<compile_context>
chip_gen: v5e
topology: v5e:2x2
jax: 0.10.0
libtpu: 0.0.40
codegen_flags: <defaults>
</compile_context>

<pallas_src>
import math

import jax
import jax.numpy as jnp
from jax.experimental import pallas as pl
from jax.experimental.pallas import tpu as pltpu


def _make_kernel(H, W, C, CP, B, NR, res_scale):
    HW = H * W
    shift = B - W - 1          # flat row offset of tap (kh, kw) is kh*W + kw + shift

    def kernel(x_ref, m_ref, w1_ref, b1_ref, w2_ref, b2_ref, o_ref, xp_s, mid_s):
        # x_ref: (1, HW, C) f32   m_ref: (HW, 2) bf16 column masks
        # xp_s:  (NR, C)  bf16 padded input      mid_s: (NR, CP) bf16 padded ReLU(conv1)
        x32 = x_ref[0]                                        # (HW, C) f32

        # Zero only the small top/bottom halo rows (interiors are fully overwritten
        # every step -> megacore-safe, no full-buffer zero passes).
        top = B
        bot = NR - B - HW
        xp_s[pl.ds(0, top), :] = jnp.zeros((top, C), xp_s.dtype)
        xp_s[pl.ds(B + HW, bot), :] = jnp.zeros((bot, C), xp_s.dtype)
        mid_s[pl.ds(0, top), :] = jnp.zeros((top, CP), mid_s.dtype)
        mid_s[pl.ds(B + HW, bot), :] = jnp.zeros((bot, CP), mid_s.dtype)

        # Interior: row-major flat image == one contiguous, sublane-aligned block copy.
        xp_s[pl.ds(B, HW), :] = x32.astype(xp_s.dtype)

        # Column masks killing the wrap-around reads of the flat (no width halo) layout.
        keep_l = m_ref[:, 0:1]        # 0 where (pixel % W) == 0      -> kw == 0 taps
        keep_r = m_ref[:, 1:2]        # 0 where (pixel % W) == W - 1  -> kw == 2 taps

        def conv3x3(src, w_ref, b_ref):
            acc = jnp.zeros((HW, CP), jnp.float32)
            for t in range(9):
                kh, kw = divmod(t, 3)
                # Pure sublane-offset slice: zero relayout per tap.
                lhs = src[pl.ds(kh * W + kw + shift, HW), :]          # (HW, K) bf16
                if kw == 0:
                    lhs = lhs * keep_l
                elif kw == 2:
                    lhs = lhs * keep_r
                acc += jnp.dot(lhs, w_ref[t], preferred_element_type=jnp.float32)
            return acc + b_ref[...]                                    # f32 bias add

        # conv1 + bias + ReLU in f32; store bf16.  Lanes >= C are exact zeros
        # (weights/bias zero-padded), so conv2 can use the full 128-lane K dim.
        y1 = jnp.maximum(conv3x3(xp_s, w1_ref, b1_ref), 0.0)
        mid_s[pl.ds(B, HW), :] = y1.astype(mid_s.dtype)

        # conv2 + bias (no activation); residual add in f32 with the exact f32 input.
        y2 = conv3x3(mid_s, w2_ref, b2_ref)
        o_ref[0] = (x32 + res_scale * y2[:, :C]).astype(o_ref.dtype)

    return kernel


def pack_params(params):
    """One-time weight packing (kept out of the per-call path).

    OIHW weights -> (tap, Cin, Cout_padded) bf16 with Cout (and conv2's Cin) zero-padded
    to a full 128-lane tile; biases -> (1, Cout_padded) f32.
    """
    w1, b1, w2, b2 = params                         # (C,C,3,3) OIHW, (C,)
    C = w1.shape[0]
    CP = max(128, ((C + 127) // 128) * 128)

    def conv_w(w, kin_pad):
        wt = jnp.transpose(w, (2, 3, 1, 0)).reshape(9, C, C).astype(jnp.bfloat16)
        return jnp.zeros((9, kin_pad, CP), jnp.bfloat16).at[:, :C, :C].set(wt)

    w1p = conv_w(w1, C)       # conv1: K = C (true input channels), N = CP
    w2p = conv_w(w2, CP)      # conv2: K = CP (mid lanes >= C are exact zeros)
    b1p = jnp.zeros((1, CP), jnp.float32).at[0, :C].set(b1)
    b2p = jnp.zeros((1, CP), jnp.float32).at[0, :C].set(b2)
    return w1p, b1p, w2p, b2p


def residual_block_nobn_nhwc(x_flat, packed, H, W, res_scale=1.0):
    """x_flat: (N, H*W, C) f32 channels-last activations.  Returns same layout."""
    w1p, b1p, w2p, b2p = packed
    N, HW, C = x_flat.shape
    CP = w1p.shape[-1]

    B = ((W + 1 + 7) // 8) * 8                       # sublane-aligned interior offset
    NR = ((B + HW + W + 1 + 7) // 8) * 8             # covers max tap read index

    # Edge-column masks (constant data; computed outside the kernel).
    col = jnp.arange(HW, dtype=jnp.int32) % W
    edge_mask = jnp.stack([col != 0, col != (W - 1)], axis=-1).astype(jnp.bfloat16)

    kernel = _make_kernel(H, W, C, CP, B, NR, float(res_scale))

    return pl.pallas_call(
        kernel,
        out_shape=jax.ShapeDtypeStruct((N, HW, C), jnp.float32),
        grid_spec=pltpu.PrefetchScalarGridSpec(
            num_scalar_prefetch=0,
            grid=(N,),
            in_specs=[
                pl.BlockSpec((1, HW, C), lambda n: (n, 0, 0)),
                pl.BlockSpec((HW, 2), lambda n: (0, 0)),
                pl.BlockSpec((9, C, CP), lambda n: (0, 0, 0)),
                pl.BlockSpec((1, CP), lambda n: (0, 0)),
                pl.BlockSpec((9, CP, CP), lambda n: (0, 0, 0)),
                pl.BlockSpec((1, CP), lambda n: (0, 0)),
            ],
            out_specs=pl.BlockSpec((1, HW, C), lambda n: (n, 0, 0)),
            scratch_shapes=[
                pltpu.VMEM((NR, C), jnp.bfloat16),    # padded input (flat, channels-last)
                pltpu.VMEM((NR, CP), jnp.bfloat16),   # padded ReLU(conv1(x))
            ],
        ),
        compiler_params=pltpu.CompilerParams(
            dimension_semantics=("parallel",),
        ),
    )(x_flat, edge_mask, w1p, b1p, w2p, b2p)


def residual_block_nobn(x_nchw, params, res_scale=1.0):
    """NCHW/OIHW adapter (PyTorch layout).  A real network would keep the packed
    (N, H*W, C) layout end-to-end and call pack_params once at init."""
    N, C, H, W = x_nchw.shape
    x_flat = jnp.transpose(x_nchw, (0, 2, 3, 1)).reshape(N, H * W, C)
    packed = pack_params(params)
    out_flat = residual_block_nobn_nhwc(x_flat, packed, H, W, res_scale=res_scale)
    out = out_flat.reshape(N, H, W, C)
    return jnp.transpose(out, (0, 3, 1, 2))


def init_params(key, num_feat, scale=0.1):
    """Synthetic init matching nn.Conv2d shapes (OIHW weights, (O,) bias).

    Mimics default_init_weights(kaiming_normal * 0.1); biases are nonzero here so the
    bias path is actually validated.
    """
    k1, k2, k3, k4 = jax.random.split(key, 4)
    std = math.sqrt(2.0 / (num_feat * 9)) * scale
    w1 = jax.random.normal(k1, (num_feat, num_feat, 3, 3), jnp.float32) * std
    w2 = jax.random.normal(k2, (num_feat, num_feat, 3, 3), jnp.float32) * std
    b1 = jax.random.normal(k3, (num_feat,), jnp.float32) * 0.05
    b2 = jax.random.normal(k4, (num_feat,), jnp.float32) * 0.05
    return (w1, b1, w2, b2)


def _reference(x_nchw, params, res_scale=1.0):
    """Pure-JAX f32 reference with the same semantics as the PyTorch module."""
    w1, b1, w2, b2 = params

    def conv(z, w, b):
        y = jax.lax.conv_general_dilated(
            z, w, window_strides=(1, 1), padding=((1, 1), (1, 1)),
            dimension_numbers=("NCHW", "OIHW", "NCHW"))
        return y + b.reshape(1, -1, 1, 1)

    y = jnp.maximum(conv(x_nchw, w1, b1), 0.0)   # ReLU
    y = conv(y, w2, b2)                          # no activation after conv2
    return x_nchw + res_scale * y                # residual add


if __name__ == "__main__":
    key = jax.random.PRNGKey(0)
    kx, kp = jax.random.split(key)

    N, C, H, W = 2, 8, 16, 16
    x = jax.random.normal(kx, (N, C, H, W), jnp.float32)
    params = init_params(kp, C)
    res_scale = 1.0

    out = residual_block_nobn(x, params, res_scale=res_scale)
    out = jax.block_until_ready(out)

    ref = _reference(x, params, res_scale=res_scale)
    assert out.shape == (N, C, H, W)
    max_err = float(jnp.max(jnp.abs(out - ref)))
    # bf16 matmul operands with f32 accumulation -> loosened (but still meaningful) tol.
    assert jnp.allclose(out, ref, atol=5e-3, rtol=5e-3), f"mismatch vs reference (max abs err {max_err})"

    print("KERNEL_OK")
</pallas_src>

<mosaic_0001>
module attributes {stable_mosaic.version = 11 : i64} {
  func.func @kernel(%arg0: i32, %arg1: memref<1x256x8xf32, #tpu.memory_space<vmem>>, %arg2: memref<256x2xbf16, #tpu.memory_space<vmem>>, %arg3: memref<9x8x128xbf16, #tpu.memory_space<vmem>>, %arg4: memref<1x128xf32, #tpu.memory_space<vmem>>, %arg5: memref<9x128x128xbf16, #tpu.memory_space<vmem>>, %arg6: memref<1x128xf32, #tpu.memory_space<vmem>>, %arg7: memref<1x256x8xf32, #tpu.memory_space<vmem>>, %arg8: memref<304x8xbf16, #tpu.memory_space<vmem>>, %arg9: memref<304x128xbf16, #tpu.memory_space<vmem>>) attributes {dimension_semantics = [#tpu.dimension_semantics<parallel>], iteration_bounds = array<i64: 2>, scalar_prefetch = 0 : i64, scratch_operands = 2 : i64, tpu.core_type = #tpu.core_type<tc>, window_params = [{transform_indices = @transform_0, window_bounds = array<i64: 1, 256, 8>}, {pipeline_mode = #tpu.pipeline_mode<synchronous>, transform_indices = @transform_1, window_bounds = array<i64: 256, 2>}, {pipeline_mode = #tpu.pipeline_mode<synchronous>, transform_indices = @transform_2, window_bounds = array<i64: 9, 8, 128>}, {pipeline_mode = #tpu.pipeline_mode<synchronous>, transform_indices = @transform_3, window_bounds = array<i64: 1, 128>}, {pipeline_mode = #tpu.pipeline_mode<synchronous>, transform_indices = @transform_4, window_bounds = array<i64: 9, 128, 128>}, {pipeline_mode = #tpu.pipeline_mode<synchronous>, transform_indices = @transform_5, window_bounds = array<i64: 1, 128>}, {transform_indices = @transform_6, window_bounds = array<i64: 1, 256, 8>}]} {
    %c0 = arith.constant 0 : index
    %c0_0 = arith.constant 0 : index
    %c0_1 = arith.constant 0 : index
    %0 = vector.load %arg1[%c0, %c0_0, %c0_1] : memref<1x256x8xf32, #tpu.memory_space<vmem>>, vector<1x256x8xf32>
    %1 = vector.shape_cast %0 : vector<1x256x8xf32> to vector<256x8xf32>
    %cst = arith.constant 0.000000e+00 : bf16
    %2 = vector.broadcast %cst : bf16 to vector<24x8xbf16>
    %c0_2 = arith.constant 0 : index
    %c0_3 = arith.constant 0 : index
    %3 = vector.load %arg8[%c0_2, %c0_3] : memref<304x8xbf16, #tpu.memory_space<vmem>>, vector<24x8xbf16>
    tpu.vector_store %arg8[%c0_2, %c0_3], %2 {strides = array<i32>} : memref<304x8xbf16, #tpu.memory_space<vmem>>, vector<24x8xbf16>,
    %cst_4 = arith.constant 0.000000e+00 : bf16
    %4 = vector.broadcast %cst_4 : bf16 to vector<24x8xbf16>
    %c280 = arith.constant 280 : index
    %c0_5 = arith.constant 0 : index
    %5 = vector.load %arg8[%c280, %c0_5] : memref<304x8xbf16, #tpu.memory_space<vmem>>, vector<24x8xbf16>
    tpu.vector_store %arg8[%c280, %c0_5], %4 {strides = array<i32>} : memref<304x8xbf16, #tpu.memory_space<vmem>>, vector<24x8xbf16>,
    %cst_6 = arith.constant 0.000000e+00 : bf16
    %6 = vector.broadcast %cst_6 : bf16 to vector<24x128xbf16>
    %c0_7 = arith.constant 0 : index
    %c0_8 = arith.constant 0 : index
    %7 = vector.load %arg9[%c0_7, %c0_8] : memref<304x128xbf16, #tpu.memory_space<vmem>>, vector<24x128xbf16>
    tpu.vector_store %arg9[%c0_7, %c0_8], %6 {strides = array<i32>} : memref<304x128xbf16, #tpu.memory_space<vmem>>, vector<24x128xbf16>,
    %cst_9 = arith.constant 0.000000e+00 : bf16
    %8 = vector.broadcast %cst_9 : bf16 to vector<24x128xbf16>
    %c280_10 = arith.constant 280 : index
    %c0_11 = arith.constant 0 : index
    %9 = vector.load %arg9[%c280_10, %c0_11] : memref<304x128xbf16, #tpu.memory_space<vmem>>, vector<24x128xbf16>
    tpu.vector_store %arg9[%c280_10, %c0_11], %8 {strides = array<i32>} : memref<304x128xbf16, #tpu.memory_space<vmem>>, vector<24x128xbf16>,
    %10 = arith.truncf %1 : vector<256x8xf32> to vector<256x8xbf16>
    %c24 = arith.constant 24 : index
    %c0_12 = arith.constant 0 : index
    %11 = vector.load %arg8[%c24, %c0_12] : memref<304x8xbf16, #tpu.memory_space<vmem>>, vector<256x8xbf16>
    tpu.vector_store %arg8[%c24, %c0_12], %10 {strides = array<i32>} : memref<304x8xbf16, #tpu.memory_space<vmem>>, vector<256x8xbf16>,
    %c0_13 = arith.constant 0 : index
    %c0_14 = arith.constant 0 : index
    %12 = vector.load %arg2[%c0_13, %c0_14] : memref<256x2xbf16, #tpu.memory_space<vmem>>, vector<256x1xbf16>
    %c0_15 = arith.constant 0 : index
    %c1 = arith.constant 1 : index
    %13 = vector.load %arg2[%c0_15, %c1] : memref<256x2xbf16, #tpu.memory_space<vmem>>, vector<256x1xbf16>
    %cst_16 = arith.constant 0.000000e+00 : f32
    %14 = vector.broadcast %cst_16 : f32 to vector<256x128xf32>
    %c7 = arith.constant 7 : index
    %c0_17 = arith.constant 0 : index
    %15 = vector.load %arg8[%c7, %c0_17] : memref<304x8xbf16, #tpu.memory_space<vmem>>, vector<256x8xbf16>
    %16 = vector.broadcast %12 : vector<256x1xbf16> to vector<256x8xbf16>
    %17 = arith.mulf %15, %16 : vector<256x8xbf16>
    %c0_18 = arith.constant 0 : index
    %c0_19 = arith.constant 0 : index
    %c0_20 = arith.constant 0 : index
    %18 = vector.load %arg3[%c0_18, %c0_19, %c0_20] : memref<9x8x128xbf16, #tpu.memory_space<vmem>>, vector<1x8x128xbf16>
    %19 = vector.shape_cast %18 : vector<1x8x128xbf16> to vector<8x128xbf16>
    %cst_21 = arith.constant dense<0.000000e+00> : vector<256x128xf32>
    %20 = tpu.matmul %17, %19, %cst_21 {dimension_numbers = #tpu.dot_dimension_numbers<[1], [0], [0], [1], [0, 0, 1, 1], [], []>} : vector<256x8xbf16>, vector<8x128xbf16>, vector<256x128xf32> -> vector<256x128xf32>
    %21 = arith.addf %14, %20 : vector<256x128xf32>
    %c8 = arith.constant 8 : index
    %c0_22 = arith.constant 0 : index
    %22 = vector.load %arg8[%c8, %c0_22] : memref<304x8xbf16, #tpu.memory_space<vmem>>, vector<256x8xbf16>
    %c1_23 = arith.constant 1 : index
    %c0_24 = arith.constant 0 : index
    %c0_25 = arith.constant 0 : index
    %23 = vector.load %arg3[%c1_23, %c0_24, %c0_25] : memref<9x8x128xbf16, #tpu.memory_space<vmem>>, vector<1x8x128xbf16>
    %24 = vector.shape_cast %23 : vector<1x8x128xbf16> to vector<8x128xbf16>
    %cst_26 = arith.constant dense<0.000000e+00> : vector<256x128xf32>
    %25 = tpu.matmul %22, %24, %cst_26 {dimension_numbers = #tpu.dot_dimension_numbers<[1], [0], [0], [1], [0, 0, 1, 1], [], []>} : vector<256x8xbf16>, vector<8x128xbf16>, vector<256x128xf32> -> vector<256x128xf32>
    %26 = arith.addf %21, %25 : vector<256x128xf32>
    %c9 = arith.constant 9 : index
    %c0_27 = arith.constant 0 : index
    %27 = vector.load %arg8[%c9, %c0_27] : memref<304x8xbf16, #tpu.memory_space<vmem>>, vector<256x8xbf16>
    %28 = vector.broadcast %13 : vector<256x1xbf16> to vector<256x8xbf16>
    %29 = arith.mulf %27, %28 : vector<256x8xbf16>
    %c2 = arith.constant 2 : index
    %c0_28 = arith.constant 0 : index
    %c0_29 = arith.constant 0 : index
    %30 = vector.load %arg3[%c2, %c0_28, %c0_29] : memref<9x8x128xbf16, #tpu.memory_space<vmem>>, vector<1x8x128xbf16>
    %31 = vector.shape_cast %30 : vector<1x8x128xbf16> to vector<8x128xbf16>
    %cst_30 = arith.constant dense<0.000000e+00> : vector<256x128xf32>
    %32 = tpu.matmul %29, %31, %cst_30 {dimension_numbers = #tpu.dot_dimension_numbers<[1], [0], [0], [1], [0, 0, 1, 1], [], []>} : vector<256x8xbf16>, vector<8x128xbf16>, vector<256x128xf32> -> vector<256x128xf32>
    %33 = arith.addf %26, %32 : vector<256x128xf32>
    %c23 = arith.constant 23 : index
    %c0_31 = arith.constant 0 : index
    %34 = vector.load %arg8[%c23, %c0_31] : memref<304x8xbf16, #tpu.memory_space<vmem>>, vector<256x8xbf16>
    %35 = vector.broadcast %12 : vector<256x1xbf16> to vector<256x8xbf16>
    %36 = arith.mulf %34, %35 : vector<256x8xbf16>
    %c3 = arith.constant 3 : index
    %c0_32 = arith.constant 0 : index
    %c0_33 = arith.constant 0 : index
    %37 = vector.load %arg3[%c3, %c0_32, %c0_33] : memref<9x8x128xbf16, #tpu.memory_space<vmem>>, vector<1x8x128xbf16>
    %38 = vector.shape_cast %37 : vector<1x8x128xbf16> to vector<8x128xbf16>
    %cst_34 = arith.constant dense<0.000000e+00> : vector<256x128xf32>
    %39 = tpu.matmul %36, %38, %cst_34 {dimension_numbers = #tpu.dot_dimension_numbers<[1], [0], [0], [1], [0, 0, 1, 1], [], []>} : vector<256x8xbf16>, vector<8x128xbf16>, vector<256x128xf32> -> vector<256x128xf32>
    %40 = arith.addf %33, %39 : vector<256x128xf32>
    %c24_35 = arith.constant 24 : index
    %c0_36 = arith.constant 0 : index
    %41 = vector.load %arg8[%c24_35, %c0_36] : memref<304x8xbf16, #tpu.memory_space<vmem>>, vector<256x8xbf16>
    %c4 = arith.constant 4 : index
    %c0_37 = arith.constant 0 : index
    %c0_38 = arith.constant 0 : index
    %42 = vector.load %arg3[%c4, %c0_37, %c0_38] : memref<9x8x128xbf16, #tpu.memory_space<vmem>>, vector<1x8x128xbf16>
    %43 = vector.shape_cast %42 : vector<1x8x128xbf16> to vector<8x128xbf16>
    %cst_39 = arith.constant dense<0.000000e+00> : vector<256x128xf32>
    %44 = tpu.matmul %41, %43, %cst_39 {dimension_numbers = #tpu.dot_dimension_numbers<[1], [0], [0], [1], [0, 0, 1, 1], [], []>} : vector<256x8xbf16>, vector<8x128xbf16>, vector<256x128xf32> -> vector<256x128xf32>
    %45 = arith.addf %40, %44 : vector<256x128xf32>
    %c25 = arith.constant 25 : index
    %c0_40 = arith.constant 0 : index
    %46 = vector.load %arg8[%c25, %c0_40] : memref<304x8xbf16, #tpu.memory_space<vmem>>, vector<256x8xbf16>
    %47 = vector.broadcast %13 : vector<256x1xbf16> to vector<256x8xbf16>
    %48 = arith.mulf %46, %47 : vector<256x8xbf16>
    %c5 = arith.constant 5 : index
    %c0_41 = arith.constant 0 : index
    %c0_42 = arith.constant 0 : index
    %49 = vector.load %arg3[%c5, %c0_41, %c0_42] : memref<9x8x128xbf16, #tpu.memory_space<vmem>>, vector<1x8x128xbf16>
    %50 = vector.shape_cast %49 : vector<1x8x128xbf16> to vector<8x128xbf16>
    %cst_43 = arith.constant dense<0.000000e+00> : vector<256x128xf32>
    %51 = tpu.matmul %48, %50, %cst_43 {dimension_numbers = #tpu.dot_dimension_numbers<[1], [0], [0], [1], [0, 0, 1, 1], [], []>} : vector<256x8xbf16>, vector<8x128xbf16>, vector<256x128xf32> -> vector<256x128xf32>
    %52 = arith.addf %45, %51 : vector<256x128xf32>
    %c39 = arith.constant 39 : index
    %c0_44 = arith.constant 0 : index
    %53 = vector.load %arg8[%c39, %c0_44] : memref<304x8xbf16, #tpu.memory_space<vmem>>, vector<256x8xbf16>
    %54 = vector.broadcast %12 : vector<256x1xbf16> to vector<256x8xbf16>
    %55 = arith.mulf %53, %54 : vector<256x8xbf16>
    %c6 = arith.constant 6 : index
    %c0_45 = arith.constant 0 : index
    %c0_46 = arith.constant 0 : index
    %56 = vector.load %arg3[%c6, %c0_45, %c0_46] : memref<9x8x128xbf16, #tpu.memory_space<vmem>>, vector<1x8x128xbf16>
    %57 = vector.shape_cast %56 : vector<1x8x128xbf16> to vector<8x128xbf16>
    %cst_47 = arith.constant dense<0.000000e+00> : vector<256x128xf32>
    %58 = tpu.matmul %55, %57, %cst_47 {dimension_numbers = #tpu.dot_dimension_numbers<[1], [0], [0], [1], [0, 0, 1, 1], [], []>} : vector<256x8xbf16>, vector<8x128xbf16>, vector<256x128xf32> -> vector<256x128xf32>
    %59 = arith.addf %52, %58 : vector<256x128xf32>
    %c40 = arith.constant 40 : index
    %c0_48 = arith.constant 0 : index
    %60 = vector.load %arg8[%c40, %c0_48] : memref<304x8xbf16, #tpu.memory_space<vmem>>, vector<256x8xbf16>
    %c7_49 = arith.constant 7 : index
    %c0_50 = arith.constant 0 : index
    %c0_51 = arith.constant 0 : index
    %61 = vector.load %arg3[%c7_49, %c0_50, %c0_51] : memref<9x8x128xbf16, #tpu.memory_space<vmem>>, vector<1x8x128xbf16>
    %62 = vector.shape_cast %61 : vector<1x8x128xbf16> to vector<8x128xbf16>
    %cst_52 = arith.constant dense<0.000000e+00> : vector<256x128xf32>
    %63 = tpu.matmul %60, %62, %cst_52 {dimension_numbers = #tpu.dot_dimension_numbers<[1], [0], [0], [1], [0, 0, 1, 1], [], []>} : vector<256x8xbf16>, vector<8x128xbf16>, vector<256x128xf32> -> vector<256x128xf32>
    %64 = arith.addf %59, %63 : vector<256x128xf32>
    %c41 = arith.constant 41 : index
    %c0_53 = arith.constant 0 : index
    %65 = vector.load %arg8[%c41, %c0_53] : memref<304x8xbf16, #tpu.memory_space<vmem>>, vector<256x8xbf16>
    %66 = vector.broadcast %13 : vector<256x1xbf16> to vector<256x8xbf16>
    %67 = arith.mulf %65, %66 : vector<256x8xbf16>
    %c8_54 = arith.constant 8 : index
    %c0_55 = arith.constant 0 : index
    %c0_56 = arith.constant 0 : index
    %68 = vector.load %arg3[%c8_54, %c0_55, %c0_56] : memref<9x8x128xbf16, #tpu.memory_space<vmem>>, vector<1x8x128xbf16>
    %69 = vector.shape_cast %68 : vector<1x8x128xbf16> to vector<8x128xbf16>
    %cst_57 = arith.constant dense<0.000000e+00> : vector<256x128xf32>
    %70 = tpu.matmul %67, %69, %cst_57 {dimension_numbers = #tpu.dot_dimension_numbers<[1], [0], [0], [1], [0, 0, 1, 1], [], []>} : vector<256x8xbf16>, vector<8x128xbf16>, vector<256x128xf32> -> vector<256x128xf32>
    %71 = arith.addf %64, %70 : vector<256x128xf32>
    %c0_58 = arith.constant 0 : index
    %c0_59 = arith.constant 0 : index
    %72 = vector.load %arg4[%c0_58, %c0_59] : memref<1x128xf32, #tpu.memory_space<vmem>>, vector<1x128xf32>
    %73 = vector.broadcast %72 : vector<1x128xf32> to vector<256x128xf32>
    %74 = arith.addf %71, %73 : vector<256x128xf32>
    %cst_60 = arith.constant 0.000000e+00 : f32
    %75 = vector.broadcast %cst_60 : f32 to vector<256x128xf32>
    %76 = arith.maximumf %74, %75 : vector<256x128xf32>
    %77 = arith.truncf %76 : vector<256x128xf32> to vector<256x128xbf16>
    %c24_61 = arith.constant 24 : index
    %c0_62 = arith.constant 0 : index
    %78 = vector.load %arg9[%c24_61, %c0_62] : memref<304x128xbf16, #tpu.memory_space<vmem>>, vector<256x128xbf16>
    tpu.vector_store %arg9[%c24_61, %c0_62], %77 {strides = array<i32>} : memref<304x128xbf16, #tpu.memory_space<vmem>>, vector<256x128xbf16>,
    %cst_63 = arith.constant 0.000000e+00 : f32
    %79 = vector.broadcast %cst_63 : f32 to vector<256x128xf32>
    %c7_64 = arith.constant 7 : index
    %c0_65 = arith.constant 0 : index
    %80 = vector.load %arg9[%c7_64, %c0_65] : memref<304x128xbf16, #tpu.memory_space<vmem>>, vector<256x128xbf16>
    %81 = vector.broadcast %12 : vector<256x1xbf16> to vector<256x128xbf16>
    %82 = arith.mulf %80, %81 : vector<256x128xbf16>
    %c0_66 = arith.constant 0 : index
    %c0_67 = arith.constant 0 : index
    %c0_68 = arith.constant 0 : index
    %83 = vector.load %arg5[%c0_66, %c0_67, %c0_68] : memref<9x128x128xbf16, #tpu.memory_space<vmem>>, vector<1x128x128xbf16>
    %84 = vector.shape_cast %83 : vector<1x128x128xbf16> to vector<128x128xbf16>
    %cst_69 = arith.constant dense<0.000000e+00> : vector<256x128xf32>
    %85 = tpu.matmul %82, %84, %cst_69 {dimension_numbers = #tpu.dot_dimension_numbers<[1], [0], [0], [1], [0, 0, 1, 1], [], []>} : vector<256x128xbf16>, vector<128x128xbf16>, vector<256x128xf32> -> vector<256x128xf32>
    %86 = arith.addf %79, %85 : vector<256x128xf32>
    %c8_70 = arith.constant 8 : index
    %c0_71 = arith.constant 0 : index
    %87 = vector.load %arg9[%c8_70, %c0_71] : memref<304x128xbf16, #tpu.memory_space<vmem>>, vector<256x128xbf16>
    %c1_72 = arith.constant 1 : index
    %c0_73 = arith.constant 0 : index
    %c0_74 = arith.constant 0 : index
    %88 = vector.load %arg5[%c1_72, %c0_73, %c0_74] : memref<9x128x128xbf16, #tpu.memory_space<vmem>>, vector<1x128x128xbf16>
    %89 = vector.shape_cast %88 : vector<1x128x128xbf16> to vector<128x128xbf16>
    %cst_75 = arith.constant dense<0.000000e+00> : vector<256x128xf32>
    %90 = tpu.matmul %87, %89, %cst_75 {dimension_numbers = #tpu.dot_dimension_numbers<[1], [0], [0], [1], [0, 0, 1, 1], [], []>} : vector<256x128xbf16>, vector<128x128xbf16>, vector<256x128xf32> -> vector<256x128xf32>
    %91 = arith.addf %86, %90 : vector<256x128xf32>
    %c9_76 = arith.constant 9 : index
    %c0_77 = arith.constant 0 : index
    %92 = vector.load %arg9[%c9_76, %c0_77] : memref<304x128xbf16, #tpu.memory_space<vmem>>, vector<256x128xbf16>
    %93 = vector.broadcast %13 : vector<256x1xbf16> to vector<256x128xbf16>
    %94 = arith.mulf %92, %93 : vector<256x128xbf16>
    %c2_78 = arith.constant 2 : index
    %c0_79 = arith.constant 0 : index
    %c0_80 = arith.constant 0 : index
    %95 = vector.load %arg5[%c2_78, %c0_79, %c0_80] : memref<9x128x128xbf16, #tpu.memory_space<vmem>>, vector<1x128x128xbf16>
    %96 = vector.shape_cast %95 : vector<1x128x128xbf16> to vector<128x128xbf16>
    %cst_81 = arith.constant dense<0.000000e+00> : vector<256x128xf32>
    %97 = tpu.matmul %94, %96, %cst_81 {dimension_numbers = #tpu.dot_dimension_numbers<[1], [0], [0], [1], [0, 0, 1, 1], [], []>} : vector<256x128xbf16>, vector<128x128xbf16>, vector<256x128xf32> -> vector<256x128xf32>
    %98 = arith.addf %91, %97 : vector<256x128xf32>
    %c23_82 = arith.constant 23 : index
    %c0_83 = arith.constant 0 : index
    %99 = vector.load %arg9[%c23_82, %c0_83] : memref<304x128xbf16, #tpu.memory_space<vmem>>, vector<256x128xbf16>
    %100 = vector.broadcast %12 : vector<256x1xbf16> to vector<256x128xbf16>
    %101 = arith.mulf %99, %100 : vector<256x128xbf16>
    %c3_84 = arith.constant 3 : index
    %c0_85 = arith.constant 0 : index
    %c0_86 = arith.constant 0 : index
    %102 = vector.load %arg5[%c3_84, %c0_85, %c0_86] : memref<9x128x128xbf16, #tpu.memory_space<vmem>>, vector<1x128x128xbf16>
    %103 = vector.shape_cast %102 : vector<1x128x128xbf16> to vector<128x128xbf16>
    %cst_87 = arith.constant dense<0.000000e+00> : vector<256x128xf32>
    %104 = tpu.matmul %101, %103, %cst_87 {dimension_numbers = #tpu.dot_dimension_numbers<[1], [0], [0], [1], [0, 0, 1, 1], [], []>} : vector<256x128xbf16>, vector<128x128xbf16>, vector<256x128xf32> -> vector<256x128xf32>
    %105 = arith.addf %98, %104 : vector<256x128xf32>
    %c24_88 = arith.constant 24 : index
    %c0_89 = arith.constant 0 : index
    %106 = vector.load %arg9[%c24_88, %c0_89] : memref<304x128xbf16, #tpu.memory_space<vmem>>, vector<256x128xbf16>
    %c4_90 = arith.constant 4 : index
    %c0_91 = arith.constant 0 : index
    %c0_92 = arith.constant 0 : index
    %107 = vector.load %arg5[%c4_90, %c0_91, %c0_92] : memref<9x128x128xbf16, #tpu.memory_space<vmem>>, vector<1x128x128xbf16>
    %108 = vector.shape_cast %107 : vector<1x128x128xbf16> to vector<128x128xbf16>
    %cst_93 = arith.constant dense<0.000000e+00> : vector<256x128xf32>
    %109 = tpu.matmul %106, %108, %cst_93 {dimension_numbers = #tpu.dot_dimension_numbers<[1], [0], [0], [1], [0, 0, 1, 1], [], []>} : vector<256x128xbf16>, vector<128x128xbf16>, vector<256x128xf32> -> vector<256x128xf32>
    %110 = arith.addf %105, %109 : vector<256x128xf32>
    %c25_94 = arith.constant 25 : index
    %c0_95 = arith.constant 0 : index
    %111 = vector.load %arg9[%c25_94, %c0_95] : memref<304x128xbf16, #tpu.memory_space<vmem>>, vector<256x128xbf16>
    %112 = vector.broadcast %13 : vector<256x1xbf16> to vector<256x128xbf16>
    %113 = arith.mulf %111, %112 : vector<256x128xbf16>
    %c5_96 = arith.constant 5 : index
    %c0_97 = arith.constant 0 : index
    %c0_98 = arith.constant 0 : index
    %114 = vector.load %arg5[%c5_96, %c0_97, %c0_98] : memref<9x128x128xbf16, #tpu.memory_space<vmem>>, vector<1x128x128xbf16>
    %115 = vector.shape_cast %114 : vector<1x128x128xbf16> to vector<128x128xbf16>
    %cst_99 = arith.constant dense<0.000000e+00> : vector<256x128xf32>
    %116 = tpu.matmul %113, %115, %cst_99 {dimension_numbers = #tpu.dot_dimension_numbers<[1], [0], [0], [1], [0, 0, 1, 1], [], []>} : vector<256x128xbf16>, vector<128x128xbf16>, vector<256x128xf32> -> vector<256x128xf32>
    %117 = arith.addf %110, %116 : vector<256x128xf32>
    %c39_100 = arith.constant 39 : index
    %c0_101 = arith.constant 0 : index
    %118 = vector.load %arg9[%c39_100, %c0_101] : memref<304x128xbf16, #tpu.memory_space<vmem>>, vector<256x128xbf16>
    %119 = vector.broadcast %12 : vector<256x1xbf16> to vector<256x128xbf16>
    %120 = arith.mulf %118, %119 : vector<256x128xbf16>
    %c6_102 = arith.constant 6 : index
    %c0_103 = arith.constant 0 : index
    %c0_104 = arith.constant 0 : index
    %121 = vector.load %arg5[%c6_102, %c0_103, %c0_104] : memref<9x128x128xbf16, #tpu.memory_space<vmem>>, vector<1x128x128xbf16>
    %122 = vector.shape_cast %121 : vector<1x128x128xbf16> to vector<128x128xbf16>
    %cst_105 = arith.constant dense<0.000000e+00> : vector<256x128xf32>
    %123 = tpu.matmul %120, %122, %cst_105 {dimension_numbers = #tpu.dot_dimension_numbers<[1], [0], [0], [1], [0, 0, 1, 1], [], []>} : vector<256x128xbf16>, vector<128x128xbf16>, vector<256x128xf32> -> vector<256x128xf32>
    %124 = arith.addf %117, %123 : vector<256x128xf32>
    %c40_106 = arith.constant 40 : index
    %c0_107 = arith.constant 0 : index
    %125 = vector.load %arg9[%c40_106, %c0_107] : memref<304x128xbf16, #tpu.memory_space<vmem>>, vector<256x128xbf16>
    %c7_108 = arith.constant 7 : index
    %c0_109 = arith.constant 0 : index
    %c0_110 = arith.constant 0 : index
    %126 = vector.load %arg5[%c7_108, %c0_109, %c0_110] : memref<9x128x128xbf16, #tpu.memory_space<vmem>>, vector<1x128x128xbf16>
    %127 = vector.shape_cast %126 : vector<1x128x128xbf16> to vector<128x128xbf16>
    %cst_111 = arith.constant dense<0.000000e+00> : vector<256x128xf32>
    %128 = tpu.matmul %125, %127, %cst_111 {dimension_numbers = #tpu.dot_dimension_numbers<[1], [0], [0], [1], [0, 0, 1, 1], [], []>} : vector<256x128xbf16>, vector<128x128xbf16>, vector<256x128xf32> -> vector<256x128xf32>
    %129 = arith.addf %124, %128 : vector<256x128xf32>
    %c41_112 = arith.constant 41 : index
    %c0_113 = arith.constant 0 : index
    %130 = vector.load %arg9[%c41_112, %c0_113] : memref<304x128xbf16, #tpu.memory_space<vmem>>, vector<256x128xbf16>
    %131 = vector.broadcast %13 : vector<256x1xbf16> to vector<256x128xbf16>
    %132 = arith.mulf %130, %131 : vector<256x128xbf16>
    %c8_114 = arith.constant 8 : index
    %c0_115 = arith.constant 0 : index
    %c0_116 = arith.constant 0 : index
    %133 = vector.load %arg5[%c8_114, %c0_115, %c0_116] : memref<9x128x128xbf16, #tpu.memory_space<vmem>>, vector<1x128x128xbf16>
    %134 = vector.shape_cast %133 : vector<1x128x128xbf16> to vector<128x128xbf16>
    %cst_117 = arith.constant dense<0.000000e+00> : vector<256x128xf32>
    %135 = tpu.matmul %132, %134, %cst_117 {dimension_numbers = #tpu.dot_dimension_numbers<[1], [0], [0], [1], [0, 0, 1, 1], [], []>} : vector<256x128xbf16>, vector<128x128xbf16>, vector<256x128xf32> -> vector<256x128xf32>
    %136 = arith.addf %129, %135 : vector<256x128xf32>
    %c0_118 = arith.constant 0 : index
    %c0_119 = arith.constant 0 : index
    %137 = vector.load %arg6[%c0_118, %c0_119] : memref<1x128xf32, #tpu.memory_space<vmem>>, vector<1x128xf32>
    %138 = vector.broadcast %137 : vector<1x128xf32> to vector<256x128xf32>
    %139 = arith.addf %136, %138 : vector<256x128xf32>
    %140 = vector.extract_strided_slice %139 {offsets = [0, 0], sizes = [256, 8], strides = [1, 1]} : vector<256x128xf32> to vector<256x8xf32>
    %cst_120 = arith.constant 1.000000e+00 : f32
    %141 = vector.broadcast %cst_120 : f32 to vector<256x8xf32>
    %142 = arith.mulf %141, %140 : vector<256x8xf32>
    %143 = arith.addf %1, %142 : vector<256x8xf32>
    %c0_121 = arith.constant 0 : index
    %c0_122 = arith.constant 0 : index
    %c0_123 = arith.constant 0 : index
    %144 = vector.load %arg7[%c0_121, %c0_122, %c0_123] : memref<1x256x8xf32, #tpu.memory_space<vmem>>, vector<1x256x8xf32>
    %145 = vector.shape_cast %144 : vector<1x256x8xf32> to vector<256x8xf32>
    %146 = vector.shape_cast %143 : vector<256x8xf32> to vector<1x256x8xf32>
    tpu.vector_store %arg7[%c0_121, %c0_122, %c0_123], %146 {strides = array<i32>} : memref<1x256x8xf32, #tpu.memory_space<vmem>>, vector<1x256x8xf32>,
    return
  }
  func.func @transform_0(%arg0: i32) -> (i32, i32, i32) {
    %c0_i32 = arith.constant 0 : i32
    %c0_i32_0 = arith.constant 0 : i32
    %c0_i32_1 = arith.constant 0 : i32
    return %arg0, %c0_i32, %c0_i32_0 : i32, i32, i32
  }
  func.func @transform_1(%arg0: i32) -> (i32, i32) {
    %c0_i32 = arith.constant 0 : i32
    %c0_i32_0 = arith.constant 0 : i32
    %c0_i32_1 = arith.constant 0 : i32
    return %c0_i32, %c0_i32_0 : i32, i32
  }
  func.func @transform_2(%arg0: i32) -> (i32, i32, i32) {
    %c0_i32 = arith.constant 0 : i32
    %c0_i32_0 = arith.constant 0 : i32
    %c0_i32_1 = arith.constant 0 : i32
    %c0_i32_2 = arith.constant 0 : i32
    return %c0_i32, %c0_i32_0, %c0_i32_1 : i32, i32, i32
  }
  func.func @transform_3(%arg0: i32) -> (i32, i32) {
    %c0_i32 = arith.constant 0 : i32
    %c0_i32_0 = arith.constant 0 : i32
    %c0_i32_1 = arith.constant 0 : i32
    return %c0_i32, %c0_i32_0 : i32, i32
  }
  func.func @transform_4(%arg0: i32) -> (i32, i32, i32) {
    %c0_i32 = arith.constant 0 : i32
    %c0_i32_0 = arith.constant 0 : i32
    %c0_i32_1 = arith.constant 0 : i32
    %c0_i32_2 = arith.constant 0 : i32
    return %c0_i32, %c0_i32_0, %c0_i32_1 : i32, i32, i32
  }
  func.func @transform_5(%arg0: i32) -> (i32, i32) {
    %c0_i32 = arith.constant 0 : i32
    %c0_i32_0 = arith.constant 0 : i32
    %c0_i32_1 = arith.constant 0 : i32
    return %c0_i32, %c0_i32_0 : i32, i32
  }
  func.func @transform_6(%arg0: i32) -> (i32, i32, i32) {
    %c0_i32 = arith.constant 0 : i32
    %c0_i32_0 = arith.constant 0 : i32
    %c0_i32_1 = arith.constant 0 : i32
    return %arg0, %c0_i32, %c0_i32_0 : i32, i32, i32
  }
}

</mosaic_0001>

<bundles_post_ra>
// kernel: tpu_custom_call.1
= control target key start
LH: loop header
LB: loop body
LE: loop exit
PB: predicated region body
PF: predicated region fallthrough
CT: control target
= control target key end

     0   :  { %s10621_s21 = smov 0   ;;  %s15218_s0 = inlined_call_operand.vmem [shape: f32[2,256,8], index: 0, kind: input, shape index: {}]   ;;  %s15219_s1 = inlined_call_operand.vmem [shape: bf16[256,2], index: 1, kind: input, shape index: {}]   ;;  %s15220_s2 = inlined_call_operand.vmem [shape: bf16[9,8,128], index: 2, kind: input, shape index: {}]   ;;  %s15221_s3 = inlined_call_operand.vmem [shape: f32[1,128], index: 3, kind: input, shape index: {}]   ;;  %s15222_s4 = inlined_call_operand.vmem [shape: bf16[9,128,128], index: 4, kind: input, shape index: {}]   ;;  %s15223_s5 = inlined_call_operand.vmem [shape: f32[1,128], index: 5, kind: input, shape index: {}]   ;;  %s15224_s6 = inlined_call_operand.vmem [shape: f32[2,256,8], index: 6, kind: output, shape index: {}]  }
   0x1 LB: > { %s8381_s22 = sadd.s32 4294967295, %s10581_s21   ;;  %p8385_p0 = scmp.ge.s32.totalorder %s10581_s21, 1  ;;  %s10581_s21 = sphi %s10621_s21, %s16_s21  }
   0x2   : > { %p212_p1 = scmp.lt.s32.totalorder %s10581_s21, 3 }
   0x4   : > { %p213_p2 = pnand %p8385_p0, %p212_p1 }
   0x6   : > { %216 = sbr.rel (%p213_p2) target bundleno = 1582 (0x62e), region = 44 }
   0xb   : > { %v10632_v0 = vld [vmem:[%s15219_s1 + $0x4c] sm:$0xf]  ;;  %v10637_v1 = vld [vmem:[%s15219_s1 + $0x44] sm:$0xf]  ;;  %vm1091_vm0 = vcmask 1043456   ;;  %v10583_v2 = vmov 0  }
   0xc   : > { %10519 = vset.pattern.permute.xlu2 %v10583_v2  ;;  %292 = vst [vmem:[#allocation3] sm:$0xf] %v10583_v2  ;;  %10518 = vset.pattern.permute.xlu1 %v10583_v2  ;;  %v10645_v3 = vld [vmem:[%s15219_s1 + $0x3c] sm:$0xf]  ;;  %v8390_v4 = vld [vmem:[%s15220_s2 + $0x4] sm:$0xf] }
   0xd   : > { %293 = vst [vmem:[#allocation3 + $0x4] sm:$0xf] %v10583_v2  ;;  %10517 = vset.pattern.permute.xlu0 %v10583_v2  ;;  %600 = vperm.xlu2 %10519, %v10632_v0   ;;  %v1093_v5 = vsel %vm1091_vm0, %v8390_v4, 0  ;;  %vm285_vm1 = vcmask 60416   ;;  %p242_p3 = scmp.lt.s32.totalorder %s8381_s22, 1  ;;  %vm1042_vm2 = vcmask 64512  }
   0xe   : > { %294 = vst [vmem:[#allocation3 + $0x8] sm:$0xf] %v10583_v2  ;;  %582 = vperm.xlu1 %10518, %v10637_v1   ;;  %564 = vperm.xlu0 %10517, %v10645_v3   ;;  %v10665_v6 = vld [vmem:[%s15219_s1 + $0x50] sm:$0xf]  ;;  %v10676_v7 = vld [vmem:[%s15219_s1 + $0x48] sm:$0xf] }
   0xf   : > { %295 = vst [vmem:[#allocation3 + $0x8c] sm:$0xf] %v10583_v2  ;;  %1102 = vmatpush.bf16.msra.mxu0 %v1093_v5  ;;  %10504 = vmatpush.bf16.msra.mxu2 %v1093_v5  ;;  %s16231_s22 = smov (!%p242_p3, %s8381_s22), 1  ;;  %v10681_v8 = vld [vmem:[%s15219_s1 + $0x40] sm:$0xf]  ;;  %v10584_v42 = vmov 1  }
  0x10   : > { %296 = vst [vmem:[#allocation3 + $0x90] sm:$0xf] %v10583_v2  ;;  %s9344_s13 = sshll.u32 %s16231_s22, 8  ;;  %v10712_v18 = vld [vmem:[%s15219_s1 + $0x5c] sm:$0xf]  ;;  %vm812_vm3 = vcmask 1046528  }
  0x11   : > { %297 = vst [vmem:[#allocation3 + $0x94] sm:$0xf] %v10583_v2  ;;  %s10696_s16 = scalar_lea.vmem %s15218_s0, %s9344_s13  ;;  %v10718_v19 = vld [vmem:[%s15219_s1 + $0x58] sm:$0xf]  ;;  %v10723_v20 = vld [vmem:[%s15219_s1 + $0x54] sm:$0xf]  ;;  %s14989_s17 = scalar_lea.vmem %s15224_s6, %s9344_s13 }
  0x12   : > { %287 = vst.msk [vmem:[#allocation2 + $0x4] sm:$0xf] %vm285_vm1, %v10583_v2  ;;  %v253_v9 = vld [vmem:[%s10696_s16] sm:$0xff]  ;;  %v254_v10 = vld [vmem:[%s10696_s16 + $0x8] sm:$0xff]  ;;  %v255_v13 = vld [vmem:[%s10696_s16 + $0x10] sm:$0xff]  ;;  %vm1863_vm5 = vcmask 1040384  }
  0x13   : > { %288 = vst.msk [vmem:[#allocation2 + $0x8] sm:$0xf] %vm285_vm1, %v10583_v2  ;;  %v298_v11 = vpack.c.bf16 %v253_v9, %v253_v9  ;;  %v299_v12 = vpack.c.bf16 %v254_v10, %v254_v10  ;;  %v256_v14 = vld [vmem:[%s10696_s16 + $0x18] sm:$0xff]  ;;  %v300_v15 = vpack.c.bf16 %v255_v13, %v255_v13  ;;  %v257_v21 = vld [vmem:[%s10696_s16 + $0x20] sm:$0xff]  ;;  %v258_v22 = vld [vmem:[%s10696_s16 + $0x28] sm:$0xff] }
  0x14   : > { %286 = vst.msk [vmem:[#allocation2] sm:$0xf] %vm285_vm1, %v10583_v2  ;;  %v301_v16 = vpack.c.bf16 %v256_v14, %v256_v14  ;;  %v302_v23 = vpack.c.bf16 %v257_v21, %v257_v21  ;;  %v303_v24 = vpack.c.bf16 %v258_v22, %v258_v22  ;;  %v10736_v25 = vld [vmem:[%s15219_s1 + $0x68] sm:$0xf]  ;;  %v10741_v26 = vld [vmem:[%s15219_s1 + $0x64] sm:$0xf] }
  0x15   : > { %609 = vperm.xlu2 %10519, %v10665_v6   ;;  %289 = vst.msk [vmem:[#allocation2 + $0x8c] sm:$0xf] %vm285_vm1, %v10583_v2  ;;  %v10746_v27 = vld [vmem:[%s15219_s1 + $0x60] sm:$0xf]  ;;  %v10756_v29 = vld [vmem:[%s15219_s1 + $0x74] sm:$0xf] }
  0x16   : > { %591 = vperm.xlu1 %10518, %v10676_v7   ;;  %573 = vperm.xlu0 %10517, %v10681_v8   ;;  %290 = vst.msk [vmem:[#allocation2 + $0x90] sm:$0xf] %vm285_vm1, %v10583_v2  ;;  %v10761_v30 = vld [vmem:[%s15219_s1 + $0x70] sm:$0xf]  ;;  %v10766_v31 = vld [vmem:[%s15219_s1 + $0x6c] sm:$0xf] }
  0x17   : > { %291 = vst.msk [vmem:[#allocation2 + $0x94] sm:$0xf] %vm285_vm1, %v10583_v2  ;;  %v267_v32 = vld [vmem:[%s10696_s16 + $0x70] sm:$0xff]  ;;  %v268_v33 = vld [vmem:[%s10696_s16 + $0x78] sm:$0xff]  ;;  %v362_v43 = vld [vmem:[%s15219_s1] sm:$0xf] }
  0x18   : > { %330 = vst.msk [vmem:[#allocation2 + $0xc] sm:$0xf] %vm285_vm1, %v298_v11  ;;  %v312_v34 = vpack.c.bf16 %v267_v32, %v267_v32  ;;  %v313_v35 = vpack.c.bf16 %v268_v33, %v268_v33  ;;  %v259_v36 = vld [vmem:[%s10696_s16 + $0x30] sm:$0xff]  ;;  %v260_v37 = vld [vmem:[%s10696_s16 + $0x38] sm:$0xff]  ;;  %v363_v46 = vld [vmem:[%s15219_s1 + $0x4] sm:$0xf] }
  0x19   : > { %331 = vst.msk [vmem:[#allocation2 + $0x10] sm:$0xf] %vm285_vm1, %v299_v12  ;;  %v304_v38 = vpack.c.bf16 %v259_v36, %v259_v36  ;;  %v305_v39 = vpack.c.bf16 %v260_v37, %v260_v37  ;;  %v10781_v40 = vld [vmem:[%s15219_s1 + $0x7c] sm:$0xf]  ;;  %v10786_v41 = vld [vmem:[%s15219_s1 + $0x78] sm:$0xf] }
  0x1a   : > { %v9346_v17 = vld [vmem:[#allocation2 + $0x4] sm:$0xff]  ;;  %332 = vst.msk [vmem:[#allocation2 + $0x14] sm:$0xf] %vm285_vm1, %v300_v15  ;;  %v365_v56 = vld [vmem:[%s15219_s1 + $0xc] sm:$0xf]  ;;  %v271_v59 = vld [vmem:[%s10696_s16 + $0x90] sm:$0xff] }
  0x1b   : > { %8455 = vmatmul.msk.bf16.vlgmr.msra.gmra.mxu0 %vm1042_vm2, %v9346_v17  ;;  %333 = vst.msk [vmem:[#allocation2 + $0x18] sm:$0xf] %vm285_vm1, %v301_v16  ;;  %v269_v47 = vld [vmem:[%s10696_s16 + $0x80] sm:$0xff]  ;;  %v270_v48 = vld [vmem:[%s10696_s16 + $0x88] sm:$0xff]  ;;  %v367_v60 = vld [vmem:[%s15219_s1 + $0x14] sm:$0xf]  ;;  %v316_v62 = vpack.c.bf16 %v271_v59, %v271_v59 }
  0x1c   : > { %334 = vst.msk [vmem:[#allocation2 + $0x1c] sm:$0xf] %vm285_vm1, %v302_v23  ;;  %v314_v49 = vpack.c.bf16 %v269_v47, %v269_v47  ;;  %v315_v50 = vpack.c.bf16 %v270_v48, %v270_v48  ;;  %v261_v51 = vld [vmem:[%s10696_s16 + $0x40] sm:$0xff]  ;;  %v262_v52 = vld [vmem:[%s10696_s16 + $0x48] sm:$0xff]  ;;  %v272_v61 = vld [vmem:[%s10696_s16 + $0x98] sm:$0xff] }
  0x1d   : > { %636 = vperm.xlu2 %10519, %v10712_v18   ;;  %335 = vst.msk [vmem:[#allocation2 + $0x20] sm:$0xf] %vm285_vm1, %v303_v24  ;;  %v306_v53 = vpack.c.bf16 %v261_v51, %v261_v51  ;;  %v307_v54 = vpack.c.bf16 %v262_v52, %v262_v52  ;;  %v364_v55 = vld [vmem:[%s15219_s1 + $0x8] sm:$0xf]  ;;  %v317_v63 = vpack.c.bf16 %v272_v61, %v272_v61  ;;  %v366_v4 = vld [vmem:[%s15219_s1 + $0x10] sm:$0xf] }
  0x1e   : > { %627 = vperm.xlu1 %10518, %v10718_v19   ;;  %618 = vperm.xlu0 %10517, %v10723_v20   ;;  %344 = vst.msk [vmem:[#allocation2 + $0x44] sm:$0xf] %vm285_vm1, %v312_v34  ;;  %v263_v5 = vld [vmem:[%s10696_s16 + $0x50] sm:$0xff]  ;;  %v264_v9 = vld [vmem:[%s10696_s16 + $0x58] sm:$0xff]  ;;  %v273_v15 = vld [vmem:[%s10696_s16 + $0xa0] sm:$0xff] }
  0x1f   : > { %345 = vst.msk [vmem:[#allocation2 + $0x48] sm:$0xf] %vm285_vm1, %v313_v35  ;;  %v308_v10 = vpack.c.bf16 %v263_v5, %v263_v5  ;;  %v309_v11 = vpack.c.bf16 %v264_v9, %v264_v9  ;;  %v368_v14 = vld [vmem:[%s15219_s1 + $0x18] sm:$0xf]  ;;  %v274_v16 = vld [vmem:[%s10696_s16 + $0xa8] sm:$0xff]  ;;  %v318_v17 = vpack.c.bf16 %v273_v15, %v273_v15  ;;  %v265_v23 = vld [vmem:[%s10696_s16 + $0x60] sm:$0xff] }
  0x20   : > { %v9347_v28 = vld [vmem:[#allocation2 + $0xc] sm:$0xff]  ;;  %336 = vst.msk [vmem:[#allocation2 + $0x24] sm:$0xf] %vm285_vm1, %v304_v38  ;;  %v319_v21 = vpack.c.bf16 %v274_v16, %v274_v16  ;;  %v371_v22 = vld [vmem:[%s15219_s1 + $0x24] sm:$0xf] }
  0x21   : > { %337 = vst.msk [vmem:[#allocation2 + $0x28] sm:$0xf] %vm285_vm1, %v305_v39  ;;  %v266_v24 = vld [vmem:[%s10696_s16 + $0x68] sm:$0xff]  ;;  %v369_v33 = vld [vmem:[%s15219_s1 + $0x1c] sm:$0xf]  ;;  %v275_v38 = vld [vmem:[%s10696_s16 + $0xb0] sm:$0xff] }
  0x22   : > { %v9348_v45 = vld [vmem:[#allocation2 + $0x14] sm:$0xff]  ;;  %346 = vst.msk [vmem:[#allocation2 + $0x4c] sm:$0xf] %vm285_vm1, %v314_v49  ;;  %v311_v32 = vpack.c.bf16 %v266_v24, %v266_v24  ;;  %v372_v37 = vld [vmem:[%s15219_s1 + $0x28] sm:$0xf]  ;;  %v320_v39 = vpack.c.bf16 %v275_v38, %v275_v38  ;;  %v277_v47 = vld [vmem:[%s10696_s16 + $0xc0] sm:$0xff] }
  0x23   : > { %347 = vst.msk [vmem:[#allocation2 + $0x50] sm:$0xf] %vm285_vm1, %v315_v50  ;;  %v322_v48 = vpack.c.bf16 %v277_v47, %v277_v47  ;;  %v8521_v50 = vld [vmem:[%s15220_s2 + $0x10] sm:$0xf]  ;;  %v10885_v51 = vld [vmem:[%s15219_s1 + $0x34] sm:$0xf] }
  0x24   : > { %338 = vst.msk [vmem:[#allocation2 + $0x2c] sm:$0xf] %vm285_vm1, %v306_v53  ;;  %v9349_v58 = vld [vmem:[#allocation2 + $0x1c] sm:$0xff]  ;;  %v2890_v53 = vsel %vm1091_vm0, %v8521_v50, 0  ;;  %v373_v15 = vld [vmem:[%s15219_s1 + $0x2c] sm:$0xf] }
  0x25   : > { %663 = vperm.xlu2 %10519, %v10736_v25   ;;  %339 = vst.msk [vmem:[#allocation2 + $0x30] sm:$0xf] %vm285_vm1, %v307_v54  ;;  %2899 = vmatpush.bf16.msrb.mxu0 %v2890_v53  ;;  %vm1184_vm4 = vsmask.f32 4352  ;;  %vm2012_vm6 = vsmask.f32 7424 }
  0x26   : > { %654 = vperm.xlu1 %10518, %v10741_v26   ;;  %645 = vperm.xlu0 %10517, %v10746_v27   ;;  %v9354_v44 = vld [vmem:[#allocation2 + $0x44] sm:$0xff]  ;;  %348 = vst.msk [vmem:[#allocation2 + $0x54] sm:$0xf] %vm285_vm1, %v316_v62  ;;  %v10585_v62 = vmov 839922192  }
  0x27   : > { %8463 = vmatmul.msk.bf16.vlgmr.msra.gmra.mxu2 %vm1042_vm2, %v9354_v44  ;;  %349 = vst.msk [vmem:[#allocation2 + $0x58] sm:$0xf] %vm285_vm1, %v317_v63  ;;  %v433_v63 = vunpack.c.l.s4 %v10585_v62 }
  0x28   : > { %340 = vst.msk [vmem:[#allocation2 + $0x34] sm:$0xf] %vm285_vm1, %v308_v10  ;;  %v9350_v13 = vld [vmem:[#allocation2 + $0x24] sm:$0xff] }
  0x29   : > { %341 = vst.msk [vmem:[#allocation2 + $0x38] sm:$0xf] %vm285_vm1, %v309_v11  ;;  %v8487_v10 = vld [vmem:[%s15220_s2 + $0x8] sm:$0xf]  ;;  %v8504_v11 = vld [vmem:[%s15220_s2 + $0xc] sm:$0xf] }
  0x2a   : > { %v9355_v57 = vld [vmem:[#allocation2 + $0x4c] sm:$0xff]  ;;  %350 = vst.msk [vmem:[#allocation2 + $0x5c] sm:$0xf] %vm285_vm1, %v318_v17  ;;  %v2194_v16 = vsel %vm1091_vm0, %v8487_v10, 0  ;;  %v2636_v17 = vsel %vm1091_vm0, %v8504_v11, 0 }
  0x2b   : > { %8456 = vmatmul.msk.bf16.gmra.mxu0 %vm1042_vm2, %v9347_v28  ;;  %351 = vst.msk [vmem:[#allocation2 + $0x60] sm:$0xf] %vm285_vm1, %v319_v21  ;;  %v310_v28 = vpack.c.bf16 %v265_v23, %v265_v23  ;;  %2203 = vmatpush.bf16.msrb.mxu2 %v2194_v16  ;;  %v282_v21 = vld [vmem:[%s10696_s16 + $0xe8] sm:$0xff] }
  0x2c   : > { %343 = vst.msk [vmem:[#allocation2 + $0x40] sm:$0xf] %vm285_vm1, %v311_v32  ;;  %v9351_v36 = vld [vmem:[#allocation2 + $0x2c] sm:$0xff] }
  0x2d   : > { %690 = vperm.xlu2 %10519, %v10756_v29   ;;  %342 = vst.msk [vmem:[#allocation2 + $0x3c] sm:$0xf] %vm285_vm1, %v310_v28 }
  0x2e   : > { %681 = vperm.xlu1 %10518, %v10761_v30   ;;  %672 = vperm.xlu0 %10517, %v10766_v31   ;;  %v9356_v12 = vld [vmem:[#allocation2 + $0x54] sm:$0xff]  ;;  %352 = vst.msk [vmem:[#allocation2 + $0x64] sm:$0xf] %vm285_vm1, %v320_v39 }
  0x2f   : > { %354 = vst.msk [vmem:[#allocation2 + $0x6c] sm:$0xf] %vm285_vm1, %v322_v48 }
  0x30   : > { %v9352_v52 = vld [vmem:[#allocation2 + $0x34] sm:$0xff] }
  0x32   : > { %v9357_v35 = vld [vmem:[#allocation2 + $0x5c] sm:$0xff] }
  0x34   : > { %v9353_v39 = vld [vmem:[#allocation2 + $0x3c] sm:$0xff] }
  0x35   : > { %10520 = vset.pattern.permute.xlu2 %v10584_v42 }
  0x36   : > { %708 = vperm.xlu1 %10518, %v10781_v40   ;;  %699 = vperm.xlu0 %10517, %v10786_v41  }
  0x37   : > { %1511 = vperm.xlu2 %10520, %v362_v43   ;;  %8464 = vmatmul.msk.bf16.gmra.mxu2 %vm1042_vm2, %v9355_v57 }
  0x3b   : > { %8457 = vmatmul.msk.bf16.gmra.mxu0 %vm1042_vm2, %v9348_v45 }
  0x3e   : > { %429 = vperm.xlu1 %10518, %v362_v43   ;;  %10521 = vset.pattern.permute.xlu0 %v10584_v42  ;;  %v276_v43 = vld [vmem:[%s10696_s16 + $0xb8] sm:$0xff] }
  0x3f   : > { %1519 = vperm.xlu0 %10521, %v363_v46   ;;  %10522 = vset.pattern.permute.xlu2 %v10583_v2  ;;  %v321_v44 = vpack.c.bf16 %v276_v43, %v276_v43 }
  0x40   : > { %438 = vperm.xlu2 %10522, %v363_v46   ;;  %v370_v46 = vld [vmem:[%s15219_s1 + $0x20] sm:$0xf] }
  0x41   : > { %353 = vst.msk [vmem:[#allocation2 + $0x68] sm:$0xf] %vm285_vm1, %v321_v44 }
  0x46   : > { %447 = vperm.xlu1 %10518, %v364_v55  }
  0x47   : > { %1527 = vperm.xlu0 %10521, %v364_v55   ;;  %8465 = vmatmul.msk.bf16.gmra.mxu2 %vm1042_vm2, %v9356_v12  ;;  %v278_v55 = vld [vmem:[%s10696_s16 + $0xc8] sm:$0xff]  ;;  %v10911_v12 = vunpack.c.0.s8 %v433_v63 }
  0x48   : > { %456 = vperm.xlu2 %10522, %v365_v56   ;;  %v9358_v49 = vld [vmem:[#allocation2 + $0x64] sm:$0xff]  ;;  %v323_v57 = vpack.c.bf16 %v278_v55, %v278_v55 }
  0x4a   : > { %355 = vst.msk [vmem:[#allocation2 + $0x70] sm:$0xf] %vm285_vm1, %v323_v57 }
  0x4b   : > { %8458 = vmatmul.msk.bf16.gmra.mxu0 %vm1042_vm2, %v9349_v58  ;;  %v280_v58 = vld [vmem:[%s10696_s16 + $0xd8] sm:$0xff] }
  0x4c   : > { %v325_v61 = vpack.c.bf16 %v280_v58, %v280_v58 }
  0x4e   : > { %10523 = vset.pattern.permute.xlu1 %v10584_v42  ;;  %357 = vst.msk [vmem:[#allocation2 + $0x78] sm:$0xf] %vm285_vm1, %v325_v61  ;;  %v284_v61 = vld [vmem:[%s10696_s16 + $0xf8] sm:$0xff] }
  0x4f   : > { %1535 = vperm.xlu1 %10523, %v365_v56   ;;  %10524 = vset.pattern.permute.xlu0 %v10583_v2  ;;  %v279_v56 = vld [vmem:[%s10696_s16 + $0xd0] sm:$0xff] }
  0x50   : > { %474 = vperm.xlu0 %10524, %v367_v60   ;;  %465 = vperm.xlu2 %10522, %v366_v4   ;;  %v324_v59 = vpack.c.bf16 %v279_v56, %v279_v56 }
  0x52   : > { %356 = vst.msk [vmem:[#allocation2 + $0x74] sm:$0xf] %vm285_vm1, %v324_v59 }
  0x57   : > { %1543 = vperm.xlu1 %10523, %v366_v4   ;;  %8466 = vmatmul.msk.bf16.gmra.mxu2 %vm1042_vm2, %v9357_v35  ;;  %v959_v4 = vld [vmem:[%s15220_s2] sm:$0xf] }
  0x58   : > { %10528 = vset.pattern.permute.xlu0 %v10584_v42  ;;  %10525 = vset.pattern.permute.xlu2 %v10584_v42  ;;  %v1386_v9 = vsel %vm1091_vm0, %v959_v4, 0 }
  0x59   : > { %1559 = vperm.xlu0 %10528, %v368_v14   ;;  %1551 = vperm.xlu2 %10525, %v367_v60   ;;  %v281_v60 = vld [vmem:[%s10696_s16 + $0xe0] sm:$0xff] }
  0x5a   : > { %v326_v5 = vpack.c.bf16 %v281_v60, %v281_v60  ;;  %10505 = vmatpush.bf16.msra.mxu3 %v1386_v9  ;;  %1395 = vmatpush.bf16.msra.mxu1 %v1386_v9  ;;  %v329_v9 = vpack.c.bf16 %v284_v61, %v284_v61 }
  0x5b   : > { %8459 = vmatmul.msk.bf16.gmra.mxu0 %vm1042_vm2, %v9350_v13 }
  0x5c   : > { %358 = vst.msk [vmem:[#allocation2 + $0x7c] sm:$0xf] %vm285_vm1, %v326_v5 }
  0x5d   : > { %361 = vst.msk [vmem:[#allocation2 + $0x88] sm:$0xf] %vm285_vm1, %v329_v9 }
  0x5e   : > { %2645 = vmatpush.bf16.msrb.mxu3 %v2636_v17 }
  0x5f   : > { %10526 = vset.pattern.permute.xlu1 %v10583_v2 }
  0x60   : > { %483 = vperm.xlu1 %10526, %v368_v14  }
  0x61   : > { %1583 = vperm.xlu0 %10528, %v371_v22   ;;  %10527 = vset.pattern.permute.xlu2 %v10583_v2 }
  0x62   : > { %492 = vperm.xlu2 %10527, %v369_v33  }
  0x67   : > { %v10858_v34 = vpop.permute.xlu2 %600  ;;  %8467 = vmatmul.msk.bf16.gmra.mxu2 %vm1042_vm2, %v9358_v49  ;;  %v10317_v49 = vld [vmem:[#allocation2 + $0x48] sm:$0xff]  }
  0x68   : > { %10529 = vset.pattern.permute.xlu1 %v10584_v42  ;;  %v606_v23 = vperm.slane %v10858_v34, %v10911_v12  ;;  %v9548_v59 = vunpack.c.l.bf16 %v10317_v49  ;;  %v9549_v60 = vunpack.c.h.bf16 %v10317_v49 }
  0x69   : > { %1567 = vperm.xlu1 %10529, %v369_v33   ;;  %1591 = vperm.xlu0 %10528, %v372_v37   ;;  %v283_v33 = vld [vmem:[%s10696_s16 + $0xf0] sm:$0xff] }
  0x6a   : > { %501 = vperm.xlu2 %10527, %v370_v46   ;;  %v767_v38 = vunpack.c.l.bf16 %v606_v23 }
  0x6b   : > { %8460 = vmatmul.msk.bf16.gmra.mxu0 %vm1042_vm2, %v9351_v36  ;;  %v9359_v36 = vld [vmem:[#allocation2 + $0x6c] sm:$0xff] }
  0x6f   : > { %v10869_v45 = vpop.permute.xlu2 %609 }
  0x70   : > { %v615_v35 = vperm.slane %v10869_v45, %v10911_v12 }
  0x71   : > { %10530 = vset.pattern.permute.xlu1 %v10583_v2  ;;  %10534 = vset.pattern.permute.xlu0 %v10583_v2 }
  0x72   : > { %510 = vperm.xlu1 %10530, %v371_v22   ;;  %10531 = vset.pattern.permute.xlu2 %v10584_v42  ;;  %v327_v22 = vpack.c.bf16 %v282_v21, %v282_v21  ;;  %v768_v50 = vunpack.c.l.bf16 %v615_v35 }
  0x73   : > { %546 = vperm.xlu0 %10534, %v10885_v51   ;;  %1575 = vperm.xlu2 %10531, %v370_v46   ;;  %v374_v46 = vld [vmem:[%s15219_s1 + $0x30] sm:$0xf] }
  0x74   : > { %359 = vst.msk [vmem:[#allocation2 + $0x80] sm:$0xf] %vm285_vm1, %v327_v22  ;;  %v852_v10 = vrot.slane %v768_v50, 1 }
  0x77   : > { %v10890_v54 = vpop.permute.xlu2 %636  ;;  %8468 = vmatmul.msk.bf16.gmra.mxu2 %vm1042_vm2, %v9359_v36 }
  0x7a   : > { %519 = vperm.xlu1 %10530, %v372_v37   ;;  %v328_v37 = vpack.c.bf16 %v283_v33, %v283_v33  ;;  %v376_v33 = vld [vmem:[%s15219_s1 + $0x38] sm:$0xf] }
  0x7b   : > { %8461 = vmatmul.msk.bf16.gmra.mxu0 %vm1042_vm2, %v9352_v52  ;;  %10537 = vset.pattern.permute.xlu0 %v10584_v42  ;;  %v850_v52 = vrot.slane %v767_v38, 1 }
  0x7c   : > { %10532 = vset.pattern.permute.xlu2 %v10583_v2  ;;  %1631 = vperm.xlu0 %10537, %v10645_v3   ;;  %v10316_v3 = vld [vmem:[#allocation2 + $0x40] sm:$0xff]   ;;  %360 = vst.msk [vmem:[#allocation2 + $0x84] sm:$0xf] %vm285_vm1, %v328_v37 }
  0x7d   : > { %528 = vperm.xlu2 %10532, %v373_v15   ;;  %v9544_v56 = vunpack.c.l.bf16 %v10316_v3  ;;  %v9545_v58 = vunpack.c.h.bf16 %v10316_v3  ;;  %v10973_v37 = vsel %vm812_vm3, %v850_v52, %v852_v10 }
  0x7e   : > { %15484 = vst [vmem:[#allocation8_spill] sm:$0xff] %v10973_v37 }
  0x7f   : > { %v10925_v24 = vpop.permute.xlu2 %663 }
  0x80   : > { %v583_v13 = vpop.permute.xlu1 %582  ;;  %v565_v14 = vpop.permute.xlu0 %564 }
  0x81   : > { %v588_v28 = vperm.slane %v583_v13, %v10911_v12  ;;  %v570_v32 = vperm.slane %v565_v14, %v10911_v12 }
  0x82   : > { %10533 = vset.pattern.permute.xlu1 %v10584_v42 }
  0x83   : > { %1599 = vperm.xlu1 %10533, %v373_v15   ;;  %v765_v34 = vunpack.c.l.bf16 %v588_v28  ;;  %v10938_v47 = vunpack.c.l.bf16 %v570_v32  ;;  %v10318_v28 = vld [vmem:[#allocation2 + $0x50] sm:$0xff]  }
  0x84   : > { %1671 = vperm.xlu0 %10537, %v10665_v6  }
  0x85   : > { %537 = vperm.xlu2 %10532, %v374_v46   ;;  %v846_v57 = vrot.slane %v765_v34, 1  ;;  %v15225_v62 = vrot.slane %v10938_v47, 1  ;;  %v9552_v34 = vunpack.c.l.bf16 %v10318_v28 }
  0x87   : > { %v10947_v63 = vpop.permute.xlu2 %690 }
  0x88   : > { %v592_v43 = vpop.permute.xlu1 %591  ;;  %v574_v44 = vpop.permute.xlu0 %573 }
  0x89   : > { %v597_v48 = vperm.slane %v592_v43, %v10911_v12  ;;  %v579_v45 = vperm.slane %v574_v44, %v10911_v12 }
  0x8b   : > { %v766_v53 = vunpack.c.l.bf16 %v597_v48  ;;  %v764_v55 = vunpack.c.l.bf16 %v579_v45  ;;  %1607 = vperm.xlu1 %10533, %v374_v46   ;;  %8462 = vmatmul.msk.bf16.gmra.mxu0 %vm1042_vm2, %v9353_v39  ;;  %v9553_v39 = vunpack.c.h.bf16 %v10318_v28 }
  0x8c   : > { %1695 = vperm.xlu0 %10537, %v10712_v18  }
  0x8d   : > { %v848_v4 = vrot.slane %v766_v53, 1  ;;  %v844_v5 = vrot.slane %v764_v55, 1  ;;  %10535 = vset.pattern.permute.xlu2 %v10584_v42  ;;  %v9360_v55 = vld [vmem:[#allocation2 + $0x74] sm:$0xff] }
  0x8e   : > { %1615 = vperm.xlu2 %10535, %v10885_v51   ;;  %v642_v51 = vperm.slane %v10890_v54, %v10911_v12  ;;  %8469 = vmatmul.msk.bf16.gmra.mxu2 %vm1042_vm2, %v9360_v55 }
  0x8f   : > { %v10950_v11 = vsel %vm812_vm3, %v846_v57, %v848_v4  ;;  %v10953_v13 = vsel %vm812_vm3, %v848_v4, %v850_v52  ;;  %v10958_v14 = vsel %vm812_vm3, %v15225_v62, %v844_v5  ;;  %v10961_v6 = vsel %vm812_vm3, %v844_v5, %v846_v57 }
  0x90   : > { %15480 = vst [vmem:[#allocation4_spill] sm:$0xff] %v10950_v11  ;;  %v628_v15 = vpop.permute.xlu1 %627  ;;  %v619_v16 = vpop.permute.xlu0 %618  ;;  %v925_v17 = vmul.f32 %v9544_v56, %v10958_v14  ;;  %v926_v21 = vmul.f32 %v9545_v58, %v10961_v6  ;;  %v927_v22 = vmul.f32 %v9548_v59, %v10950_v11  ;;  %v928_v23 = vmul.f32 %v9549_v60, %v10953_v13  ;;  %v9362_v58 = vld [vmem:[#allocation2 + $0xc] sm:$0xff] }
  0x91   : > { %15481 = vst [vmem:[#allocation5_spill] sm:$0xff] %v10953_v13  ;;  %v624_v32 = vperm.slane %v619_v16, %v10911_v12  ;;  %v633_v48 = vperm.slane %v628_v15, %v10911_v12  ;;  %v10979_v49 = vpop.permute.xlu2 %1511  ;;  %v929_v57 = vmul.f32 %v9552_v34, %v10973_v37  ;;  %v10997_v54 = vunpack.c.l.bf16 %v642_v51 }
  0x92   : > { %15482 = vst [vmem:[#allocation6_spill] sm:$0xff] %v10958_v14  ;;  %v950_v35 = vpack.c.bf16 %v926_v21, %v925_v17  ;;  %v951_v36 = vpack.c.bf16 %v928_v23, %v927_v22  ;;  %v10319_v22 = vld [vmem:[#allocation2 + $0x58] sm:$0xff]  }
  0x93   : > { %15483 = vst [vmem:[#allocation7_spill] sm:$0xff] %v10961_v6  ;;  %v769_v38 = vunpack.c.l.bf16 %v624_v32  ;;  %10536 = vset.pattern.permute.xlu1 %v10583_v2  ;;  %v770_v9 = vunpack.c.l.bf16 %v633_v48  ;;  %v858_v28 = vrot.slane %v10997_v54, 1  ;;  %v9361_v48 = vld [vmem:[#allocation2 + $0x7c] sm:$0xff] }
  0x94   : > { %555 = vperm.xlu1 %10536, %v376_v33   ;;  %v1257_v43 = vshrl.u32 %v950_v35, 16  ;;  %v1260_v44 = vshll.u32 %v950_v35, 16  ;;  %v1266_v46 = vshrl.u32 %v951_v36, 16  ;;  %v1269_v3 = vshll.u32 %v951_v36, 16  ;;  %1719 = vperm.xlu0 %10537, %v10736_v25  }
  0x95   : > { %v854_v45 = vrot.slane %v769_v38, 1  ;;  %v856_v16 = vrot.slane %v770_v9, 1  ;;  %v9556_v38 = vunpack.c.l.bf16 %v10319_v22 }
  0x96   : > { %v1259_v50 = vrot.slane %v1257_v43, 3  ;;  %v1262_v2 = vrot.slane %v1260_v44, 4  ;;  %v1268_v52 = vrot.slane %v1266_v46, 3  ;;  %v1271_v53 = vrot.slane %v1269_v3, 4  ;;  %1623 = vperm.xlu2 %10535, %v376_v33  }
  0x97   : > { %v10983_v56 = vsel %vm812_vm3, %v852_v10, %v854_v45  ;;  %v11014_v33 = vsel %vm812_vm3, %v854_v45, %v856_v16  ;;  %v669_v45 = vperm.slane %v10925_v24, %v10911_v12 }
  0x98   : > { %15485 = vst [vmem:[#allocation9_spill] sm:$0xff] %v10983_v56  ;;  %v655_v59 = vpop.permute.xlu1 %654  ;;  %v646_v60 = vpop.permute.xlu0 %645  ;;  %v10988_v61 = vor.u32 %v1262_v2, %v1259_v50  ;;  %v1272_v18 = vor.u32 %v1271_v53, %v1268_v52  ;;  %v930_v4 = vmul.f32 %v9553_v39, %v10983_v56  ;;  %v931_v43 = vmul.f32 %v9556_v38, %v11014_v33  ;;  %v9363_v50 = vld [vmem:[#allocation2 + $0x14] sm:$0xff] }
  0x99   : > { %v10991_v5 = vpop.f32.mrf.mxu0  ;;  %15489 = vst [vmem:[#allocation13_spill] sm:$0xff] %v11014_v33  ;;  %v651_v25 = vperm.slane %v646_v60, %v10911_v12  ;;  %v660_v46 = vperm.slane %v655_v59, %v10911_v12  ;;  %v1517_v59 = vperm.slane %v10979_v49, %v10911_v12  ;;  %v10320_v60 = vld [vmem:[#allocation2 + $0x60] sm:$0xff]  }
  0x9a   : > { %15486 = vst [vmem:[#allocation10_spill] sm:$0xff] %v10991_v5  ;;  %v1273_v10 = vsel %vm1184_vm4, %v10988_v61, %v1272_v18  ;;  %v952_v15 = vpack.c.bf16 %v930_v4, %v929_v57  ;;  %v439_v23 = vpop.permute.xlu2 %438 }
  0x9b   : > { %8479 = vmatmul.msk.bf16.vlgmr.msra.gmra.mxu3 %vm1042_vm2, %v1273_v10  ;;  %8586 = vmatmul.msk.bf16.vlgmr.msrb.gmra.mxu0 %vm1042_vm2, %v9362_v58  ;;  %v772_v52 = vunpack.c.l.bf16 %v651_v25  ;;  %v444_v24 = vperm.slane %v439_v23, %v10911_v12  ;;  %v696_v58 = vperm.slane %v10947_v63, %v10911_v12  ;;  %v9560_v63 = vunpack.c.l.bf16 %v10320_v60  ;;  %v394_v23 = vld [vmem:[#allocation2] sm:$0x8] }
  0x9c   : > { %10538 = vset.pattern.permute.xlu1 %v10584_v42  ;;  %v1275_v17 = vshrl.u32 %v952_v15, 16  ;;  %v1278_v21 = vshll.u32 %v952_v15, 16  ;;  %v9557_v42 = vunpack.c.h.bf16 %v10319_v22  ;;  %1743 = vperm.xlu0 %10537, %v10756_v29   ;;  %v11036_v29 = vunpack.c.l.bf16 %v669_v45 }
  0x9d   : > { %1639 = vperm.xlu1 %10538, %v10681_v8   ;;  %v11011_v8 = vsel %vm812_vm3, %v856_v16, %v858_v28  ;;  %v860_v4 = vrot.slane %v772_v52, 1  ;;  %v11050_v16 = vunpack.c.l.bf16 %v444_v24  ;;  %v1799_v49 = vunpack.c.l.bf16 %v1517_v59  ;;  %v1477_v24 = vld [vmem:[#allocation2 + $0x4] sm:$0xf] }
  0x9e   : > { %15488 = vst [vmem:[#allocation12_spill] sm:$0xff] %v11011_v8  ;;  %v1277_v34 = vrot.slane %v1275_v17, 3  ;;  %v1280_v39 = vrot.slane %v1278_v21, 4  ;;  %v932_v44 = vmul.f32 %v9557_v42, %v11011_v8  ;;  %1647 = vperm.xlu2 %10535, %v10637_v1   ;;  %8470 = vmatmul.msk.bf16.gmra.mxu2 %vm1042_vm2, %v9361_v48  ;;  %v773_v1 = vunpack.c.l.bf16 %v660_v46 }
  0x9f   : > { %v15228_v54 = vrot.slane %v11036_v29, 1  ;;  %v9561_v17 = vunpack.c.h.bf16 %v10320_v60  ;;  %v11052_v21 = vunpack.c.l.bf16 %v696_v58  ;;  %v11070_v58 = vrot.slane %v1799_v49, 7 }
  0xa0   : > { %v11004_v32 = vpop.permute.xlu1 %681  ;;  %v11006_v35 = vpop.permute.xlu0 %672  ;;  %v11022_v3 = vor.u32 %v1280_v39, %v1277_v34  ;;  %v862_v15 = vrot.slane %v773_v1, 1 }
  0xa1   : > { %v11008_v36 = vpop.f32.mrf.mxu0  ;;  %v678_v48 = vperm.slane %v11006_v35, %v10911_v12  ;;  %15494 = vst [vmem:[#allocation18_spill] sm:$0xff] %v11070_v58 }
  0xa2   : > { %15487 = vst [vmem:[#allocation11_spill] sm:$0xff] %v11008_v36  ;;  %v1282_v57 = vsel %vm1184_vm4, %v1272_v18, %v11022_v3  ;;  %v457_v51 = vpop.permute.xlu2 %456  ;;  %v11047_v18 = vld [vmem:[#allocation2 + $0x68] sm:$0xff]   ;;  %v11063_v46 = vsel %vm812_vm3, %v860_v4, %v862_v15 }
  0xa3   : > { %15493 = vst [vmem:[#allocation17_spill] sm:$0xff] %v11063_v46  ;;  %v462_v1 = vperm.slane %v457_v51, %v10911_v12  ;;  %v11085_v51 = vunpack.c.l.bf16 %v678_v48 }
  0xa5   : > { %1655 = vperm.xlu1 %10538, %v10676_v7   ;;  %v953_v7 = vpack.c.bf16 %v932_v44, %v931_v43  ;;  %v395_v44 = vld [vmem:[#allocation2 + $0x4] sm:$0xf]  ;;  %v15231_v62 = vrot.slane %v11085_v51, 1 }
  0xa6   : > { %1663 = vperm.xlu2 %10535, %v10632_v0   ;;  %v11057_v0 = vsel %vm812_vm3, %v858_v28, %v860_v4  ;;  %v15227_v28 = vrot.slane %v11050_v16, 1  ;;  %v716_v60 = vunpack.c.l.bf16 %v395_v44 }
  0xa7   : > { %v1284_v9 = vshrl.u32 %v953_v7, 16  ;;  %v1287_v10 = vshll.u32 %v953_v7, 16  ;;  %15491 = vst [vmem:[#allocation15_spill] sm:$0xff] %v11057_v0  ;;  %v10384_v7 = vld [vmem:[#allocation2 + $0x18] sm:$0xff]   ;;  %v933_v4 = vmul.f32 %v9560_v63, %v11057_v0  ;;  %v1766_v63 = vunpack.c.l.bf16 %v1477_v24 }
  0xa8   : > { %v11027_v2 = vpop.permute.xlu1 %708  ;;  %v11031_v55 = vpop.permute.xlu0 %699  ;;  %v11124_v38 = vunpack.c.h.bf16 %v10384_v7 }
  0xa9   : > { %v11029_v53 = vpop.f32.mrf.mxu0  ;;  %v1286_v25 = vrot.slane %v1284_v9, 3  ;;  %v1289_v43 = vrot.slane %v1287_v10, 4 }
  0xaa   : > { %15490 = vst [vmem:[#allocation14_spill] sm:$0xff] %v11029_v53 }
  0xab   : > { %8480 = vmatmul.msk.bf16.gmra.mxu3 %vm1042_vm2, %v1282_v57  ;;  %8587 = vmatmul.msk.bf16.gmra.mxu0 %vm1042_vm2, %v9363_v50  ;;  %v466_v50 = vpop.permute.xlu2 %465  ;;  %v715_v57 = vunpack.c.l.bf16 %v394_v23  ;;  %v11077_v9 = vor.u32 %v1289_v43, %v1286_v25  ;;  %v11088_v23 = vunpack.c.l.bf16 %v10384_v7  ;;  %v751_v25 = vunpack.c.l.bf16 %v462_v1 }
  0xac   : > { %v471_v10 = vperm.slane %v466_v50, %v10911_v12 }
  0xad   : > { %1679 = vperm.xlu1 %10538, %v10723_v20  }
  0xae   : > { %1687 = vperm.xlu2 %10535, %v10718_v19  }
  0xb0   : > { %v430_v22 = vpop.permute.xlu1 %429 }
  0xb1   : > { %v11059_v42 = vpop.f32.mrf.mxu0  ;;  %v435_v34 = vperm.slane %v430_v22, %v10911_v12  ;;  %v1520_v39 = vpop.permute.xlu0 %1519  ;;  %v11080_v22 = vld [vmem:[#allocation2 + $0x8] sm:$0xff]  }
  0xb2   : > { %15492 = vst [vmem:[#allocation16_spill] sm:$0xff] %v11059_v42  ;;  %v1525_v45 = vperm.slane %v1520_v39, %v10911_v12  ;;  %v11093_v39 = vsel %vm812_vm3, %v862_v15, %v15228_v54  ;;  %v9364_v15 = vld [vmem:[#allocation2 + $0x1c] sm:$0xff]  ;;  %v9516_v48 = vunpack.c.l.bf16 %v11080_v22 }
  0xb3   : > { %v748_v52 = vunpack.c.l.bf16 %v435_v34  ;;  %v934_v34 = vmul.f32 %v9561_v17, %v11063_v46  ;;  %15496 = vst [vmem:[#allocation20_spill] sm:$0xff] %v11093_v39  ;;  %v687_v17 = vperm.slane %v11004_v32, %v10911_v12  ;;  %v1291_v32 = vsel %vm1184_vm4, %v11022_v3, %v11077_v9  ;;  %v10325_v46 = vld [vmem:[#allocation2 + $0x10] sm:$0xff]  }
  0xb4   : > { %v11072_v59 = vunpack.c.l.bf16 %v1525_v45 }
  0xb5   : > { %v11075_v35 = vrot.slane %v748_v52, 1  ;;  %1703 = vperm.xlu1 %10538, %v10746_v27   ;;  %v954_v24 = vpack.c.bf16 %v934_v34, %v933_v4  ;;  %v11127_v3 = vunpack.c.l.bf16 %v687_v17  ;;  %v11131_v34 = vpop.f32.mrf.mxu2  ;;  %v1552_v17 = vpop.permute.xlu2 %1551 }
  0xb6   : > { %v15226_v49 = vrot.slane %v11072_v59, 7  ;;  %15500 = vst [vmem:[#allocation24_spill] sm:$0xff] %v11131_v34  ;;  %1711 = vperm.xlu2 %10535, %v10741_v26   ;;  %v1557_v0 = vperm.slane %v1552_v17, %v10911_v12 }
  0xb7   : > { %15495 = vst [vmem:[#allocation19_spill] sm:$0xff] %v11075_v35  ;;  %v11099_v27 = vsel %vm812_vm3, %v11075_v35, %v15227_v28  ;;  %v909_v19 = vmul.f32 %v11075_v35, %v715_v57  ;;  %v11118_v57 = vunpack.c.l.bf16 %v471_v10  ;;  %v818_v28 = vrot.slane %v751_v25, 1 }
  0xb8   : > { %15497 = vst [vmem:[#allocation21_spill] sm:$0xff] %v11099_v27  ;;  %v11108_v43 = vsel %vm1863_vm5, %v11070_v58, %v15226_v49  ;;  %v448_v44 = vpop.permute.xlu1 %447  ;;  %v910_v45 = vmul.f32 %v11099_v27, %v716_v60  ;;  %v1960_v49 = vmul.f32 %v11070_v58, %v1766_v63  ;;  %v9517_v10 = vunpack.c.h.bf16 %v11080_v22 }
  0xb9   : > { %15498 = vst [vmem:[#allocation22_spill] sm:$0xff] %v11108_v43  ;;  %v11112_v50 = vpop.f32.mrf.mxu0  ;;  %v453_v52 = vperm.slane %v448_v44, %v10911_v12  ;;  %v1528_v1 = vpop.permute.xlu0 %1527  ;;  %v1961_v60 = vmul.f32 %v9516_v48, %v11108_v43  ;;  %v15501_v63 = vunpack.c.l.bf16 %v11047_v18 }
  0xba   : > { %15499 = vst [vmem:[#allocation23_spill] sm:$0xff] %v11112_v50  ;;  %v1533_v20 = vperm.slane %v1528_v1, %v10911_v12  ;;  %v942_v44 = vpack.c.bf16 %v910_v45, %v909_v19  ;;  %v1293_v1 = vshrl.u32 %v954_v24, 16  ;;  %v1296_v19 = vshll.u32 %v954_v24, 16  ;;  %v10329_v50 = vld [vmem:[#allocation2 + $0x30] sm:$0xff]  }
  0xbb   : > { %v750_v54 = vunpack.c.l.bf16 %v453_v52  ;;  %8481 = vmatmul.msk.bf16.gmra.mxu3 %vm1042_vm2, %v1291_v32  ;;  %8588 = vmatmul.msk.bf16.gmra.mxu0 %vm1042_vm2, %v9364_v15  ;;  %v11136_v25 = vmul.f32 %v15501_v63, %v11093_v39  ;;  %v820_v52 = vrot.slane %v11118_v57, 1  ;;  %v9580_v15 = vunpack.c.l.bf16 %v10325_v46 }
  0xbc   : > { %v1801_v4 = vunpack.c.l.bf16 %v1533_v20  ;;  %v15502_v20 = vrot.slane %v11036_v29, 1  ;;  %v11148_v45 = vpack.c.bf16 %v1961_v60, %v1960_v49  ;;  %v15504_v32 = vrot.slane %v11050_v16, 1 }
  0xbd   : > { %v816_v7 = vrot.slane %v750_v54, 1  ;;  %1727 = vperm.xlu1 %10538, %v10766_v31   ;;  %v11150_v54 = vunpack.c.h.bf16 %v10325_v46  ;;  %v1186_v31 = vshrl.u32 %v942_v44, 16  ;;  %v1189_v24 = vshll.u32 %v942_v44, 16  ;;  %v11187_v17 = vpop.f32.mrf.mxu2 }
  0xbe   : > { %v11146_v22 = vsel %vm812_vm3, %v15502_v20, %v15231_v62  ;;  %v1867_v49 = vrot.slane %v1801_v4, 7  ;;  %v11168_v20 = vsel %vm812_vm3, %v818_v28, %v820_v52  ;;  %v1298_v62 = vrot.slane %v1296_v19, 4  ;;  %15512 = vst [vmem:[#allocation32_spill] sm:$0xff] %v11187_v17  ;;  %1735 = vperm.xlu2 %10535, %v10761_v30  }
  0xbf   : > { %15503 = vst [vmem:[#allocation25_spill] sm:$0xff] %v11146_v22  ;;  %v11155_v57 = vsel %vm812_vm3, %v15504_v32, %v816_v7  ;;  %v11158_v26 = vsel %vm812_vm3, %v816_v7, %v818_v28  ;;  %v1295_v32 = vrot.slane %v1293_v1, 3  ;;  %v2016_v4 = vshll.u32 %v11148_v45, 16 }
  0xc0   : > { %15505 = vst [vmem:[#allocation26_spill] sm:$0xff] %v11155_v57  ;;  %v3503_v29 = vmul.f32 %v11088_v23, %v11155_v57  ;;  %v3504_v63 = vmul.f32 %v11124_v38, %v11158_v26  ;;  %v911_v46 = vmul.f32 %v9516_v48, %v11155_v57  ;;  %v912_v7 = vmul.f32 %v9517_v10, %v11158_v26 }
  0xc1   : > { %15506 = vst [vmem:[#allocation27_spill] sm:$0xff] %v11158_v26  ;;  %v11165_v60 = vpop.f32.mrf.mxu0  ;;  %v1536_v16 = vpop.permute.xlu1 %1535  ;;  %v2385_v33 = vmul.f32 %v9580_v15, %v11155_v57  ;;  %v2386_v28 = vmul.f32 %v11150_v54, %v11158_v26  ;;  %v15510_v1 = vrot.slane %v11072_v59, 7 }
  0xc2   : > { %15507 = vst [vmem:[#allocation28_spill] sm:$0xff] %v11165_v60  ;;  %v11171_v44 = vpack.c.bf16 %v3504_v63, %v3503_v29  ;;  %v1541_v34 = vperm.slane %v1536_v16, %v10911_v12  ;;  %v475_v39 = vpop.permute.xlu0 %474  ;;  %v943_v8 = vpack.c.bf16 %v912_v7, %v911_v46  ;;  %v1188_v63 = vrot.slane %v1186_v31, 3 }
  0xc3   : > { %15508 = vst [vmem:[#allocation29_spill] sm:$0xff] %v11168_v20  ;;  %v480_v48 = vperm.slane %v475_v39, %v10911_v12  ;;  %v11183_v19 = vsel %vm1863_vm5, %v15510_v1, %v1867_v49  ;;  %v1191_v16 = vrot.slane %v1189_v24, 4  ;;  %v11193_v7 = vpack.c.bf16 %v2386_v28, %v2385_v33  ;;  %v9365_v33 = vld [vmem:[#allocation2 + $0x24] sm:$0xff] }
  0xc4   : > { %15509 = vst [vmem:[#allocation30_spill] sm:$0xff] %v11171_v44  ;;  %v11185_v29 = vunpack.c.l.bf16 %v1541_v34  ;;  %v1194_v39 = vshrl.u32 %v943_v8, 16  ;;  %v1197_v46 = vshll.u32 %v943_v8, 16  ;;  %v11196_v1 = vor.u32 %v1298_v62, %v1295_v32 }
  0xc5   : > { %15511 = vst [vmem:[#allocation31_spill] sm:$0xff] %v11183_v19  ;;  %v11189_v44 = vunpack.c.l.bf16 %v480_v48  ;;  %1751 = vperm.xlu1 %10538, %v10786_v41   ;;  %v913_v34 = vmul.f32 %v9580_v15, %v11168_v20  ;;  %v15513_v31 = vunpack.c.h.bf16 %v11047_v18  ;;  %v1962_v41 = vmul.f32 %v9517_v10, %v11183_v19 }
  0xc6   : > { %v1869_v59 = vrot.slane %v11185_v29, 7  ;;  %v1196_v26 = vrot.slane %v1194_v39, 3  ;;  %v1199_v8 = vrot.slane %v1197_v46, 4  ;;  %v11207_v28 = vunpack.c.l.bf16 %v1557_v0  ;;  %v493_v29 = vpop.permute.xlu2 %492  ;;  %1759 = vperm.xlu2 %10535, %v10781_v40  }
  0xc7   : > { %v936_v24 = vmul.f32 %v15513_v31, %v11146_v22  ;;  %v15243_v48 = vrot.slane %v11189_v44, 1  ;;  %v2014_v62 = vshrl.u32 %v11148_v45, 16  ;;  %v2018_v32 = vrot.slane %v2016_v4, 1 }
  0xc8   : > { %v11205_v30 = vsel %vm1863_vm5, %v1867_v49, %v1869_v59  ;;  %v1192_v39 = vor.u32 %v1191_v16, %v1188_v63  ;;  %v11217_v46 = vor.u32 %v1199_v8, %v1196_v26  ;;  %v1300_v0 = vsel %vm1184_vm4, %v11077_v9, %v11196_v1  ;;  %v11238_v8 = vpop.f32.mrf.mxu2 }
  0xc9   : > { %15514 = vst [vmem:[#allocation33_spill] sm:$0xff] %v11205_v30  ;;  %v11213_v18 = vsel %vm812_vm3, %v820_v52, %v15243_v48  ;;  %v11215_v31 = vpop.f32.mrf.mxu0  ;;  %v1544_v10 = vpop.permute.xlu1 %1543  ;;  %v1963_v49 = vmul.f32 %v9580_v15, %v11205_v30  ;;  %v955_v52 = vpack.c.bf16 %v936_v24, %v11136_v25  ;;  %v10322_v48 = vld [vmem:[#allocation2 + $0x70] sm:$0xff]   ;;  %v868_v26 = vrot.slane %v11127_v3, 1 }
  0xca   : > { %15515 = vst [vmem:[#allocation34_spill] sm:$0xff] %v11213_v18  ;;  %v1549_v45 = vperm.slane %v1544_v10, %v10911_v12  ;;  %v914_v4 = vmul.f32 %v11150_v54, %v11213_v18  ;;  %v1201_v63 = vsel %vm1184_vm4, %v1192_v39, %v11217_v46  ;;  %v15246_v16 = vrot.slane %v11207_v28, 7 }
  0xcb   : > { %15516 = vst [vmem:[#allocation35_spill] sm:$0xff] %v11215_v31  ;;  %8482 = vmatmul.msk.bf16.gmra.mxu3 %vm1042_vm2, %v1300_v0  ;;  %v11232_v15 = vpack.c.bf16 %v1963_v49, %v1962_v41  ;;  %8589 = vmatmul.msk.bf16.gmra.mxu0 %vm1042_vm2, %v9365_v33  ;;  %v498_v25 = vperm.slane %v493_v29, %v10911_v12  ;;  %v9568_v39 = vunpack.c.l.bf16 %v10322_v48  ;;  %v9569_v57 = vunpack.c.h.bf16 %v10322_v48  ;;  %v1560_v0 = vpop.permute.xlu0 %1559 }
  0xcc   : > { %8471 = vmatmul.msk.bf16.vlgmr.msra.gmra.mxu1 %vm1042_vm2, %v1201_v63  ;;  %v1803_v9 = vunpack.c.l.bf16 %v1549_v45  ;;  %v944_v24 = vpack.c.bf16 %v914_v4, %v913_v34  ;;  %15517 = vst [vmem:[#allocation36_spill] sm:$0xff] %v11238_v8  ;;  %v2019_v3 = vor.u32 %v2018_v32, %v2014_v62  ;;  %v1302_v33 = vshrl.u32 %v955_v52, 16 }
  0xcd   : > { %v2021_v10 = vshll.u32 %v11232_v15, 16  ;;  %v1305_v49 = vshll.u32 %v955_v52, 16  ;;  %v15518_v45 = vrot.slane %v11052_v21, 1  ;;  %v15520_v62 = vrot.slane %v11085_v51, 1 }
  0xce   : > { %v1871_v41 = vrot.slane %v1803_v9, 7  ;;  %v1203_v29 = vshrl.u32 %v944_v24, 16  ;;  %v1206_v4 = vshll.u32 %v944_v24, 16  ;;  %v11260_v52 = vunpack.c.l.bf16 %v498_v25  ;;  %v11262_v9 = vpop.permute.xlu2 %501 }
  0xcf   : > { %v11245_v63 = vsel %vm812_vm3, %v868_v26, %v15518_v45  ;;  %v2023_v34 = vrot.slane %v2021_v10, 1  ;;  %v11250_v32 = vsel %vm812_vm3, %v15520_v62, %v868_v26  ;;  %v1565_v51 = vperm.slane %v1560_v0, %v10911_v12 }
  0xd0   : > { %15519 = vst [vmem:[#allocation37_spill] sm:$0xff] %v11245_v63  ;;  %v11253_v40 = vsel %vm1863_vm5, %v1869_v59, %v1871_v41  ;;  %v11258_v48 = vsel %vm1863_vm5, %v1871_v41, %v15246_v16  ;;  %v714_v41 = vperm.slane %v11027_v2, %v10911_v12  ;;  %v1304_v45 = vrot.slane %v1302_v33, 3  ;;  %v11282_v37 = vpop.f32.mrf.mxu2 }
  0xd1   : > { %15521 = vst [vmem:[#allocation38_spill] sm:$0xff] %v11250_v32  ;;  %v11264_v10 = vpop.f32.mrf.mxu0  ;;  %v2024_v24 = vsel %vm2012_vm6, %v2019_v3, %v2023_v34  ;;  %v1964_v26 = vmul.f32 %v11150_v54, %v11253_v40  ;;  %v1965_v59 = vmul.f32 %v11088_v23, %v11258_v48  ;;  %v1307_v62 = vrot.slane %v1305_v49, 4 }
  0xd2   : > { %15522 = vst [vmem:[#allocation39_spill] sm:$0xff] %v11253_v40  ;;  %8488 = vmatmul.msk.bf16.vlgmr.msrb.gmra.mxu2 %vm1042_vm2, %v2024_v24  ;;  %v484_v25 = vpop.permute.xlu1 %483  ;;  %v1205_v8 = vrot.slane %v1203_v29, 3  ;;  %v1208_v3 = vrot.slane %v1206_v4, 4  ;;  %v705_v54 = vperm.slane %v11031_v55, %v10911_v12  ;;  %v937_v0 = vmul.f32 %v9568_v39, %v11250_v32  ;;  %v9366_v39 = vld [vmem:[#allocation2 + $0x2c] sm:$0xff] }
  0xd3   : > { %15523 = vst [vmem:[#allocation40_spill] sm:$0xff] %v11258_v48  ;;  %v489_v16 = vperm.slane %v484_v25, %v10911_v12  ;;  %v11276_v17 = vpack.c.bf16 %v1965_v59, %v1964_v26  ;;  %v938_v22 = vmul.f32 %v9569_v57, %v11245_v63  ;;  %v1805_v33 = vunpack.c.l.bf16 %v1565_v51 }
  0xd4   : > { %15524 = vst [vmem:[#allocation41_spill] sm:$0xff] %v11264_v10  ;;  %v779_v49 = vunpack.c.l.bf16 %v714_v41  ;;  %v11285_v56 = vor.u32 %v1307_v62, %v1304_v45  ;;  %v11287_v4 = vor.u32 %v1208_v3, %v1205_v8  ;;  %v2025_v26 = vshrl.u32 %v11232_v15, 16  ;;  %v1584_v3 = vpop.permute.xlu0 %1583 }
  0xd5   : > { %15525 = vst [vmem:[#allocation42_spill] sm:$0xff] %v11282_v37  ;;  %v754_v2 = vunpack.c.l.bf16 %v489_v16  ;;  %v2029_v55 = vshll.u32 %v11276_v17, 16  ;;  %v778_v59 = vunpack.c.l.bf16 %v705_v54  ;;  %v956_v25 = vpack.c.bf16 %v938_v22, %v937_v0  ;;  %v10323_v54 = vld [vmem:[#allocation2 + $0x78] sm:$0xff]  }
  0xd6   : > { %v15527_v16 = vrot.slane %v11189_v44, 1  ;;  %v15529_v51 = vrot.slane %v11260_v52, 1  ;;  %v1875_v8 = vrot.slane %v1805_v33, 7  ;;  %v11303_v45 = vrot.slane %v779_v49, 1  ;;  %v1576_v62 = vpop.permute.xlu2 %1575 }
  0xd7   : > { %v824_v29 = vrot.slane %v754_v2, 1  ;;  %v1309_v15 = vsel %vm1184_vm4, %v11196_v1, %v11285_v56  ;;  %v1210_v0 = vsel %vm1184_vm4, %v11217_v46, %v11287_v4  ;;  %v2027_v33 = vor.u32 %v2025_v26, %v2023_v34 }
  0xd8   : > { %15531 = vst [vmem:[#allocation46_spill] sm:$0xff] %v11303_v45  ;;  %v11316_v49 = vrot.slane %v2029_v55, 1  ;;  %v507_v1 = vperm.slane %v11262_v9, %v10911_v12  ;;  %v1311_v46 = vshrl.u32 %v956_v25, 16  ;;  %v1314_v26 = vshll.u32 %v956_v25, 16  ;;  %v11331_v9 = vpop.f32.mrf.mxu2 }
  0xd9   : > { %v11291_v57 = vpop.f32.mrf.mxu0  ;;  %v11296_v24 = vsel %vm812_vm3, %v15527_v16, %v824_v29  ;;  %v11301_v41 = vsel %vm812_vm3, %v824_v29, %v15529_v51  ;;  %v872_v29 = vrot.slane %v778_v59, 1  ;;  %v11320_v16 = vld [vmem:[#allocation2 + $0x20] sm:$0xff]   ;;  %v1589_v55 = vperm.slane %v1584_v3, %v10911_v12  ;;  %15534 = vst [vmem:[#allocation48_spill] sm:$0xff] %v11331_v9 }
  0xda   : > { %15526 = vst [vmem:[#allocation43_spill] sm:$0xff] %v11291_v57  ;;  %v915_v22 = vmul.f32 %v11088_v23, %v11296_v24  ;;  %v916_v44 = vmul.f32 %v11124_v38, %v11301_v41  ;;  %v9572_v59 = vunpack.c.l.bf16 %v10323_v54  ;;  %v15535_v25 = vrot.slane %v11052_v21, 1 }
  0xdb   : > { %15528 = vst [vmem:[#allocation44_spill] sm:$0xff] %v11296_v24  ;;  %8483 = vmatmul.msk.bf16.gmra.mxu3 %vm1042_vm2, %v1309_v15  ;;  %v1568_v2 = vpop.permute.xlu1 %1567  ;;  %8590 = vmatmul.msk.bf16.gmra.mxu0 %vm1042_vm2, %v9366_v39  ;;  %v15532_v15 = vrot.slane %v11207_v28, 7  ;;  %v2032_v28 = vsel %vm2012_vm6, %v2027_v33, %v11316_v49  ;;  %v1316_v10 = vrot.slane %v1314_v26, 4  ;;  %v15540_v11 = vrot.slane %v11260_v52, 1 }
  0xdc   : > { %15530 = vst [vmem:[#allocation45_spill] sm:$0xff] %v11301_v41  ;;  %8472 = vmatmul.msk.bf16.gmra.mxu1 %vm1042_vm2, %v1210_v0  ;;  %v1573_v51 = vperm.slane %v1568_v2, %v10911_v12  ;;  %v945_v37 = vpack.c.bf16 %v916_v44, %v915_v22  ;;  %v1581_v0 = vperm.slane %v1576_v62, %v10911_v12  ;;  %v11335_v2 = vunpack.c.l.bf16 %v11320_v16 }
  0xdd   : > { %v11328_v34 = vsel %vm1863_vm5, %v15532_v15, %v1875_v8  ;;  %v756_v22 = vunpack.c.l.bf16 %v507_v1  ;;  %v9573_v44 = vunpack.c.h.bf16 %v10323_v54  ;;  %v11342_v3 = vsel %vm812_vm3, %v15535_v25, %v872_v29 }
  0xde   : > { %15533 = vst [vmem:[#allocation47_spill] sm:$0xff] %v11328_v34  ;;  %v1806_v63 = vunpack.c.l.bf16 %v1573_v51  ;;  %v1212_v32 = vshrl.u32 %v945_v37, 16  ;;  %v1215_v39 = vshll.u32 %v945_v37, 16  ;;  %v11346_v51 = vsel %vm812_vm3, %v872_v29, %v11303_v45  ;;  %v529_v25 = vpop.permute.xlu2 %528 }
  0xdf   : > { %15536 = vst [vmem:[#allocation49_spill] sm:$0xff] %v11342_v3  ;;  %v1313_v15 = vrot.slane %v1311_v46, 3  ;;  %v1966_v33 = vmul.f32 %v11124_v38, %v11328_v34  ;;  %v1807_v21 = vunpack.c.l.bf16 %v1581_v0  ;;  %v11356_v1 = vunpack.c.l.bf16 %v1589_v55 }
  0xe0   : > { %15537 = vst [vmem:[#allocation50_spill] sm:$0xff] %v11346_v51  ;;  %v1877_v37 = vrot.slane %v1806_v63, 7  ;;  %v1214_v9 = vrot.slane %v1212_v32, 3  ;;  %v1217_v57 = vrot.slane %v1215_v39, 4  ;;  %v828_v29 = vrot.slane %v756_v22, 1 }
  0xe1   : > { %v11348_v62 = vpop.f32.mrf.mxu0  ;;  %v939_v32 = vmul.f32 %v9572_v59, %v11342_v3  ;;  %v940_v26 = vmul.f32 %v9573_v44, %v11346_v51  ;;  %v1879_v55 = vrot.slane %v1807_v21, 7  ;;  %v15261_v0 = vrot.slane %v11356_v1, 7 }
  0xe2   : > { %15538 = vst [vmem:[#allocation51_spill] sm:$0xff] %v11348_v62  ;;  %v11353_v54 = vsel %vm1863_vm5, %v1875_v8, %v1877_v37  ;;  %8489 = vmatmul.msk.bf16.gmra.mxu2 %vm1042_vm2, %v2032_v28  ;;  %v11363_v62 = vor.u32 %v1217_v57, %v1214_v9  ;;  %v11365_v8 = vor.u32 %v1316_v10, %v1313_v15  ;;  %v2033_v22 = vshrl.u32 %v11276_v17, 16  ;;  %v11378_v9 = vpop.f32.mrf.mxu2  ;;  %v10328_v10 = vld [vmem:[#allocation2 + $0x28] sm:$0xff]   ;;  %v9367_v15 = vld [vmem:[#allocation2 + $0x34] sm:$0xff] }
  0xe3   : > { %15539 = vst [vmem:[#allocation52_spill] sm:$0xff] %v11353_v54  ;;  %v1967_v63 = vmul.f32 %v11335_v2, %v11353_v54  ;;  %v11374_v59 = vsel %vm812_vm3, %v15540_v11, %v828_v29  ;;  %v534_v57 = vperm.slane %v529_v25, %v10911_v12  ;;  %v957_v52 = vpack.c.bf16 %v940_v26, %v939_v32 }
  0xe4   : > { %v511_v46 = vpop.permute.xlu1 %510  ;;  %15541 = vst [vmem:[#allocation53_spill] sm:$0xff] %v11374_v59  ;;  %v1219_v17 = vsel %vm1184_vm4, %v11287_v4, %v11363_v62  ;;  %v1318_v11 = vsel %vm1184_vm4, %v11285_v56, %v11365_v8  ;;  %v11392_v25 = vsel %vm1863_vm5, %v1879_v55, %v15261_v0  ;;  %v11404_v56 = vsel %vm1863_vm5, %v1877_v37, %v1879_v55 }
  0xe5   : > { %v516_v39 = vperm.slane %v511_v46, %v10911_v12  ;;  %v11367_v28 = vpack.c.bf16 %v1967_v63, %v1966_v33  ;;  %15542 = vst [vmem:[#allocation54_spill] sm:$0xff] %v11378_v9  ;;  %v9529_v33 = vunpack.c.h.bf16 %v11320_v16  ;;  %v426_v46 = vld [vmem:[#allocation2 + $0x80] sm:$0xf]  ;;  %v2035_v16 = vor.u32 %v2033_v22, %v11316_v49 }
  0xe6   : > { %15544 = vst [vmem:[#allocation56_spill] sm:$0xff] %v11392_v25  ;;  %v11397_v9 = vunpack.c.l.bf16 %v10328_v10  ;;  %v11408_v26 = vunpack.c.l.bf16 %v534_v57  ;;  %v747_v0 = vunpack.c.l.bf16 %v426_v46  ;;  %v1320_v51 = vshrl.u32 %v957_v52, 16  ;;  %v538_v31 = vpop.permute.xlu2 %537 }
  0xe7   : > { %v757_v13 = vunpack.c.l.bf16 %v516_v39  ;;  %v2037_v44 = vshll.u32 %v11367_v28, 16  ;;  %v1592_v39 = vpop.permute.xlu0 %1591  ;;  %15546 = vst [vmem:[#allocation58_spill] sm:$0xff] %v11404_v56  ;;  %v1968_v37 = vmul.f32 %v9529_v33, %v11404_v56  ;;  %v11426_v60 = vunpack.c.h.bf16 %v10328_v10  ;;  %v2317_v10 = vld [vmem:[#allocation2 + $0x8] sm:$0x8] }
  0xe8   : > { %v1969_v55 = vmul.f32 %v11397_v9, %v11392_v25  ;;  %v1597_v46 = vperm.slane %v1592_v39, %v10911_v12 }
  0xe9   : > { %v11381_v21 = vpop.f32.mrf.mxu0  ;;  %v830_v63 = vrot.slane %v757_v13, 1  ;;  %v917_v13 = vmul.f32 %v11335_v2, %v11374_v59  ;;  %v11406_v32 = vrot.slane %v2037_v44, 1 }
  0xea   : > { %15543 = vst [vmem:[#allocation55_spill] sm:$0xff] %v11381_v21  ;;  %v11429_v6 = vpack.c.bf16 %v1969_v55, %v1968_v37  ;;  %v2041_v55 = vshrl.u32 %v11367_v28, 16 }
  0xeb   : > { %v11400_v4 = vsel %vm812_vm3, %v828_v29, %v830_v63  ;;  %8484 = vmatmul.msk.bf16.gmra.mxu3 %vm1042_vm2, %v1318_v11  ;;  %8591 = vmatmul.msk.bf16.gmra.mxu0 %vm1042_vm2, %v9367_v15  ;;  %v1323_v11 = vshll.u32 %v957_v52, 16  ;;  %v2040_v57 = vsel %vm2012_vm6, %v2035_v16, %v11406_v32 }
  0xec   : > { %15545 = vst [vmem:[#allocation57_spill] sm:$0xff] %v11400_v4  ;;  %8473 = vmatmul.msk.bf16.gmra.mxu1 %vm1042_vm2, %v1219_v17  ;;  %v520_v49 = vpop.permute.xlu1 %519  ;;  %v918_v22 = vmul.f32 %v9529_v33, %v11400_v4  ;;  %v1322_v33 = vrot.slane %v1320_v51, 3  ;;  %v1809_v51 = vunpack.c.l.bf16 %v1597_v46  ;;  %v543_v46 = vperm.slane %v538_v31, %v10911_v12 }
  0xed   : > { %v525_v29 = vperm.slane %v520_v49, %v10911_v12  ;;  %v941_v49 = vmul.f32 %v11303_v45, %v747_v0  ;;  %v1325_v15 = vrot.slane %v1323_v11, 4  ;;  %v15550_v0 = vrot.slane %v11408_v26, 1 }
  0xee   : > { %v946_v3 = vpack.c.bf16 %v918_v22, %v917_v13  ;;  %v11424_v22 = vpop.f32.mrf.mxu2 }
  0xef   : > { %v758_v44 = vunpack.c.l.bf16 %v525_v29  ;;  %15548 = vst [vmem:[#allocation60_spill] sm:$0xff] %v11424_v22  ;;  %v958_v22 = vpack.c.bf16 %v941_v49, %v941_v49  ;;  %v11446_v37 = vor.u32 %v1325_v15, %v1322_v33  ;;  %v1616_v33 = vpop.permute.xlu2 %1615 }
  0xf0   : > { %v1221_v17 = vshrl.u32 %v946_v3, 16  ;;  %v1224_v21 = vshll.u32 %v946_v3, 16 }
  0xf1   : > { %v11422_v13 = vpop.f32.mrf.mxu0  ;;  %v832_v52 = vrot.slane %v758_v44, 1  ;;  %v547_v44 = vpop.permute.xlu0 %546  ;;  %v1329_v14 = vshrl.u32 %v958_v22, 16  ;;  %v1332_v15 = vshll.u32 %v958_v22, 16  ;;  %v11471_v22 = vunpack.c.l.bf16 %v10329_v50 }
  0xf2   : > { %15547 = vst [vmem:[#allocation59_spill] sm:$0xff] %v11422_v13  ;;  %8490 = vmatmul.msk.bf16.gmra.mxu2 %vm1042_vm2, %v2040_v57  ;;  %v1223_v16 = vrot.slane %v1221_v17, 3  ;;  %v1226_v29 = vrot.slane %v1224_v21, 4  ;;  %v2045_v57 = vshll.u32 %v11429_v6, 16  ;;  %v2318_v17 = vld [vmem:[#allocation2 + $0xc] sm:$0xf]  ;;  %v552_v49 = vperm.slane %v547_v44, %v10911_v12 }
  0xf3   : > { %v11432_v3 = vsel %vm812_vm3, %v830_v63, %v832_v52  ;;  %v11437_v39 = vsel %vm812_vm3, %v832_v52, %v15550_v0  ;;  %v2350_v52 = vunpack.c.l.bf16 %v2317_v10  ;;  %v1883_v0 = vrot.slane %v1809_v51, 7 }
  0xf4   : > { %15549 = vst [vmem:[#allocation61_spill] sm:$0xff] %v11432_v3  ;;  %v11439_v13 = vor.u32 %v1226_v29, %v1223_v16  ;;  %v919_v21 = vmul.f32 %v11397_v9, %v11432_v3  ;;  %v920_v11 = vmul.f32 %v11426_v60, %v11437_v39  ;;  %v9368_v29 = vld [vmem:[#allocation2 + $0x3c] sm:$0xff]  ;;  %v2351_v53 = vunpack.c.l.bf16 %v2318_v17  ;;  %v8619_v17 = vld [vmem:[%s15220_s2 + $0x18] sm:$0xf] }
  0xf5   : > { %15551 = vst [vmem:[#allocation62_spill] sm:$0xff] %v11437_v39  ;;  %v1600_v45 = vpop.permute.xlu1 %1599  ;;  %v1327_v44 = vsel %vm1184_vm4, %v11365_v8, %v11446_v37  ;;  %v2043_v51 = vor.u32 %v2041_v55, %v11406_v32  ;;  %v11464_v10 = vrot.slane %v2045_v57, 1  ;;  %v15554_v8 = vrot.slane %v11356_v1, 7 }
  0xf6   : > { %v1605_v63 = vperm.slane %v1600_v45, %v10911_v12  ;;  %v1228_v45 = vsel %vm1184_vm4, %v11363_v62, %v11439_v13  ;;  %v947_v28 = vpack.c.bf16 %v920_v11, %v919_v21  ;;  %v11469_v62 = vpop.f32.mrf.mxu2  ;;  %v2383_v21 = vmul.f32 %v2350_v52, %v11075_v35 }
  0xf7   : > { %15553 = vst [vmem:[#allocation64_spill] sm:$0xff] %v11469_v62  ;;  %v11479_v32 = vsel %vm1863_vm5, %v15554_v8, %v1883_v0  ;;  %v1331_v55 = vrot.slane %v1329_v14, 3  ;;  %v1621_v57 = vperm.slane %v1616_v33, %v10911_v12  ;;  %v2048_v14 = vsel %vm2012_vm6, %v2043_v51, %v11464_v10 }
  0xf8   : > { %v11452_v16 = vunpack.c.l.bf16 %v1605_v63  ;;  %v760_v63 = vunpack.c.l.bf16 %v543_v46  ;;  %15555 = vst [vmem:[#allocation65_spill] sm:$0xff] %v11479_v32  ;;  %v8636_v46 = vld [vmem:[%s15220_s2 + $0x1c] sm:$0xf]  ;;  %v1233_v52 = vshll.u32 %v947_v28, 16  ;;  %v1334_v33 = vrot.slane %v1332_v15, 4 }
  0xf9   : > { %v11454_v42 = vpop.f32.mrf.mxu0  ;;  %v11504_v62 = vunpack.c.l.bf16 %v1621_v57  ;;  %v15558_v57 = vrot.slane %v11408_v26, 1 }
  0xfa   : > { %15552 = vst [vmem:[#allocation63_spill] sm:$0xff] %v11454_v42  ;;  %v15272_v31 = vrot.slane %v11452_v16, 7  ;;  %v11467_v42 = vunpack.c.l.bf16 %v552_v49  ;;  %v1230_v49 = vshrl.u32 %v947_v28, 16  ;;  %v836_v8 = vrot.slane %v760_v63, 1 }
  0xfb   : > { %8485 = vmatmul.msk.bf16.gmra.mxu3 %vm1042_vm2, %v1327_v44  ;;  %8592 = vmatmul.msk.bf16.gmra.mxu0 %vm1042_vm2, %v9368_v29  ;;  %v3754_v29 = vsel %vm1091_vm0, %v8619_v17, 0  ;;  %v2384_v44 = vmul.f32 %v2351_v53, %v11099_v27  ;;  %v1970_v28 = vmul.f32 %v11426_v60, %v11479_v32  ;;  %v1235_v15 = vrot.slane %v1233_v52, 4  ;;  %v11516_v27 = vld [vmem:[#allocation2 + $0x20] sm:$0xff]  }
  0xfc   : > { %8474 = vmatmul.msk.bf16.gmra.mxu1 %vm1042_vm2, %v1228_v45  ;;  %v11484_v11 = vsel %vm1863_vm5, %v1883_v0, %v15272_v31  ;;  %v4008_v45 = vsel %vm1091_vm0, %v8636_v46, 0  ;;  %3763 = vmatpush.bf16.msra.mxu2 %v3754_v29  ;;  %v1232_v51 = vrot.slane %v1230_v49, 3  ;;  %v1335_v53 = vor.u32 %v1334_v33, %v1331_v55  ;;  %v11514_v31 = vld [vmem:[#allocation2 + $0x18] sm:$0xff]  }
  0xfd   : > { %15556 = vst [vmem:[#allocation66_spill] sm:$0xff] %v11484_v11  ;;  %v1608_v1 = vpop.permute.xlu1 %1607  ;;  %4017 = vmatpush.bf16.msra.mxu3 %v4008_v45  ;;  %v1971_v17 = vmul.f32 %v11471_v22, %v11484_v11  ;;  %v11509_v29 = vunpack.c.h.bf16 %v10329_v50  ;;  %v2416_v63 = vpack.c.bf16 %v2384_v44, %v2383_v21  ;;  %v8717_v45 = vld [vmem:[%s15220_s2 + $0x20] sm:$0xf]  ;;  %v15560_v49 = vrot.slane %v11467_v42, 1 }
  0xfe   : > { %v1613_v0 = vperm.slane %v1608_v1, %v10911_v12  ;;  %v4430_v21 = vsel %vm1091_vm0, %v8717_v45, 0  ;;  %v11532_v33 = vor.u32 %v1235_v15, %v1232_v51  ;;  %v11534_v44 = vpop.f32.mrf.mxu2  ;;  %v10330_v15 = vld [vmem:[#allocation2 + $0x38] sm:$0xff]   ;;  %v15563_v26 = vrot.slane %v11452_v16, 7 }
  0xff   : > { %v11526_v55 = vsel %vm812_vm3, %v836_v8, %v15560_v49  ;;  %v11528_v50 = vpack.c.bf16 %v1971_v17, %v1970_v28  ;;  %4439 = vmatpush.bf16.msra.mxu0 %v4430_v21  ;;  %15562 = vst [vmem:[#allocation70_spill] sm:$0xff] %v11534_v44  ;;  %v1336_v28 = vsel %vm1184_vm4, %v11446_v37, %v1335_v53  ;;  %v2049_v17 = vshrl.u32 %v11429_v6, 16  ;;  %v9369_v53 = vld [vmem:[#allocation2 + $0x44] sm:$0xff] }
 0x100   : > { %v1811_v46 = vunpack.c.l.bf16 %v1613_v0  ;;  %v11521_v0 = vsel %vm812_vm3, %v15558_v57, %v836_v8  ;;  %15561 = vst [vmem:[#allocation69_spill] sm:$0xff] %v11526_v55  ;;  %v922_v51 = vmul.f32 %v11509_v29, %v11526_v55  ;;  %v2436_v49 = vshrl.u32 %v2416_v63, 16 }
 0x101   : > { %v11506_v1 = vpop.f32.mrf.mxu0  ;;  %15559 = vst [vmem:[#allocation68_spill] sm:$0xff] %v11521_v0  ;;  %v2053_v45 = vshll.u32 %v11528_v50, 16  ;;  %v2439_v21 = vshll.u32 %v2416_v63, 16  ;;  %v3086_v63 = vmul.f32 %v11397_v9, %v11353_v54  ;;  %v1237_v16 = vsel %vm1184_vm4, %v11439_v13, %v11532_v33  ;;  %v1624_v54 = vpop.permute.xlu2 %1623 }
 0x102   : > { %15557 = vst [vmem:[#allocation67_spill] sm:$0xff] %v11506_v1  ;;  %8491 = vmatmul.msk.bf16.gmra.mxu2 %vm1042_vm2, %v2048_v14  ;;  %v1887_v52 = vrot.slane %v1811_v46, 7  ;;  %v15280_v14 = vrot.slane %v11504_v62, 7  ;;  %v15277_v1 = vunpack.c.h.bf16 %v11516_v27  ;;  %v921_v46 = vmul.f32 %v11471_v22, %v11521_v0 }
 0x104   : > { %v3085_v57 = vmul.f32 %v15277_v1, %v11328_v34  ;;  %v11553_v37 = vsel %vm1863_vm5, %v15563_v26, %v1887_v52  ;;  %v11559_v44 = vsel %vm1863_vm5, %v1887_v52, %v15280_v14  ;;  %v2444_v26 = vshrl.u32 %v11193_v7, 16 }
 0x105   : > { %15564 = vst [vmem:[#allocation71_spill] sm:$0xff] %v11553_v37  ;;  %v2447_v1 = vshll.u32 %v11193_v7, 16  ;;  %v2051_v34 = vor.u32 %v2049_v17, %v11464_v10  ;;  %v948_v36 = vpack.c.bf16 %v922_v51, %v921_v46  ;;  %v2391_v52 = vmul.f32 %v11397_v9, %v11374_v59  ;;  %v1632_v9 = vpop.permute.xlu0 %1631 }
 0x106   : > { %v556_v8 = vpop.permute.xlu1 %555  ;;  %15565 = vst [vmem:[#allocation72_spill] sm:$0xff] %v11559_v44  ;;  %v2392_v14 = vmul.f32 %v11426_v60, %v11400_v4  ;;  %v1972_v13 = vmul.f32 %v11509_v29, %v11553_v37  ;;  %v3087_v10 = vmul.f32 %v11426_v60, %v11404_v56  ;;  %v3088_v51 = vmul.f32 %v11471_v22, %v11392_v25 }
 0x107   : > { %v561_v6 = vperm.slane %v556_v8, %v10911_v12  ;;  %v11570_v8 = vunpack.c.l.bf16 %v10330_v15  ;;  %v2441_v4 = vrot.slane %v2439_v21, 4  ;;  %v2446_v59 = vrot.slane %v2444_v26, 3 }
 0x108   : > { %v11586_v46 = vpack.c.bf16 %v2392_v14, %v2391_v52  ;;  %v2449_v37 = vrot.slane %v2447_v1, 4  ;;  %v1242_v5 = vshll.u32 %v948_v36, 16  ;;  %v1629_v60 = vperm.slane %v1624_v54, %v10911_v12 }
 0x109   : > { %v11563_v35 = vpop.f32.mrf.mxu0  ;;  %v1973_v7 = vmul.f32 %v11570_v8, %v11559_v44  ;;  %v762_v17 = vunpack.c.l.bf16 %v561_v6  ;;  %v1239_v44 = vshrl.u32 %v948_v36, 16  ;;  %v15568_v1 = vunpack.c.l.bf16 %v11514_v31 }
 0x10a   : > { %15566 = vst [vmem:[#allocation73_spill] sm:$0xff] %v11563_v35  ;;  %v2055_v35 = vrot.slane %v2053_v45, 1  ;;  %v2438_v45 = vrot.slane %v2436_v49, 3  ;;  %v4198_v49 = vmul.f32 %v11088_v23, %v11108_v43  ;;  %v11606_v26 = vor.u32 %v2449_v37, %v2446_v59 }
 0x10b   : > { %8486 = vmatmul.msk.bf16.gmra.mxu3 %vm1042_vm2, %v1336_v28  ;;  %8593 = vmatmul.msk.bf16.gmra.mxu0 %vm1042_vm2, %v9369_v53  ;;  %v3115_v28 = vpack.c.bf16 %v3086_v63, %v3085_v57  ;;  %v11592_v53 = vpop.f32.mrf.mxu2  ;;  %v11595_v14 = vpack.c.bf16 %v1973_v7, %v1972_v13  ;;  %v11597_v57 = vpack.c.bf16 %v3088_v51, %v3087_v10  ;;  %v840_v21 = vrot.slane %v762_v17, 1  ;;  %v4131_v10 = vld [vmem:[#allocation2 + $0x14] sm:$0xf] }
 0x10c   : > { %8475 = vmatmul.msk.bf16.gmra.mxu1 %vm1042_vm2, %v1237_v16  ;;  %v2056_v6 = vsel %vm2012_vm6, %v2051_v34, %v2055_v35  ;;  %15567 = vst [vmem:[#allocation74_spill] sm:$0xff] %v11592_v53  ;;  %v1637_v16 = vperm.slane %v1632_v9, %v10911_v12  ;;  %v2387_v36 = vmul.f32 %v15568_v1, %v11168_v20  ;;  %v11608_v52 = vunpack.c.h.bf16 %v10330_v15  ;;  %v8602_v51 = vld [vmem:[%s15220_s2 + $0x14] sm:$0xf] }
 0x10d   : > { %v3155_v63 = vshll.u32 %v3115_v28, 16  ;;  %v2442_v34 = vor.u32 %v2441_v4, %v2438_v45  ;;  %v15570_v13 = vunpack.c.h.bf16 %v11514_v31  ;;  %v1241_v23 = vrot.slane %v1239_v44, 3 }
 0x10e   : > { %v1244_v17 = vrot.slane %v1242_v5, 4  ;;  %v1813_v9 = vunpack.c.l.bf16 %v1629_v60  ;;  %v3159_v1 = vshrl.u32 %v3115_v28, 16  ;;  %v11617_v4 = vunpack.c.l.bf16 %v1637_v16 }
 0x10f   : > { %v2388_v7 = vmul.f32 %v15570_v13, %v11213_v18  ;;  %v2057_v59 = vshrl.u32 %v11528_v50, 16  ;;  %v2061_v15 = vshll.u32 %v11595_v14, 16  ;;  %v3312_v37 = vsel %vm1091_vm0, %v8602_v51, 0 }
 0x110   : > { %v15571_v45 = vrot.slane %v10938_v47, 1  ;;  %v15573_v5 = vrot.slane %v11467_v42, 1  ;;  %3321 = vmatpush.bf16.msrb.mxu1 %v3312_v37  ;;  %v11632_v28 = vrot.slane %v3155_v63, 1  ;;  %v4164_v60 = vunpack.c.l.bf16 %v4131_v10 }
 0x111   : > { %v11604_v54 = vpop.f32.mrf.mxu0  ;;  %v4199_v50 = vmul.f32 %v11124_v38, %v11183_v19  ;;  %v4200_v16 = vmul.f32 %v11335_v2, %v11205_v30  ;;  %v2451_v47 = vsel %vm1184_vm4, %v2442_v34, %v11606_v26  ;;  %v2418_v13 = vpack.c.bf16 %v2388_v7, %v2387_v36 }
 0x112   : > { %15569 = vst [vmem:[#allocation75_spill] sm:$0xff] %v11604_v54  ;;  %8492 = vmatmul.msk.bf16.gmra.mxu2 %vm1042_vm2, %v2056_v6  ;;  %v11625_v6 = vsel %vm812_vm3, %v840_v21, %v15571_v45  ;;  %v11630_v44 = vsel %vm812_vm3, %v15573_v5, %v840_v21  ;;  %v11640_v51 = vor.u32 %v1244_v17, %v1241_v23  ;;  %v1891_v42 = vrot.slane %v1813_v9, 7  ;;  %v9370_v45 = vld [vmem:[#allocation2 + $0x4c] sm:$0xff] }
 0x113   : > { %15572 = vst [vmem:[#allocation76_spill] sm:$0xff] %v11625_v6  ;;  %v3161_v21 = vor.u32 %v3159_v1, %v11632_v28  ;;  %v3163_v37 = vshll.u32 %v11597_v57, 16  ;;  %v2059_v10 = vor.u32 %v2057_v59, %v2055_v35  ;;  %v923_v38 = vmul.f32 %v11570_v8, %v11630_v44  ;;  %v11660_v17 = vpop.f32.mrf.mxu2  ;;  %v11662_v1 = vld [vmem:[#allocation2 + $0x40] sm:$0xff]  }
 0x114   : > { %15574 = vst [vmem:[#allocation77_spill] sm:$0xff] %v11630_v44  ;;  %v924_v2 = vmul.f32 %v11608_v52, %v11625_v6  ;;  %v11649_v5 = vrot.slane %v2061_v15, 1  ;;  %v2471_v36 = vshrl.u32 %v11586_v46, 16  ;;  %v4197_v7 = vmul.f32 %v4164_v60, %v11070_v58 }
 0x115   : > { %v11652_v34 = vrot.slane %v3163_v37, 1  ;;  %v1246_v35 = vsel %vm1184_vm4, %v11532_v33, %v11640_v51  ;;  %15576 = vst [vmem:[#allocation79_spill] sm:$0xff] %v11660_v17  ;;  %v2453_v9 = vshrl.u32 %v2418_v13, 16  ;;  %v2474_v59 = vshll.u32 %v11586_v46, 16 }
 0x116   : > { %v2393_v15 = vmul.f32 %v11471_v22, %v11432_v3  ;;  %v15577_v37 = vrot.slane %v11504_v62, 7  ;;  %v2456_v63 = vshll.u32 %v2418_v13, 16  ;;  %v2394_v53 = vmul.f32 %v11509_v29, %v11437_v39 }
 0x117   : > { %v11676_v33 = vsel %vm2012_vm6, %v3161_v21, %v11652_v34  ;;  %v15579_v46 = vrot.slane %v11617_v4, 7  ;;  %v949_v22 = vpack.c.bf16 %v924_v2, %v923_v38  ;;  %v4230_v62 = vpack.c.bf16 %v4198_v49, %v4197_v7 }
 0x118   : > { %v11670_v60 = vsel %vm1863_vm5, %v15577_v37, %v1891_v42  ;;  %v11684_v3 = vpack.c.bf16 %v4200_v16, %v4199_v50  ;;  %v2064_v13 = vsel %vm2012_vm6, %v2059_v10, %v11649_v5  ;;  %v11691_v21 = vunpack.c.l.bf16 %v11662_v1  ;;  %v1648_v16 = vpop.permute.xlu2 %1647 }
 0x119   : > { %v11655_v23 = vpop.f32.mrf.mxu0  ;;  %15578 = vst [vmem:[#allocation80_spill] sm:$0xff] %v11670_v60  ;;  %v11682_v17 = vsel %vm1863_vm5, %v1891_v42, %v15579_v46  ;;  %v2421_v37 = vpack.c.bf16 %v2394_v53, %v2393_v15  ;;  %v1974_v42 = vmul.f32 %v11608_v52, %v11670_v60  ;;  %v2476_v46 = vrot.slane %v2474_v59, 4 }
 0x11a   : > { %15575 = vst [vmem:[#allocation78_spill] sm:$0xff] %v11655_v23  ;;  %v4252_v38 = vshll.u32 %v4230_v62, 16  ;;  %v4257_v49 = vshll.u32 %v11684_v3, 16  ;;  %v1975_v2 = vmul.f32 %v11691_v21, %v11682_v17  ;;  %v4250_v7 = vshrl.u32 %v4230_v62, 16 }
 0x11b   : > { %8505 = vmatmul.msk.bf16.vlgmr.msrb.gmra.mxu3 %vm1042_vm2, %v2451_v47  ;;  %15580 = vst [vmem:[#allocation81_spill] sm:$0xff] %v11682_v17  ;;  %8594 = vmatmul.msk.bf16.gmra.mxu0 %vm1042_vm2, %v9370_v45  ;;  %v2473_v47 = vrot.slane %v2471_v36, 3  ;;  %v2480_v45 = vshrl.u32 %v2421_v37, 16  ;;  %v2483_v10 = vshll.u32 %v2421_v37, 16  ;;  %v1251_v39 = vshll.u32 %v949_v22, 16  ;;  %v1640_v36 = vpop.permute.xlu1 %1639 }
 0x11c   : > { %8476 = vmatmul.msk.bf16.gmra.mxu1 %vm1042_vm2, %v1246_v35  ;;  %v1248_v35 = vshrl.u32 %v949_v22, 16  ;;  %v1653_v53 = vperm.slane %v1648_v16, %v10911_v12  ;;  %v4254_v15 = vrot.slane %v4252_v38, 1  ;;  %v1645_v59 = vperm.slane %v1640_v36, %v10911_v12  ;;  %v11716_v36 = vpop.f32.mrf.mxu2 }
 0x11d   : > { %v2482_v18 = vrot.slane %v2480_v45, 3  ;;  %v2485_v20 = vrot.slane %v2483_v10, 4  ;;  %v11702_v54 = vrot.slane %v4257_v49, 1  ;;  %v2455_v23 = vrot.slane %v2453_v9, 3  ;;  %15583 = vst [vmem:[#allocation84_spill] sm:$0xff] %v11716_v36 }
 0x11e   : > { %v11696_v50 = vpop.f32.mrf.mxu3  ;;  %v2458_v25 = vrot.slane %v2456_v63, 4  ;;  %v2395_v37 = vmul.f32 %v11570_v8, %v11521_v0  ;;  %v2396_v22 = vmul.f32 %v11608_v52, %v11526_v55  ;;  %v15301_v62 = vunpack.c.l.bf16 %v11516_v27 }
 0x11f   : > { %15581 = vst [vmem:[#allocation82_spill] sm:$0xff] %v11696_v50  ;;  %v11712_v38 = vor.u32 %v2476_v46, %v2473_v47  ;;  %v11714_v16 = vor.u32 %v2485_v20, %v2482_v18  ;;  %v4255_v49 = vor.u32 %v4254_v15, %v4250_v7  ;;  %v1250_v45 = vrot.slane %v1248_v35, 3  ;;  %v9371_v15 = vld [vmem:[#allocation2 + $0x54] sm:$0xff] }
 0x120   : > { %v1253_v10 = vrot.slane %v1251_v39, 4  ;;  %v11718_v63 = vpack.c.bf16 %v1975_v2, %v1974_v42  ;;  %v11720_v9 = vunpack.c.l.bf16 %v1653_v53  ;;  %v2422_v20 = vpack.c.bf16 %v2396_v22, %v2395_v37 }
 0x121   : > { %v11704_v50 = vpop.f32.mrf.mxu0  ;;  %v11729_v47 = vsel %vm2012_vm6, %v4255_v49, %v11702_v54  ;;  %v11733_v39 = vor.u32 %v2458_v25, %v2455_v23  ;;  %v2389_v42 = vmul.f32 %v15301_v62, %v11296_v24  ;;  %v15585_v46 = vunpack.c.h.bf16 %v11516_v27 }
 0x122   : > { %15582 = vst [vmem:[#allocation83_spill] sm:$0xff] %v11704_v50  ;;  %8493 = vmatmul.msk.bf16.gmra.mxu2 %vm1042_vm2, %v2064_v13  ;;  %v1815_v50 = vunpack.c.l.bf16 %v1645_v59  ;;  %v11725_v13 = vsel %vm1184_vm4, %v11712_v38, %v11714_v16  ;;  %v11741_v7 = vor.u32 %v1253_v10, %v1250_v45  ;;  %v2065_v35 = vshrl.u32 %v11595_v14, 16 }
 0x123   : > { %v2390_v2 = vmul.f32 %v15585_v46, %v11301_v41  ;;  %v2069_v53 = vshll.u32 %v11718_v63, 16  ;;  %v15302_v59 = vrot.slane %v11720_v9, 7  ;;  %v2489_v23 = vshrl.u32 %v2422_v20, 16  ;;  %v11751_v46 = vld [vmem:[#allocation2 + $0x48] sm:$0xff]  }
 0x124   : > { %v1895_v37 = vrot.slane %v1815_v50, 7  ;;  %v2492_v22 = vshll.u32 %v2422_v20, 16  ;;  %v2460_v49 = vsel %vm1184_vm4, %v11606_v26, %v11733_v39  ;;  %v3089_v14 = vmul.f32 %v11509_v29, %v11479_v32 }
 0x125   : > { %v2419_v62 = vpack.c.bf16 %v2390_v2, %v2389_v42  ;;  %v3090_v45 = vmul.f32 %v11570_v8, %v11484_v11  ;;  %v1255_v50 = vsel %vm1184_vm4, %v11640_v51, %v11741_v7  ;;  %v2067_v10 = vor.u32 %v2065_v35, %v11649_v5  ;;  %v11776_v42 = vpop.f32.mrf.mxu2  ;;  %v15635_v11 = vld [vmem:[#allocation7_spill] sm:$0xff] }
 0x126   : > { %v11731_v18 = vpop.f32.mrf.mxu3  ;;  %v2071_v20 = vrot.slane %v2069_v53, 1  ;;  %v15587_v26 = vrot.slane %v11617_v4, 7  ;;  %v11772_v8 = vsel %vm1863_vm5, %v1895_v37, %v15302_v59  ;;  %15590 = vst [vmem:[#allocation89_spill] sm:$0xff] %v11776_v42  ;;  %v11779_v5 = vunpack.c.h.bf16 %v11662_v1  ;;  %v10354_v59 = vld [vmem:[#allocation2 + $0x10] sm:$0xff]  }
 0x127   : > { %15584 = vst [vmem:[#allocation85_spill] sm:$0xff] %v11731_v18  ;;  %v11774_v51 = vpack.c.bf16 %v3090_v45, %v3089_v14  ;;  %v11782_v2 = vunpack.c.l.bf16 %v11751_v46  ;;  %v2491_v35 = vrot.slane %v2489_v23, 3  ;;  %v2494_v4 = vrot.slane %v2492_v22, 4  ;;  %v3013_v45 = vld [vmem:[#allocation2 + $0xc] sm:$0xf] }
 0x128   : > { %v11767_v29 = vsel %vm1863_vm5, %v15587_v26, %v1895_v37  ;;  %15589 = vst [vmem:[#allocation88_spill] sm:$0xff] %v11772_v8  ;;  %v1664_v37 = vpop.permute.xlu2 %1663  ;;  %v1656_v26 = vpop.permute.xlu1 %1655  ;;  %v9696_v24 = vunpack.c.l.bf16 %v10354_v59  ;;  %v3046_v18 = vunpack.c.l.bf16 %v3013_v45 }
 0x129   : > { %v11746_v25 = vpop.f32.mrf.mxu0  ;;  %15588 = vst [vmem:[#allocation87_spill] sm:$0xff] %v11767_v29  ;;  %v1976_v14 = vmul.f32 %v11779_v5, %v11767_v29  ;;  %v1977_v1 = vmul.f32 %v11782_v2, %v11772_v8  ;;  %v3171_v42 = vshll.u32 %v11774_v51, 16  ;;  %v1669_v23 = vperm.slane %v1664_v37, %v10911_v12 }
 0x12a   : > { %15586 = vst [vmem:[#allocation86_spill] sm:$0xff] %v11746_v25  ;;  %v1661_v22 = vperm.slane %v1656_v26, %v10911_v12 }
 0x12b   : > { %8506 = vmatmul.msk.bf16.gmra.mxu3 %vm1042_vm2, %v2460_v49  ;;  %8595 = vmatmul.msk.bf16.gmra.mxu0 %vm1042_vm2, %v9371_v15  ;;  %v2462_v15 = vshrl.u32 %v2419_v62, 16  ;;  %v2465_v49 = vshll.u32 %v2419_v62, 16  ;;  %v3167_v62 = vshrl.u32 %v11597_v57, 16  ;;  %v11800_v25 = vpack.c.bf16 %v1977_v1, %v1976_v14 }
 0x12c   : > { %8477 = vmatmul.msk.bf16.gmra.mxu1 %vm1042_vm2, %v1255_v50  ;;  %v2072_v50 = vsel %vm2012_vm6, %v2067_v10, %v2071_v20  ;;  %v11797_v10 = vor.u32 %v2494_v4, %v2491_v35  ;;  %v11808_v57 = vrot.slane %v3171_v42, 1  ;;  %v1817_v35 = vunpack.c.l.bf16 %v1661_v22  ;;  %v9372_v22 = vld [vmem:[#allocation2 + $0x5c] sm:$0xff] }
 0x12d   : > { %v2467_v41 = vrot.slane %v2465_v49, 4  ;;  %v3169_v26 = vor.u32 %v3167_v62, %v11652_v34  ;;  %v11818_v14 = vpop.f32.mrf.mxu2  ;;  %v2077_v1 = vshll.u32 %v11800_v25, 16  ;;  %v3079_v34 = vmul.f32 %v3046_v18, %v11070_v58 }
 0x12e   : > { %v11784_v53 = vpop.f32.mrf.mxu3  ;;  %v11805_v37 = vsel %vm1184_vm4, %v11714_v16, %v11797_v10  ;;  %15594 = vst [vmem:[#allocation93_spill] sm:$0xff] %v11818_v14  ;;  %v2073_v16 = vshrl.u32 %v11718_v63, 16  ;;  %v3080_v42 = vmul.f32 %v9696_v24, %v11108_v43  ;;  %v15596_v63 = vunpack.c.l.bf16 %v11514_v31 }
 0x12f   : > { %15591 = vst [vmem:[#allocation90_spill] sm:$0xff] %v11784_v53  ;;  %v2464_v53 = vrot.slane %v2462_v15, 3  ;;  %v11814_v4 = vsel %vm2012_vm6, %v3169_v26, %v11808_v57  ;;  %v10333_v26 = vld [vmem:[#allocation2 + $0x50] sm:$0xff]   ;;  %v1264_v24 = vsel %vm1184_vm4, %v11741_v7, %v10988_v61  ;;  %v2079_v18 = vrot.slane %v2077_v1, 1 }
 0x130   : > { %v15597_v58 = vrot.slane %v11720_v9, 7  ;;  %v11850_v61 = vunpack.c.l.bf16 %v10333_v26  ;;  %v1680_v9 = vpop.permute.xlu1 %1679 }
 0x131   : > { %v11795_v36 = vpop.f32.mrf.mxu0  ;;  %v2468_v49 = vor.u32 %v2467_v41, %v2464_v53  ;;  %v3082_v53 = vmul.f32 %v15596_v63, %v11205_v30  ;;  %v11848_v63 = vunpack.c.h.bf16 %v11751_v46  ;;  %v1685_v46 = vperm.slane %v1680_v9, %v10911_v12 }
 0x132   : > { %15592 = vst [vmem:[#allocation91_spill] sm:$0xff] %v11795_v36  ;;  %8494 = vmatmul.msk.bf16.gmra.mxu2 %vm1042_vm2, %v2072_v50  ;;  %v11810_v36 = vunpack.c.l.bf16 %v1669_v23  ;;  %v9697_v50 = vunpack.c.h.bf16 %v10354_v59  ;;  %v1899_v23 = vrot.slane %v1817_v35, 7  ;;  %v3112_v35 = vpack.c.bf16 %v3080_v42, %v3079_v34 }
 0x133   : > { %v2469_v41 = vsel %vm1184_vm4, %v11733_v39, %v2468_v49 }
 0x134   : > { %v1901_v45 = vrot.slane %v11810_v36, 7  ;;  %v3081_v59 = vmul.f32 %v9697_v50, %v11183_v19  ;;  %v2075_v36 = vor.u32 %v2073_v16, %v2071_v20  ;;  %v11840_v39 = vsel %vm1863_vm5, %v15597_v58, %v1899_v23  ;;  %v1672_v16 = vpop.permute.xlu0 %1671 }
 0x135   : > { %15598 = vst [vmem:[#allocation95_spill] sm:$0xff] %v11840_v39  ;;  %v3134_v1 = vshll.u32 %v3112_v35, 16  ;;  %v1978_v34 = vmul.f32 %v11848_v63, %v11840_v39  ;;  %v11869_v19 = vunpack.c.l.bf16 %v1685_v46  ;;  %v10334_v46 = vld [vmem:[#allocation2 + $0x58] sm:$0xff]  }
 0x136   : > { %v11816_v15 = vpop.f32.mrf.mxu3  ;;  %v11843_v50 = vsel %vm1863_vm5, %v1899_v23, %v1901_v45  ;;  %v11854_v20 = vpack.c.bf16 %v3082_v53, %v3081_v59  ;;  %v2080_v58 = vsel %vm2012_vm6, %v2075_v36, %v2079_v18  ;;  %v1677_v23 = vperm.slane %v1672_v16, %v10911_v12 }
 0x137   : > { %15593 = vst [vmem:[#allocation92_spill] sm:$0xff] %v11816_v15  ;;  %v1979_v42 = vmul.f32 %v11850_v61, %v11843_v50  ;;  %v3132_v59 = vshrl.u32 %v3112_v35, 16  ;;  %v3136_v53 = vrot.slane %v3134_v1, 1  ;;  %v2081_v16 = vshrl.u32 %v11800_v25, 16  ;;  %v9373_v15 = vld [vmem:[#allocation2 + $0x64] sm:$0xff] }
 0x138   : > { %15599 = vst [vmem:[#allocation96_spill] sm:$0xff] %v11843_v50  ;;  %v1819_v30 = vunpack.c.l.bf16 %v1677_v23  ;;  %v2478_v1 = vsel %vm1184_vm4, %v2468_v49, %v11712_v38  ;;  %v15609_v38 = vrot.slane %v11869_v19, 7  ;;  %v11899_v49 = vunpack.c.h.bf16 %v10333_v26  ;;  %v1688_v26 = vpop.permute.xlu2 %1687 }
 0x139   : > { %v11825_v62 = vpop.f32.mrf.mxu0  ;;  %v2002_v36 = vpack.c.bf16 %v1979_v42, %v1978_v34  ;;  %v3137_v14 = vor.u32 %v3136_v53, %v3132_v59  ;;  %v15605_v34 = vunpack.c.h.bf16 %v11514_v31  ;;  %v2083_v59 = vor.u32 %v2081_v16, %v2079_v18 }
 0x13a   : > { %15595 = vst [vmem:[#allocation94_spill] sm:$0xff] %v11825_v62  ;;  %v15607_v53 = vunpack.c.l.bf16 %v11516_v27 }
 0x13b   : > { %8507 = vmatmul.msk.bf16.gmra.mxu3 %vm1042_vm2, %v2469_v41  ;;  %8596 = vmatmul.msk.bf16.gmra.mxu0 %vm1042_vm2, %v9372_v22  ;;  %v11865_v41 = vpop.f32.mrf.mxu2  ;;  %v3083_v42 = vmul.f32 %v15605_v34, %v11253_v40  ;;  %15611 = vst [vmem:[#allocation105_spill] sm:$0xff] %v11899_v49  ;;  %v3143_v34 = vshrl.u32 %v11854_v20, 16 }
 0x13c   : > { %8478 = vmatmul.msk.bf16.gmra.mxu1 %vm1042_vm2, %v1264_v24  ;;  %15602 = vst [vmem:[#allocation99_spill] sm:$0xff] %v11865_v41  ;;  %v3139_v24 = vshll.u32 %v11854_v20, 16  ;;  %v1903_v41 = vrot.slane %v1819_v30, 7 }
 0x13e   : > { %v11852_v7 = vpop.f32.mrf.mxu3  ;;  %v3141_v9 = vrot.slane %v3139_v24, 1  ;;  %v3084_v24 = vmul.f32 %v15607_v53, %v11258_v48  ;;  %v11895_v31 = vsel %vm1863_vm5, %v1903_v41, %v15609_v38 }
 0x13f   : > { %15600 = vst [vmem:[#allocation97_spill] sm:$0xff] %v11852_v7  ;;  %v2085_v7 = vshll.u32 %v2002_v36, 16 }
 0x140   : > { %v3142_v25 = vsel %vm2012_vm6, %v3137_v14, %v3141_v9  ;;  %15610 = vst [vmem:[#allocation104_spill] sm:$0xff] %v11895_v31  ;;  %v11901_v14 = vunpack.c.l.bf16 %v10334_v46 }
 0x141   : > { %v11863_v22 = vpop.f32.mrf.mxu0  ;;  %v2087_v30 = vrot.slane %v2085_v7, 1  ;;  %v3114_v7 = vpack.c.bf16 %v3084_v24, %v3083_v42  ;;  %v1693_v42 = vperm.slane %v1688_v26, %v10911_v12  ;;  %v15614_v24 = vld [vmem:[#allocation10_spill] sm:$0xff] }
 0x142   : > { %15601 = vst [vmem:[#allocation98_spill] sm:$0xff] %v11863_v22  ;;  %8495 = vmatmul.msk.bf16.gmra.mxu2 %vm1042_vm2, %v2080_v58  ;;  %v11890_v22 = vsel %vm1863_vm5, %v1901_v45, %v1903_v41  ;;  %v1981_v41 = vmul.f32 %v11901_v14, %v11895_v31 }
 0x143   : > { %v11884_v23 = vpop.f32.mrf.mxu2  ;;  %15608 = vst [vmem:[#allocation103_spill] sm:$0xff] %v11890_v22  ;;  %v2088_v27 = vsel %vm2012_vm6, %v2083_v59, %v2087_v30  ;;  %v1980_v45 = vmul.f32 %v11899_v49, %v11890_v22  ;;  %v1821_v20 = vunpack.c.l.bf16 %v1693_v42  ;;  %v15634_v22 = vld [vmem:[#allocation6_spill] sm:$0xff] }
 0x144   : > { %15606 = vst [vmem:[#allocation102_spill] sm:$0xff] %v11884_v23 }
 0x145   : > { %v11914_v53 = vpack.c.bf16 %v1981_v41, %v1980_v45  ;;  %v9374_v45 = vld [vmem:[#allocation2 + $0x6c] sm:$0xff] }
 0x146   : > { %v11871_v43 = vpop.f32.mrf.mxu3 }
 0x147   : > { %15603 = vst [vmem:[#allocation100_spill] sm:$0xff] %v11871_v43  ;;  %v3145_v43 = vor.u32 %v3143_v34, %v3141_v9  ;;  %v2093_v62 = vshll.u32 %v11914_v53, 16 }
 0x149   : > { %v11875_v58 = vpop.f32.mrf.mxu0  ;;  %v1397_v35 = vpop.f32.mrf.mxu1 }
 0x14a   : > { %15604 = vst [vmem:[#allocation101_spill] sm:$0xff] %v11875_v58  ;;  %v1398_v38 = vadd.f32 %v1397_v35, %v15614_v24  ;;  %v2089_v58 = vshrl.u32 %v2002_v36, 16  ;;  %v1907_v24 = vrot.slane %v1821_v20, 7  ;;  %v15617_v36 = vld [vmem:[#allocation11_spill] sm:$0xff] }
 0x14b   : > { %8508 = vmatmul.msk.bf16.gmra.mxu3 %vm1042_vm2, %v2478_v1  ;;  %8597 = vmatmul.msk.bf16.gmra.mxu0 %vm1042_vm2, %v9373_v15  ;;  %v1696_v1 = vpop.permute.xlu0 %1695 }
 0x14c   : > { %8603 = vmatmul.msk.bf16.vlgmr.msrb.gmra.mxu1 %vm1042_vm2, %v3142_v25  ;;  %v3147_v25 = vshll.u32 %v3114_v7, 16  ;;  %v1701_v59 = vperm.slane %v1696_v1, %v10911_v12  ;;  %v2095_v1 = vrot.slane %v2093_v62, 1 }
 0x14e   : > { %v11903_v18 = vpop.f32.mrf.mxu3  ;;  %v11924_v31 = vunpack.c.l.bf16 %v1701_v59 }
 0x14f   : > { %15612 = vst [vmem:[#allocation106_spill] sm:$0xff] %v11903_v18 }
 0x150   : > { %v1909_v9 = vrot.slane %v11924_v31, 7 }
 0x151   : > { %v11910_v16 = vpop.f32.mrf.mxu0  ;;  %v1399_v15 = vpop.f32.mrf.mxu1 }
 0x152   : > { %15613 = vst [vmem:[#allocation107_spill] sm:$0xff] %v11910_v16  ;;  %8496 = vmatmul.msk.bf16.gmra.mxu2 %vm1042_vm2, %v2088_v27  ;;  %v3149_v27 = vrot.slane %v3147_v25, 1  ;;  %v1400_v34 = vadd.f32 %v1399_v15, %v15617_v36  ;;  %v11950_v15 = vunpack.c.h.bf16 %v10334_v46 }
 0x154   : > { %v3150_v35 = vsel %vm2012_vm6, %v3145_v43, %v3149_v27  ;;  %v15619_v43 = vrot.slane %v11869_v19, 7 }
 0x155   : > { %v2205_v23 = vpop.f32.mrf.mxu2 }
 0x156   : > { %v11919_v18 = vadd.f32 %v2205_v23, %v1398_v38  ;;  %v11921_v16 = vpop.f32.mrf.mxu3  ;;  %v2091_v23 = vor.u32 %v2089_v58, %v2087_v30  ;;  %v10335_v38 = vld [vmem:[#allocation2 + $0x60] sm:$0xff]   ;;  %v11943_v62 = vsel %vm1863_vm5, %v15619_v43, %v1907_v24  ;;  %v11946_v58 = vsel %vm1863_vm5, %v1907_v24, %v1909_v9 }
 0x157   : > { %15615 = vst [vmem:[#allocation10_spill] sm:$0xff] %v11921_v16  ;;  %v11952_v20 = vunpack.c.l.bf16 %v10335_v38  ;;  %v1982_v19 = vmul.f32 %v11950_v15, %v11943_v62 }
 0x158   : > { %15620 = vst [vmem:[#allocation109_spill] sm:$0xff] %v11943_v62 }
 0x159   : > { %v11926_v41 = vpop.f32.mrf.mxu0  ;;  %v1402_v26 = vpop.f32.mrf.mxu1  ;;  %15621 = vst [vmem:[#allocation110_spill] sm:$0xff] %v11946_v58  ;;  %v1983_v36 = vmul.f32 %v11952_v20, %v11946_v58 }
 0x15a   : > { %15616 = vst [vmem:[#allocation108_spill] sm:$0xff] %v11926_v41 }
 0x15b   : > { %8509 = vmatmul.msk.bf16.gmra.mxu3 %vm1042_vm2, %v11725_v13  ;;  %8598 = vmatmul.msk.bf16.gmra.mxu0 %vm1042_vm2, %v9374_v45  ;;  %v2096_v13 = vsel %vm2012_vm6, %v2091_v23, %v2095_v1  ;;  %v1712_v45 = vpop.permute.xlu2 %1711  ;;  %v3151_v23 = vshrl.u32 %v3114_v7, 16  ;;  %v2397_v7 = vmul.f32 %v11691_v21, %v11630_v44  ;;  %v11970_v41 = vpack.c.bf16 %v1983_v36, %v1982_v19  ;;  %v15626_v36 = vld [vmem:[#allocation16_spill] sm:$0xff] }
 0x15c   : > { %8604 = vmatmul.msk.bf16.gmra.mxu1 %vm1042_vm2, %v3150_v35  ;;  %v1704_v35 = vpop.permute.xlu1 %1703  ;;  %v1717_v24 = vperm.slane %v1712_v45, %v10911_v12 }
 0x15d   : > { %v2207_v25 = vpop.f32.mrf.mxu2  ;;  %v3153_v16 = vor.u32 %v3151_v23, %v3149_v27  ;;  %v2101_v27 = vshll.u32 %v11970_v41, 16 }
 0x15e   : > { %v11935_v42 = vadd.f32 %v2207_v25, %v1400_v34  ;;  %v11937_v59 = vpop.f32.mrf.mxu3  ;;  %v1709_v34 = vperm.slane %v1704_v35, %v10911_v12  ;;  %v15623_v25 = vld [vmem:[#allocation14_spill] sm:$0xff]  ;;  %v11972_v58 = vunpack.c.l.bf16 %v1717_v24  ;;  %v9375_v35 = vld [vmem:[#allocation2 + $0x74] sm:$0xff] }
 0x15f   : > { %15618 = vst [vmem:[#allocation11_spill] sm:$0xff] %v11937_v59  ;;  %v1403_v46 = vadd.f32 %v1402_v26, %v15623_v25  ;;  %v2097_v25 = vshrl.u32 %v11914_v53, 16 }
 0x160   : > { %v1823_v45 = vunpack.c.l.bf16 %v1709_v34  ;;  %v1913_v23 = vrot.slane %v11972_v58, 7 }
 0x161   : > { %v11948_v30 = vpop.f32.mrf.mxu0  ;;  %v1404_v31 = vpop.f32.mrf.mxu1  ;;  %v2099_v53 = vor.u32 %v2097_v25, %v2095_v1  ;;  %v11999_v1 = vunpack.c.h.bf16 %v10335_v38  ;;  %v15631_v38 = vld [vmem:[#allocation23_spill] sm:$0xff] }
 0x162   : > { %15622 = vst [vmem:[#allocation111_spill] sm:$0xff] %v11948_v30  ;;  %8497 = vmatmul.msk.bf16.gmra.mxu2 %vm1042_vm2, %v2096_v13  ;;  %v2398_v13 = vmul.f32 %v11779_v5, %v11625_v6  ;;  %v1911_v19 = vrot.slane %v1823_v45, 7  ;;  %v1405_v24 = vadd.f32 %v1404_v31, %v15626_v36  ;;  %v1720_v36 = vpop.permute.xlu0 %1719 }
 0x164   : > { %v11994_v58 = vsel %vm1863_vm5, %v1909_v9, %v1911_v19 }
 0x165   : > { %v2210_v43 = vpop.f32.mrf.mxu2  ;;  %15629 = vst [vmem:[#allocation114_spill] sm:$0xff] %v11994_v58 }
 0x166   : > { %v11962_v30 = vadd.f32 %v2210_v43, %v1403_v46  ;;  %v11964_v59 = vpop.f32.mrf.mxu3  ;;  %v2423_v46 = vpack.c.bf16 %v2398_v13, %v2397_v7  ;;  %v3158_v43 = vsel %vm2012_vm6, %v3153_v16, %v11632_v28  ;;  %v10336_v28 = vld [vmem:[#allocation2 + $0x68] sm:$0xff]   ;;  %v2103_v16 = vrot.slane %v2101_v27, 1  ;;  %v1728_v27 = vpop.permute.xlu1 %1727 }
 0x167   : > { %15624 = vst [vmem:[#allocation14_spill] sm:$0xff] %v11964_v59  ;;  %v12001_v25 = vunpack.c.l.bf16 %v10336_v28 }
 0x168   : > { %v2501_v59 = vshll.u32 %v2423_v46, 16 }
 0x169   : > { %v11974_v62 = vpop.f32.mrf.mxu0  ;;  %v1407_v26 = vpop.f32.mrf.mxu1 }
 0x16a   : > { %15625 = vst [vmem:[#allocation112_spill] sm:$0xff] %v11974_v62  ;;  %v11991_v62 = vsel %vm1863_vm5, %v1911_v19, %v1913_v23  ;;  %v1733_v19 = vperm.slane %v1728_v27, %v10911_v12 }
 0x16b   : > { %8510 = vmatmul.msk.bf16.gmra.mxu3 %vm1042_vm2, %v11805_v37  ;;  %8599 = vmatmul.msk.bf16.gmra.mxu0 %vm1042_vm2, %v9375_v35  ;;  %v2498_v37 = vshrl.u32 %v2423_v46, 16  ;;  %15628 = vst [vmem:[#allocation113_spill] sm:$0xff] %v11991_v62  ;;  %v2104_v35 = vsel %vm2012_vm6, %v2099_v53, %v2103_v16  ;;  %v1985_v9 = vmul.f32 %v12001_v25, %v11991_v62 }
 0x16c   : > { %8605 = vmatmul.msk.bf16.gmra.mxu1 %vm1042_vm2, %v3158_v43  ;;  %v2503_v43 = vrot.slane %v2501_v59, 4  ;;  %v1408_v53 = vadd.f32 %v1407_v26, %v15631_v38  ;;  %v2400_v62 = vmul.f32 %v11848_v63, %v15635_v11  ;;  %v12021_v32 = vunpack.c.l.bf16 %v1733_v19  ;;  %v15637_v19 = vld [vmem:[#allocation28_spill] sm:$0xff] }
 0x16d   : > { %v2212_v34 = vpop.f32.mrf.mxu2  ;;  %v2500_v46 = vrot.slane %v2498_v37, 3 }
 0x16e   : > { %v11986_v7 = vadd.f32 %v2212_v34, %v1405_v24  ;;  %v11988_v13 = vpop.f32.mrf.mxu3  ;;  %v1984_v24 = vmul.f32 %v11999_v1, %v11994_v58  ;;  %v1725_v34 = vperm.slane %v1720_v36, %v10911_v12  ;;  %v2399_v58 = vmul.f32 %v11782_v2, %v15634_v22  ;;  %v9376_v36 = vld [vmem:[#allocation2 + $0x7c] sm:$0xff] }
 0x16f   : > { %15627 = vst [vmem:[#allocation16_spill] sm:$0xff] %v11988_v13  ;;  %v2504_v59 = vor.u32 %v2503_v43, %v2500_v46 }
 0x170   : > { %v12015_v37 = vpack.c.bf16 %v1985_v9, %v1984_v24  ;;  %v1825_v27 = vunpack.c.l.bf16 %v1725_v34  ;;  %v2424_v24 = vpack.c.bf16 %v2400_v62, %v2399_v58  ;;  %v15333_v9 = vrot.slane %v12021_v32, 7 }
 0x171   : > { %v11996_v31 = vpop.f32.mrf.mxu0  ;;  %v1409_v45 = vpop.f32.mrf.mxu1  ;;  %v2505_v46 = vsel %vm1184_vm4, %v11797_v10, %v2504_v59 }
 0x172   : > { %15630 = vst [vmem:[#allocation115_spill] sm:$0xff] %v11996_v31  ;;  %8498 = vmatmul.msk.bf16.gmra.mxu2 %vm1042_vm2, %v2104_v35  ;;  %v2109_v43 = vshll.u32 %v12015_v37, 16  ;;  %v1915_v38 = vrot.slane %v1825_v27, 7  ;;  %v2510_v27 = vshll.u32 %v2424_v24, 16 }
 0x174   : > { %v2111_v22 = vrot.slane %v2109_v43, 1  ;;  %v12040_v62 = vsel %vm1863_vm5, %v1913_v23, %v1915_v38  ;;  %v12045_v58 = vsel %vm1863_vm5, %v1915_v38, %v15333_v9  ;;  %v1736_v23 = vpop.permute.xlu2 %1735  ;;  %v15644_v9 = vld [vmem:[#allocation35_spill] sm:$0xff] }
 0x175   : > { %v2215_v31 = vpop.f32.mrf.mxu2  ;;  %15640 = vst [vmem:[#allocation119_spill] sm:$0xff] %v12040_v62 }
 0x176   : > { %v12011_v13 = vadd.f32 %v2215_v31, %v1408_v53  ;;  %v12013_v35 = vpop.f32.mrf.mxu3  ;;  %v2105_v31 = vshrl.u32 %v11970_v41, 16  ;;  %v1410_v53 = vadd.f32 %v1409_v45, %v15637_v19  ;;  %15641 = vst [vmem:[#allocation120_spill] sm:$0xff] %v12045_v58  ;;  %v1744_v45 = vpop.permute.xlu0 %1743 }
 0x177   : > { %15633 = vst [vmem:[#allocation116_spill] sm:$0xff] %v12013_v35  ;;  %v2507_v35 = vshrl.u32 %v2424_v24, 16  ;;  %v1741_v24 = vperm.slane %v1736_v23, %v10911_v12 }
 0x178   : > { %15632 = vst [vmem:[#allocation23_spill] sm:$0xff] %v12011_v13  ;;  %v2107_v41 = vor.u32 %v2105_v31, %v2103_v16  ;;  %v12050_v31 = vunpack.c.h.bf16 %v10336_v28  ;;  %v2512_v28 = vrot.slane %v2510_v27, 4  ;;  %v2113_v27 = vshrl.u32 %v12015_v37, 16 }
 0x179   : > { %v12023_v50 = vpop.f32.mrf.mxu0  ;;  %v1412_v26 = vpop.f32.mrf.mxu1  ;;  %v2509_v43 = vrot.slane %v2507_v35, 3 }
 0x17a   : > { %15636 = vst [vmem:[#allocation117_spill] sm:$0xff] %v12023_v50  ;;  %v2115_v37 = vor.u32 %v2113_v27, %v2111_v22 }
 0x17b   : > { %8511 = vmatmul.msk.bf16.gmra.mxu3 %vm1042_vm2, %v2505_v46  ;;  %8600 = vmatmul.msk.bf16.gmra.mxu0 %vm1042_vm2, %v9376_v36  ;;  %v10337_v46 = vld [vmem:[#allocation2 + $0x70] sm:$0xff]   ;;  %v2112_v36 = vsel %vm2012_vm6, %v2107_v41, %v2111_v22  ;;  %v1413_v41 = vadd.f32 %v1412_v26, %v15644_v9 }
 0x17c   : > { %8606 = vmatmul.msk.bf16.gmra.mxu1 %vm1042_vm2, %v11676_v33  ;;  %v12052_v19 = vunpack.c.l.bf16 %v10337_v46 }
 0x17d   : > { %v2217_v34 = vpop.f32.mrf.mxu2 }
 0x17e   : > { %v12035_v11 = vadd.f32 %v2217_v34, %v1410_v53  ;;  %v12037_v10 = vpop.f32.mrf.mxu3  ;;  %15643 = vst [vmem:[#allocation122_spill] sm:$0xff] %v12052_v19  ;;  %v1986_v53 = vmul.f32 %v12050_v31, %v12040_v62  ;;  %v1987_v38 = vmul.f32 %v12052_v19, %v12045_v58  ;;  %v1749_v34 = vperm.slane %v1744_v45, %v10911_v12  ;;  %v9377_v45 = vld [vmem:[#allocation2 + $0x84] sm:$0xff] }
 0x17f   : > { %15639 = vst [vmem:[#allocation118_spill] sm:$0xff] %v12037_v10  ;;  %v1827_v58 = vunpack.c.l.bf16 %v1741_v24  ;;  %v12074_v19 = vor.u32 %v2512_v28, %v2509_v43 }
 0x180   : > { %15638 = vst [vmem:[#allocation28_spill] sm:$0xff] %v12035_v11  ;;  %v15648_v11 = vld [vmem:[#allocation5_spill] sm:$0xff]  ;;  %v12070_v13 = vpack.c.bf16 %v1987_v38, %v1986_v53  ;;  %v12072_v23 = vunpack.c.l.bf16 %v1749_v34  ;;  %v15650_v38 = vld [vmem:[#allocation71_spill] sm:$0xff]  ;;  %v15651_v34 = vld [vmem:[#allocation72_spill] sm:$0xff] }
 0x181   : > { %v12047_v33 = vpop.f32.mrf.mxu0  ;;  %v1414_v16 = vpop.f32.mrf.mxu1  ;;  %v2402_v62 = vmul.f32 %v11899_v49, %v15648_v11  ;;  %v3091_v24 = vmul.f32 %v11608_v52, %v15650_v38  ;;  %v3092_v43 = vmul.f32 %v11691_v21, %v15651_v34  ;;  %v1919_v28 = vrot.slane %v1827_v58, 7 }
 0x182   : > { %15642 = vst [vmem:[#allocation121_spill] sm:$0xff] %v12047_v33  ;;  %8499 = vmatmul.msk.bf16.gmra.mxu2 %vm1042_vm2, %v2112_v36  ;;  %v15647_v36 = vld [vmem:[#allocation4_spill] sm:$0xff]  ;;  %v2117_v53 = vshll.u32 %v12070_v13, 16  ;;  %v1760_v21 = vpop.permute.xlu2 %1759  ;;  %v1752_v58 = vpop.permute.xlu1 %1751 }
 0x183   : > { %v2401_v35 = vmul.f32 %v11850_v61, %v15647_v36  ;;  %v15652_v36 = vld [vmem:[#allocation41_spill] sm:$0xff]  ;;  %v12098_v34 = vpack.c.bf16 %v3092_v43, %v3091_v24  ;;  %v1757_v24 = vperm.slane %v1752_v58, %v10911_v12 }
 0x184   : > { %v2119_v11 = vrot.slane %v2117_v53, 1 }
 0x185   : > { %v2220_v33 = vpop.f32.mrf.mxu2  ;;  %v1829_v49 = vunpack.c.l.bf16 %v1757_v24 }
 0x186   : > { %v12062_v10 = vadd.f32 %v2220_v33, %v1413_v41  ;;  %v12064_v50 = vpop.f32.mrf.mxu3  ;;  %v2514_v33 = vsel %vm1184_vm4, %v2504_v59, %v12074_v19  ;;  %v2425_v41 = vpack.c.bf16 %v2402_v62, %v2401_v35  ;;  %v2120_v27 = vsel %vm2012_vm6, %v2115_v37, %v2119_v11 }
 0x187   : > { %15646 = vst [vmem:[#allocation123_spill] sm:$0xff] %v12064_v50  ;;  %v1415_v50 = vadd.f32 %v1414_v16, %v15652_v36  ;;  %v15655_v16 = vrot.slane %v12021_v32, 7  ;;  %v1765_v32 = vperm.slane %v1760_v21, %v10911_v12  ;;  %v3179_v37 = vshll.u32 %v12098_v34, 16  ;;  %v15661_v21 = vld [vmem:[#allocation43_spill] sm:$0xff] }
 0x188   : > { %15645 = vst [vmem:[#allocation35_spill] sm:$0xff] %v12062_v10  ;;  %v2516_v52 = vshrl.u32 %v2425_v41, 16 }
 0x189   : > { %v12076_v26 = vpop.f32.mrf.mxu0  ;;  %v1417_v9 = vpop.f32.mrf.mxu1  ;;  %v12103_v36 = vsel %vm1863_vm5, %v15655_v16, %v1919_v28  ;;  %v9425_v16 = vld [vmem:[%s15222_s4 + $0x78] sm:$0xff]  ;;  %v1830_v10 = vunpack.c.l.bf16 %v1765_v32 }
 0x18a   : > { %15649 = vst [vmem:[#allocation124_spill] sm:$0xff] %v12076_v26  ;;  %v12096_v26 = vld [vmem:[#allocation2 + $0x78] sm:$0xff]   ;;  %v2518_v43 = vrot.slane %v2516_v52, 3  ;;  %v1418_v58 = vadd.f32 %v1417_v9, %v15661_v21  ;;  %4978 = vmatpush.bf16.msra.mxu1 %v9425_v16  ;;  %v12145_v21 = vrot.slane %v3179_v37, 1  ;;  %v15668_v37 = vld [vmem:[#allocation51_spill] sm:$0xff] }
 0x18b   : > { %8512 = vmatmul.msk.bf16.gmra.mxu3 %vm1042_vm2, %v2514_v33  ;;  %8601 = vmatmul.msk.bf16.gmra.mxu0 %vm1042_vm2, %v9377_v45  ;;  %v2519_v33 = vshll.u32 %v2425_v41, 16  ;;  %15656 = vst [vmem:[#allocation126_spill] sm:$0xff] %v12103_v36  ;;  %v12113_v41 = vunpack.c.h.bf16 %v10337_v46  ;;  %v12116_v53 = vunpack.c.l.bf16 %v12096_v26  ;;  %v3175_v46 = vshrl.u32 %v11774_v51, 16  ;;  %v15662_v52 = vld [vmem:[#allocation9_spill] sm:$0xff]  ;;  %v15663_v51 = vld [vmem:[#allocation8_spill] sm:$0xff] }
 0x18c   : > { %8607 = vmatmul.msk.bf16.gmra.mxu1 %vm1042_vm2, %v11814_v4  ;;  %v15657_v4 = vrot.slane %v12072_v23, 7 }
 0x18d   : > { %v2222_v59 = vpop.f32.mrf.mxu2  ;;  %15660 = vst [vmem:[#allocation129_spill] sm:$0xff] %v12113_v41  ;;  %v3177_v9 = vor.u32 %v3175_v46, %v11808_v57  ;;  %v3094_v46 = vmul.f32 %v11782_v2, %v11682_v17 }
 0x18e   : > { %v12092_v62 = vadd.f32 %v2222_v59, %v1415_v50  ;;  %v12094_v35 = vpop.f32.mrf.mxu3  ;;  %v12108_v50 = vsel %vm1863_vm5, %v1919_v28, %v15657_v4  ;;  %v2521_v59 = vrot.slane %v2519_v33, 4  ;;  %v12121_v28 = vld [vmem:[#allocation2 + $0x28] sm:$0xff]   ;;  %v1988_v4 = vmul.f32 %v12113_v41, %v12103_v36 }
 0x18f   : > { %15654 = vst [vmem:[#allocation125_spill] sm:$0xff] %v12094_v35  ;;  %v1989_v12 = vmul.f32 %v12116_v53, %v12108_v50  ;;  %v2404_v33 = vmul.f32 %v11950_v15, %v15662_v52  ;;  %v15666_v24 = vunpack.c.l.bf16 %v12121_v28 }
 0x190   : > { %15653 = vst [vmem:[#allocation41_spill] sm:$0xff] %v12092_v62  ;;  %v2403_v62 = vmul.f32 %v11901_v14, %v15663_v51  ;;  %v2121_v51 = vshrl.u32 %v12070_v13, 16 }
 0x191   : > { %15658 = vst [vmem:[#allocation127_spill] sm:$0xff] %v12108_v50  ;;  %v12110_v22 = vpop.f32.mrf.mxu0  ;;  %v1419_v45 = vpop.f32.mrf.mxu1  ;;  %v12142_v50 = vor.u32 %v2521_v59, %v2518_v43  ;;  %v12147_v16 = vpack.c.bf16 %v1989_v12, %v1988_v4  ;;  %v12156_v43 = vrot.slane %v1830_v10, 7  ;;  %v1923_v59 = vrot.slane %v1829_v49, 7  ;;  %v1508_v10 = vld [vmem:[#allocation2 + $0x80] sm:$0xf] }
 0x192   : > { %15659 = vst [vmem:[#allocation128_spill] sm:$0xff] %v12110_v22  ;;  %8500 = vmatmul.msk.bf16.gmra.mxu2 %vm1042_vm2, %v2120_v27  ;;  %v10541_v22 = vld [vmem:[#allocation2 + $0x20] sm:$0xff]   ;;  %v1420_v49 = vadd.f32 %v1419_v45, %v15668_v37  ;;  %v2123_v12 = vor.u32 %v2121_v51, %v2119_v11  ;;  %v15670_v45 = vrot.slane %v12072_v23, 7  ;;  %v15673_v37 = vld [vmem:[#allocation12_spill] sm:$0xff] }
 0x193   : > { %v9821_v35 = vunpack.c.h.bf16 %v10541_v22  ;;  %v2426_v22 = vpack.c.bf16 %v2404_v33, %v2403_v62  ;;  %15667 = vst [vmem:[#allocation131_spill] sm:$0xff] %v12156_v43  ;;  %v2523_v57 = vsel %vm1184_vm4, %v12074_v19, %v12142_v50  ;;  %v3182_v62 = vsel %vm2012_vm6, %v3177_v9, %v12145_v21 }
 0x194   : > { %v2125_v13 = vshll.u32 %v12147_v16, 16  ;;  %v2406_v23 = vmul.f32 %v11999_v1, %v15673_v37 }
 0x195   : > { %v2225_v27 = vpop.f32.mrf.mxu2  ;;  %v4201_v32 = vmul.f32 %v9821_v35, %v11253_v40  ;;  %v3093_v35 = vmul.f32 %v11779_v5, %v11670_v60  ;;  %v2525_v19 = vshrl.u32 %v2426_v22, 16  ;;  %v12177_v5 = vsel %vm1863_vm5, %v1923_v59, %v12156_v43 }
 0x196   : > { %v12138_v36 = vadd.f32 %v2225_v27, %v1418_v58  ;;  %v12140_v41 = vpop.f32.mrf.mxu3  ;;  %v4202_v58 = vmul.f32 %v15666_v24, %v11258_v48  ;;  %v2528_v27 = vshll.u32 %v2426_v22, 16  ;;  %15669 = vst [vmem:[#allocation51_spill] sm:$0xff] %v12177_v5  ;;  %v1797_v24 = vunpack.c.l.bf16 %v1508_v10  ;;  %v12191_v22 = vld [vmem:[#allocation2 + $0x30] sm:$0xff]  }
 0x197   : > { %15664 = vst [vmem:[#allocation43_spill] sm:$0xff] %v12140_v41  ;;  %v2127_v11 = vrot.slane %v2125_v13, 1  ;;  %v12189_v51 = vpack.c.bf16 %v3094_v46, %v3093_v35  ;;  %v4261_v13 = vshrl.u32 %v11684_v3, 16  ;;  %v15351_v3 = vunpack.c.h.bf16 %v12121_v28 }
 0x198   : > { %v12173_v33 = vpack.c.bf16 %v4202_v58, %v4201_v32  ;;  %v2527_v32 = vrot.slane %v2525_v19, 3  ;;  %v12194_v58 = vunpack.c.h.bf16 %v12096_v26  ;;  %v2530_v46 = vrot.slane %v2528_v27, 4 }
 0x199   : > { %v12149_v52 = vpop.f32.mrf.mxu0  ;;  %v1422_v38 = vpop.f32.mrf.mxu1  ;;  %v1991_v19 = vmul.f32 %v12177_v5, %v1797_v24  ;;  %v4263_v27 = vor.u32 %v4261_v13, %v11702_v54 }
 0x19a   : > { %15665 = vst [vmem:[#allocation130_spill] sm:$0xff] %v12149_v52  ;;  %v4265_v35 = vshll.u32 %v12173_v33, 16  ;;  %v12215_v37 = vor.u32 %v2530_v46, %v2527_v32  ;;  %v15677_v52 = vld [vmem:[#allocation52_spill] sm:$0xff] }
 0x19b   : > { %8513 = vmatmul.msk.bf16.gmra.mxu3 %vm1042_vm2, %v2523_v57  ;;  %8718 = vmatmul.msk.bf16.vlgmr.msra.gmra.mxu0 %vm1042_vm2, %v11729_v47  ;;  %v12184_v47 = vsel %vm1863_vm5, %v15670_v45, %v1923_v59  ;;  %v3187_v45 = vshll.u32 %v12189_v51, 16 }
 0x19c   : > { %8608 = vmatmul.msk.bf16.gmra.mxu1 %vm1042_vm2, %v3182_v62  ;;  %15671 = vst [vmem:[#allocation132_spill] sm:$0xff] %v12184_v47  ;;  %v15672_v62 = vld [vmem:[#allocation13_spill] sm:$0xff]  ;;  %v1990_v26 = vmul.f32 %v12194_v58, %v12184_v47  ;;  %v2532_v46 = vsel %vm1184_vm4, %v12142_v50, %v12215_v37  ;;  %v15709_v47 = vld [vmem:[#allocation122_spill] sm:$0xff] }
 0x19d   : > { %v2227_v4 = vpop.f32.mrf.mxu2  ;;  %v2405_v10 = vmul.f32 %v11952_v20, %v15672_v62  ;;  %v12231_v32 = vrot.slane %v3187_v45, 1 }
 0x19e   : > { %v12179_v9 = vadd.f32 %v2227_v4, %v1420_v49  ;;  %v2647_v2 = vpop.f32.mrf.mxu3  ;;  %v12219_v41 = vpack.c.bf16 %v1991_v19, %v1990_v26  ;;  %v15676_v4 = vld [vmem:[#allocation47_spill] sm:$0xff] }
 0x19f   : > { %v12187_v57 = vadd.f32 %v2647_v2, %v11919_v18  ;;  %v2128_v18 = vsel %vm2012_vm6, %v2123_v12, %v2127_v11  ;;  %v3183_v2 = vshrl.u32 %v12098_v34, 16  ;;  %v2427_v40 = vpack.c.bf16 %v2406_v23, %v2405_v10 }
 0x1a0   : > { %v4203_v34 = vmul.f32 %v15351_v3, %v15676_v4  ;;  %v2133_v26 = vshll.u32 %v12219_v41, 16  ;;  %v3095_v3 = vmul.f32 %v11848_v63, %v11767_v29 }
 0x1a1   : > { %v12200_v59 = vpop.f32.mrf.mxu0  ;;  %v1424_v49 = vpop.f32.mrf.mxu1  ;;  %v3185_v54 = vor.u32 %v3183_v2, %v12145_v21  ;;  %v2534_v23 = vshrl.u32 %v2427_v40, 16  ;;  %v2537_v19 = vshll.u32 %v2427_v40, 16 }
 0x1a2   : > { %15674 = vst [vmem:[#allocation133_spill] sm:$0xff] %v12200_v59  ;;  %8501 = vmatmul.msk.bf16.gmra.mxu2 %vm1042_vm2, %v2128_v18  ;;  %v15675_v59 = vld [vmem:[#allocation55_spill] sm:$0xff]  ;;  %v4267_v18 = vrot.slane %v4265_v35, 1 }
 0x1a3   : > { %v1423_v12 = vadd.f32 %v1422_v38, %v15675_v59  ;;  %v15678_v38 = vunpack.c.l.bf16 %v12191_v22  ;;  %v2536_v40 = vrot.slane %v2534_v23, 3  ;;  %v2539_v23 = vrot.slane %v2537_v19, 4 }
 0x1a4   : > { %v4268_v21 = vsel %vm2012_vm6, %v4263_v27, %v4267_v18  ;;  %v3096_v27 = vmul.f32 %v11850_v61, %v11772_v8  ;;  %v4269_v61 = vshrl.u32 %v12173_v33, 16 }
 0x1a5   : > { %v2230_v48 = vpop.f32.mrf.mxu2  ;;  %v4204_v59 = vmul.f32 %v15678_v38, %v15677_v52  ;;  %v15680_v38 = vld [vmem:[#allocation59_spill] sm:$0xff] }
 0x1a6   : > { %v12217_v62 = vadd.f32 %v2230_v48, %v1423_v12  ;;  %v2649_v24 = vpop.f32.mrf.mxu3  ;;  %v2129_v48 = vshrl.u32 %v12147_v16, 16  ;;  %v1509_v12 = vld [vmem:[#allocation2 + $0x84] sm:$0x1]  ;;  %v3190_v16 = vsel %vm2012_vm6, %v3185_v54, %v12231_v32  ;;  %v1425_v50 = vadd.f32 %v1424_v49, %v15680_v38  ;;  %v15682_v38 = vld [vmem:[#allocation17_spill] sm:$0xff] }
 0x1a7   : > { %v12228_v10 = vadd.f32 %v2649_v24, %v11935_v42  ;;  %v12240_v42 = vld [vmem:[#allocation2 + $0x40] sm:$0xff]   ;;  %v12242_v24 = vld [vmem:[#allocation2 + $0x48] sm:$0xff]   ;;  %v12248_v45 = vpack.c.bf16 %v4204_v59, %v4203_v34  ;;  %v1798_v4 = vunpack.c.l.bf16 %v1509_v12  ;;  %v3435_v34 = vld [vmem:[#allocation2 + $0x10] sm:$0x8]  ;;  %v12276_v19 = vpack.c.bf16 %v3096_v27, %v3095_v3 }
 0x1a8   : > { %v2131_v2 = vor.u32 %v2129_v48, %v2127_v11  ;;  %v15352_v54 = vunpack.c.l.bf16 %v12240_v42  ;;  %v12262_v48 = vrot.slane %v2133_v26, 1  ;;  %v15681_v12 = vld [vmem:[#allocation15_spill] sm:$0xff]  ;;  %v2408_v11 = vmul.f32 %v12050_v31, %v15682_v38 }
 0x1a9   : > { %v12234_v13 = vpop.f32.mrf.mxu0  ;;  %v1427_v35 = vpop.f32.mrf.mxu1  ;;  %v4273_v26 = vshll.u32 %v12248_v45, 16  ;;  %v12291_v3 = vor.u32 %v2539_v23, %v2536_v40  ;;  %v3468_v27 = vunpack.c.l.bf16 %v3435_v34 }
 0x1aa   : > { %15679 = vst [vmem:[#allocation55_spill] sm:$0xff] %v12234_v13  ;;  %v3513_v33 = vmul.f32 %v15352_v54, %v11521_v0  ;;  %v15686_v54 = vunpack.c.h.bf16 %v12242_v24  ;;  %v4271_v0 = vor.u32 %v4269_v61, %v4267_v18 }
 0x1ab   : > { %8514 = vmatmul.msk.bf16.gmra.mxu3 %vm1042_vm2, %v2532_v46  ;;  %8719 = vmatmul.msk.bf16.gmra.mxu0 %vm1042_vm2, %v4268_v21  ;;  %v15684_v21 = vunpack.c.h.bf16 %v12240_v42  ;;  %v12303_v40 = vrot.slane %v4273_v26, 1 }
 0x1ac   : > { %8609 = vmatmul.msk.bf16.gmra.mxu1 %vm1042_vm2, %v3190_v16  ;;  %v2407_v16 = vmul.f32 %v12001_v25, %v15681_v12 }
 0x1ad   : > { %v2232_v46 = vpop.f32.mrf.mxu2  ;;  %v3514_v52 = vmul.f32 %v15684_v21, %v11526_v55  ;;  %v3191_v21 = vshrl.u32 %v12189_v51, 16  ;;  %v12300_v55 = vld [vmem:[#allocation2 + $0x38] sm:$0xff]  }
 0x1ae   : > { %v12260_v49 = vadd.f32 %v2232_v46, %v1425_v50  ;;  %v2652_v59 = vpop.f32.mrf.mxu3  ;;  %v2136_v50 = vsel %vm2012_vm6, %v2131_v2, %v12262_v48  ;;  %v15685_v2 = vunpack.c.l.bf16 %v12242_v24  ;;  %v2428_v12 = vpack.c.bf16 %v2408_v11, %v2407_v16 }
 0x1af   : > { %v12266_v63 = vadd.f32 %v2652_v59, %v11962_v30  ;;  %v1992_v59 = vmul.f32 %v12156_v43, %v1798_v4  ;;  %v9424_v4 = vld [vmem:[%s15222_s4 + $0x70] sm:$0xff]  ;;  %v3195_v43 = vshll.u32 %v12276_v19, 16  ;;  %v3193_v16 = vor.u32 %v3191_v21, %v12231_v32  ;;  %v15690_v32 = vld [vmem:[#allocation19_spill] sm:$0xff] }
 0x1b0   : > { %v3515_v38 = vmul.f32 %v15685_v2, %v11630_v44  ;;  %v3540_v2 = vpack.c.bf16 %v3514_v52, %v3513_v33  ;;  %v15687_v44 = vld [vmem:[#allocation63_spill] sm:$0xff]  ;;  %4979 = vmatpush.bf16.msra.mxu1 %v9424_v4  ;;  %v3501_v21 = vmul.f32 %v3468_v27, %v15690_v32  ;;  %v2546_v27 = vshll.u32 %v2428_v12, 16 }
 0x1b1   : > { %v12278_v46 = vpop.f32.mrf.mxu0  ;;  %v1429_v30 = vpop.f32.mrf.mxu1  ;;  %v2009_v5 = vpack.c.bf16 %v1992_v59, %v1992_v59 }
 0x1b2   : > { %15683 = vst [vmem:[#allocation59_spill] sm:$0xff] %v12278_v46  ;;  %8502 = vmatmul.msk.bf16.gmra.mxu2 %vm1042_vm2, %v2136_v50  ;;  %v3516_v46 = vmul.f32 %v15686_v54, %v11625_v6  ;;  %v1428_v50 = vadd.f32 %v1427_v35, %v15687_v44  ;;  %v3436_v54 = vld [vmem:[#allocation2 + $0x14] sm:$0xf]  ;;  %v3607_v18 = vshrl.u32 %v3540_v2, 16  ;;  %v3610_v61 = vshll.u32 %v3540_v2, 16 }
 0x1b3   : > { %v3469_v59 = vunpack.c.l.bf16 %v3436_v54  ;;  %v2141_v34 = vshll.u32 %v2009_v5, 16 }
 0x1b4   : > { %v3541_v23 = vpack.c.bf16 %v3516_v46, %v3515_v38  ;;  %v3609_v38 = vrot.slane %v3607_v18, 3  ;;  %v3612_v26 = vrot.slane %v3610_v61, 4  ;;  %v2137_v46 = vshrl.u32 %v12219_v41, 16  ;;  %v15693_v18 = vld [vmem:[#allocation56_spill] sm:$0xff] }
 0x1b5   : > { %v2235_v13 = vpop.f32.mrf.mxu2  ;;  %v4276_v41 = vsel %vm2012_vm6, %v4271_v0, %v12303_v40  ;;  %v15694_v61 = vunpack.c.l.bf16 %v12300_v55 }
 0x1b6   : > { %v12307_v51 = vadd.f32 %v2235_v13, %v1428_v50  ;;  %v2654_v6 = vpop.f32.mrf.mxu3  ;;  %v3616_v11 = vshrl.u32 %v3541_v23, 16  ;;  %v3619_v44 = vshll.u32 %v3541_v23, 16  ;;  %v3197_v50 = vrot.slane %v3195_v43, 1 }
 0x1b7   : > { %v12311_v35 = vadd.f32 %v2654_v6, %v11986_v7  ;;  %v12317_v52 = vor.u32 %v3612_v26, %v3609_v38  ;;  %v2541_v6 = vsel %vm1184_vm4, %v12215_v37, %v12291_v3  ;;  %v2543_v7 = vshrl.u32 %v2428_v12, 16  ;;  %v15696_v38 = vld [vmem:[#allocation21_spill] sm:$0xff] }
 0x1b8   : > { %v3618_v33 = vrot.slane %v3616_v11, 3  ;;  %v3621_v4 = vrot.slane %v3619_v44, 4  ;;  %v3198_v54 = vsel %vm2012_vm6, %v3193_v16, %v3197_v50  ;;  %v15692_v43 = vunpack.c.h.bf16 %v12191_v22  ;;  %v15695_v11 = vld [vmem:[#allocation67_spill] sm:$0xff] }
 0x1b9   : > { %v12315_v2 = vpop.f32.mrf.mxu0  ;;  %v1432_v13 = vpop.f32.mrf.mxu1  ;;  %15689 = vst [vmem:[#allocation134_spill] sm:$0xff] %v12317_v52  ;;  %v4206_v37 = vmul.f32 %v15694_v61, %v15693_v18  ;;  %v1430_v44 = vadd.f32 %v1429_v30, %v15695_v11  ;;  %v2139_v0 = vor.u32 %v2137_v46, %v12262_v48  ;;  %v3502_v26 = vmul.f32 %v3469_v59, %v15696_v38  ;;  %v15700_v48 = vld [vmem:[#allocation23_spill] sm:$0xff] }
 0x1ba   : > { %15688 = vst [vmem:[#allocation63_spill] sm:$0xff] %v12315_v2  ;;  %v12323_v23 = vor.u32 %v3621_v4, %v3618_v33  ;;  %v4205_v5 = vmul.f32 %v15692_v43, %v11404_v56  ;;  %v2143_v33 = vrot.slane %v2141_v34, 1  ;;  %v15697_v4 = vld [vmem:[#allocation105_spill] sm:$0xff]  ;;  %v15698_v43 = vld [vmem:[#allocation96_spill] sm:$0xff]  ;;  %v2545_v34 = vrot.slane %v2543_v7, 3 }
 0x1bb   : > { %8515 = vmatmul.msk.bf16.gmra.mxu3 %vm1042_vm2, %v2541_v6  ;;  %8720 = vmatmul.msk.bf16.gmra.mxu0 %vm1042_vm2, %v4276_v41  ;;  %v3097_v6 = vmul.f32 %v15697_v4, %v11840_v39  ;;  %v3098_v56 = vmul.f32 %v11901_v14, %v15698_v43  ;;  %v2548_v14 = vrot.slane %v2546_v27, 4  ;;  %v3534_v18 = vpack.c.bf16 %v3502_v26, %v3501_v21  ;;  %v15704_v27 = vld [vmem:[#allocation25_spill] sm:$0xff] }
 0x1bc   : > { %15691 = vst [vmem:[#allocation135_spill] sm:$0xff] %v12323_v23  ;;  %8610 = vmatmul.msk.bf16.gmra.mxu1 %vm1042_vm2, %v3198_v54  ;;  %v12347_v30 = vsel %vm1184_vm4, %v12317_v52, %v12323_v23  ;;  %v12354_v46 = vpack.c.bf16 %v4206_v37, %v4205_v5  ;;  %v2144_v11 = vsel %vm2012_vm6, %v2139_v0, %v2143_v33  ;;  %v3199_v7 = vshrl.u32 %v12276_v19, 16  ;;  %v15703_v37 = vld [vmem:[#allocation73_spill] sm:$0xff]  ;;  %v15706_v23 = vld [vmem:[#allocation28_spill] sm:$0xff] }
 0x1bd   : > { %v2237_v16 = vpop.f32.mrf.mxu2  ;;  %15699 = vst [vmem:[#allocation67_spill] sm:$0xff] %v12347_v30  ;;  %v12359_v4 = vpack.c.bf16 %v3098_v56, %v3097_v6  ;;  %v12368_v0 = vor.u32 %v2548_v14, %v2545_v34  ;;  %v3554_v21 = vshrl.u32 %v3534_v18, 16  ;;  %v15705_v26 = vld [vmem:[#allocation129_spill] sm:$0xff]  ;;  %v10370_v6 = vld [vmem:[#allocation2 + $0x20] sm:$0xff]   ;;  %v15708_v52 = vld [vmem:[#allocation20_spill] sm:$0xff] }
 0x1be   : > { %v12349_v41 = vadd.f32 %v2237_v16, %v1430_v44  ;;  %v2657_v54 = vpop.f32.mrf.mxu3  ;;  %v15702_v44 = vld [vmem:[#allocation30_spill] sm:$0xff]  ;;  %v4281_v5 = vshll.u32 %v12354_v46, 16  ;;  %v2410_v33 = vmul.f32 %v15705_v26, %v15704_v27  ;;  %v3201_v14 = vor.u32 %v3199_v7, %v3197_v50 }
 0x1bf   : > { %v12352_v12 = vadd.f32 %v2657_v54, %v15700_v48  ;;  %v3562_v16 = vshrl.u32 %v15702_v44, 16  ;;  %v3565_v38 = vshll.u32 %v15702_v44, 16  ;;  %v4277_v54 = vshrl.u32 %v12248_v45, 16 }
 0x1c0   : > { %v1433_v48 = vadd.f32 %v1432_v13, %v15703_v37  ;;  %v3203_v56 = vshll.u32 %v12359_v4, 16  ;;  %v3557_v45 = vshll.u32 %v3534_v18, 16  ;;  %v4283_v34 = vrot.slane %v4281_v5, 1  ;;  %v15707_v37 = vld [vmem:[#allocation78_spill] sm:$0xff] }
 0x1c1   : > { %v12356_v59 = vpop.f32.mrf.mxu0  ;;  %v1434_v61 = vpop.f32.mrf.mxu1  ;;  %v3564_v32 = vrot.slane %v3562_v16, 3  ;;  %v3567_v2 = vrot.slane %v3565_v38, 4  ;;  %v4279_v13 = vor.u32 %v4277_v54, %v12303_v40  ;;  %v2981_v30 = vadd.f32 %v15707_v37, %v12187_v57 }
 0x1c2   : > { %15701 = vst [vmem:[#allocation105_spill] sm:$0xff] %v12356_v59  ;;  %8503 = vmatmul.msk.bf16.gmra.mxu2 %vm1042_vm2, %v2144_v11  ;;  %v2409_v27 = vmul.f32 %v15709_v47, %v15708_v52  ;;  %v9760_v43 = vunpack.c.l.bf16 %v10370_v6  ;;  %v3205_v16 = vrot.slane %v3203_v56, 1  ;;  %v15371_v38 = vunpack.c.h.bf16 %v12300_v55  ;;  %v15712_v56 = vld [vmem:[#allocation75_spill] sm:$0xff] }
 0x1c3   : > { %v2550_v40 = vsel %vm1184_vm4, %v12291_v3, %v12368_v0  ;;  %v3556_v50 = vrot.slane %v3554_v21, 3  ;;  %v4284_v57 = vsel %vm2012_vm6, %v4279_v13, %v4283_v34  ;;  %v3559_v7 = vrot.slane %v3557_v45, 4  ;;  %v15714_v3 = vld [vmem:[#allocation34_spill] sm:$0xff] }
 0x1c4   : > { %v2429_v54 = vpack.c.bf16 %v2410_v33, %v2409_v27  ;;  %v3206_v5 = vsel %vm2012_vm6, %v3201_v14, %v3205_v16  ;;  %v15715_v33 = vld [vmem:[#allocation65_spill] sm:$0xff]  ;;  %v15717_v45 = vunpack.c.l.bf16 %v12240_v42  ;;  %v15719_v14 = vld [vmem:[#allocation104_spill] sm:$0xff] }
 0x1c5   : > { %v2240_v59 = vpop.f32.mrf.mxu2  ;;  %v4207_v13 = vmul.f32 %v15371_v38, %v15715_v33  ;;  %v15721_v38 = vld [vmem:[#allocation83_spill] sm:$0xff] }
 0x1c6   : > { %v12373_v11 = vadd.f32 %v2240_v59, %v1433_v48  ;;  %v2659_v44 = vpop.f32.mrf.mxu3  ;;  %v9761_v59 = vunpack.c.h.bf16 %v10370_v6  ;;  %v12394_v6 = vor.u32 %v3567_v2, %v3564_v32  ;;  %v15718_v32 = vld [vmem:[#allocation103_spill] sm:$0xff]  ;;  %v2982_v33 = vadd.f32 %v15721_v38, %v12228_v10 }
 0x1c7   : > { %v12376_v19 = vadd.f32 %v2659_v44, %v15706_v23  ;;  %v1435_v44 = vadd.f32 %v1434_v61, %v15712_v56  ;;  %v3099_v61 = vmul.f32 %v11950_v15, %v15718_v32  ;;  %v15720_v56 = vld [vmem:[#allocation35_spill] sm:$0xff]  ;;  %v4285_v38 = vshrl.u32 %v12354_v46, 16 }
 0x1c8   : > { %v3506_v21 = vmul.f32 %v9761_v59, %v15714_v3  ;;  %v2555_v59 = vshll.u32 %v2429_v54, 16  ;;  %v9423_v10 = vld [vmem:[%s15222_s4 + $0x68] sm:$0xff] }
 0x1c9   : > { %v12383_v48 = vpop.f32.mrf.mxu0  ;;  %v3323_v18 = vpop.f32.mrf.mxu1  ;;  %4980 = vmatpush.bf16.msra.mxu1 %v9423_v10 }
 0x1ca   : > { %15710 = vst [vmem:[#allocation23_spill] sm:$0xff] %v12383_v48  ;;  %v12386_v23 = vadd.f32 %v3323_v18, %v2981_v30  ;;  %v15713_v30 = vld [vmem:[#allocation29_spill] sm:$0xff]  ;;  %v15716_v18 = vld [vmem:[#allocation66_spill] sm:$0xff] }
 0x1cb   : > { %8516 = vmatmul.msk.bf16.gmra.mxu3 %vm1042_vm2, %v2550_v40  ;;  %8721 = vmatmul.msk.bf16.gmra.mxu0 %vm1042_vm2, %v4284_v57  ;;  %v3505_v37 = vmul.f32 %v9760_v43, %v15713_v30  ;;  %v4208_v2 = vmul.f32 %v15717_v45, %v15716_v18  ;;  %v3100_v40 = vmul.f32 %v11952_v20, %v15719_v14 }
 0x1cc   : > { %15711 = vst [vmem:[#allocation30_spill] sm:$0xff] %v12386_v23  ;;  %8611 = vmatmul.msk.bf16.gmra.mxu1 %vm1042_vm2, %v3206_v5  ;;  %v2552_v5 = vshrl.u32 %v2429_v54, 16  ;;  %v3560_v30 = vor.u32 %v3559_v7, %v3556_v50  ;;  %v2557_v50 = vrot.slane %v2555_v59, 4  ;;  %v3207_v7 = vshrl.u32 %v12359_v4, 16  ;;  %v15726_v59 = vld [vmem:[#allocation38_spill] sm:$0xff]  ;;  %v15727_v4 = vld [vmem:[#allocation37_spill] sm:$0xff] }
 0x1cd   : > { %v2242_v27 = vpop.f32.mrf.mxu2  ;;  %v3536_v23 = vpack.c.bf16 %v3506_v21, %v3505_v37  ;;  %v12422_v20 = vpack.c.bf16 %v4208_v2, %v4207_v13  ;;  %v15724_v37 = vld [vmem:[#allocation24_spill] sm:$0xff]  ;;  %v2411_v46 = vmul.f32 %v12116_v53, %v15726_v59 }
 0x1ce   : > { %v12411_v57 = vadd.f32 %v2242_v27, %v1435_v44  ;;  %v2662_v43 = vpop.f32.mrf.mxu3  ;;  %v3569_v15 = vsel %vm1184_vm4, %v3560_v30, %v12394_v6  ;;  %v12424_v44 = vpack.c.bf16 %v3100_v40, %v3099_v61  ;;  %v2554_v54 = vrot.slane %v2552_v5, 3  ;;  %v15725_v30 = vld [vmem:[#allocation82_spill] sm:$0xff] }
 0x1cf   : > { %v12414_v3 = vadd.f32 %v2662_v43, %v15720_v56  ;;  %v1438_v21 = vadd.f32 %v15725_v30, %v15724_v37  ;;  %v3571_v13 = vshrl.u32 %v3536_v23, 16  ;;  %v3574_v2 = vshll.u32 %v3536_v23, 16  ;;  %v15729_v30 = vld [vmem:[#allocation86_spill] sm:$0xff] }
 0x1d0   : > { %v3211_v61 = vshll.u32 %v12424_v44, 16  ;;  %v12440_v5 = vor.u32 %v2557_v50, %v2554_v54  ;;  %v2412_v56 = vmul.f32 %v12194_v58, %v15727_v4  ;;  %v4287_v23 = vor.u32 %v4285_v38, %v4283_v34 }
 0x1d1   : > { %v12418_v45 = vpop.f32.mrf.mxu0  ;;  %v3325_v18 = vpop.f32.mrf.mxu1  ;;  %v3209_v10 = vor.u32 %v3207_v7, %v3205_v16  ;;  %v15732_v16 = vld [vmem:[#allocation71_spill] sm:$0xff]  ;;  %v15733_v38 = vunpack.c.h.bf16 %v12240_v42 }
 0x1d2   : > { %15722 = vst [vmem:[#allocation73_spill] sm:$0xff] %v12418_v45  ;;  %v12426_v27 = vadd.f32 %v3325_v18, %v2982_v33  ;;  %8620 = vmatmul.msk.bf16.vlgmr.msra.gmra.mxu2 %vm1042_vm2, %v3569_v15  ;;  %v4289_v18 = vshll.u32 %v12422_v20, 16  ;;  %v15728_v15 = vld [vmem:[#allocation41_spill] sm:$0xff]  ;;  %v2983_v45 = vadd.f32 %v15729_v30, %v12266_v63  ;;  %v3213_v52 = vrot.slane %v3211_v61, 1 }
 0x1d3   : > { %v2559_v4 = vsel %vm1184_vm4, %v12368_v0, %v12440_v5  ;;  %v4209_v7 = vmul.f32 %v15733_v38, %v15732_v16  ;;  %v15737_v61 = vld [vmem:[#allocation85_spill] sm:$0xff]  ;;  %v15741_v30 = vunpack.c.l.bf16 %v12121_v28 }
 0x1d4   : > { %15723 = vst [vmem:[#allocation129_spill] sm:$0xff] %v12426_v27  ;;  %v3573_v27 = vrot.slane %v3571_v13, 3  ;;  %v4291_v54 = vrot.slane %v4289_v18, 1  ;;  %v3214_v63 = vsel %vm2012_vm6, %v3209_v10, %v3213_v52  ;;  %v15734_v13 = vld [vmem:[#allocation72_spill] sm:$0xff]  ;;  %v15742_v38 = vld [vmem:[#allocation45_spill] sm:$0xff] }
 0x1d5   : > { %v2245_v33 = vpop.f32.mrf.mxu2  ;;  %v15736_v18 = vld [vmem:[#allocation32_spill] sm:$0xff] }
 0x1d6   : > { %v12438_v40 = vadd.f32 %v2245_v33, %v1438_v21  ;;  %v2664_v43 = vpop.f32.mrf.mxu3  ;;  %v3576_v21 = vrot.slane %v3574_v2, 4  ;;  %v4292_v34 = vsel %vm2012_vm6, %v4287_v23, %v4291_v54  ;;  %v15735_v2 = vunpack.c.l.bf16 %v12242_v24  ;;  %v15739_v23 = vld [vmem:[#allocation110_spill] sm:$0xff]  ;;  %v15740_v10 = vld [vmem:[#allocation44_spill] sm:$0xff] }
 0x1d7   : > { %v12447_v37 = vadd.f32 %v2664_v43, %v15728_v15  ;;  %v2430_v43 = vpack.c.bf16 %v2412_v56, %v2411_v46  ;;  %v1440_v15 = vadd.f32 %v15737_v61, %v15736_v18  ;;  %v3102_v42 = vmul.f32 %v12001_v25, %v15739_v23  ;;  %v10353_v61 = vld [vmem:[#allocation2 + $0x80] sm:$0xff]   ;;  %v15744_v25 = vld [vmem:[#allocation91_spill] sm:$0xff] }
 0x1d8   : > { %v12471_v0 = vor.u32 %v3576_v21, %v3573_v27 }
 0x1d9   : > { %v12451_v33 = vpop.f32.mrf.mxu0  ;;  %v3328_v50 = vpop.f32.mrf.mxu1  ;;  %v2561_v27 = vshrl.u32 %v2430_v43, 16  ;;  %v2564_v21 = vshll.u32 %v2430_v43, 16  ;;  %v12499_v43 = vunpack.c.l.bf16 %v10353_v61 }
 0x1da   : > { %15730 = vst [vmem:[#allocation28_spill] sm:$0xff] %v12451_v33  ;;  %v12453_v48 = vadd.f32 %v3328_v50, %v2983_v45  ;;  %v4210_v45 = vmul.f32 %v15735_v2, %v15734_v13  ;;  %v3507_v50 = vmul.f32 %v15741_v30, %v15740_v10  ;;  %v15743_v2 = vunpack.c.h.bf16 %v12121_v28 }
 0x1db   : > { %8517 = vmatmul.msk.bf16.gmra.mxu3 %vm1042_vm2, %v2559_v4  ;;  %8722 = vmatmul.msk.bf16.gmra.mxu0 %vm1042_vm2, %v4292_v34  ;;  %v15738_v4 = vld [vmem:[#allocation109_spill] sm:$0xff]  ;;  %v2984_v13 = vadd.f32 %v15744_v25, %v12311_v35  ;;  %v3578_v28 = vsel %vm1184_vm4, %v12394_v6, %v12471_v0  ;;  %v4293_v35 = vshrl.u32 %v12422_v20, 16  ;;  %v3215_v25 = vshrl.u32 %v12424_v44, 16  ;;  %v15747_v6 = vld [vmem:[#allocation36_spill] sm:$0xff] }
 0x1dc   : > { %15731 = vst [vmem:[#allocation78_spill] sm:$0xff] %v12453_v48  ;;  %8612 = vmatmul.msk.bf16.gmra.mxu1 %vm1042_vm2, %v3214_v63  ;;  %v3101_v56 = vmul.f32 %v11999_v1, %v15738_v4  ;;  %v3508_v18 = vmul.f32 %v15743_v2, %v15742_v38  ;;  %v12488_v1 = vpack.c.bf16 %v4210_v45, %v4209_v7  ;;  %v2566_v7 = vrot.slane %v2564_v21, 4  ;;  %v15750_v20 = vld [vmem:[#allocation49_spill] sm:$0xff]  ;;  %v15751_v38 = vld [vmem:[#allocation50_spill] sm:$0xff] }
 0x1dd   : > { %v2247_v46 = vpop.f32.mrf.mxu2  ;;  %v12504_v45 = vunpack.c.h.bf16 %v10353_v61  ;;  %v12516_v61 = vld [vmem:[#allocation2 + $0x50] sm:$0xff]  }
 0x1de   : > { %v12483_v34 = vadd.f32 %v2247_v46, %v1440_v15  ;;  %v2667_v63 = vpop.f32.mrf.mxu3  ;;  %v12497_v15 = vpack.c.bf16 %v3102_v42, %v3101_v56  ;;  %v3537_v46 = vpack.c.bf16 %v3508_v18, %v3507_v50  ;;  %v15748_v56 = vld [vmem:[#allocation90_spill] sm:$0xff] }
 0x1df   : > { %v12486_v16 = vadd.f32 %v2667_v63, %v12138_v36  ;;  %v2563_v36 = vrot.slane %v2561_v27, 3  ;;  %v4297_v63 = vshll.u32 %v12488_v1, 16  ;;  %v1443_v42 = vadd.f32 %v15748_v56, %v15747_v6 }
 0x1e0   : > { %v3219_v18 = vshll.u32 %v12497_v15, 16  ;;  %v2414_v44 = vmul.f32 %v12504_v45, %v15751_v38  ;;  %v4295_v56 = vor.u32 %v4293_v35, %v4291_v54  ;;  %v15754_v35 = vunpack.c.h.bf16 %v12242_v24 }
 0x1e1   : > { %v12492_v48 = vpop.f32.mrf.mxu0  ;;  %v3330_v30 = vpop.f32.mrf.mxu1  ;;  %v12514_v21 = vor.u32 %v2566_v7, %v2563_v36  ;;  %v4299_v10 = vrot.slane %v4297_v63, 1 }
 0x1e2   : > { %15745 = vst [vmem:[#allocation122_spill] sm:$0xff] %v12492_v48  ;;  %v12501_v2 = vadd.f32 %v3330_v30, %v2984_v13  ;;  %8621 = vmatmul.msk.bf16.gmra.mxu2 %vm1042_vm2, %v3578_v28  ;;  %v3580_v13 = vshrl.u32 %v3537_v46, 16  ;;  %v3583_v30 = vshll.u32 %v3537_v46, 16  ;;  %v2413_v28 = vmul.f32 %v12499_v43, %v15750_v20  ;;  %v15753_v46 = vld [vmem:[#allocation94_spill] sm:$0xff] }
 0x1e3   : > { %v3221_v7 = vrot.slane %v3219_v18, 1  ;;  %v15372_v20 = vunpack.c.l.bf16 %v12516_v61  ;;  %v4211_v63 = vmul.f32 %v15754_v35, %v11670_v60  ;;  %v15755_v18 = vld [vmem:[#allocation42_spill] sm:$0xff] }
 0x1e4   : > { %15746 = vst [vmem:[#allocation75_spill] sm:$0xff] %v12501_v2  ;;  %v3217_v2 = vor.u32 %v3215_v25, %v3213_v52  ;;  %v3582_v59 = vrot.slane %v3580_v13, 3  ;;  %v3585_v33 = vrot.slane %v3583_v30, 4  ;;  %v2431_v54 = vpack.c.bf16 %v2414_v44, %v2413_v28  ;;  %v15756_v13 = vld [vmem:[#allocation92_spill] sm:$0xff] }
 0x1e5   : > { %v2250_v50 = vpop.f32.mrf.mxu2  ;;  %v4300_v52 = vsel %vm2012_vm6, %v4295_v56, %v4299_v10  ;;  %v4212_v25 = vmul.f32 %v15372_v20, %v11682_v17  ;;  %v1445_v30 = vadd.f32 %v15756_v13, %v15755_v18  ;;  %v15760_v44 = vunpack.c.h.bf16 %v12191_v22 }
 0x1e6   : > { %v12512_v48 = vadd.f32 %v2250_v50, %v1443_v42  ;;  %v2669_v27 = vpop.f32.mrf.mxu3  ;;  %v2985_v42 = vadd.f32 %v15753_v46, %v12352_v12  ;;  %v3222_v12 = vsel %vm2012_vm6, %v3217_v2, %v3221_v7  ;;  %v15759_v2 = vld [vmem:[#allocation57_spill] sm:$0xff]  ;;  %v12554_v46 = vor.u32 %v3585_v33, %v3582_v59  ;;  %v15763_v59 = vld [vmem:[#allocation98_spill] sm:$0xff] }
 0x1e7   : > { %v12523_v6 = vadd.f32 %v2669_v27, %v12179_v9  ;;  %v2568_v9 = vsel %vm1184_vm4, %v12440_v5, %v12514_v21  ;;  %v15757_v5 = vld [vmem:[#allocation53_spill] sm:$0xff]  ;;  %v15758_v27 = vunpack.c.l.bf16 %v12191_v22  ;;  %v3510_v24 = vmul.f32 %v15760_v44, %v15759_v2  ;;  %v2349_v22 = vld [vmem:[#allocation2 + $0x88] sm:$0xf] }
 0x1e8   : > { %15749 = vst [vmem:[#allocation35_spill] sm:$0xff] %v12512_v48  ;;  %v2570_v18 = vshrl.u32 %v2431_v54, 16  ;;  %v2573_v13 = vshll.u32 %v2431_v54, 16  ;;  %v12565_v20 = vpack.c.bf16 %v4212_v25, %v4211_v63  ;;  %v2986_v33 = vadd.f32 %v15763_v59, %v12376_v19  ;;  %v9422_v19 = vld [vmem:[%s15222_s4 + $0x60] sm:$0xff] }
 0x1e9   : > { %15752 = vst [vmem:[#allocation83_spill] sm:$0xff] %v12523_v6  ;;  %v12527_v50 = vpop.f32.mrf.mxu0  ;;  %v3333_v36 = vpop.f32.mrf.mxu1  ;;  %v3509_v28 = vmul.f32 %v15758_v27, %v15757_v5  ;;  %v2382_v25 = vunpack.c.l.bf16 %v2349_v22  ;;  %4981 = vmatpush.bf16.msra.mxu1 %v9422_v19  ;;  %v12598_v5 = vld [vmem:[#allocation2 + $0x58] sm:$0xff]   ;;  %v15772_v6 = vld [vmem:[#allocation100_spill] sm:$0xff] }
 0x1ea   : > { %v12530_v48 = vadd.f32 %v3333_v36, %v2985_v42  ;;  %v15761_v42 = vld [vmem:[#allocation114_spill] sm:$0xff]  ;;  %v2575_v63 = vrot.slane %v2573_v13, 4 }
 0x1eb   : > { %8518 = vmatmul.msk.bf16.gmra.mxu3 %vm1042_vm2, %v2568_v9  ;;  %8723 = vmatmul.msk.bf16.gmra.mxu0 %vm1042_vm2, %v4300_v52  ;;  %v3103_v36 = vmul.f32 %v12050_v31, %v15761_v42  ;;  %v15762_v9 = vld [vmem:[#allocation113_spill] sm:$0xff]  ;;  %v3538_v44 = vpack.c.bf16 %v3510_v24, %v3509_v28  ;;  %v4301_v28 = vshrl.u32 %v12488_v1, 16  ;;  %v4305_v24 = vshll.u32 %v12565_v20, 16 }
 0x1ec   : > { %8613 = vmatmul.msk.bf16.gmra.mxu1 %vm1042_vm2, %v3222_v12  ;;  %v3104_v35 = vmul.f32 %v15709_v47, %v15762_v9  ;;  %v3587_v47 = vsel %vm1184_vm4, %v12471_v0, %v12554_v46  ;;  %v15766_v0 = vld [vmem:[#allocation48_spill] sm:$0xff] }
 0x1ed   : > { %v2252_v56 = vpop.f32.mrf.mxu2  ;;  %v3592_v59 = vshll.u32 %v3538_v44, 16  ;;  %v4307_v17 = vrot.slane %v4305_v24, 1  ;;  %v15378_v24 = vunpack.c.l.bf16 %v12598_v5 }
 0x1ee   : > { %v12560_v52 = vadd.f32 %v2252_v56, %v1445_v30  ;;  %v2672_v12 = vpop.f32.mrf.mxu3  ;;  %v12574_v30 = vpack.c.bf16 %v3104_v35, %v3103_v36  ;;  %v3223_v56 = vshrl.u32 %v12497_v15, 16  ;;  %v15767_v36 = vld [vmem:[#allocation97_spill] sm:$0xff]  ;;  %v4303_v15 = vor.u32 %v4301_v28, %v4299_v10 }
 0x1ef   : > { %v12563_v27 = vadd.f32 %v2672_v12, %v12217_v62  ;;  %v2572_v62 = vrot.slane %v2570_v18, 3  ;;  %v1448_v35 = vadd.f32 %v15767_v36, %v15766_v0  ;;  %v3589_v12 = vshrl.u32 %v3538_v44, 16  ;;  %v15770_v0 = vld [vmem:[#allocation101_spill] sm:$0xff] }
 0x1f0   : > { %v3227_v18 = vshll.u32 %v12574_v30, 16  ;;  %v3225_v2 = vor.u32 %v3223_v56, %v3221_v7  ;;  %v2987_v44 = vadd.f32 %v15770_v0, %v12414_v3  ;;  %v3594_v36 = vrot.slane %v3592_v59, 4  ;;  %v15773_v56 = vld [vmem:[#allocation61_spill] sm:$0xff]  ;;  %v15775_v59 = vld [vmem:[#allocation62_spill] sm:$0xff]  ;;  %v15777_v0 = vld [vmem:[#allocation119_spill] sm:$0xff] }
 0x1f1   : > { %v12569_v60 = vpop.f32.mrf.mxu0  ;;  %v3335_v31 = vpop.f32.mrf.mxu1  ;;  %v3591_v19 = vrot.slane %v3589_v12, 3  ;;  %v4308_v3 = vsel %vm2012_vm6, %v4303_v15, %v4307_v17  ;;  %v15377_v28 = vunpack.c.h.bf16 %v12516_v61  ;;  %v4214_v15 = vmul.f32 %v15378_v24, %v11772_v8 }
 0x1f2   : > { %15764 = vst [vmem:[#allocation24_spill] sm:$0xff] %v12569_v60  ;;  %v12576_v54 = vadd.f32 %v3335_v31, %v2986_v33  ;;  %8622 = vmatmul.msk.bf16.gmra.mxu2 %vm1042_vm2, %v3587_v47  ;;  %v12590_v31 = vor.u32 %v2575_v63, %v2572_v62  ;;  %v15768_v47 = vld [vmem:[#allocation46_spill] sm:$0xff]  ;;  %v3229_v62 = vrot.slane %v3227_v18, 1  ;;  %v15776_v18 = vunpack.c.h.bf16 %v12300_v55 }
 0x1f3   : > { %v2415_v1 = vmul.f32 %v2382_v25, %v15768_v47  ;;  %v15771_v63 = vld [vmem:[#allocation54_spill] sm:$0xff] }
 0x1f4   : > { %15765 = vst [vmem:[#allocation82_spill] sm:$0xff] %v12576_v54  ;;  %v1450_v25 = vadd.f32 %v15772_v6, %v15771_v63  ;;  %v3230_v7 = vsel %vm2012_vm6, %v3225_v2, %v3229_v62  ;;  %v12616_v6 = vor.u32 %v3594_v36, %v3591_v19  ;;  %v4213_v2 = vmul.f32 %v15377_v28, %v11767_v29  ;;  %v15778_v19 = vld [vmem:[#allocation120_spill] sm:$0xff] }
 0x1f5   : > { %v2255_v33 = vpop.f32.mrf.mxu2  ;;  %v2432_v10 = vpack.c.bf16 %v2415_v1, %v2415_v1  ;;  %v3106_v36 = vmul.f32 %v12116_v53, %v15778_v19 }
 0x1f6   : > { %v12588_v13 = vadd.f32 %v2255_v33, %v1448_v35  ;;  %v2674_v22 = vpop.f32.mrf.mxu3  ;;  %v12646_v53 = vpack.c.bf16 %v4214_v15, %v4213_v2 }
 0x1f7   : > { %v12594_v60 = vadd.f32 %v2674_v22, %v12260_v49  ;;  %v2577_v49 = vsel %vm1184_vm4, %v12514_v21, %v12590_v31  ;;  %v15774_v21 = vunpack.c.l.bf16 %v12300_v55  ;;  %v3512_v22 = vmul.f32 %v15776_v18, %v15775_v59 }
 0x1f8   : > { %v2579_v55 = vshrl.u32 %v2432_v10, 16  ;;  %v4313_v2 = vshll.u32 %v12646_v53, 16 }
 0x1f9   : > { %15769 = vst [vmem:[#allocation41_spill] sm:$0xff] %v12594_v60  ;;  %v12600_v35 = vpop.f32.mrf.mxu0  ;;  %v3338_v33 = vpop.f32.mrf.mxu1  ;;  %v3511_v12 = vmul.f32 %v15774_v21, %v15773_v56 }
 0x1fa   : > { %v12604_v54 = vadd.f32 %v3338_v33, %v2987_v44  ;;  %v3105_v44 = vmul.f32 %v15705_v26, %v15777_v0  ;;  %v3596_v26 = vsel %vm1184_vm4, %v12554_v46, %v12616_v6  ;;  %v4315_v8 = vrot.slane %v4313_v2, 1 }
 0x1fb   : > { %8519 = vmatmul.msk.bf16.gmra.mxu3 %vm1042_vm2, %v2577_v49  ;;  %8724 = vmatmul.msk.bf16.gmra.mxu0 %vm1042_vm2, %v4308_v3  ;;  %v2582_v49 = vshll.u32 %v2432_v10, 16  ;;  %v3539_v18 = vpack.c.bf16 %v3512_v22, %v3511_v12  ;;  %v3231_v12 = vshrl.u32 %v12574_v30, 16  ;;  %v15781_v22 = vld [vmem:[#allocation60_spill] sm:$0xff] }
 0x1fc   : > { %8614 = vmatmul.msk.bf16.gmra.mxu1 %vm1042_vm2, %v3230_v7  ;;  %v15779_v7 = vld [vmem:[#allocation107_spill] sm:$0xff]  ;;  %v15784_v30 = vld [vmem:[#allocation108_spill] sm:$0xff] }
 0x1fd   : > { %v2257_v1 = vpop.f32.mrf.mxu2  ;;  %v2988_v21 = vadd.f32 %v15779_v7, %v12447_v37  ;;  %v2584_v10 = vrot.slane %v2582_v49, 4  ;;  %v4309_v37 = vshrl.u32 %v12565_v20, 16  ;;  %v3601_v29 = vshll.u32 %v3539_v18, 16 }
 0x1fe   : > { %v12634_v33 = vadd.f32 %v2257_v1, %v1450_v25  ;;  %v2677_v63 = vpop.f32.mrf.mxu3  ;;  %v12648_v25 = vpack.c.bf16 %v3106_v36, %v3105_v44  ;;  %v3233_v49 = vor.u32 %v3231_v12, %v3229_v62  ;;  %v15787_v12 = vld [vmem:[#allocation96_spill] sm:$0xff] }
 0x1ff   : > { %v12637_v3 = vadd.f32 %v2677_v63, %v12307_v51  ;;  %v2581_v51 = vrot.slane %v2579_v55, 3  ;;  %v15782_v63 = vld [vmem:[#allocation106_spill] sm:$0xff]  ;;  %v4311_v20 = vor.u32 %v4309_v37, %v4307_v17 }
 0x200   : > { %v1453_v7 = vadd.f32 %v15782_v63, %v15781_v22  ;;  %v3235_v15 = vshll.u32 %v12648_v25, 16  ;;  %v3603_v22 = vrot.slane %v3601_v29, 4  ;;  %v15384_v29 = vunpack.c.h.bf16 %v12598_v5 }
 0x201   : > { %v12641_v28 = vpop.f32.mrf.mxu0  ;;  %v3340_v24 = vpop.f32.mrf.mxu1  ;;  %v2585_v36 = vor.u32 %v2584_v10, %v2581_v51  ;;  %v4316_v17 = vsel %vm2012_vm6, %v4311_v20, %v4315_v8  ;;  %v15786_v51 = vld [vmem:[#allocation10_spill] sm:$0xff] }
 0x202   : > { %15780 = vst [vmem:[#allocation86_spill] sm:$0xff] %v12641_v28  ;;  %v12650_v1 = vadd.f32 %v3340_v24, %v2988_v21  ;;  %8623 = vmatmul.msk.bf16.gmra.mxu2 %vm1042_vm2, %v3596_v26  ;;  %v3598_v28 = vshrl.u32 %v3539_v18, 16  ;;  %v2989_v21 = vadd.f32 %v15784_v30, %v12486_v16  ;;  %v12666_v18 = vld [vmem:[#allocation2 + $0x60] sm:$0xff]  }
 0x203   : > { %v15383_v62 = vunpack.c.l.bf16 %v12666_v18 }
 0x204   : > { %v3600_v26 = vrot.slane %v3598_v28, 3  ;;  %v15785_v28 = vld [vmem:[#allocation64_spill] sm:$0xff] }
 0x205   : > { %v2260_v46 = vpop.f32.mrf.mxu2  ;;  %v1455_v10 = vadd.f32 %v15786_v51, %v15785_v28  ;;  %v4216_v2 = vmul.f32 %v15383_v62, %v15787_v12  ;;  %v4317_v28 = vshrl.u32 %v12646_v53, 16  ;;  %v15792_v51 = vld [vmem:[#allocation70_spill] sm:$0xff]  ;;  %v15795_v53 = vld [vmem:[#allocation112_spill] sm:$0xff]  ;;  %v12719_v12 = vld [vmem:[#allocation2 + $0x68] sm:$0xff]  }
 0x206   : > { %v12659_v24 = vadd.f32 %v2260_v46, %v1453_v7  ;;  %v2679_v44 = vpop.f32.mrf.mxu3  ;;  %v3237_v7 = vrot.slane %v3235_v15, 1  ;;  %v15788_v15 = vld [vmem:[#allocation126_spill] sm:$0xff] }
 0x207   : > { %v12662_v55 = vadd.f32 %v2679_v44, %v12349_v41  ;;  %v2586_v41 = vsel %vm1184_vm4, %v12590_v31, %v2585_v36  ;;  %v4215_v31 = vmul.f32 %v15384_v29, %v11840_v39  ;;  %v3107_v44 = vmul.f32 %v12194_v58, %v15788_v15  ;;  %v15789_v36 = vld [vmem:[#allocation127_spill] sm:$0xff]  ;;  %v9421_v58 = vld [vmem:[%s15222_s4 + $0x58] sm:$0xff] }
 0x208   : > { %v3238_v16 = vsel %vm2012_vm6, %v3233_v49, %v3237_v7  ;;  %v3108_v20 = vmul.f32 %v12499_v43, %v15789_v36  ;;  %4982 = vmatpush.bf16.msra.mxu1 %v9421_v58  ;;  %v9378_v39 = vld [vmem:[#allocation2 + $0x14] sm:$0xff] }
 0x209   : > { %15783 = vst [vmem:[#allocation32_spill] sm:$0xff] %v12662_v55  ;;  %v12668_v63 = vpop.f32.mrf.mxu0  ;;  %v3343_v59 = vpop.f32.mrf.mxu1 }
 0x20a   : > { %v12670_v46 = vadd.f32 %v3343_v59, %v2989_v21  ;;  %v3604_v59 = vor.u32 %v3603_v22, %v3600_v26 }
 0x20b   : > { %8520 = vmatmul.msk.bf16.gmra.mxu3 %vm1042_vm2, %v2586_v41  ;;  %8725 = vmatmul.msk.bf16.gmra.mxu0 %vm1042_vm2, %v4316_v17  ;;  %v4239_v17 = vpack.c.bf16 %v4216_v2, %v4215_v31  ;;  %v3044_v2 = vld [vmem:[#allocation2 + $0x88] sm:$0xf] }
 0x20c   : > { %8615 = vmatmul.msk.bf16.gmra.mxu1 %vm1042_vm2, %v3238_v16  ;;  %v3605_v41 = vsel %vm1184_vm4, %v12616_v6, %v3604_v59  ;;  %v3126_v16 = vpack.c.bf16 %v3108_v20, %v3107_v44  ;;  %v4319_v20 = vor.u32 %v4317_v28, %v4315_v8  ;;  %v15387_v8 = vunpack.c.h.bf16 %v12666_v18  ;;  %v15798_v28 = vld [vmem:[#allocation14_spill] sm:$0xff] }
 0x20d   : > { %v2262_v37 = vpop.f32.mrf.mxu2  ;;  %v4321_v62 = vshll.u32 %v4239_v17, 16 }
 0x20e   : > { %v12693_v49 = vadd.f32 %v2262_v37, %v1455_v10  ;;  %v2682_v30 = vpop.f32.mrf.mxu3  ;;  %v15793_v10 = vld [vmem:[#allocation11_spill] sm:$0xff]  ;;  %v3243_v29 = vshll.u32 %v3126_v16, 16 }
 0x20f   : > { %v12696_v21 = vadd.f32 %v2682_v30, %v12373_v11  ;;  %v3239_v11 = vshrl.u32 %v12648_v25, 16  ;;  %v1458_v37 = vadd.f32 %v15793_v10, %v15792_v51  ;;  %v2991_v25 = vadd.f32 %v15795_v53, %v12563_v27 }
 0x210   : > { %v4323_v58 = vrot.slane %v4321_v62, 1  ;;  %v15388_v27 = vunpack.c.l.bf16 %v12719_v12  ;;  %v4217_v62 = vmul.f32 %v15387_v8, %v15718_v32  ;;  %v4325_v32 = vshrl.u32 %v4239_v17, 16  ;;  %v15806_v17 = vld [vmem:[#allocation117_spill] sm:$0xff] }
 0x211   : > { %v12698_v26 = vpop.f32.mrf.mxu0  ;;  %v12700_v22 = vpop.f32.mrf.mxu1 }
 0x212   : > { %15790 = vst [vmem:[#allocation85_spill] sm:$0xff] %v12698_v26  ;;  %8624 = vmatmul.msk.bf16.gmra.mxu2 %vm1042_vm2, %v3605_v41  ;;  %v3241_v41 = vor.u32 %v3239_v11, %v3237_v7  ;;  %v3245_v26 = vrot.slane %v3243_v29, 1  ;;  %v4324_v55 = vsel %vm2012_vm6, %v4319_v20, %v4323_v58  ;;  %v15797_v7 = vld [vmem:[#allocation74_spill] sm:$0xff]  ;;  %v15800_v20 = vld [vmem:[#allocation51_spill] sm:$0xff] }
 0x213   : > { %15791 = vst [vmem:[#allocation91_spill] sm:$0xff] %v12700_v22  ;;  %v1460_v11 = vadd.f32 %v15798_v28, %v15797_v7  ;;  %v15802_v7 = vld [vmem:[#allocation134_spill] sm:$0xff] }
 0x214   : > { %v3614_v28 = vsel %vm1184_vm4, %v3604_v59, %v15802_v7  ;;  %v4327_v59 = vor.u32 %v4325_v32, %v4323_v58  ;;  %v15810_v58 = vld [vmem:[#allocation116_spill] sm:$0xff] }
 0x215   : > { %v2265_v30 = vpop.f32.mrf.mxu2 }
 0x216   : > { %v12712_v6 = vadd.f32 %v2265_v30, %v1458_v37  ;;  %v2684_v31 = vpop.f32.mrf.mxu3  ;;  %v3077_v37 = vunpack.c.l.bf16 %v3044_v2 }
 0x217   : > { %v12715_v44 = vadd.f32 %v2684_v31, %v12411_v57  ;;  %v3246_v57 = vsel %vm2012_vm6, %v3241_v41, %v3245_v26  ;;  %v15799_v31 = vld [vmem:[#allocation132_spill] sm:$0xff] }
 0x218   : > { %v3109_v2 = vmul.f32 %v12504_v45, %v15799_v31  ;;  %v3110_v41 = vmul.f32 %v3077_v37, %v15800_v20  ;;  %v15803_v37 = vld [vmem:[#allocation79_spill] sm:$0xff] }
 0x219   : > { %15794 = vst [vmem:[#allocation36_spill] sm:$0xff] %v12715_v44  ;;  %v12721_v51 = vpop.f32.mrf.mxu0  ;;  %v3348_v10 = vpop.f32.mrf.mxu1  ;;  %v3045_v44 = vld [vmem:[#allocation2 + $0x8c] sm:$0x1] }
 0x21a   : > { %v12723_v30 = vadd.f32 %v3348_v10, %v2991_v25 }
 0x21b   : > { %8701 = vmatmul.msk.bf16.vlgmr.msra.gmra.mxu3 %vm1042_vm2, %v9378_v39  ;;  %8726 = vmatmul.msk.bf16.gmra.mxu0 %vm1042_vm2, %v4324_v55  ;;  %v4218_v39 = vmul.f32 %v15388_v27, %v15719_v14  ;;  %v3127_v27 = vpack.c.bf16 %v3110_v41, %v3109_v2  ;;  %v3247_v14 = vshrl.u32 %v3126_v16, 16  ;;  %v3078_v2 = vunpack.c.l.bf16 %v3045_v44  ;;  %v12764_v41 = vld [vmem:[#allocation2 + $0x70] sm:$0xff]  }
 0x21c   : > { %15796 = vst [vmem:[#allocation90_spill] sm:$0xff] %v12723_v30  ;;  %8616 = vmatmul.msk.bf16.gmra.mxu1 %vm1042_vm2, %v3246_v57  ;;  %v2993_v16 = vadd.f32 %v15806_v17, %v12637_v3  ;;  %v15808_v3 = vld [vmem:[#allocation131_spill] sm:$0xff]  ;;  %v15809_v44 = vld [vmem:[#allocation84_spill] sm:$0xff]  ;;  %v15812_v17 = vunpack.c.l.bf16 %v12516_v61 }
 0x21d   : > { %v2267_v29 = vpop.f32.mrf.mxu2  ;;  %v4240_v8 = vpack.c.bf16 %v4218_v39, %v4217_v62  ;;  %v3249_v62 = vor.u32 %v3247_v14, %v3245_v26  ;;  %v9379_v39 = vld [vmem:[#allocation2 + $0x1c] sm:$0xff]  ;;  %v15393_v14 = vunpack.c.l.bf16 %v12764_v41  ;;  %v3111_v26 = vmul.f32 %v3078_v2, %v15808_v3 }
 0x21e   : > { %v12743_v53 = vadd.f32 %v2267_v29, %v1460_v11  ;;  %v2687_v25 = vpop.f32.mrf.mxu3  ;;  %v15804_v11 = vld [vmem:[#allocation16_spill] sm:$0xff]  ;;  %v15811_v2 = vld [vmem:[#allocation6_spill] sm:$0xff] }
 0x21f   : > { %v12746_v55 = vadd.f32 %v2687_v25, %v12438_v40  ;;  %v1463_v29 = vadd.f32 %v15804_v11, %v15803_v37  ;;  %v4329_v40 = vshll.u32 %v4240_v8, 16  ;;  %v3251_v25 = vshll.u32 %v3127_v27, 16 }
 0x221   : > { %v12748_v10 = vpop.f32.mrf.mxu0  ;;  %v12750_v57 = vpop.f32.mrf.mxu1  ;;  %v3253_v11 = vrot.slane %v3251_v25, 1 }
 0x222   : > { %15801 = vst [vmem:[#allocation94_spill] sm:$0xff] %v12750_v57  ;;  %8625 = vmatmul.msk.bf16.gmra.mxu2 %vm1042_vm2, %v3614_v28  ;;  %v4331_v28 = vrot.slane %v4329_v40, 1 }
 0x223   : > { %v3254_v32 = vsel %vm2012_vm6, %v3249_v62, %v3253_v11 }
 0x225   : > { %v2270_v56 = vpop.f32.mrf.mxu2 }
 0x226   : > { %v12757_v60 = vadd.f32 %v2270_v56, %v1463_v29  ;;  %v2689_v30 = vpop.f32.mrf.mxu3  ;;  %v15391_v29 = vunpack.c.h.bf16 %v12719_v12 }
 0x227   : > { %v12760_v57 = vadd.f32 %v2689_v30, %v12483_v34  ;;  %v4332_v34 = vsel %vm2012_vm6, %v4327_v59, %v4331_v28  ;;  %v1465_v30 = vadd.f32 %v15810_v58, %v15809_v44  ;;  %v4220_v59 = vmul.f32 %v15393_v14, %v15739_v23  ;;  %v15815_v44 = vld [vmem:[#allocation35_spill] sm:$0xff] }
 0x228   : > { %v4219_v25 = vmul.f32 %v15391_v29, %v15738_v4  ;;  %v4333_v23 = vshrl.u32 %v4240_v8, 16  ;;  %v9380_v8 = vld [vmem:[#allocation2 + $0x24] sm:$0xff] }
 0x229   : > { %15805 = vst [vmem:[#allocation42_spill] sm:$0xff] %v12760_v57  ;;  %v12766_v7 = vpop.f32.mrf.mxu0  ;;  %v3353_v37 = vpop.f32.mrf.mxu1  ;;  %v3128_v57 = vpack.c.bf16 %v3111_v26, %v3111_v26 }
 0x22a   : > { %v12768_v56 = vadd.f32 %v3353_v37, %v2993_v16  ;;  %v3517_v16 = vmul.f32 %v15812_v17, %v15811_v2  ;;  %v15813_v37 = vld [vmem:[#allocation7_spill] sm:$0xff]  ;;  %v4241_v14 = vpack.c.bf16 %v4220_v59, %v4219_v25  ;;  %v9420_v17 = vld [vmem:[%s15222_s4 + $0x50] sm:$0xff] }
 0x22b   : > { %8702 = vmatmul.msk.bf16.gmra.mxu3 %vm1042_vm2, %v9379_v39  ;;  %8727 = vmatmul.msk.bf16.gmra.mxu0 %vm1042_vm2, %v4332_v34  ;;  %v15814_v34 = vunpack.c.h.bf16 %v12516_v61  ;;  %v3255_v61 = vshrl.u32 %v3127_v27, 16  ;;  %v12813_v27 = vld [vmem:[#allocation2 + $0x78] sm:$0xff]  }
 0x22c   : > { %15807 = vst [vmem:[#allocation92_spill] sm:$0xff] %v12768_v56  ;;  %8617 = vmatmul.msk.bf16.gmra.mxu1 %vm1042_vm2, %v3254_v32  ;;  %v4337_v2 = vshll.u32 %v4241_v14, 16 }
 0x22d   : > { %v2272_v40 = vpop.f32.mrf.mxu2  ;;  %v3518_v32 = vmul.f32 %v15814_v34, %v15813_v37  ;;  %v3259_v34 = vshll.u32 %v3128_v57, 16  ;;  %v15818_v37 = vld [vmem:[#allocation89_spill] sm:$0xff]  ;;  %4983 = vmatpush.bf16.msra.mxu1 %v9420_v17  ;;  %v15821_v57 = vld [vmem:[#allocation124_spill] sm:$0xff] }
 0x22e   : > { %v12786_v62 = vadd.f32 %v2272_v40, %v1465_v30  ;;  %v2692_v39 = vpop.f32.mrf.mxu3  ;;  %v15817_v30 = vld [vmem:[#allocation67_spill] sm:$0xff] }
 0x22f   : > { %v12795_v58 = vadd.f32 %v2692_v39, %v15815_v44  ;;  %v3542_v40 = vpack.c.bf16 %v3518_v32, %v3517_v16  ;;  %v15819_v39 = vld [vmem:[#allocation118_spill] sm:$0xff]  ;;  %v4335_v32 = vor.u32 %v4333_v23, %v4331_v28  ;;  %v3261_v22 = vrot.slane %v3259_v34, 1  ;;  %v15822_v34 = vld [vmem:[#allocation93_spill] sm:$0xff] }
 0x230   : > { %v1468_v44 = vadd.f32 %v15819_v39, %v15818_v37  ;;  %v2995_v37 = vadd.f32 %v15821_v57, %v12696_v21  ;;  %v4339_v39 = vrot.slane %v4337_v2, 1  ;;  %v15823_v21 = vld [vmem:[#allocation123_spill] sm:$0xff] }
 0x231   : > { %v12797_v29 = vpop.f32.mrf.mxu0  ;;  %v12799_v4 = vpop.f32.mrf.mxu1  ;;  %v3625_v59 = vshrl.u32 %v3542_v40, 16 }
 0x232   : > { %15816 = vst [vmem:[#allocation98_spill] sm:$0xff] %v12799_v4  ;;  %8626 = vmatmul.msk.bf16.gmra.mxu2 %vm1042_vm2, %v15817_v30  ;;  %v3628_v4 = vshll.u32 %v3542_v40, 16  ;;  %v3257_v30 = vor.u32 %v3255_v61, %v3253_v11  ;;  %v15395_v40 = vunpack.c.h.bf16 %v12764_v41  ;;  %v4340_v23 = vsel %vm2012_vm6, %v4335_v32, %v4339_v39  ;;  %v15824_v32 = vld [vmem:[#allocation4_spill] sm:$0xff] }
 0x233   : > { %v3627_v11 = vrot.slane %v3625_v59, 3  ;;  %v15825_v59 = vunpack.c.l.bf16 %v12598_v5 }
 0x234   : > { %v3262_v28 = vsel %vm2012_vm6, %v3257_v30, %v3261_v22  ;;  %v3630_v61 = vrot.slane %v3628_v4, 4  ;;  %v4221_v57 = vmul.f32 %v15395_v40, %v15761_v42  ;;  %v15826_v30 = vld [vmem:[#allocation5_spill] sm:$0xff] }
 0x235   : > { %v2275_v26 = vpop.f32.mrf.mxu2  ;;  %v3519_v4 = vmul.f32 %v15825_v59, %v15824_v32 }
 0x236   : > { %v12808_v56 = vadd.f32 %v2275_v26, %v1468_v44  ;;  %v2694_v25 = vpop.f32.mrf.mxu3 }
 0x237   : > { %v12811_v16 = vadd.f32 %v2694_v25, %v12560_v52  ;;  %v15396_v52 = vunpack.c.l.bf16 %v12813_v27  ;;  %v1470_v25 = vadd.f32 %v15823_v21, %v15822_v34  ;;  %v3631_v34 = vor.u32 %v3630_v61, %v3627_v11 }
 0x239   : > { %15820 = vst [vmem:[#allocation48_spill] sm:$0xff] %v12811_v16  ;;  %v12817_v17 = vpop.f32.mrf.mxu0  ;;  %v3358_v44 = vpop.f32.mrf.mxu1  ;;  %v4222_v22 = vmul.f32 %v15396_v52, %v15762_v9  ;;  %v15829_v52 = vld [vmem:[#allocation135_spill] sm:$0xff] }
 0x23a   : > { %v12819_v26 = vadd.f32 %v3358_v44, %v2995_v37  ;;  %v3632_v9 = vsel %vm1184_vm4, %v15829_v52, %v3631_v34  ;;  %v9381_v52 = vld [vmem:[#allocation2 + $0x2c] sm:$0xff] }
 0x23b   : > { %8703 = vmatmul.msk.bf16.gmra.mxu3 %vm1042_vm2, %v9380_v8  ;;  %8728 = vmatmul.msk.bf16.gmra.mxu0 %vm1042_vm2, %v4340_v23  ;;  %v15827_v8 = vunpack.c.h.bf16 %v12598_v5  ;;  %v4242_v42 = vpack.c.bf16 %v4222_v22, %v4221_v57  ;;  %v4341_v5 = vshrl.u32 %v4241_v14, 16  ;;  %v15833_v57 = vld [vmem:[#allocation130_spill] sm:$0xff] }
 0x23c   : > { %8618 = vmatmul.msk.bf16.gmra.mxu1 %vm1042_vm2, %v3262_v28  ;;  %v2997_v22 = vadd.f32 %v15833_v57, %v12746_v55 }
 0x23d   : > { %v2277_v2 = vpop.f32.mrf.mxu2  ;;  %v3520_v37 = vmul.f32 %v15827_v8, %v15826_v30  ;;  %v15830_v8 = vld [vmem:[#allocation99_spill] sm:$0xff]  ;;  %v4345_v32 = vshll.u32 %v4242_v42, 16 }
 0x23e   : > { %v12842_v44 = vadd.f32 %v2277_v2, %v1470_v25  ;;  %v2697_v23 = vpop.f32.mrf.mxu3  ;;  %v15831_v25 = vld [vmem:[#allocation125_spill] sm:$0xff] }
 0x23f   : > { %v12845_v28 = vadd.f32 %v2697_v23, %v12588_v13  ;;  %v3543_v59 = vpack.c.bf16 %v3520_v37, %v3519_v4  ;;  %v1473_v2 = vadd.f32 %v15831_v25, %v15830_v8  ;;  %v4347_v14 = vrot.slane %v4345_v32, 1 }
 0x241   : > { %v12847_v21 = vpop.f32.mrf.mxu0  ;;  %v12849_v40 = vpop.f32.mrf.mxu1  ;;  %v3634_v13 = vshrl.u32 %v3543_v59, 16  ;;  %v3637_v23 = vshll.u32 %v3543_v59, 16  ;;  %v15834_v59 = vld [vmem:[#allocation102_spill] sm:$0xff] }
 0x242   : > { %15828 = vst [vmem:[#allocation97_spill] sm:$0xff] %v12849_v40  ;;  %8627 = vmatmul.msk.bf16.gmra.mxu2 %vm1042_vm2, %v3632_v9  ;;  %v4343_v40 = vor.u32 %v4341_v5, %v4339_v39  ;;  %v15835_v39 = vld [vmem:[#allocation43_spill] sm:$0xff] }
 0x243   : > { %v3636_v37 = vrot.slane %v3634_v13, 3  ;;  %v3639_v8 = vrot.slane %v3637_v23, 4  ;;  %v1475_v5 = vadd.f32 %v15835_v39, %v15834_v59  ;;  %v4224_v13 = vmul.f32 %v12499_v43, %v15778_v19  ;;  %v15836_v23 = vld [vmem:[#allocation9_spill] sm:$0xff] }
 0x245   : > { %v2280_v30 = vpop.f32.mrf.mxu2 }
 0x246   : > { %v12856_v11 = vadd.f32 %v2280_v30, %v1473_v2  ;;  %v2699_v61 = vpop.f32.mrf.mxu3  ;;  %v4348_v30 = vsel %vm2012_vm6, %v4343_v40, %v4347_v14  ;;  %v3640_v2 = vor.u32 %v3639_v8, %v3636_v37  ;;  %v15837_v40 = vunpack.c.h.bf16 %v12666_v18 }
 0x247   : > { %v12859_v16 = vadd.f32 %v2699_v61, %v12634_v33  ;;  %v15399_v33 = vunpack.c.h.bf16 %v12813_v27  ;;  %v15839_v37 = vunpack.c.l.bf16 %v12666_v18 }
 0x248   : > { %v3522_v61 = vmul.f32 %v15837_v40, %v15836_v23  ;;  %v3641_v43 = vsel %vm1184_vm4, %v3631_v34, %v3640_v2 }
 0x249   : > { %15832 = vst [vmem:[#allocation101_spill] sm:$0xff] %v12859_v16  ;;  %v12863_v9 = vpop.f32.mrf.mxu0  ;;  %v3363_v4 = vpop.f32.mrf.mxu1  ;;  %v4223_v32 = vmul.f32 %v15399_v33, %v15777_v0  ;;  %v15848_v16 = vld [vmem:[#allocation63_spill] sm:$0xff] }
 0x24a   : > { %v12865_v25 = vadd.f32 %v3363_v4, %v2997_v22  ;;  %v15838_v4 = vld [vmem:[#allocation8_spill] sm:$0xff] }
 0x24b   : > { %8704 = vmatmul.msk.bf16.gmra.mxu3 %vm1042_vm2, %v9381_v52  ;;  %8729 = vmatmul.msk.bf16.gmra.mxu0 %vm1042_vm2, %v4348_v30  ;;  %v3521_v8 = vmul.f32 %v15839_v37, %v15838_v4  ;;  %v4243_v39 = vpack.c.bf16 %v4224_v13, %v4223_v32  ;;  %v9382_v32 = vld [vmem:[#allocation2 + $0x34] sm:$0xff]  ;;  %v15841_v13 = vld [vmem:[#allocation55_spill] sm:$0xff] }
 0x24d   : > { %v2282_v55 = vpop.f32.mrf.mxu2  ;;  %v3544_v33 = vpack.c.bf16 %v3522_v61, %v3521_v8  ;;  %v4353_v18 = vshll.u32 %v4243_v39, 16  ;;  %v2999_v61 = vadd.f32 %v15841_v13, %v12795_v58  ;;  %v12905_v8 = vld [vmem:[#allocation2 + $0x88] sm:$0xff]   ;;  %v15843_v58 = vunpack.c.l.bf16 %v12719_v12 }
 0x24e   : > { %v12881_v52 = vadd.f32 %v2282_v55, %v1475_v5  ;;  %v2702_v57 = vpop.f32.mrf.mxu3  ;;  %v9419_v5 = vld [vmem:[%s15222_s4 + $0x48] sm:$0xff] }
 0x24f   : > { %v12884_v22 = vadd.f32 %v2702_v57, %v12659_v24  ;;  %v4349_v24 = vshrl.u32 %v4242_v42, 16  ;;  %4984 = vmatpush.bf16.msra.mxu1 %v9419_v5  ;;  %v3643_v40 = vshrl.u32 %v3544_v33, 16  ;;  %v3646_v57 = vshll.u32 %v3544_v33, 16 }
 0x250   : > { %v4355_v42 = vrot.slane %v4353_v18, 1 }
 0x251   : > { %v12889_v30 = vpop.f32.mrf.mxu0  ;;  %v12891_v59 = vpop.f32.mrf.mxu1  ;;  %v4351_v34 = vor.u32 %v4349_v24, %v4347_v14  ;;  %v3645_v0 = vrot.slane %v3643_v40, 3  ;;  %v3648_v23 = vrot.slane %v3646_v57, 4  ;;  %v15842_v14 = vld [vmem:[#allocation13_spill] sm:$0xff]  ;;  %v4225_v40 = vmul.f32 %v12504_v45, %v15788_v15 }
 0x252   : > { %8628 = vmatmul.msk.bf16.gmra.mxu2 %vm1042_vm2, %v3641_v43  ;;  %v3523_v24 = vmul.f32 %v15843_v58, %v15842_v14  ;;  %v4357_v15 = vshrl.u32 %v4243_v39, 16  ;;  %v4162_v14 = vld [vmem:[#allocation2 + $0x90] sm:$0xf] }
 0x253   : > { %v4356_v33 = vsel %vm2012_vm6, %v4351_v34, %v4355_v42  ;;  %v3649_v18 = vor.u32 %v3648_v23, %v3645_v0  ;;  %v15844_v34 = vld [vmem:[#allocation12_spill] sm:$0xff]  ;;  %v4195_v39 = vunpack.c.l.bf16 %v4162_v14 }
 0x255   : > { %v12898_v55 = vpop.f32.mrf.mxu2  ;;  %v3650_v0 = vsel %vm1184_vm4, %v3640_v2, %v3649_v18  ;;  %v3001_v2 = vadd.f32 %v15848_v16, %v12845_v28  ;;  %v15851_v16 = vunpack.c.l.bf16 %v12764_v41 }
 0x256   : > { %v2704_v37 = vpop.f32.mrf.mxu3 }
 0x257   : > { %v12901_v19 = vadd.f32 %v2704_v37, %v12693_v49  ;;  %v15403_v49 = vunpack.c.l.bf16 %v12905_v8 }
 0x259   : > { %15840 = vst [vmem:[#allocation54_spill] sm:$0xff] %v12901_v19  ;;  %v12907_v43 = vpop.f32.mrf.mxu0  ;;  %v3368_v5 = vpop.f32.mrf.mxu1  ;;  %v4226_v57 = vmul.f32 %v15403_v49, %v15789_v36  ;;  %v9383_v19 = vld [vmem:[#allocation2 + $0x3c] sm:$0xff] }
 0x25a   : > { %v12909_v4 = vadd.f32 %v3368_v5, %v2999_v61 }
 0x25b   : > { %8705 = vmatmul.msk.bf16.gmra.mxu3 %vm1042_vm2, %v9382_v32  ;;  %8730 = vmatmul.msk.bf16.gmra.mxu0 %vm1042_vm2, %v4356_v33  ;;  %v15845_v32 = vunpack.c.h.bf16 %v12719_v12  ;;  %v4244_v23 = vpack.c.bf16 %v4226_v57, %v4225_v40 }
 0x25d   : > { %v12918_v37 = vpop.f32.mrf.mxu2  ;;  %v3524_v13 = vmul.f32 %v15845_v32, %v15844_v34  ;;  %v4361_v36 = vshll.u32 %v4244_v23, 16 }
 0x25e   : > { %v2707_v61 = vpop.f32.mrf.mxu3 }
 0x25f   : > { %v12929_v5 = vadd.f32 %v2707_v61, %v12712_v6  ;;  %v3545_v45 = vpack.c.bf16 %v3524_v13, %v3523_v24  ;;  %v4359_v61 = vor.u32 %v4357_v15, %v4355_v42  ;;  %v4363_v40 = vrot.slane %v4361_v36, 1  ;;  %v15850_v15 = vld [vmem:[#allocation15_spill] sm:$0xff] }
 0x260   : > { %v3525_v36 = vmul.f32 %v15851_v16, %v15850_v15 }
 0x261   : > { %v12931_v33 = vpop.f32.mrf.mxu0  ;;  %v12933_v58 = vpop.f32.mrf.mxu1  ;;  %v3652_v12 = vshrl.u32 %v3545_v45, 16  ;;  %v3655_v32 = vshll.u32 %v3545_v45, 16  ;;  %v4364_v45 = vsel %vm2012_vm6, %v4359_v61, %v4363_v40 }
 0x262   : > { %15846 = vst [vmem:[#allocation100_spill] sm:$0xff] %v12933_v58  ;;  %8629 = vmatmul.msk.bf16.gmra.mxu2 %vm1042_vm2, %v3650_v0 }
 0x263   : > { %v3654_v57 = vrot.slane %v3652_v12, 3  ;;  %v3657_v13 = vrot.slane %v3655_v32, 4  ;;  %v15852_v12 = vld [vmem:[#allocation17_spill] sm:$0xff] }
 0x265   : > { %v12937_v49 = vpop.f32.mrf.mxu2  ;;  %v3658_v42 = vor.u32 %v3657_v13, %v3654_v57  ;;  %v9418_v13 = vld [vmem:[%s15222_s4 + $0x40] sm:$0xff] }
 0x266   : > { %v2709_v34 = vpop.f32.mrf.mxu3  ;;  %4985 = vmatpush.bf16.msra.mxu1 %v9418_v13 }
 0x267   : > { %v12940_v6 = vadd.f32 %v2709_v34, %v12743_v53  ;;  %v15405_v53 = vunpack.c.h.bf16 %v12905_v8  ;;  %v4228_v34 = vmul.f32 %v4195_v39, %v15800_v20  ;;  %v4365_v39 = vshrl.u32 %v4244_v23, 16 }
 0x269   : > { %15847 = vst [vmem:[#allocation107_spill] sm:$0xff] %v12940_v6  ;;  %v3373_v24 = vpop.f32.mrf.mxu1  ;;  %v12944_v0 = vpop.f32.mrf.mxu0  ;;  %v4227_v14 = vmul.f32 %v15405_v53, %v15799_v31 }
 0x26a   : > { %v12946_v58 = vadd.f32 %v3373_v24, %v3001_v2 }
 0x26b   : > { %8706 = vmatmul.msk.bf16.gmra.mxu3 %vm1042_vm2, %v9383_v19  ;;  %8731 = vmatmul.msk.bf16.gmra.mxu0 %vm1042_vm2, %v4364_v45  ;;  %v15853_v19 = vunpack.c.h.bf16 %v12764_v41  ;;  %v3659_v45 = vsel %vm1184_vm4, %v3649_v18, %v3658_v42  ;;  %v4245_v16 = vpack.c.bf16 %v4228_v34, %v4227_v14  ;;  %v4163_v41 = vld [vmem:[#allocation2 + $0x94] sm:$0x1]  ;;  %v9384_v14 = vld [vmem:[#allocation2 + $0x44] sm:$0xff] }
 0x26c   : > { %15849 = vst [vmem:[#allocation60_spill] sm:$0xff] %v12946_v58  ;;  %v4196_v34 = vunpack.c.l.bf16 %v4163_v41 }
 0x26d   : > { %v12955_v28 = vpop.f32.mrf.mxu2  ;;  %v3526_v32 = vmul.f32 %v15853_v19, %v15852_v12 }
 0x26e   : > { %v2712_v61 = vpop.f32.mrf.mxu3 }
 0x26f   : > { %v12965_v2 = vadd.f32 %v2712_v61, %v12757_v60  ;;  %v3546_v57 = vpack.c.bf16 %v3526_v32, %v3525_v36  ;;  %v4369_v60 = vshll.u32 %v4245_v16, 16  ;;  %v4367_v36 = vor.u32 %v4365_v39, %v4363_v40  ;;  %v15856_v32 = vld [vmem:[#allocation23_spill] sm:$0xff]  ;;  %v15858_v40 = vld [vmem:[#allocation25_spill] sm:$0xff] }
 0x271   : > { %v12967_v24 = vpop.f32.mrf.mxu1  ;;  %v12974_v53 = vpop.f32.mrf.mxu0  ;;  %v3661_v61 = vshrl.u32 %v3546_v57, 16  ;;  %v3664_v31 = vshll.u32 %v3546_v57, 16  ;;  %v4371_v23 = vrot.slane %v4369_v60, 1  ;;  %v4229_v57 = vmul.f32 %v4196_v34, %v15808_v3 }
 0x272   : > { %15854 = vst [vmem:[#allocation106_spill] sm:$0xff] %v12967_v24  ;;  %8630 = vmatmul.msk.bf16.gmra.mxu2 %vm1042_vm2, %v3659_v45  ;;  %v3003_v45 = vadd.f32 %v15856_v32, %v12884_v22  ;;  %v15859_v22 = vunpack.c.h.bf16 %v12813_v27 }
 0x273   : > { %v3663_v15 = vrot.slane %v3661_v61, 3  ;;  %v3666_v6 = vrot.slane %v3664_v31, 4  ;;  %v4372_v24 = vsel %vm2012_vm6, %v4367_v36, %v4371_v23  ;;  %v4246_v60 = vpack.c.bf16 %v4229_v57, %v4229_v57  ;;  %v15860_v61 = vld [vmem:[#allocation20_spill] sm:$0xff] }
 0x274   : > { %v3528_v39 = vmul.f32 %v15859_v22, %v15858_v40  ;;  %v15861_v36 = vunpack.c.l.bf16 %v12813_v27  ;;  %v9385_v40 = vld [vmem:[#allocation2 + $0x4c] sm:$0xff] }
 0x275   : > { %v12976_v19 = vpop.f32.mrf.mxu2  ;;  %v4377_v32 = vshll.u32 %v4246_v60, 16 }
 0x276   : > { %v2714_v20 = vpop.f32.mrf.mxu3 }
 0x277   : > { %v12979_v18 = vadd.f32 %v2714_v20, %v12786_v62  ;;  %v3667_v62 = vor.u32 %v3666_v6, %v3663_v15  ;;  %v4373_v15 = vshrl.u32 %v4245_v16, 16 }
 0x279   : > { %15855 = vst [vmem:[#allocation108_spill] sm:$0xff] %v12979_v18  ;;  %v3378_v12 = vpop.f32.mrf.mxu1  ;;  %v12994_v41 = vpop.f32.mrf.mxu0  ;;  %v4375_v27 = vor.u32 %v4373_v15, %v4371_v23  ;;  %v15866_v15 = vld [vmem:[#allocation38_spill] sm:$0xff] }
 0x27a   : > { %v12983_v13 = vadd.f32 %v3378_v12, %v3003_v45 }
 0x27b   : > { %8707 = vmatmul.msk.bf16.gmra.mxu3 %vm1042_vm2, %v9384_v14  ;;  %8732 = vmatmul.msk.bf16.gmra.mxu0 %vm1042_vm2, %v4372_v24  ;;  %v3527_v14 = vmul.f32 %v15861_v36, %v15860_v61  ;;  %v3668_v24 = vsel %vm1184_vm4, %v3658_v42, %v3667_v62  ;;  %v4379_v36 = vrot.slane %v4377_v32, 1  ;;  %v15864_v42 = vld [vmem:[#allocation28_spill] sm:$0xff] }
 0x27c   : > { %15857 = vst [vmem:[#allocation64_spill] sm:$0xff] %v12983_v13 }
 0x27d   : > { %v12989_v20 = vpop.f32.mrf.mxu2  ;;  %v3547_v6 = vpack.c.bf16 %v3528_v39, %v3527_v14  ;;  %v3005_v39 = vadd.f32 %v15864_v42, %v12929_v5 }
 0x27e   : > { %v2717_v31 = vpop.f32.mrf.mxu3 }
 0x27f   : > { %v12997_v12 = vadd.f32 %v2717_v31, %v12808_v56  ;;  %v3670_v22 = vshrl.u32 %v3547_v6, 16  ;;  %v3673_v3 = vshll.u32 %v3547_v6, 16  ;;  %v10382_v31 = vld [vmem:[#allocation2 + $0x80] sm:$0xff]   ;;  %v4380_v6 = vsel %vm2012_vm6, %v4375_v27, %v4379_v36 }
 0x280   : > { %v9809_v18 = vunpack.c.h.bf16 %v10382_v31  ;;  %v9394_v27 = vld [vmem:[#allocation3 + $0x4] sm:$0xff] }
 0x281   : > { %v13002_v34 = vpop.f32.mrf.mxu1  ;;  %v13011_v61 = vpop.f32.mrf.mxu0  ;;  %v3672_v16 = vrot.slane %v3670_v22, 3  ;;  %v3675_v60 = vrot.slane %v3673_v3, 4  ;;  %v9417_v3 = vld [vmem:[%s15222_s4 + $0x38] sm:$0xff]  ;;  %4986 = vmatmul.bf16.vlgmr.msra.gmra.mxu1 %v9394_v27 }
 0x282   : > { %15862 = vst [vmem:[#allocation10_spill] sm:$0xff] %v13002_v34  ;;  %8631 = vmatmul.msk.bf16.gmra.mxu2 %vm1042_vm2, %v3668_v24  ;;  %v9808_v24 = vunpack.c.l.bf16 %v10382_v31  ;;  %v9433_v22 = vld [vmem:[%s15222_s4 + $0xb8] sm:$0xff] }
 0x283   : > { %v3676_v23 = vor.u32 %v3675_v60, %v3672_v16  ;;  %5283 = vmatpush.bf16.msrb.mxu2 %v9417_v3  ;;  %5701 = vmatpush.bf16.msrb.mxu3 %v9433_v22  ;;  %v3007_v3 = vadd.f32 %v12527_v50, %v12965_v2  ;;  %v9456_v50 = vld [vmem:[%s15222_s4 + $0xf0] sm:$0xff]  ;;  %v15871_v2 = vld [vmem:[#allocation30_spill] sm:$0xff] }
 0x284   : > { %v3529_v32 = vmul.f32 %v9808_v24, %v15866_v15 }
 0x285   : > { %v13006_v45 = vpop.f32.mrf.mxu2 }
 0x286   : > { %v2719_v56 = vpop.f32.mrf.mxu3 }
 0x287   : > { %v13009_v57 = vadd.f32 %v2719_v56, %v12842_v44  ;;  %v15867_v56 = vld [vmem:[#allocation37_spill] sm:$0xff] }
 0x288   : > { %v3530_v5 = vmul.f32 %v9809_v18, %v15867_v56  ;;  %v3677_v18 = vsel %vm1184_vm4, %v3667_v62, %v3676_v23 }
 0x289   : > { %15863 = vst [vmem:[#allocation70_spill] sm:$0xff] %v13009_v57  ;;  %v3383_v14 = vpop.f32.mrf.mxu1 }
 0x28a   : > { %v13015_v34 = vadd.f32 %v3383_v14, %v3005_v39  ;;  %v3548_v42 = vpack.c.bf16 %v3530_v5, %v3529_v32  ;;  %v13036_v39 = vpop.f32.mrf.mxu0  ;;  %v9457_v32 = vld [vmem:[%s15222_s4 + $0xf8] sm:$0xff] }
 0x28b   : > { %8708 = vmatmul.msk.bf16.gmra.mxu3 %vm1042_vm2, %v9385_v40  ;;  %8733 = vmatmul.msk.bf16.gmra.mxu0 %vm1042_vm2, %v4380_v6  ;;  %v9386_v6 = vld [vmem:[#allocation2 + $0x54] sm:$0xff] }
 0x28c   : > { %15865 = vst [vmem:[#allocation11_spill] sm:$0xff] %v13015_v34  ;;  %v3679_v16 = vshrl.u32 %v3548_v42, 16  ;;  %v3682_v60 = vshll.u32 %v3548_v42, 16  ;;  %v9465_v5 = vld [vmem:[%s15222_s4 + $0x138] sm:$0xff]  ;;  %6171 = vmatpush.bf16.msrb.mxu0 %v9457_v32  ;;  %v9416_v32 = vld [vmem:[%s15222_s4 + $0x30] sm:$0xff] }
 0x28d   : > { %v13020_v44 = vpop.f32.mrf.mxu2  ;;  %6453 = vmatpush.bf16.msrb.mxu1 %v9465_v5  ;;  %5284 = vmatpush.bf16.msrb.mxu2 %v9416_v32 }
 0x28e   : > { %v2722_v31 = vpop.f32.mrf.mxu3  ;;  %v3684_v62 = vrot.slane %v3682_v60, 4  ;;  %v15872_v60 = vld [vmem:[#allocation49_spill] sm:$0xff] }
 0x28f   : > { %v13031_v40 = vadd.f32 %v2722_v31, %v12856_v11  ;;  %v3681_v31 = vrot.slane %v3679_v16, 3 }
 0x290   : > { %6172 = vmatpush.bf16.msrb.mxu0 %v9456_v50 }
 0x291   : > { %v13033_v36 = vpop.f32.mrf.mxu1  ;;  %v13064_v16 = vor.u32 %v3684_v62, %v3681_v31  ;;  %v9455_v31 = vld [vmem:[%s15222_s4 + $0xe8] sm:$0xff] }
 0x292   : > { %15868 = vst [vmem:[#allocation112_spill] sm:$0xff] %v13033_v36  ;;  %8632 = vmatmul.msk.bf16.gmra.mxu2 %vm1042_vm2, %v3677_v18  ;;  %v3845_v18 = vadd.f32 %v12898_v55, %v15871_v2  ;;  %v13078_v55 = vld [vmem:[%s15221_s3] ss:$0 sm:$0xff] }
 0x294   : > { %6173 = vmatpush.bf16.msrb.mxu0 %v9455_v31  ;;  %v3009_v31 = vadd.f32 %v12600_v35, %v12997_v12  ;;  %v9452_v12 = vld [vmem:[%s15222_s4 + $0xd0] sm:$0xff] }
 0x295   : > { %v13039_v14 = vpop.f32.mrf.mxu2 }
 0x296   : > { %v2724_v24 = vpop.f32.mrf.mxu3 }
 0x297   : > { %v13042_v11 = vadd.f32 %v2724_v24, %v12881_v52  ;;  %v13058_v52 = vpop.f32.mrf.mxu0  ;;  %v15873_v24 = vunpack.c.l.bf16 %v12905_v8 }
 0x299   : > { %15869 = vst [vmem:[#allocation74_spill] sm:$0xff] %v13042_v11  ;;  %v3388_v22 = vpop.f32.mrf.mxu1 }
 0x29a   : > { %v13052_v27 = vadd.f32 %v3388_v22, %v3007_v3  ;;  %v3531_v3 = vmul.f32 %v15873_v24, %v15872_v60 }
 0x29b   : > { %8709 = vmatmul.msk.bf16.gmra.mxu3 %vm1042_vm2, %v9386_v6  ;;  %v15874_v6 = vunpack.c.h.bf16 %v12905_v8  ;;  %v9415_v8 = vld [vmem:[%s15222_s4 + $0x28] sm:$0xff] }
 0x29c   : > { %15870 = vst [vmem:[#allocation14_spill] sm:$0xff] %v13052_v27  ;;  %5285 = vmatpush.bf16.msrb.mxu2 %v9415_v8 }
 0x29d   : > { %v13062_v42 = vpop.f32.mrf.mxu2  ;;  %v3532_v22 = vmul.f32 %v15874_v6, %v15751_v38  ;;  %v9454_v6 = vld [vmem:[%s15222_s4 + $0xe0] sm:$0xff]  ;;  %v3467_v38 = vld [vmem:[#allocation2 + $0x90] sm:$0xf] }
 0x29e   : > { %v4019_v5 = vpop.f32.mrf.mxu3  ;;  %6174 = vmatpush.bf16.msrb.mxu0 %v9454_v6  ;;  %v3500_v8 = vunpack.c.l.bf16 %v3467_v38  ;;  %v9413_v38 = vld [vmem:[%s15222_s4 + $0x18] sm:$0xff]  ;;  %v15878_v6 = vld [vmem:[#allocation78_spill] sm:$0xff] }
 0x29f   : > { %v4099_v11 = vadd.f32 %v4019_v5, %v3845_v18  ;;  %v3686_v18 = vsel %vm1184_vm4, %v3676_v23, %v13064_v16  ;;  %v3549_v24 = vpack.c.bf16 %v3532_v22, %v3531_v3  ;;  %v13098_v60 = vpop.f32.mrf.mxu0  ;;  %v15876_v3 = vld [vmem:[#allocation129_spill] sm:$0xff] }
 0x2a0   : > { %v3846_v22 = vadd.f32 %v12918_v37, %v15876_v3  ;;  %v9453_v37 = vld [vmem:[%s15222_s4 + $0xd8] sm:$0xff]  ;;  %v3533_v35 = vmul.f32 %v3500_v8, %v15768_v47  ;;  %v9432_v3 = vld [vmem:[%s15222_s4 + $0xb0] sm:$0xff] }
 0x2a1   : > { %v4521_v62 = vadd.f32 %v12721_v51, %v4099_v11  ;;  %v13087_v2 = vpop.f32.mrf.mxu1  ;;  %v3688_v51 = vshrl.u32 %v3549_v24, 16  ;;  %v3691_v11 = vshll.u32 %v3549_v24, 16  ;;  %v9414_v24 = vld [vmem:[%s15222_s4 + $0x20] sm:$0xff]  ;;  %5702 = vmatpush.bf16.msrb.mxu3 %v9432_v3 }
 0x2a2   : > { %15875 = vst [vmem:[#allocation134_spill] sm:$0xff] %v13087_v2  ;;  %8633 = vmatmul.msk.bf16.gmra.mxu2 %vm1042_vm2, %v3686_v18  ;;  %6175 = vmatpush.bf16.msrb.mxu0 %v9453_v37  ;;  %v9411_v37 = vld [vmem:[%s15222_s4 + $0x8] sm:$0xff] }
 0x2a3   : > { %v4557_v50 = vadd.f32 %v13078_v55, %v4521_v62  ;;  %v9387_v62 = vld [vmem:[#allocation2 + $0x5c] sm:$0xff]  ;;  %v3690_v15 = vrot.slane %v3688_v51, 3  ;;  %v3693_v57 = vrot.slane %v3691_v11, 4  ;;  %5286 = vmatpush.bf16.msrb.mxu2 %v9414_v24  ;;  %v3847_v51 = vadd.f32 %v12937_v49, %v15878_v6 }
 0x2a4   : > { %v3550_v49 = vpack.c.bf16 %v3533_v35, %v3533_v35 }
 0x2a5   : > { %v4589_v32 = vmax.f32 %v4557_v50, 0.0  ;;  %v13096_v5 = vpop.f32.mrf.mxu2 }
 0x2a6   : > { %v4021_v23 = vpop.f32.mrf.mxu3  ;;  %6176 = vmatpush.bf16.msrb.mxu0 %v9452_v12  ;;  %v3700_v35 = vshll.u32 %v3550_v49, 16  ;;  %v5822_v12 = vld [vmem:[#allocation3 + $0x8] sm:$0x8] }
 0x2a7   : > { %v4621_v18 = vpack.c.bf16 %v4589_v32, %v4589_v32  ;;  %v4100_v50 = vadd.f32 %v4021_v23, %v3846_v22  ;;  %v13125_v23 = vor.u32 %v3693_v57, %v3690_v15  ;;  %5287 = vmatpush.bf16.msrb.mxu2 %v9413_v38  ;;  %v3697_v38 = vshrl.u32 %v3550_v49, 16 }
 0x2a8   : > { %v5855_v49 = vunpack.c.l.bf16 %v5822_v12 }
 0x2a9   : > { %4653 = vst [vmem:[#allocation3 + $0xc] sm:$0xf] %v4621_v18  ;;  %v3393_v56 = vpop.f32.mrf.mxu1  ;;  %v3699_v47 = vrot.slane %v3697_v38, 3 }
 0x2aa   : > { %v13110_v32 = vadd.f32 %v3393_v56, %v3009_v31  ;;  %v4522_v56 = vadd.f32 %v12748_v10, %v4100_v50  ;;  %v13133_v31 = vpop.f32.mrf.mxu0  ;;  %v9451_v10 = vld [vmem:[%s15222_s4 + $0xc8] sm:$0xff]  ;;  %v3695_v50 = vsel %vm1184_vm4, %v13064_v16, %v13125_v23 }
 0x2ab   : > { %8710 = vmatmul.msk.bf16.gmra.mxu3 %vm1042_vm2, %v9387_v62  ;;  %v9412_v62 = vld [vmem:[%s15222_s4 + $0x10] sm:$0xff]  ;;  %6177 = vmatpush.bf16.msrb.mxu0 %v9451_v10  ;;  %v3011_v10 = vadd.f32 %v12668_v63, %v13031_v40 }
 0x2ac   : > { %15877 = vst [vmem:[#allocation79_spill] sm:$0xff] %v13110_v32  ;;  %v4558_v57 = vadd.f32 %v13078_v55, %v4522_v56  ;;  %5288 = vmatpush.bf16.msrb.mxu2 %v9412_v62  ;;  %v4685_v56 = vld [vmem:[#allocation3] sm:$0x8] }
 0x2ad   : > { %v13123_v11 = vpop.f32.mrf.mxu2 }
 0x2ae   : > { %v4024_v22 = vpop.f32.mrf.mxu3  ;;  %v4590_v6 = vmax.f32 %v4558_v57, 0.0  ;;  %v4718_v57 = vunpack.c.l.bf16 %v4685_v56 }
 0x2af   : > { %v4101_v18 = vadd.f32 %v4024_v22, %v3847_v51  ;;  %v4686_v22 = vld [vmem:[#allocation3 + $0x4] sm:$0xf] }
 0x2b0   : > { %5289 = vmatpush.bf16.msrb.mxu2 %v9411_v37  ;;  %v5823_v2 = vld [vmem:[#allocation3 + $0xc] sm:$0xf]  ;;  %v4719_v12 = vunpack.c.l.bf16 %v4686_v22 }
 0x2b1   : > { %v4523_v15 = vadd.f32 %v12766_v7, %v4101_v18  ;;  %v13140_v8 = vpop.f32.mrf.mxu1  ;;  %v9450_v7 = vld [vmem:[%s15222_s4 + $0xc0] sm:$0xff]  ;;  %v15880_v18 = vld [vmem:[#allocation75_spill] sm:$0xff]  ;;  %v5856_v38 = vunpack.c.l.bf16 %v5823_v2 }
 0x2b2   : > { %15879 = vst [vmem:[#allocation16_spill] sm:$0xff] %v13140_v8  ;;  %8634 = vmatmul.msk.bf16.gmra.mxu2 %vm1042_vm2, %v3695_v50  ;;  %v3848_v62 = vadd.f32 %v12955_v28, %v15880_v18  ;;  %v9388_v50 = vld [vmem:[#allocation2 + $0x64] sm:$0xff]  ;;  %v3702_v8 = vrot.slane %v3700_v35, 4  ;;  %6178 = vmatpush.bf16.msrb.mxu0 %v9450_v7  ;;  %v13168_v63 = vpop.f32.mrf.mxu0 }
 0x2b3   : > { %v4559_v24 = vadd.f32 %v13078_v55, %v4523_v15  ;;  %v9410_v28 = vld [vmem:[%s15222_s4] sm:$0xff]  ;;  %v15884_v18 = vld [vmem:[#allocation27_spill] sm:$0xff] }
 0x2b4   : > { %v13166_v37 = vld [vmem:[#allocation3 + $0x8] sm:$0xff]   ;;  %5290 = vmatpush.bf16.msrb.mxu2 %v9410_v28  ;;  %v3703_v2 = vor.u32 %v3702_v8, %v3699_v47 }
 0x2b5   : > { %v4591_v51 = vmax.f32 %v4559_v24, 0.0  ;;  %v13153_v16 = vpop.f32.mrf.mxu2  ;;  %v15411_v35 = vunpack.c.l.bf16 %v13166_v37  ;;  %v15413_v7 = vunpack.c.h.bf16 %v13166_v37 }
 0x2b6   : > { %v4026_v3 = vpop.f32.mrf.mxu3 }
 0x2b7   : > { %v9877_v15 = vpack.c.bf16 %v4591_v51, %v4590_v6  ;;  %v4102_v24 = vadd.f32 %v4026_v3, %v3848_v62  ;;  %v9464_v6 = vld [vmem:[%s15222_s4 + $0x130] sm:$0xff]  ;;  %v15882_v51 = vld [vmem:[#allocation19_spill] sm:$0xff]  ;;  %v15883_v3 = vld [vmem:[#allocation26_spill] sm:$0xff] }
 0x2b8   : > { %v5888_v56 = vmul.f32 %v5855_v49, %v15882_v51  ;;  %v15885_v62 = vld [vmem:[#allocation21_spill] sm:$0xff]  ;;  %6454 = vmatpush.bf16.msrb.mxu1 %v9464_v6  ;;  %v3849_v49 = vadd.f32 %v12976_v19, %v12530_v48  ;;  %v3704_v6 = vsel %vm1184_vm4, %v13125_v23, %v3703_v2 }
 0x2b9   : > { %10399 = vst [vmem:[#allocation3 + $0x10] sm:$0xff] %v9877_v15   ;;  %v3398_v32 = vpop.f32.mrf.mxu1  ;;  %v13159_v27 = vunpack.c.l.bf16 %v9877_v15  ;;  %v13161_v36 = vunpack.c.h.bf16 %v9877_v15  ;;  %v5889_v15 = vmul.f32 %v5856_v38, %v15885_v62  ;;  %v4751_v38 = vmul.f32 %v4718_v57, %v15882_v51 }
 0x2ba   : > { %v13170_v40 = vadd.f32 %v3398_v32, %v3011_v10  ;;  %v4753_v10 = vmul.f32 %v15411_v35, %v15883_v3  ;;  %v4752_v13 = vmul.f32 %v4719_v12, %v15885_v62  ;;  %v13203_v23 = vpop.f32.mrf.mxu0 }
 0x2bb   : > { %8711 = vmatmul.msk.bf16.gmra.mxu3 %vm1042_vm2, %v9388_v50  ;;  %v5890_v22 = vmul.f32 %v13159_v27, %v15883_v3  ;;  %v5891_v32 = vmul.f32 %v13161_v36, %v15884_v18  ;;  %v4754_v50 = vmul.f32 %v15413_v7, %v15884_v18  ;;  %v5921_v8 = vpack.c.bf16 %v5889_v15, %v5888_v56 }
 0x2bc   : > { %15881 = vst [vmem:[#allocation117_spill] sm:$0xff] %v13170_v40  ;;  %v4524_v40 = vadd.f32 %v12797_v29, %v4102_v24 }
 0x2bd   : > { %v13193_v34 = vpop.f32.mrf.mxu2  ;;  %v5922_v28 = vpack.c.bf16 %v5891_v32, %v5890_v22  ;;  %v5956_v18 = vshrl.u32 %v5921_v8, 16  ;;  %v5959_v48 = vshll.u32 %v5921_v8, 16  ;;  %v4785_v19 = vpack.c.bf16 %v4754_v50, %v4753_v10  ;;  %v9389_v8 = vld [vmem:[#allocation2 + $0x6c] sm:$0xff] }
 0x2be   : > { %v4029_v47 = vpop.f32.mrf.mxu3  ;;  %v4560_v29 = vadd.f32 %v13078_v55, %v4524_v40  ;;  %v4784_v32 = vpack.c.bf16 %v4752_v13, %v4751_v38 }
 0x2bf   : > { %v4103_v35 = vadd.f32 %v4029_v47, %v3849_v49  ;;  %v5964_v3 = vshrl.u32 %v5922_v28, 16  ;;  %v5967_v58 = vshll.u32 %v5922_v28, 16  ;;  %v5958_v57 = vrot.slane %v5956_v18, 3 }
 0x2c0   : > { %v9395_v7 = vld [vmem:[#allocation3 + $0xc] sm:$0xff]  ;;  %v5961_v12 = vrot.slane %v5959_v48, 4  ;;  %v5076_v28 = vshrl.u32 %v4785_v19, 16  ;;  %v5079_v10 = vshll.u32 %v4785_v19, 16  ;;  %v4592_v50 = vmax.f32 %v4560_v29, 0.0 }
 0x2c1   : > { %v4525_v24 = vadd.f32 %v12817_v17, %v4103_v35  ;;  %v5966_v22 = vrot.slane %v5964_v3, 3  ;;  %v5969_v56 = vrot.slane %v5967_v58, 4  ;;  %4991 = vmatmul.bf16.gmra.mxu1 %v9395_v7  ;;  %v5068_v35 = vshrl.u32 %v4784_v32, 16  ;;  %v15886_v3 = vld [vmem:[#allocation82_spill] sm:$0xff] }
 0x2c2   : > { %8635 = vmatmul.msk.bf16.gmra.mxu2 %vm1042_vm2, %v3704_v6  ;;  %v5962_v2 = vor.u32 %v5961_v12, %v5958_v57  ;;  %v5071_v7 = vshll.u32 %v4784_v32, 16  ;;  %v3850_v13 = vadd.f32 %v12989_v20, %v15886_v3  ;;  %v5078_v38 = vrot.slane %v5076_v28, 3  ;;  %v15888_v12 = vld [vmem:[#allocation34_spill] sm:$0xff] }
 0x2c3   : > { %v4561_v15 = vadd.f32 %v13078_v55, %v4525_v24  ;;  %v5970_v49 = vor.u32 %v5969_v56, %v5966_v22  ;;  %v5081_v6 = vrot.slane %v5079_v10, 4  ;;  %v5070_v24 = vrot.slane %v5068_v35, 3  ;;  %v15887_v56 = vld [vmem:[#allocation29_spill] sm:$0xff] }
 0x2c4   : > { %v5073_v22 = vrot.slane %v5071_v7, 4  ;;  %v3851_v28 = vadd.f32 %v13006_v45, %v12604_v54 }
 0x2c5   : > { %v4593_v40 = vmax.f32 %v4561_v15, 0.0  ;;  %v13205_v47 = vpop.f32.mrf.mxu2  ;;  %v5971_v58 = vsel %vm1184_vm4, %v5962_v2, %v5970_v49  ;;  %v5082_v32 = vor.u32 %v5081_v6, %v5078_v38  ;;  %v4755_v15 = vmul.f32 %v13159_v27, %v15887_v56 }
 0x2c6   : > { %v4031_v17 = vpop.f32.mrf.mxu3  ;;  %6179 = vmatmul.bf16.vlgmr.msrb.gmra.mxu0 %v5971_v58  ;;  %v4756_v2 = vmul.f32 %v13161_v36, %v15888_v12  ;;  %v13231_v58 = vpop.f32.mrf.mxu0  ;;  %v5074_v7 = vor.u32 %v5073_v22, %v5070_v24 }
 0x2c7   : > { %v9882_v18 = vpack.c.bf16 %v4593_v40, %v4592_v50  ;;  %v4104_v48 = vadd.f32 %v4031_v17, %v3850_v13  ;;  %v9431_v17 = vld [vmem:[%s15222_s4 + $0xa8] sm:$0xff] }
 0x2c8   : > { %5703 = vmatpush.bf16.msrb.mxu3 %v9431_v17  ;;  %v4786_v45 = vpack.c.bf16 %v4756_v2, %v4755_v15  ;;  %v3852_v2 = vadd.f32 %v13020_v44, %v12650_v1  ;;  %v15889_v1 = vld [vmem:[#allocation44_spill] sm:$0xff] }
 0x2c9   : > { %10400 = vst [vmem:[#allocation3 + $0x18] sm:$0xff] %v9882_v18   ;;  %v13210_v19 = vunpack.c.l.bf16 %v9882_v18  ;;  %v13212_v29 = vunpack.c.h.bf16 %v9882_v18  ;;  %v4526_v10 = vadd.f32 %v12847_v21, %v4104_v48 }
 0x2ca   : > { %v5085_v24 = vshrl.u32 %v4786_v45, 16  ;;  %v5088_v22 = vshll.u32 %v4786_v45, 16  ;;  %v15890_v45 = vld [vmem:[#allocation45_spill] sm:$0xff] }
 0x2cb   : > { %8712 = vmatmul.msk.bf16.gmra.mxu3 %vm1042_vm2, %v9389_v8  ;;  %v5892_v57 = vmul.f32 %v13210_v19, %v15887_v56  ;;  %v5893_v20 = vmul.f32 %v13212_v29, %v15888_v12  ;;  %v5083_v8 = vsel %vm1184_vm4, %v5074_v7, %v5082_v32  ;;  %v4562_v21 = vadd.f32 %v13078_v55, %v4526_v10  ;;  %v9390_v10 = vld [vmem:[#allocation2 + $0x74] sm:$0xff] }
 0x2cd   : > { %v13226_v50 = vpop.f32.mrf.mxu2  ;;  %v5923_v40 = vpack.c.bf16 %v5893_v20, %v5892_v57 }
 0x2ce   : > { %v4034_v35 = vpop.f32.mrf.mxu3  ;;  %v13242_v7 = vpop.f32.mrf.mxu0 }
 0x2cf   : > { %v4105_v3 = vadd.f32 %v4034_v35, %v3851_v28  ;;  %v5973_v13 = vshrl.u32 %v5923_v40, 16  ;;  %v5976_v18 = vshll.u32 %v5923_v40, 16  ;;  %v4594_v28 = vmax.f32 %v4562_v21, 0.0 }
 0x2d0   : > { %v9396_v54 = vld [vmem:[#allocation3 + $0x14] sm:$0xff] }
 0x2d1   : > { %v4527_v38 = vadd.f32 %v12863_v9, %v4105_v3  ;;  %v5975_v6 = vrot.slane %v5973_v13, 3  ;;  %v5978_v48 = vrot.slane %v5976_v18, 4  ;;  %4996 = vmatmul.bf16.gmra.mxu1 %v9396_v54  ;;  %v5087_v3 = vrot.slane %v5085_v24, 3 }
 0x2d2   : > { %5291 = vmatmul.bf16.vlgmr.msrb.gmra.mxu2 %v5083_v8  ;;  %v5090_v13 = vrot.slane %v5088_v22, 4 }
 0x2d3   : > { %v4563_v57 = vadd.f32 %v13078_v55, %v4527_v38  ;;  %v5979_v20 = vor.u32 %v5978_v48, %v5975_v6  ;;  %v4757_v6 = vmul.f32 %v13210_v19, %v15889_v1  ;;  %v4758_v48 = vmul.f32 %v13212_v29, %v15890_v45 }
 0x2d4   : > { %v5091_v38 = vor.u32 %v5090_v13, %v5087_v3 }
 0x2d5   : > { %v4595_v40 = vmax.f32 %v4563_v57, 0.0  ;;  %v13237_v17 = vpop.f32.mrf.mxu2  ;;  %v5980_v35 = vsel %vm1184_vm4, %v5970_v49, %v5979_v20  ;;  %v9463_v49 = vld [vmem:[%s15222_s4 + $0x128] sm:$0xff]  ;;  %v3853_v57 = vadd.f32 %v13039_v14, %v12670_v46  ;;  %v4787_v3 = vpack.c.bf16 %v4758_v48, %v4757_v6 }
 0x2d6   : > { %v4036_v15 = vpop.f32.mrf.mxu3  ;;  %6184 = vmatmul.bf16.gmra.mxu0 %v5980_v35  ;;  %6455 = vmatpush.bf16.msrb.mxu1 %v9463_v49  ;;  %v13268_v46 = vpop.f32.mrf.mxu0  ;;  %v15892_v14 = vld [vmem:[#allocation111_spill] sm:$0xff] }
 0x2d7   : > { %v9887_v9 = vpack.c.bf16 %v4595_v40, %v4594_v28  ;;  %v4106_v18 = vadd.f32 %v4036_v15, %v3852_v2 }
 0x2d9   : > { %10401 = vst [vmem:[#allocation3 + $0x20] sm:$0xff] %v9887_v9   ;;  %v13244_v8 = vunpack.c.l.bf16 %v9887_v9  ;;  %v13246_v54 = vunpack.c.h.bf16 %v9887_v9  ;;  %v4528_v24 = vadd.f32 %v12889_v30, %v4106_v18  ;;  %v5092_v9 = vsel %vm1184_vm4, %v5082_v32, %v5091_v38  ;;  %v15891_v30 = vld [vmem:[#allocation83_spill] sm:$0xff] }
 0x2da   : > { %v2990_v18 = vadd.f32 %v15892_v14, %v15891_v30  ;;  %v5097_v32 = vshll.u32 %v4787_v3, 16 }
 0x2db   : > { %8713 = vmatmul.msk.bf16.gmra.mxu3 %vm1042_vm2, %v9390_v10  ;;  %v5894_v44 = vmul.f32 %v13244_v8, %v15889_v1  ;;  %v5895_v21 = vmul.f32 %v13246_v54, %v15890_v45  ;;  %v4564_v13 = vadd.f32 %v13078_v55, %v4528_v24  ;;  %v15905_v1 = vld [vmem:[#allocation98_spill] sm:$0xff] }
 0x2dc   : > { %v5099_v30 = vrot.slane %v5097_v32, 4  ;;  %v15896_v32 = vld [vmem:[#allocation90_spill] sm:$0xff] }
 0x2dd   : > { %v13263_v22 = vpop.f32.mrf.mxu2  ;;  %v5924_v28 = vpack.c.bf16 %v5895_v21, %v5894_v44  ;;  %v4596_v48 = vmax.f32 %v4564_v13, 0.0  ;;  %v15894_v13 = vld [vmem:[#allocation53_spill] sm:$0xff] }
 0x2de   : > { %v4039_v40 = vpop.f32.mrf.mxu3 }
 0x2df   : > { %v4107_v35 = vadd.f32 %v4039_v40, %v3853_v57  ;;  %v5982_v15 = vshrl.u32 %v5924_v28, 16  ;;  %v5985_v2 = vshll.u32 %v5924_v28, 16  ;;  %v5094_v57 = vshrl.u32 %v4787_v3, 16  ;;  %v15893_v28 = vld [vmem:[#allocation91_spill] sm:$0xff] }
 0x2e0   : > { %v9397_v10 = vld [vmem:[#allocation3 + $0x1c] sm:$0xff]  ;;  %v3412_v6 = vadd.f32 %v15893_v28, %v2990_v18  ;;  %v3855_v28 = vadd.f32 %v13096_v5, %v15896_v32 }
 0x2e1   : > { %v4529_v49 = vadd.f32 %v12907_v43, %v4107_v35  ;;  %v5984_v62 = vrot.slane %v5982_v15, 3  ;;  %v5987_v51 = vrot.slane %v5985_v2, 4  ;;  %5001 = vmatmul.bf16.gmra.mxu1 %v9397_v10  ;;  %v5096_v10 = vrot.slane %v5094_v57, 3  ;;  %v15897_v32 = vld [vmem:[#allocation41_spill] sm:$0xff] }
 0x2e2   : > { %5296 = vmatmul.bf16.gmra.mxu2 %v5092_v9  ;;  %v3854_v15 = vadd.f32 %v13062_v42, %v3412_v6  ;;  %v9391_v9 = vld [vmem:[#allocation2 + $0x7c] sm:$0xff]  ;;  %v13287_v42 = vpop.f32.mrf.mxu0 }
 0x2e3   : > { %v4565_v44 = vadd.f32 %v13078_v55, %v4529_v49  ;;  %v5988_v21 = vor.u32 %v5987_v51, %v5984_v62  ;;  %v13289_v18 = vor.u32 %v5099_v30, %v5096_v10 }
 0x2e5   : > { %v4597_v24 = vmax.f32 %v4565_v44, 0.0  ;;  %v13274_v40 = vpop.f32.mrf.mxu2  ;;  %v5989_v43 = vsel %vm1184_vm4, %v5979_v20, %v5988_v21  ;;  %v15895_v20 = vld [vmem:[#allocation57_spill] sm:$0xff]  ;;  %v4759_v44 = vmul.f32 %v13244_v8, %v15894_v13  ;;  %v5101_v10 = vsel %vm1184_vm4, %v5091_v38, %v13289_v18 }
 0x2e6   : > { %v4041_v35 = vpop.f32.mrf.mxu3  ;;  %6189 = vmatmul.bf16.gmra.mxu0 %v5989_v43  ;;  %v4760_v57 = vmul.f32 %v13246_v54, %v15895_v20  ;;  %v9430_v43 = vld [vmem:[%s15222_s4 + $0xa0] sm:$0xff] }
 0x2e7   : > { %v9892_v2 = vpack.c.bf16 %v4597_v24, %v4596_v48  ;;  %v4108_v51 = vadd.f32 %v4041_v35, %v3854_v15  ;;  %5704 = vmatpush.bf16.msrb.mxu3 %v9430_v43 }
 0x2e9   : > { %10402 = vst [vmem:[#allocation3 + $0x28] sm:$0xff] %v9892_v2   ;;  %v13278_v62 = vunpack.c.l.bf16 %v9892_v2  ;;  %v13280_v3 = vunpack.c.h.bf16 %v9892_v2  ;;  %v4530_v6 = vadd.f32 %v12931_v33, %v4108_v51 }
 0x2eb   : > { %8714 = vmatmul.msk.bf16.gmra.mxu3 %vm1042_vm2, %v9391_v9  ;;  %v5896_v49 = vmul.f32 %v13278_v62, %v15894_v13  ;;  %v5897_v14 = vmul.f32 %v13280_v3, %v15895_v20  ;;  %v4788_v20 = vpack.c.bf16 %v4760_v57, %v4759_v44  ;;  %v4566_v5 = vadd.f32 %v13078_v55, %v4530_v6  ;;  %v15899_v6 = vld [vmem:[#allocation94_spill] sm:$0xff] }
 0x2ed   : > { %v13298_v48 = vpop.f32.mrf.mxu2  ;;  %v5925_v24 = vpack.c.bf16 %v5897_v14, %v5896_v49  ;;  %v9429_v14 = vld [vmem:[%s15222_s4 + $0x98] sm:$0xff]  ;;  %v5103_v44 = vshrl.u32 %v4788_v20, 16  ;;  %v5106_v57 = vshll.u32 %v4788_v20, 16 }
 0x2ee   : > { %v4044_v35 = vpop.f32.mrf.mxu3  ;;  %5705 = vmatpush.bf16.msrb.mxu3 %v9429_v14 }
 0x2ef   : > { %v4109_v15 = vadd.f32 %v4044_v35, %v3855_v28  ;;  %v5991_v2 = vshrl.u32 %v5925_v24, 16  ;;  %v5994_v9 = vshll.u32 %v5925_v24, 16  ;;  %v15898_v28 = vld [vmem:[#allocation115_spill] sm:$0xff]  ;;  %v4598_v35 = vmax.f32 %v4566_v5, 0.0 }
 0x2f0   : > { %v9398_v30 = vld [vmem:[#allocation3 + $0x24] sm:$0xff]  ;;  %v2992_v24 = vadd.f32 %v15898_v28, %v15897_v32  ;;  %v5108_v14 = vrot.slane %v5106_v57, 4 }
 0x2f1   : > { %v4531_v33 = vadd.f32 %v12944_v0, %v4109_v15  ;;  %v5993_v51 = vrot.slane %v5991_v2, 3  ;;  %v5996_v49 = vrot.slane %v5994_v9, 4  ;;  %5006 = vmatmul.bf16.gmra.mxu1 %v9398_v30 }
 0x2f2   : > { %5301 = vmatmul.bf16.gmra.mxu2 %v5101_v10  ;;  %v3414_v0 = vadd.f32 %v15899_v6, %v2992_v24  ;;  %v13320_v10 = vpop.f32.mrf.mxu0  ;;  %v9462_v24 = vld [vmem:[%s15222_s4 + $0x120] sm:$0xff] }
 0x2f3   : > { %v4567_v43 = vadd.f32 %v13078_v55, %v4531_v33  ;;  %v13313_v38 = vor.u32 %v5996_v49, %v5993_v51  ;;  %v9392_v51 = vld [vmem:[#allocation2 + $0x84] sm:$0xff]  ;;  %v5105_v49 = vrot.slane %v5103_v44, 3  ;;  %6456 = vmatpush.bf16.msrb.mxu1 %v9462_v24 }
 0x2f4   : > { %v3856_v32 = vadd.f32 %v13123_v11, %v3414_v0  ;;  %v15900_v11 = vld [vmem:[#allocation61_spill] sm:$0xff]  ;;  %v15901_v44 = vld [vmem:[#allocation62_spill] sm:$0xff] }
 0x2f5   : > { %v4599_v15 = vmax.f32 %v4567_v43, 0.0  ;;  %v13316_v2 = vpop.f32.mrf.mxu2  ;;  %v5998_v9 = vsel %vm1184_vm4, %v5988_v21, %v13313_v38  ;;  %v9428_v21 = vld [vmem:[%s15222_s4 + $0x90] sm:$0xff]  ;;  %v13338_v6 = vor.u32 %v5108_v14, %v5105_v49  ;;  %v4761_v0 = vmul.f32 %v13278_v62, %v15900_v11 }
 0x2f6   : > { %v4046_v30 = vpop.f32.mrf.mxu3  ;;  %6194 = vmatmul.bf16.gmra.mxu0 %v5998_v9  ;;  %5706 = vmatpush.bf16.msrb.mxu3 %v9428_v21  ;;  %v15902_v9 = vld [vmem:[#allocation92_spill] sm:$0xff] }
 0x2f7   : > { %v9897_v33 = vpack.c.bf16 %v4599_v15, %v4598_v35  ;;  %v4110_v20 = vadd.f32 %v4046_v30, %v3856_v32  ;;  %v4762_v35 = vmul.f32 %v13280_v3, %v15901_v44  ;;  %v9427_v15 = vld [vmem:[%s15222_s4 + $0x88] sm:$0xff]  ;;  %v3857_v30 = vadd.f32 %v13153_v16, %v15902_v9  ;;  %v15903_v9 = vld [vmem:[#allocation32_spill] sm:$0xff] }
 0x2f9   : > { %10403 = vst [vmem:[#allocation3 + $0x30] sm:$0xff] %v9897_v33   ;;  %v13323_v28 = vunpack.c.l.bf16 %v9897_v33  ;;  %v13325_v5 = vunpack.c.h.bf16 %v9897_v33  ;;  %v4532_v32 = vadd.f32 %v12974_v53, %v4110_v20  ;;  %v4789_v45 = vpack.c.bf16 %v4762_v35, %v4761_v0  ;;  %v9426_v53 = vld [vmem:[%s15222_s4 + $0x80] sm:$0xff]  ;;  %v5372_v0 = vld [vmem:[#allocation3 + $0x4] sm:$0xf] }
 0x2fa   : > { %5707 = vmatpush.bf16.msrb.mxu3 %v9427_v15 }
 0x2fb   : > { %8715 = vmatmul.msk.bf16.gmra.mxu3 %vm1042_vm2, %v9392_v51  ;;  %v5898_v43 = vmul.f32 %v13323_v28, %v15900_v11  ;;  %v5899_v57 = vmul.f32 %v13325_v5, %v15901_v44  ;;  %v13352_v11 = vpop.f32.mrf.mxu0  ;;  %v5110_v44 = vsel %vm1184_vm4, %v13289_v18, %v13338_v6  ;;  %v4568_v16 = vadd.f32 %v13078_v55, %v4532_v32 }
 0x2fc   : > { %v5112_v35 = vshrl.u32 %v4789_v45, 16  ;;  %v5115_v15 = vshll.u32 %v4789_v45, 16 }
 0x2fd   : > { %v13350_v33 = vpop.f32.mrf.mxu2  ;;  %v5926_v51 = vpack.c.bf16 %v5899_v57, %v5898_v43  ;;  %v4600_v32 = vmax.f32 %v4568_v16, 0.0 }
 0x2fe   : > { %v4049_v49 = vpop.f32.mrf.mxu3  ;;  %5708 = vmatpush.bf16.msrb.mxu3 %v9426_v53  ;;  %v5117_v45 = vrot.slane %v5115_v15, 4  ;;  %v15906_v53 = vld [vmem:[#allocation22_spill] sm:$0xff]  ;;  %v15912_v15 = vld [vmem:[#allocation68_spill] sm:$0xff] }
 0x2ff   : > { %v4111_v14 = vadd.f32 %v4049_v49, %v3857_v30  ;;  %v6000_v21 = vshrl.u32 %v5926_v51, 16  ;;  %v6003_v24 = vshll.u32 %v5926_v51, 16  ;;  %v15904_v30 = vld [vmem:[#allocation121_spill] sm:$0xff] }
 0x300   : > { %v9399_v13 = vld [vmem:[#allocation3 + $0x2c] sm:$0xff]  ;;  %v2994_v51 = vadd.f32 %v15904_v30, %v15903_v9 }
 0x301   : > { %v4533_v20 = vadd.f32 %v12994_v41, %v4111_v14  ;;  %v6002_v43 = vrot.slane %v6000_v21, 3  ;;  %v6005_v57 = vrot.slane %v6003_v24, 4  ;;  %5011 = vmatmul.bf16.gmra.mxu1 %v9399_v13  ;;  %v5405_v14 = vunpack.c.l.bf16 %v5372_v0 }
 0x302   : > { %5306 = vmatmul.bf16.gmra.mxu2 %v5110_v44  ;;  %v3416_v12 = vadd.f32 %v15905_v1, %v2994_v51  ;;  %v15907_v1 = vunpack.c.l.bf16 %v13166_v37  ;;  %v15908_v51 = vld [vmem:[#allocation18_spill] sm:$0xff]  ;;  %v15911_v0 = vunpack.c.h.bf16 %v13166_v37 }
 0x303   : > { %v4569_v18 = vadd.f32 %v13078_v55, %v4533_v20  ;;  %v13365_v49 = vor.u32 %v6005_v57, %v6002_v43  ;;  %v9393_v20 = vld [vmem:[#allocation2 + $0x8c] sm:$0xff]  ;;  %v5114_v43 = vrot.slane %v5112_v35, 3 }
 0x304   : > { %v3858_v21 = vadd.f32 %v13193_v34, %v3416_v12  ;;  %v5439_v16 = vmul.f32 %v15907_v1, %v15906_v53  ;;  %v15909_v34 = vld [vmem:[#allocation33_spill] sm:$0xff]  ;;  %v15910_v12 = vld [vmem:[#allocation31_spill] sm:$0xff] }
 0x305   : > { %v4601_v56 = vmax.f32 %v4569_v18, 0.0  ;;  %v13368_v41 = vpop.f32.mrf.mxu2  ;;  %v6007_v13 = vsel %vm1184_vm4, %v13313_v38, %v13365_v49  ;;  %v13381_v38 = vpop.f32.mrf.mxu0  ;;  %v5438_v18 = vmul.f32 %v5405_v14, %v15908_v51  ;;  %v5440_v35 = vmul.f32 %v15911_v0, %v15910_v12 }
 0x306   : > { %v4051_v44 = vpop.f32.mrf.mxu3  ;;  %6199 = vmatmul.bf16.gmra.mxu0 %v6007_v13  ;;  %v15913_v13 = vld [vmem:[#allocation69_spill] sm:$0xff]  ;;  %v4763_v14 = vmul.f32 %v13323_v28, %v15912_v15 }
 0x307   : > { %v9902_v24 = vpack.c.bf16 %v4601_v56, %v4600_v32  ;;  %v4112_v57 = vadd.f32 %v4051_v44, %v3858_v21  ;;  %v5441_v56 = vmul.f32 %v13159_v27, %v15909_v34  ;;  %v13394_v21 = vor.u32 %v5117_v45, %v5114_v43 }
 0x308   : > { %v4764_v27 = vmul.f32 %v13325_v5, %v15913_v13 }
 0x309   : > { %10404 = vst [vmem:[#allocation3 + $0x38] sm:$0xff] %v9902_v24   ;;  %v13377_v9 = vunpack.c.l.bf16 %v9902_v24  ;;  %v13379_v30 = vunpack.c.h.bf16 %v9902_v24  ;;  %v5471_v24 = vpack.c.bf16 %v5439_v16, %v5438_v18  ;;  %v4534_v37 = vadd.f32 %v13011_v61, %v4112_v57 }
 0x30a   : > { %v13405_v34 = vpack.c.bf16 %v5441_v56, %v5440_v35  ;;  %v5119_v18 = vsel %vm1184_vm4, %v13338_v6, %v13394_v21  ;;  %v4790_v51 = vpack.c.bf16 %v4764_v27, %v4763_v14  ;;  %v15915_v35 = vld [vmem:[#allocation128_spill] sm:$0xff] }
 0x30b   : > { %8716 = vmatmul.msk.bf16.gmra.mxu3 %vm1042_vm2, %v9393_v20  ;;  %v5900_v32 = vmul.f32 %v13377_v9, %v15912_v15  ;;  %v5901_v44 = vmul.f32 %v13379_v30, %v15913_v13  ;;  %v3859_v20 = vadd.f32 %v13205_v47, %v12819_v26  ;;  %v5508_v13 = vshll.u32 %v5471_v24, 16 }
 0x30c   : > { %v4570_v26 = vadd.f32 %v13078_v55, %v4534_v37  ;;  %v5513_v56 = vshll.u32 %v13405_v34, 16  ;;  %v5121_v27 = vshrl.u32 %v4790_v51, 16  ;;  %v5124_v37 = vshll.u32 %v4790_v51, 16 }
 0x30d   : > { %v13403_v1 = vpop.f32.mrf.mxu2  ;;  %v5927_v0 = vpack.c.bf16 %v5901_v44, %v5900_v32  ;;  %v13418_v6 = vpop.f32.mrf.mxu0  ;;  %v5510_v14 = vrot.slane %v5508_v13, 1 }
 0x30e   : > { %v4054_v12 = vpop.f32.mrf.mxu3  ;;  %v5126_v51 = vrot.slane %v5124_v37, 4 }
 0x30f   : > { %v4113_v43 = vadd.f32 %v4054_v12, %v3859_v20  ;;  %v6009_v45 = vshrl.u32 %v5927_v0, 16  ;;  %v6012_v16 = vshll.u32 %v5927_v0, 16  ;;  %v15914_v12 = vld [vmem:[#allocation36_spill] sm:$0xff]  ;;  %v15916_v0 = vld [vmem:[#allocation97_spill] sm:$0xff] }
 0x310   : > { %v9400_v15 = vld [vmem:[#allocation3 + $0x34] sm:$0xff]  ;;  %v2996_v32 = vadd.f32 %v15915_v35, %v15914_v12  ;;  %v5506_v12 = vshrl.u32 %v5471_v24, 16  ;;  %v5123_v35 = vrot.slane %v5121_v27, 3 }
 0x311   : > { %v4535_v61 = vadd.f32 %v13036_v39, %v4113_v43  ;;  %v6011_v47 = vrot.slane %v6009_v45, 3  ;;  %v6014_v57 = vrot.slane %v6012_v16, 4  ;;  %5016 = vmatmul.bf16.gmra.mxu1 %v9400_v15  ;;  %v4602_v43 = vmax.f32 %v4570_v26, 0.0  ;;  %v15919_v27 = vld [vmem:[#allocation76_spill] sm:$0xff] }
 0x312   : > { %5311 = vmatmul.bf16.gmra.mxu2 %v5119_v18  ;;  %v3418_v39 = vadd.f32 %v15916_v0, %v2996_v32  ;;  %v5511_v13 = vor.u32 %v5510_v14, %v5506_v12  ;;  %v15918_v0 = vld [vmem:[#allocation77_spill] sm:$0xff] }
 0x313   : > { %v4571_v44 = vadd.f32 %v13078_v55, %v4535_v61  ;;  %v13416_v20 = vor.u32 %v6014_v57, %v6011_v47  ;;  %v5515_v61 = vrot.slane %v5513_v56, 1  ;;  %v15917_v56 = vld [vmem:[#allocation40_spill] sm:$0xff] }
 0x314   : > { %v3860_v47 = vadd.f32 %v13226_v50, %v3418_v39  ;;  %v5443_v50 = vmul.f32 %v13210_v19, %v15917_v56  ;;  %v13441_v39 = vor.u32 %v5126_v51, %v5123_v35  ;;  %v3861_v19 = vadd.f32 %v13237_v17, %v12865_v25 }
 0x315   : > { %v4603_v45 = vmax.f32 %v4571_v44, 0.0  ;;  %v13421_v16 = vpop.f32.mrf.mxu2  ;;  %v6016_v15 = vsel %vm1184_vm4, %v13365_v49, %v13416_v20  ;;  %v9461_v49 = vld [vmem:[%s15222_s4 + $0x118] sm:$0xff]  ;;  %v5516_v24 = vsel %vm2012_vm6, %v5511_v13, %v5515_v61  ;;  %v13454_v13 = vpop.f32.mrf.mxu0 }
 0x316   : > { %v4056_v18 = vpop.f32.mrf.mxu3  ;;  %6204 = vmatmul.bf16.gmra.mxu0 %v6016_v15  ;;  %6457 = vmatpush.bf16.msrb.mxu1 %v9461_v49  ;;  %v4765_v15 = vmul.f32 %v13377_v9, %v15918_v0 }
 0x317   : > { %v9907_v57 = vpack.c.bf16 %v4603_v45, %v4602_v43  ;;  %v4114_v32 = vadd.f32 %v4056_v18, %v3860_v47  ;;  %v15920_v43 = vld [vmem:[#allocation39_spill] sm:$0xff]  ;;  %v4766_v18 = vmul.f32 %v13379_v30, %v15919_v27 }
 0x318   : > { %v5442_v45 = vmul.f32 %v13161_v36, %v15920_v43 }
 0x319   : > { %10405 = vst [vmem:[#allocation3 + $0x40] sm:$0xff] %v9907_v57   ;;  %v13427_v26 = vunpack.c.l.bf16 %v9907_v57  ;;  %v13429_v44 = vunpack.c.h.bf16 %v9907_v57  ;;  %v4536_v12 = vadd.f32 %v13058_v52, %v4114_v32  ;;  %v4791_v43 = vpack.c.bf16 %v4766_v18, %v4765_v15  ;;  %v13470_v18 = vpop.f32.mrf.mxu1 }
 0x31a   : > { %v13456_v51 = vpack.c.bf16 %v5443_v50, %v5442_v45 }
 0x31b   : > { %5709 = vmatmul.bf16.vlgmr.msrb.gmra.mxu3 %v5516_v24  ;;  %v5902_v14 = vmul.f32 %v13427_v26, %v15918_v0  ;;  %v5903_v37 = vmul.f32 %v13429_v44, %v15919_v27  ;;  %v5128_v27 = vsel %vm1184_vm4, %v13394_v21, %v13441_v39  ;;  %v4572_v25 = vadd.f32 %v13078_v55, %v4536_v12 }
 0x31c   : > { %v5521_v50 = vshll.u32 %v13456_v51, 16  ;;  %v5130_v21 = vshrl.u32 %v4791_v43, 16 }
 0x31d   : > { %v13452_v47 = vpop.f32.mrf.mxu2  ;;  %v5928_v57 = vpack.c.bf16 %v5903_v37, %v5902_v14  ;;  %v15921_v14 = vld [vmem:[#allocation42_spill] sm:$0xff]  ;;  %v15922_v37 = vld [vmem:[#allocation133_spill] sm:$0xff] }
 0x31e   : > { %v4059_v35 = vpop.f32.mrf.mxu3  ;;  %v2998_v45 = vadd.f32 %v15922_v37, %v15921_v14 }
 0x31f   : > { %v4115_v36 = vadd.f32 %v4059_v35, %v3861_v19  ;;  %v6018_v49 = vshrl.u32 %v5928_v57, 16  ;;  %v6021_v24 = vshll.u32 %v5928_v57, 16  ;;  %v5133_v35 = vshll.u32 %v4791_v43, 16  ;;  %v13479_v43 = vpop.f32.mrf.mxu0 }
 0x320   : > { %v9401_v0 = vld [vmem:[#allocation3 + $0x3c] sm:$0xff]  ;;  %v3420_v15 = vadd.f32 %v12891_v59, %v2998_v45 }
 0x321   : > { %v4537_v52 = vadd.f32 %v13098_v60, %v4115_v36  ;;  %v6020_v17 = vrot.slane %v6018_v49, 3  ;;  %v6023_v32 = vrot.slane %v6021_v24, 4  ;;  %5021 = vmatmul.bf16.gmra.mxu1 %v9401_v0  ;;  %v4604_v60 = vmax.f32 %v4572_v25, 0.0 }
 0x322   : > { %5316 = vmatmul.bf16.gmra.mxu2 %v5128_v27  ;;  %v5517_v49 = vshrl.u32 %v13405_v34, 16  ;;  %v5523_v24 = vrot.slane %v5521_v50, 1  ;;  %v5135_v25 = vrot.slane %v5133_v35, 4  ;;  %v15926_v35 = vld [vmem:[#allocation47_spill] sm:$0xff] }
 0x323   : > { %v4573_v19 = vadd.f32 %v13078_v55, %v4537_v52  ;;  %v13467_v57 = vor.u32 %v6023_v32, %v6020_v17  ;;  %v3862_v52 = vadd.f32 %v13263_v22, %v3420_v15  ;;  %v5132_v32 = vrot.slane %v5130_v21, 3  ;;  %v15924_v22 = vld [vmem:[#allocation6_spill] sm:$0xff]  ;;  %v15925_v15 = vld [vmem:[#allocation7_spill] sm:$0xff] }
 0x324   : > { %v5519_v59 = vor.u32 %v5517_v49, %v5515_v61  ;;  %v13503_v49 = vpop.f32.mrf.mxu1 }
 0x325   : > { %v4605_v12 = vmax.f32 %v4573_v19, 0.0  ;;  %v13472_v36 = vpop.f32.mrf.mxu2  ;;  %v6025_v0 = vsel %vm1184_vm4, %v13416_v20, %v13467_v57  ;;  %v15923_v19 = vld [vmem:[#allocation52_spill] sm:$0xff]  ;;  %v13492_v21 = vor.u32 %v5135_v25, %v5132_v32 }
 0x326   : > { %v4061_v27 = vpop.f32.mrf.mxu3  ;;  %6209 = vmatmul.bf16.gmra.mxu0 %v6025_v0  ;;  %v5524_v20 = vsel %vm2012_vm6, %v5519_v59, %v5523_v24  ;;  %v5445_v34 = vmul.f32 %v13244_v8, %v15923_v19  ;;  %v4768_v0 = vmul.f32 %v13429_v44, %v15925_v15  ;;  %v3863_v8 = vadd.f32 %v13274_v40, %v12909_v4 }
 0x327   : > { %v9912_v17 = vpack.c.bf16 %v4605_v12, %v4604_v60  ;;  %v4116_v14 = vadd.f32 %v4061_v27, %v3862_v52  ;;  %v5444_v60 = vmul.f32 %v13212_v29, %v15926_v35  ;;  %v4767_v12 = vmul.f32 %v13427_v26, %v15924_v22  ;;  %v13514_v19 = vpop.f32.mrf.mxu0 }
 0x329   : > { %10406 = vst [vmem:[#allocation3 + $0x48] sm:$0xff] %v9912_v17   ;;  %v13481_v37 = vunpack.c.l.bf16 %v9912_v17  ;;  %v13483_v45 = vunpack.c.h.bf16 %v9912_v17  ;;  %v4538_v27 = vadd.f32 %v13133_v31, %v4116_v14  ;;  %v13507_v32 = vpack.c.bf16 %v5445_v34, %v5444_v60 }
 0x32a   : > { %v4792_v35 = vpack.c.bf16 %v4768_v0, %v4767_v12 }
 0x32b   : > { %5714 = vmatmul.bf16.gmra.mxu3 %v5524_v20  ;;  %v5904_v50 = vmul.f32 %v13481_v37, %v15924_v22  ;;  %v5905_v61 = vmul.f32 %v13483_v45, %v15925_v15  ;;  %v5137_v15 = vsel %vm1184_vm4, %v13441_v39, %v13492_v21  ;;  %v4574_v4 = vadd.f32 %v13078_v55, %v4538_v27  ;;  %v15929_v27 = vld [vmem:[#allocation100_spill] sm:$0xff] }
 0x32c   : > { %v5529_v34 = vshll.u32 %v13507_v32, 16  ;;  %v5139_v12 = vshrl.u32 %v4792_v35, 16  ;;  %v5142_v0 = vshll.u32 %v4792_v35, 16 }
 0x32d   : > { %v13505_v52 = vpop.f32.mrf.mxu2  ;;  %v5929_v17 = vpack.c.bf16 %v5905_v61, %v5904_v50  ;;  %v15927_v50 = vld [vmem:[#allocation48_spill] sm:$0xff]  ;;  %v15928_v61 = vld [vmem:[#allocation59_spill] sm:$0xff] }
 0x32e   : > { %v4064_v59 = vpop.f32.mrf.mxu3  ;;  %v3000_v60 = vadd.f32 %v15928_v61, %v15927_v50 }
 0x32f   : > { %v4117_v29 = vadd.f32 %v4064_v59, %v3863_v8  ;;  %v6027_v25 = vshrl.u32 %v5929_v17, 16  ;;  %v6030_v20 = vshll.u32 %v5929_v17, 16 }
 0x330   : > { %v9402_v22 = vld [vmem:[#allocation3 + $0x44] sm:$0xff]  ;;  %v3422_v17 = vadd.f32 %v15929_v27, %v3000_v60  ;;  %v13549_v27 = vpop.f32.mrf.mxu0 }
 0x331   : > { %v4539_v31 = vadd.f32 %v13168_v63, %v4117_v29  ;;  %v6029_v40 = vrot.slane %v6027_v25, 3  ;;  %v6032_v14 = vrot.slane %v6030_v20, 4  ;;  %5026 = vmatmul.bf16.gmra.mxu1 %v9402_v22  ;;  %v4606_v63 = vmax.f32 %v4574_v4, 0.0 }
 0x332   : > { %5321 = vmatmul.bf16.gmra.mxu2 %v5137_v15  ;;  %v5525_v25 = vshrl.u32 %v13456_v51, 16  ;;  %v13529_v20 = vrot.slane %v5529_v34, 1  ;;  %v5141_v4 = vrot.slane %v5139_v12, 3  ;;  %v9460_v51 = vld [vmem:[%s15222_s4 + $0x110] sm:$0xff]  ;;  %v15932_v12 = vld [vmem:[#allocation5_spill] sm:$0xff] }
 0x333   : > { %v4575_v8 = vadd.f32 %v13078_v55, %v4539_v31  ;;  %v13520_v39 = vor.u32 %v6032_v14, %v6029_v40  ;;  %v3864_v55 = vadd.f32 %v13298_v48, %v3422_v17  ;;  %v13532_v40 = vpop.f32.mrf.mxu1  ;;  %v5144_v14 = vrot.slane %v5142_v0, 4  ;;  %6458 = vmatpush.bf16.msrb.mxu1 %v9460_v51 }
 0x334   : > { %v5527_v35 = vor.u32 %v5525_v25, %v5523_v24  ;;  %v15931_v24 = vld [vmem:[#allocation4_spill] sm:$0xff] }
 0x335   : > { %v4607_v59 = vmax.f32 %v4575_v8, 0.0  ;;  %v13523_v29 = vpop.f32.mrf.mxu2  ;;  %v6034_v22 = vsel %vm1184_vm4, %v13467_v57, %v13520_v39  ;;  %v15930_v57 = vld [vmem:[#allocation56_spill] sm:$0xff]  ;;  %v13551_v17 = vor.u32 %v5144_v14, %v5141_v4 }
 0x336   : > { %v4066_v15 = vpop.f32.mrf.mxu3  ;;  %6214 = vmatmul.bf16.gmra.mxu0 %v6034_v22  ;;  %v5532_v48 = vsel %vm2012_vm6, %v5527_v35, %v13529_v20  ;;  %v5447_v34 = vmul.f32 %v13278_v62, %v15930_v57  ;;  %v4769_v22 = vmul.f32 %v13481_v37, %v15931_v24  ;;  %v4770_v62 = vmul.f32 %v13483_v45, %v15932_v12 }
 0x337   : > { %v9917_v31 = vpack.c.bf16 %v4607_v59, %v4606_v63  ;;  %v4118_v50 = vadd.f32 %v4066_v15, %v3864_v55  ;;  %v15933_v63 = vld [vmem:[#allocation58_spill] sm:$0xff]  ;;  %v15934_v15 = vld [vmem:[#allocation60_spill] sm:$0xff] }
 0x338   : > { %v5446_v59 = vmul.f32 %v13246_v54, %v15933_v63  ;;  %v3865_v25 = vadd.f32 %v13316_v2, %v15934_v15  ;;  %v4793_v57 = vpack.c.bf16 %v4770_v62, %v4769_v22  ;;  %v15936_v15 = vld [vmem:[#allocation105_spill] sm:$0xff] }
 0x339   : > { %10407 = vst [vmem:[#allocation3 + $0x50] sm:$0xff] %v9917_v31   ;;  %v13534_v61 = vunpack.c.l.bf16 %v9917_v31  ;;  %v13536_v60 = vunpack.c.h.bf16 %v9917_v31  ;;  %v4540_v55 = vadd.f32 %v13203_v23, %v4118_v50  ;;  %v13574_v23 = vld [vmem:[%s15221_s3] ss:$0 sm:$0xff] }
 0x33a   : > { %v13564_v4 = vpack.c.bf16 %v5447_v34, %v5446_v59  ;;  %v15935_v59 = vld [vmem:[#allocation101_spill] sm:$0xff] }
 0x33b   : > { %5719 = vmatmul.bf16.gmra.mxu3 %v5532_v48  ;;  %v5906_v8 = vmul.f32 %v13534_v61, %v15931_v24  ;;  %v5907_v0 = vmul.f32 %v13536_v60, %v15932_v12  ;;  %v5146_v12 = vsel %vm1184_vm4, %v13492_v21, %v13551_v17  ;;  %v4576_v2 = vadd.f32 %v13574_v23, %v4540_v55  ;;  %v15938_v55 = vld [vmem:[#allocation106_spill] sm:$0xff] }
 0x33c   : > { %v3002_v21 = vadd.f32 %v15936_v15, %v15935_v59 }
 0x33d   : > { %v13562_v31 = vpop.f32.mrf.mxu2  ;;  %v5930_v35 = vpack.c.bf16 %v5907_v0, %v5906_v8  ;;  %v5537_v0 = vshll.u32 %v13564_v4, 16 }
 0x33e   : > { %v4069_v51 = vpop.f32.mrf.mxu3  ;;  %v13566_v48 = vpop.f32.mrf.mxu1  ;;  %v3424_v56 = vadd.f32 %v15938_v55, %v3002_v21 }
 0x33f   : > { %v4119_v14 = vadd.f32 %v4069_v51, %v3865_v25  ;;  %v6036_v54 = vshrl.u32 %v5930_v35, 16  ;;  %v6039_v63 = vshll.u32 %v5930_v35, 16  ;;  %v5148_v35 = vshrl.u32 %v4793_v57, 16 }
 0x340   : > { %v9403_v24 = vld [vmem:[#allocation3 + $0x4c] sm:$0xff]  ;;  %v5151_v51 = vshll.u32 %v4793_v57, 16 }
 0x341   : > { %v4541_v50 = vadd.f32 %v13231_v58, %v4119_v14  ;;  %v6038_v34 = vrot.slane %v6036_v54, 3  ;;  %v6041_v8 = vrot.slane %v6039_v63, 4  ;;  %5031 = vmatmul.bf16.gmra.mxu1 %v9403_v24  ;;  %v4608_v58 = vmax.f32 %v4576_v2, 0.0 }
 0x342   : > { %5326 = vmatmul.bf16.gmra.mxu2 %v5146_v12  ;;  %v5533_v54 = vshrl.u32 %v13507_v32, 16  ;;  %v5150_v2 = vrot.slane %v5148_v35, 3  ;;  %v5153_v15 = vrot.slane %v5151_v51, 4  ;;  %v15939_v32 = vld [vmem:[#allocation66_spill] sm:$0xff] }
 0x343   : > { %v4577_v22 = vadd.f32 %v13574_v23, %v4541_v50  ;;  %v13582_v62 = vor.u32 %v6041_v8, %v6038_v34  ;;  %v13584_v25 = vpop.f32.mrf.mxu0  ;;  %v5539_v50 = vrot.slane %v5537_v0, 1  ;;  %v3866_v34 = vadd.f32 %v13350_v33, %v3424_v56  ;;  %v15940_v33 = vld [vmem:[#allocation8_spill] sm:$0xff] }
 0x344   : > { %15937 = vst [vmem:[#allocation84_spill] sm:$0xff] %v13584_v25  ;;  %v5535_v57 = vor.u32 %v5533_v54, %v13529_v20  ;;  %v5449_v0 = vmul.f32 %v13323_v28, %v15939_v32  ;;  %v13608_v35 = vor.u32 %v5153_v15, %v5150_v2  ;;  %v15944_v54 = vld [vmem:[#allocation64_spill] sm:$0xff] }
 0x345   : > { %v4609_v14 = vmax.f32 %v4577_v22, 0.0  ;;  %v13587_v63 = vpop.f32.mrf.mxu2  ;;  %v6043_v24 = vsel %vm1184_vm4, %v13520_v39, %v13582_v62 }
 0x346   : > { %v4071_v12 = vpop.f32.mrf.mxu3  ;;  %v13594_v59 = vpop.f32.mrf.mxu1  ;;  %6219 = vmatmul.bf16.gmra.mxu0 %v6043_v24  ;;  %v5540_v39 = vsel %vm2012_vm6, %v5535_v57, %v5539_v50 }
 0x347   : > { %v9922_v8 = vpack.c.bf16 %v4609_v14, %v4608_v58  ;;  %v4120_v21 = vadd.f32 %v4071_v12, %v3866_v34  ;;  %v15941_v58 = vld [vmem:[#allocation9_spill] sm:$0xff]  ;;  %v4771_v12 = vmul.f32 %v13534_v61, %v15940_v33  ;;  %v3867_v34 = vadd.f32 %v13368_v41, %v15944_v54 }
 0x348   : > { %v15943_v14 = vld [vmem:[#allocation65_spill] sm:$0xff]  ;;  %v4772_v28 = vmul.f32 %v13536_v60, %v15941_v58 }
 0x349   : > { %10408 = vst [vmem:[#allocation3 + $0x58] sm:$0xff] %v9922_v8   ;;  %v13597_v22 = vunpack.c.l.bf16 %v9922_v8  ;;  %v13599_v55 = vunpack.c.h.bf16 %v9922_v8  ;;  %v5448_v24 = vmul.f32 %v13280_v3, %v15943_v14  ;;  %v4542_v8 = vadd.f32 %v13242_v7, %v4120_v21 }
 0x34a   : > { %v4794_v32 = vpack.c.bf16 %v4772_v28, %v4771_v12 }
 0x34b   : > { %5724 = vmatmul.bf16.gmra.mxu3 %v5540_v39  ;;  %v5908_v56 = vmul.f32 %v13597_v22, %v15940_v33  ;;  %v5909_v20 = vmul.f32 %v13599_v55, %v15941_v58  ;;  %v13610_v51 = vpop.f32.mrf.mxu0  ;;  %v13623_v39 = vpack.c.bf16 %v5449_v0, %v5448_v24  ;;  %v5155_v58 = vsel %vm1184_vm4, %v13551_v17, %v13608_v35  ;;  %v15946_v24 = vld [vmem:[#allocation73_spill] sm:$0xff] }
 0x34c   : > { %15942 = vst [vmem:[#allocation116_spill] sm:$0xff] %v13610_v51  ;;  %v4578_v41 = vadd.f32 %v13574_v23, %v4542_v8  ;;  %v5157_v12 = vshrl.u32 %v4794_v32, 16  ;;  %v5160_v28 = vshll.u32 %v4794_v32, 16  ;;  %v15948_v8 = vld [vmem:[#allocation10_spill] sm:$0xff] }
 0x34d   : > { %v13621_v57 = vpop.f32.mrf.mxu2  ;;  %v5931_v2 = vpack.c.bf16 %v5909_v20, %v5908_v56  ;;  %v5545_v0 = vshll.u32 %v13623_v39, 16  ;;  %v15945_v20 = vld [vmem:[#allocation54_spill] sm:$0xff] }
 0x34e   : > { %v4074_v15 = vpop.f32.mrf.mxu3  ;;  %v13625_v25 = vpop.f32.mrf.mxu1  ;;  %v3004_v54 = vadd.f32 %v15946_v24, %v15945_v20  ;;  %v5159_v24 = vrot.slane %v5157_v12, 3 }
 0x34f   : > { %v4121_v51 = vadd.f32 %v4074_v15, %v3867_v34  ;;  %v6045_v3 = vshrl.u32 %v5931_v2, 16  ;;  %v6048_v14 = vshll.u32 %v5931_v2, 16 }
 0x350   : > { %v9404_v33 = vld [vmem:[#allocation3 + $0x54] sm:$0xff]  ;;  %v3426_v15 = vadd.f32 %v15948_v8, %v3004_v54  ;;  %v5162_v54 = vrot.slane %v5160_v28, 4 }
 0x351   : > { %v4543_v7 = vadd.f32 %v13268_v46, %v4121_v51  ;;  %v6047_v21 = vrot.slane %v6045_v3, 3  ;;  %v6050_v56 = vrot.slane %v6048_v14, 4  ;;  %5036 = vmatmul.bf16.gmra.mxu1 %v9404_v33  ;;  %v4610_v46 = vmax.f32 %v4578_v41, 0.0  ;;  %v15951_v28 = vld [vmem:[#allocation12_spill] sm:$0xff] }
 0x352   : > { %5331 = vmatmul.bf16.gmra.mxu2 %v5155_v58 }
 0x353   : > { %v4579_v34 = vadd.f32 %v13574_v23, %v4543_v7  ;;  %v13636_v2 = vor.u32 %v6050_v56, %v6047_v21  ;;  %v13638_v17 = vpop.f32.mrf.mxu0  ;;  %v5541_v7 = vshrl.u32 %v13564_v4, 16  ;;  %v13648_v21 = vrot.slane %v5545_v0, 1  ;;  %v9459_v4 = vld [vmem:[%s15222_s4 + $0x108] sm:$0xff]  ;;  %v15949_v0 = vld [vmem:[#allocation72_spill] sm:$0xff] }
 0x354   : > { %15947 = vst [vmem:[#allocation35_spill] sm:$0xff] %v13638_v17  ;;  %v3868_v56 = vadd.f32 %v13403_v1, %v3426_v15  ;;  %v5451_v8 = vmul.f32 %v13377_v9, %v15949_v0  ;;  %6459 = vmatpush.bf16.msrb.mxu1 %v9459_v4  ;;  %v4774_v9 = vmul.f32 %v13599_v55, %v15951_v28 }
 0x355   : > { %v4611_v51 = vmax.f32 %v4579_v34, 0.0  ;;  %v5292_v14 = vpop.f32.mrf.mxu2  ;;  %v6052_v33 = vsel %vm1184_vm4, %v13582_v62, %v13636_v2  ;;  %v5543_v41 = vor.u32 %v5541_v7, %v5539_v50  ;;  %v15950_v50 = vld [vmem:[#allocation13_spill] sm:$0xff]  ;;  %v15954_v7 = vld [vmem:[#allocation11_spill] sm:$0xff] }
 0x356   : > { %v13645_v58 = vadd.f32 %v5292_v14, %v13503_v49  ;;  %v4076_v3 = vpop.f32.mrf.mxu3  ;;  %v13651_v20 = vpop.f32.mrf.mxu1  ;;  %6224 = vmatmul.bf16.gmra.mxu0 %v6052_v33  ;;  %v15953_v14 = vld [vmem:[#allocation71_spill] sm:$0xff] }
 0x357   : > { %v9927_v32 = vpack.c.bf16 %v4611_v51, %v4610_v46  ;;  %v4122_v34 = vadd.f32 %v4076_v3, %v3868_v56  ;;  %v5548_v1 = vsel %vm2012_vm6, %v5543_v41, %v13648_v21  ;;  %v13668_v46 = vor.u32 %v5162_v54, %v5159_v24 }
 0x358   : > { %v5450_v33 = vmul.f32 %v13325_v5, %v15953_v14  ;;  %v4773_v3 = vmul.f32 %v13597_v22, %v15950_v50  ;;  %v3869_v56 = vadd.f32 %v13421_v16, %v15954_v7 }
 0x359   : > { %10409 = vst [vmem:[#allocation3 + $0x60] sm:$0xff] %v9927_v32   ;;  %v13653_v62 = vunpack.c.l.bf16 %v9927_v32  ;;  %v13655_v49 = vunpack.c.h.bf16 %v9927_v32  ;;  %v4544_v32 = vadd.f32 %v13287_v42, %v4122_v34 }
 0x35a   : > { %v4795_v7 = vpack.c.bf16 %v4774_v9, %v4773_v3 }
 0x35b   : > { %5729 = vmatmul.bf16.gmra.mxu3 %v5548_v1  ;;  %v5910_v12 = vmul.f32 %v13653_v62, %v15950_v50  ;;  %v5911_v15 = vmul.f32 %v13655_v49, %v15951_v28  ;;  %v13670_v51 = vpop.f32.mrf.mxu0  ;;  %v13684_v1 = vpack.c.bf16 %v5451_v8, %v5450_v33  ;;  %v5164_v28 = vsel %vm1184_vm4, %v13608_v35, %v13668_v46  ;;  %v15956_v33 = vld [vmem:[#allocation122_spill] sm:$0xff] }
 0x35c   : > { %15952 = vst [vmem:[#allocation67_spill] sm:$0xff] %v13670_v51  ;;  %v4580_v42 = vadd.f32 %v13574_v23, %v4544_v32  ;;  %v5166_v3 = vshrl.u32 %v4795_v7, 16  ;;  %v5169_v9 = vshll.u32 %v4795_v7, 16  ;;  %v15958_v32 = vld [vmem:[#allocation112_spill] sm:$0xff] }
 0x35d   : > { %v5294_v41 = vpop.f32.mrf.mxu2  ;;  %v5932_v4 = vpack.c.bf16 %v5911_v15, %v5910_v12  ;;  %v5553_v8 = vshll.u32 %v13684_v1, 16  ;;  %v15955_v15 = vld [vmem:[#allocation107_spill] sm:$0xff] }
 0x35e   : > { %v13682_v24 = vadd.f32 %v5294_v41, %v13532_v40  ;;  %v4079_v54 = vpop.f32.mrf.mxu3  ;;  %v13686_v51 = vpop.f32.mrf.mxu1 }
 0x35f   : > { %v4123_v5 = vadd.f32 %v4079_v54, %v3869_v56  ;;  %v6054_v17 = vshrl.u32 %v5932_v4, 16  ;;  %v6057_v50 = vshll.u32 %v5932_v4, 16  ;;  %v3006_v56 = vadd.f32 %v15956_v33, %v15955_v15 }
 0x360   : > { %v9405_v16 = vld [vmem:[#allocation3 + $0x5c] sm:$0xff]  ;;  %v5168_v33 = vrot.slane %v5166_v3, 3 }
 0x361   : > { %v4545_v34 = vadd.f32 %v13320_v10, %v4123_v5  ;;  %v6056_v40 = vrot.slane %v6054_v17, 3  ;;  %v6059_v12 = vrot.slane %v6057_v50, 4  ;;  %5041 = vmatmul.bf16.gmra.mxu1 %v9405_v16  ;;  %v3428_v54 = vadd.f32 %v15958_v32, %v3006_v56  ;;  %v15959_v32 = vld [vmem:[#allocation15_spill] sm:$0xff] }
 0x362   : > { %5336 = vmatmul.bf16.gmra.mxu2 %v5164_v28  ;;  %v4612_v10 = vmax.f32 %v4580_v42, 0.0  ;;  %v5171_v56 = vrot.slane %v5169_v9, 4 }
 0x363   : > { %v4581_v41 = vadd.f32 %v13574_v23, %v4545_v34  ;;  %v13697_v4 = vor.u32 %v6059_v12, %v6056_v40  ;;  %v13699_v35 = vpop.f32.mrf.mxu0  ;;  %v5549_v34 = vshrl.u32 %v13623_v39, 16  ;;  %v13709_v40 = vrot.slane %v5553_v8, 1  ;;  %v15960_v8 = vld [vmem:[#allocation81_spill] sm:$0xff] }
 0x364   : > { %15957 = vst [vmem:[#allocation89_spill] sm:$0xff] %v13699_v35  ;;  %v3870_v12 = vadd.f32 %v13452_v47, %v3428_v54  ;;  %v4775_v39 = vmul.f32 %v13653_v62, %v15959_v32  ;;  %v5453_v54 = vmul.f32 %v13427_v26, %v15960_v8 }
 0x365   : > { %v4613_v17 = vmax.f32 %v4581_v41, 0.0  ;;  %v5297_v50 = vpop.f32.mrf.mxu2  ;;  %v6061_v28 = vsel %vm1184_vm4, %v13636_v2, %v13697_v4  ;;  %v5551_v42 = vor.u32 %v5549_v34, %v13648_v21 }
 0x366   : > { %v13706_v5 = vadd.f32 %v5297_v50, %v13566_v48  ;;  %v4081_v16 = vpop.f32.mrf.mxu3  ;;  %v13712_v15 = vpop.f32.mrf.mxu1  ;;  %6229 = vmatmul.bf16.gmra.mxu0 %v6061_v28  ;;  %v15963_v28 = vld [vmem:[#allocation80_spill] sm:$0xff] }
 0x367   : > { %v9932_v7 = vpack.c.bf16 %v4613_v17, %v4612_v10  ;;  %v4124_v2 = vadd.f32 %v4081_v16, %v3870_v12  ;;  %v5556_v47 = vsel %vm2012_vm6, %v5551_v42, %v13709_v40  ;;  %v15961_v10 = vld [vmem:[#allocation17_spill] sm:$0xff]  ;;  %v5172_v17 = vor.u32 %v5171_v56, %v5168_v33  ;;  %v15964_v12 = vld [vmem:[#allocation14_spill] sm:$0xff] }
 0x368   : > { %v4776_v21 = vmul.f32 %v13655_v49, %v15961_v10  ;;  %v5452_v16 = vmul.f32 %v13379_v30, %v15963_v28  ;;  %v3871_v26 = vadd.f32 %v13472_v36, %v15964_v12  ;;  %v15966_v12 = vld [vmem:[#allocation24_spill] sm:$0xff] }
 0x369   : > { %10410 = vst [vmem:[#allocation3 + $0x68] sm:$0xff] %v9932_v7   ;;  %v13715_v41 = vunpack.c.l.bf16 %v9932_v7  ;;  %v13717_v48 = vunpack.c.h.bf16 %v9932_v7  ;;  %v4546_v7 = vadd.f32 %v13352_v11, %v4124_v2  ;;  %v5173_v36 = vsel %vm1184_vm4, %v13668_v46, %v5172_v17 }
 0x36a   : > { %v4796_v34 = vpack.c.bf16 %v4776_v21, %v4775_v39  ;;  %v13741_v8 = vpack.c.bf16 %v5453_v54, %v5452_v16 }
 0x36b   : > { %5734 = vmatmul.bf16.gmra.mxu3 %v5556_v47  ;;  %v5912_v3 = vmul.f32 %v13715_v41, %v15959_v32  ;;  %v5913_v9 = vmul.f32 %v13717_v48, %v15961_v10  ;;  %v13731_v50 = vpop.f32.mrf.mxu0 }
 0x36c   : > { %15962 = vst [vmem:[#allocation118_spill] sm:$0xff] %v13731_v50  ;;  %v5175_v33 = vshrl.u32 %v4796_v34, 16  ;;  %v5178_v56 = vshll.u32 %v4796_v34, 16  ;;  %v15965_v34 = vld [vmem:[#allocation108_spill] sm:$0xff] }
 0x36d   : > { %v5299_v42 = vpop.f32.mrf.mxu2  ;;  %v5933_v47 = vpack.c.bf16 %v5913_v9, %v5912_v3  ;;  %v4582_v3 = vadd.f32 %v13574_v23, %v4546_v7 }
 0x36e   : > { %v13739_v35 = vadd.f32 %v5299_v42, %v13594_v59  ;;  %v4084_v32 = vpop.f32.mrf.mxu3  ;;  %v13743_v10 = vpop.f32.mrf.mxu1  ;;  %v5177_v11 = vrot.slane %v5175_v33, 3  ;;  %v5180_v2 = vrot.slane %v5178_v56, 4 }
 0x36f   : > { %v4125_v50 = vadd.f32 %v4084_v32, %v3871_v26  ;;  %v6063_v30 = vshrl.u32 %v5933_v47, 16  ;;  %v6066_v39 = vshll.u32 %v5933_v47, 16  ;;  %v5561_v32 = vshll.u32 %v13741_v8, 16 }
 0x370   : > { %v9406_v21 = vld [vmem:[#allocation3 + $0x64] sm:$0xff]  ;;  %v13750_v16 = vor.u32 %v5180_v2, %v5177_v11  ;;  %v3008_v26 = vadd.f32 %v15966_v12, %v15965_v34  ;;  %v4614_v33 = vmax.f32 %v4582_v3, 0.0  ;;  %v5557_v11 = vshrl.u32 %v13684_v1, 16 }
 0x371   : > { %v4547_v59 = vadd.f32 %v13381_v38, %v4125_v50  ;;  %v6065_v9 = vrot.slane %v6063_v30, 3  ;;  %v6068_v54 = vrot.slane %v6066_v39, 4  ;;  %5046 = vmatmul.bf16.gmra.mxu1 %v9406_v21  ;;  %v15968_v50 = vld [vmem:[#allocation134_spill] sm:$0xff]  ;;  %v13769_v2 = vrot.slane %v5561_v32, 1  ;;  %v15970_v32 = vld [vmem:[#allocation88_spill] sm:$0xff] }
 0x372   : > { %5341 = vmatmul.bf16.gmra.mxu2 %v5173_v36  ;;  %v5182_v38 = vsel %vm1184_vm4, %v5172_v17, %v13750_v16  ;;  %v3430_v7 = vadd.f32 %v15968_v50, %v3008_v26  ;;  %v5559_v3 = vor.u32 %v5557_v11, %v13709_v40  ;;  %v9458_v1 = vld [vmem:[%s15222_s4 + $0x100] sm:$0xff]  ;;  %v5455_v26 = vmul.f32 %v13481_v37, %v15970_v32  ;;  %v15971_v40 = vld [vmem:[#allocation25_spill] sm:$0xff] }
 0x373   : > { %v4583_v46 = vadd.f32 %v13574_v23, %v4547_v59  ;;  %v13755_v42 = vor.u32 %v6068_v54, %v6065_v9  ;;  %v13757_v47 = vpop.f32.mrf.mxu0  ;;  %6460 = vmatpush.bf16.msrb.mxu1 %v9458_v1 }
 0x374   : > { %15967 = vst [vmem:[#allocation124_spill] sm:$0xff] %v13757_v47  ;;  %v3872_v59 = vadd.f32 %v13505_v52, %v3430_v7  ;;  %v5564_v52 = vsel %vm2012_vm6, %v5559_v3, %v13769_v2 }
 0x375   : > { %v4615_v56 = vmax.f32 %v4583_v46, 0.0  ;;  %v5302_v30 = vpop.f32.mrf.mxu2  ;;  %v6070_v39 = vsel %vm1184_vm4, %v13697_v4, %v13755_v42  ;;  %v4778_v46 = vmul.f32 %v13717_v48, %v15971_v40 }
 0x376   : > { %v13766_v36 = vadd.f32 %v5302_v30, %v13625_v25  ;;  %v4086_v21 = vpop.f32.mrf.mxu3  ;;  %v13772_v9 = vpop.f32.mrf.mxu1  ;;  %6234 = vmatmul.bf16.gmra.mxu0 %v6070_v39  ;;  %v15969_v25 = vld [vmem:[#allocation20_spill] sm:$0xff] }
 0x377   : > { %v9937_v17 = vpack.c.bf16 %v4615_v56, %v4614_v33  ;;  %v4126_v54 = vadd.f32 %v4086_v21, %v3872_v59  ;;  %v4777_v12 = vmul.f32 %v13715_v41, %v15969_v25  ;;  %v15973_v56 = vld [vmem:[#allocation87_spill] sm:$0xff] }
 0x378   : > { %v5454_v30 = vmul.f32 %v13429_v44, %v15973_v56  ;;  %v15974_v21 = vld [vmem:[#allocation79_spill] sm:$0xff] }
 0x379   : > { %10411 = vst [vmem:[#allocation3 + $0x70] sm:$0xff] %v9937_v17   ;;  %v13775_v34 = vunpack.c.l.bf16 %v9937_v17  ;;  %v13777_v4 = vunpack.c.h.bf16 %v9937_v17  ;;  %v4797_v39 = vpack.c.bf16 %v4778_v46, %v4777_v12  ;;  %v3873_v37 = vadd.f32 %v13523_v29, %v15974_v21  ;;  %v15976_v21 = vld [vmem:[#allocation86_spill] sm:$0xff] }
 0x37a   : > { %v4548_v11 = vadd.f32 %v13418_v6, %v4126_v54  ;;  %v13804_v47 = vpack.c.bf16 %v5455_v26, %v5454_v30 }
 0x37b   : > { %5739 = vmatmul.bf16.gmra.mxu3 %v5564_v52  ;;  %v5914_v50 = vmul.f32 %v13775_v34, %v15969_v25  ;;  %v5915_v7 = vmul.f32 %v13777_v4, %v15971_v40  ;;  %v13794_v33 = vpop.f32.mrf.mxu0  ;;  %v5184_v1 = vshrl.u32 %v4797_v39, 16  ;;  %v5187_v40 = vshll.u32 %v4797_v39, 16 }
 0x37c   : > { %15972 = vst [vmem:[#allocation93_spill] sm:$0xff] %v13794_v33  ;;  %v4584_v6 = vadd.f32 %v13574_v23, %v4548_v11  ;;  %v5569_v30 = vshll.u32 %v13804_v47, 16  ;;  %v15978_v11 = vld [vmem:[#allocation37_spill] sm:$0xff] }
 0x37d   : > { %v5304_v59 = vpop.f32.mrf.mxu2  ;;  %v5934_v17 = vpack.c.bf16 %v5915_v7, %v5914_v50  ;;  %v5186_v56 = vrot.slane %v5184_v1, 3  ;;  %v5189_v29 = vrot.slane %v5187_v40, 4  ;;  %v15975_v7 = vld [vmem:[#allocation70_spill] sm:$0xff] }
 0x37e   : > { %v13802_v3 = vadd.f32 %v5304_v59, %v13651_v20  ;;  %v4089_v52 = vpop.f32.mrf.mxu3  ;;  %v13806_v25 = vpop.f32.mrf.mxu1  ;;  %v3010_v26 = vadd.f32 %v15976_v21, %v15975_v7  ;;  %v15980_v1 = vld [vmem:[#allocation74_spill] sm:$0xff] }
 0x37f   : > { %v4127_v33 = vadd.f32 %v4089_v52, %v3873_v37  ;;  %v6072_v44 = vshrl.u32 %v5934_v17, 16  ;;  %v6075_v12 = vshll.u32 %v5934_v17, 16  ;;  %v5190_v39 = vor.u32 %v5189_v29, %v5186_v56  ;;  %v15977_v37 = vld [vmem:[#allocation38_spill] sm:$0xff] }
 0x380   : > { %v9407_v46 = vld [vmem:[#allocation3 + $0x6c] sm:$0xff]  ;;  %v4779_v59 = vmul.f32 %v13775_v34, %v15977_v37  ;;  %v4616_v56 = vmax.f32 %v4584_v6, 0.0  ;;  %v15983_v6 = vld [vmem:[#allocation96_spill] sm:$0xff] }
 0x381   : > { %v4549_v54 = vadd.f32 %v13454_v13, %v4127_v33  ;;  %v6074_v50 = vrot.slane %v6072_v44, 3  ;;  %v6077_v20 = vrot.slane %v6075_v12, 4  ;;  %5051 = vmatmul.bf16.gmra.mxu1 %v9407_v46  ;;  %v4780_v13 = vmul.f32 %v13777_v4, %v15978_v11  ;;  %v15979_v33 = vld [vmem:[#allocation16_spill] sm:$0xff]  ;;  %v15981_v44 = vld [vmem:[#allocation85_spill] sm:$0xff] }
 0x382   : > { %5346 = vmatmul.bf16.gmra.mxu2 %v5182_v38  ;;  %v3432_v52 = vadd.f32 %v15979_v33, %v3010_v26  ;;  %v3012_v12 = vadd.f32 %v15981_v44, %v15980_v1  ;;  %v13825_v38 = vsel %vm1184_vm4, %v13750_v16, %v5190_v39  ;;  %v5565_v33 = vshrl.u32 %v13741_v8, 16  ;;  %v9497_v8 = vld [vmem:[%s15222_s4 + $0x1b8] sm:$0xff] }
 0x383   : > { %v4585_v17 = vadd.f32 %v13574_v23, %v4549_v54  ;;  %v13816_v40 = vor.u32 %v6077_v20, %v6074_v50  ;;  %v13827_v7 = vpop.f32.mrf.mxu0  ;;  %v4798_v50 = vpack.c.bf16 %v4780_v13, %v4779_v59  ;;  %v13832_v20 = vld [vmem:[#allocation3 + $0x18] sm:$0xff]   ;;  %v13838_v16 = vrot.slane %v5569_v30, 1  ;;  %v15984_v13 = vld [vmem:[#allocation95_spill] sm:$0xff]  ;;  %7373 = vmatpush.bf16.msra.mxu3 %v9497_v8 }
 0x384   : > { %15982 = vst [vmem:[#allocation123_spill] sm:$0xff] %v13827_v7  ;;  %v3874_v1 = vadd.f32 %v13562_v31, %v3432_v52  ;;  %v5567_v30 = vor.u32 %v5565_v33, %v13769_v2  ;;  %v15442_v31 = vunpack.c.l.bf16 %v13832_v20 }
 0x385   : > { %v4617_v46 = vmax.f32 %v4585_v17, 0.0  ;;  %v5307_v29 = vpop.f32.mrf.mxu2  ;;  %v6079_v54 = vsel %vm1184_vm4, %v13755_v42, %v13816_v40  ;;  %v5457_v17 = vmul.f32 %v13534_v61, %v15983_v6  ;;  %v5193_v42 = vshrl.u32 %v4798_v50, 16 }
 0x386   : > { %v13835_v21 = vadd.f32 %v5307_v29, %v13686_v51  ;;  %v4091_v26 = vpop.f32.mrf.mxu3  ;;  %v13843_v7 = vpop.f32.mrf.mxu1  ;;  %6239 = vmatmul.bf16.gmra.mxu0 %v6079_v54  ;;  %v5196_v59 = vshll.u32 %v4798_v50, 16  ;;  %v9473_v51 = vld [vmem:[%s15222_s4 + $0x178] sm:$0xff]  ;;  %v5456_v61 = vmul.f32 %v13483_v45, %v15984_v13  ;;  %v5572_v50 = vsel %vm2012_vm6, %v5567_v30, %v13838_v16 }
 0x387   : > { %v9942_v44 = vpack.c.bf16 %v4617_v46, %v4616_v56  ;;  %v4128_v56 = vadd.f32 %v4091_v26, %v3874_v1  ;;  %v5195_v54 = vrot.slane %v5193_v42, 3  ;;  %6903 = vmatpush.bf16.msra.mxu2 %v9473_v51  ;;  %v3434_v45 = vadd.f32 %v13470_v18, %v3012_v12  ;;  %v15985_v1 = vld [vmem:[#allocation117_spill] sm:$0xff]  ;;  %v15986_v51 = vld [vmem:[#allocation104_spill] sm:$0xff] }
 0x388   : > { %v13862_v2 = vpack.c.bf16 %v5457_v17, %v5456_v61  ;;  %v5198_v33 = vrot.slane %v5196_v59, 4  ;;  %v5459_v8 = vmul.f32 %v13597_v22, %v15986_v51  ;;  %v15987_v17 = vld [vmem:[#allocation26_spill] sm:$0xff]  ;;  %v5573_v30 = vshrl.u32 %v13804_v47, 16 }
 0x389   : > { %10412 = vst [vmem:[#allocation3 + $0x78] sm:$0xff] %v9942_v44   ;;  %v13856_v46 = vunpack.c.l.bf16 %v9942_v44  ;;  %v13858_v29 = vunpack.c.h.bf16 %v9942_v44  ;;  %v3875_v44 = vadd.f32 %v13587_v63, %v15985_v1  ;;  %v7092_v59 = vmul.f32 %v15442_v31, %v15987_v17  ;;  %v15993_v51 = vld [vmem:[#allocation50_spill] sm:$0xff] }
 0x38a   : > { %v13871_v42 = vor.u32 %v5198_v33, %v5195_v54  ;;  %v4550_v18 = vadd.f32 %v13479_v43, %v4128_v56  ;;  %v15989_v63 = vunpack.c.h.bf16 %v13832_v20  ;;  %v5577_v1 = vshll.u32 %v13862_v2, 16  ;;  %v15990_v43 = vld [vmem:[#allocation103_spill] sm:$0xff] }
 0x38b   : > { %5744 = vmatmul.bf16.gmra.mxu3 %v5572_v50  ;;  %v5916_v52 = vmul.f32 %v13856_v46, %v15977_v37  ;;  %v5917_v26 = vmul.f32 %v13858_v29, %v15978_v11  ;;  %v13880_v50 = vld [vmem:[#allocation3 + $0x20] sm:$0xff]   ;;  %v15988_v11 = vld [vmem:[#allocation27_spill] sm:$0xff]  ;;  %v5458_v47 = vmul.f32 %v13536_v60, %v15990_v43  ;;  %v4782_v60 = vmul.f32 %v13858_v29, %v15993_v51 }
 0x38c   : > { %v7093_v54 = vmul.f32 %v15989_v63, %v15988_v11  ;;  %v13891_v17 = vsel %vm1184_vm4, %v5190_v39, %v13871_v42  ;;  %v3876_v6 = vadd.f32 %v13621_v57, %v3434_v45  ;;  %v15994_v45 = vld [vmem:[#allocation29_spill] sm:$0xff] }
 0x38d   : > { %v5309_v12 = vpop.f32.mrf.mxu2  ;;  %v5935_v61 = vpack.c.bf16 %v5917_v26, %v5916_v52  ;;  %v13897_v26 = vpop.f32.mrf.mxu0  ;;  %v13904_v39 = vpack.c.bf16 %v5459_v8, %v5458_v47  ;;  %v9504_v47 = vld [vmem:[%s15222_s4 + $0x1f0] sm:$0xff] }
 0x38e   : > { %v13886_v33 = vadd.f32 %v5309_v12, %v13712_v15  ;;  %v4094_v22 = vpop.f32.mrf.mxu3  ;;  %v13895_v56 = vpop.f32.mrf.mxu1  ;;  %15991 = vst [vmem:[#allocation135_spill] sm:$0xff] %v13897_v26  ;;  %v9505_v15 = vld [vmem:[%s15222_s4 + $0x1f8] sm:$0xff]  ;;  %v4586_v26 = vadd.f32 %v13574_v23, %v4550_v18  ;;  %v7124_v18 = vpack.c.bf16 %v7093_v54, %v7092_v59 }
 0x38f   : > { %v4129_v52 = vadd.f32 %v4094_v22, %v3875_v44  ;;  %v6081_v31 = vshrl.u32 %v5935_v61, 16  ;;  %v6084_v11 = vshll.u32 %v5935_v61, 16  ;;  %v15992_v12 = vld [vmem:[#allocation49_spill] sm:$0xff]  ;;  %v15444_v44 = vunpack.c.l.bf16 %v13880_v50  ;;  %7655 = vmatpush.bf16.msra.mxu0 %v9505_v15  ;;  %v15995_v15 = vld [vmem:[#allocation34_spill] sm:$0xff] }
 0x390   : > { %v4781_v63 = vmul.f32 %v13856_v46, %v15992_v12  ;;  %v9408_v37 = vld [vmem:[#allocation3 + $0x74] sm:$0xff]  ;;  %v9513_v22 = vld [vmem:[%s15222_s4 + $0x238] sm:$0xff]  ;;  %v4618_v59 = vmax.f32 %v4586_v26, 0.0 }
 0x391   : > { %v4551_v61 = vadd.f32 %v13514_v19, %v4129_v52  ;;  %v6083_v43 = vrot.slane %v6081_v31, 3  ;;  %v6086_v13 = vrot.slane %v6084_v11, 4  ;;  %5056 = vmatmul.bf16.gmra.mxu1 %v9408_v37  ;;  %v5575_v31 = vor.u32 %v5573_v30, %v13838_v16  ;;  %v9472_v26 = vld [vmem:[%s15222_s4 + $0x170] sm:$0xff] }
 0x392   : > { %5351 = vmatmul.bf16.gmra.mxu2 %v13825_v38  ;;  %v4799_v8 = vpack.c.bf16 %v4782_v60, %v4781_v63  ;;  %v13922_v52 = vrot.slane %v5577_v1, 1  ;;  %8105 = vmatpush.bf16.msra.mxu1 %v9513_v22  ;;  %v7094_v11 = vmul.f32 %v15444_v44, %v15994_v45  ;;  %v15996_v63 = vunpack.c.h.bf16 %v13880_v50 }
 0x393   : > { %v4587_v19 = vadd.f32 %v13574_v23, %v4551_v61  ;;  %v13924_v57 = vor.u32 %v6086_v13, %v6083_v43  ;;  %v5585_v13 = vshll.u32 %v13904_v39, 16  ;;  %7656 = vmatpush.bf16.msra.mxu0 %v9504_v47  ;;  %v15997_v47 = vld [vmem:[#allocation109_spill] sm:$0xff]  ;;  %6904 = vmatpush.bf16.msra.mxu2 %v9472_v26 }
 0x394   : > { %v5202_v38 = vshrl.u32 %v4799_v8, 16  ;;  %v5205_v37 = vshll.u32 %v4799_v8, 16  ;;  %v7095_v60 = vmul.f32 %v15996_v63, %v15995_v15  ;;  %v7166_v8 = vshrl.u32 %v7124_v18, 16 }
 0x395   : > { %v4619_v54 = vmax.f32 %v4587_v19, 0.0  ;;  %v5312_v61 = vpop.f32.mrf.mxu2  ;;  %v6088_v16 = vsel %vm1184_vm4, %v13816_v40, %v13924_v57  ;;  %v9503_v40 = vld [vmem:[%s15222_s4 + $0x1e8] sm:$0xff]  ;;  %v15998_v19 = vld [vmem:[#allocation110_spill] sm:$0xff]  ;;  %v7169_v63 = vshll.u32 %v7124_v18, 16 }
 0x396   : > { %v13937_v30 = vadd.f32 %v5312_v61, %v13743_v10  ;;  %v4096_v1 = vpop.f32.mrf.mxu3  ;;  %v5204_v43 = vrot.slane %v5202_v38, 3  ;;  %v5207_v22 = vrot.slane %v5205_v37, 4  ;;  %v13939_v15 = vpop.f32.mrf.mxu1  ;;  %6244 = vmatmul.bf16.gmra.mxu0 %v6088_v16  ;;  %v5460_v10 = vmul.f32 %v13599_v55, %v15997_v47  ;;  %v13960_v47 = vld [vmem:[#allocation3 + $0x28] sm:$0xff]  }
 0x397   : > { %v9947_v45 = vpack.c.bf16 %v4619_v54, %v4618_v59  ;;  %v4130_v44 = vadd.f32 %v4096_v1, %v3876_v6  ;;  %v5461_v38 = vmul.f32 %v13653_v62, %v15998_v19  ;;  %v5580_v6 = vsel %vm2012_vm6, %v5575_v31, %v13922_v52  ;;  %v13956_v61 = vpop.f32.mrf.mxu0  ;;  %7657 = vmatpush.bf16.msra.mxu0 %v9503_v40 }
 0x398   : > { %v13953_v37 = vor.u32 %v5207_v22, %v5204_v43  ;;  %v7125_v59 = vpack.c.bf16 %v7095_v60, %v7094_v11  ;;  %15999 = vst [vmem:[#allocation99_spill] sm:$0xff] %v13956_v61  ;;  %v13962_v62 = vrot.slane %v5585_v13, 1  ;;  %v9471_v13 = vld [vmem:[%s15222_s4 + $0x168] sm:$0xff]  ;;  %v5589_v22 = vshrl.u32 %v13904_v39, 16  ;;  %v16000_v39 = vld [vmem:[#allocation44_spill] sm:$0xff] }
 0x399   : > { %10413 = vst [vmem:[#allocation3 + $0x80] sm:$0xff] %v9947_v45   ;;  %v4552_v54 = vadd.f32 %v13549_v27, %v4130_v44  ;;  %v10127_v16 = vunpack.c.l.bf16 %v9947_v45  ;;  %v10128_v1 = vunpack.c.h.bf16 %v9947_v45  ;;  %v13958_v55 = vpack.c.bf16 %v5461_v38, %v5460_v10  ;;  %6905 = vmatpush.bf16.msra.mxu2 %v9471_v13 }
 0x39a   : > { %v13967_v18 = vsel %vm1184_vm4, %v13871_v42, %v13953_v37  ;;  %v7168_v27 = vrot.slane %v7166_v8, 3  ;;  %v9502_v42 = vld [vmem:[%s15222_s4 + $0x1e0] sm:$0xff]  ;;  %v7175_v45 = vshrl.u32 %v7125_v59, 16  ;;  %v16001_v8 = vunpack.c.l.bf16 %v13960_v47 }
 0x39b   : > { %v4588_v44 = vadd.f32 %v13574_v23, %v4552_v54  ;;  %5749 = vmatmul.bf16.gmra.mxu3 %v5580_v6  ;;  %v5918_v11 = vmul.f32 %v10127_v16, %v15992_v12  ;;  %v5919_v60 = vmul.f32 %v10128_v1, %v15993_v51  ;;  %v5593_v43 = vshll.u32 %v13958_v55, 16  ;;  %7658 = vmatpush.bf16.msra.mxu0 %v9502_v42 }
 0x39c   : > { %v7171_v23 = vrot.slane %v7169_v63, 4  ;;  %v7178_v6 = vshll.u32 %v7125_v59, 16  ;;  %v5591_v1 = vor.u32 %v5589_v22, %v13962_v62  ;;  %v7177_v31 = vrot.slane %v7175_v45, 3  ;;  %v9501_v59 = vld [vmem:[%s15222_s4 + $0x1d8] sm:$0xff] }
 0x39d   : > { %v4620_v26 = vmax.f32 %v4588_v44, 0.0  ;;  %v5314_v40 = vpop.f32.mrf.mxu2  ;;  %v5936_v10 = vpack.c.bf16 %v5919_v60, %v5918_v11  ;;  %v13982_v38 = vrot.slane %v5593_v43, 1  ;;  %v7096_v63 = vmul.f32 %v16001_v8, %v16000_v39  ;;  %v16002_v45 = vld [vmem:[#allocation45_spill] sm:$0xff] }
 0x39e   : > { %v13985_v54 = vadd.f32 %v5314_v40, %v13772_v9  ;;  %v5710_v16 = vpop.f32.mrf.mxu3  ;;  %v13994_v11 = vpop.f32.mrf.mxu1  ;;  %v9470_v9 = vld [vmem:[%s15222_s4 + $0x160] sm:$0xff]  ;;  %v7180_v22 = vrot.slane %v7178_v6, 4  ;;  %v9500_v6 = vld [vmem:[%s15222_s4 + $0x1d0] sm:$0xff] }
 0x39f   : > { %v4652_v51 = vpack.c.bf16 %v4620_v26, %v4620_v26  ;;  %v13992_v44 = vadd.f32 %v5710_v16, %v13645_v58  ;;  %v6090_v60 = vshrl.u32 %v5936_v10, 16  ;;  %v6093_v43 = vshll.u32 %v5936_v10, 16  ;;  %6906 = vmatpush.bf16.msra.mxu2 %v9470_v9  ;;  %7659 = vmatpush.bf16.msra.mxu0 %v9501_v59  ;;  %v9469_v10 = vld [vmem:[%s15222_s4 + $0x158] sm:$0xff] }
 0x3a0   : > { %v9409_v13 = vld [vmem:[#allocation3 + $0x7c] sm:$0xff]  ;;  %v14004_v42 = vsel %vm2012_vm6, %v5591_v1, %v13982_v38  ;;  %v16003_v26 = vunpack.c.h.bf16 %v13960_v47  ;;  %v7181_v16 = vor.u32 %v7180_v22, %v7177_v31  ;;  %v14018_v1 = vpop.f32.mrf.mxu0  ;;  %v5581_v9 = vshrl.u32 %v13862_v2, 16 }
 0x3a1   : > { %4684 = vst [vmem:[#allocation3 + $0x88] sm:$0xf] %v4652_v51  ;;  %v6092_v58 = vrot.slane %v6090_v60, 3  ;;  %v6095_v8 = vrot.slane %v6093_v43, 4  ;;  %5061 = vmatmul.bf16.gmra.mxu1 %v9409_v13  ;;  %v14016_v51 = vor.u32 %v7171_v23, %v7168_v27 }
 0x3a2   : > { %v7097_v40 = vmul.f32 %v16003_v26, %v16002_v45  ;;  %5356 = vmatmul.bf16.gmra.mxu2 %v13891_v17  ;;  %16004 = vst [vmem:[#allocation125_spill] sm:$0xff] %v14018_v1  ;;  %v5583_v2 = vor.u32 %v5581_v9, %v13922_v52  ;;  %v14052_v9 = vld [vmem:[#allocation3 + $0x30] sm:$0xff]   ;;  %v16010_v1 = vld [vmem:[#allocation57_spill] sm:$0xff] }
 0x3a3   : > { %v14020_v39 = vor.u32 %v6095_v8, %v6092_v58  ;;  %v14024_v17 = vsel %vm1184_vm4, %v14016_v51, %v7181_v16  ;;  %6907 = vmatpush.bf16.msra.mxu2 %v9469_v10  ;;  %7660 = vmatpush.bf16.msra.mxu0 %v9500_v6  ;;  %v9499_v8 = vld [vmem:[%s15222_s4 + $0x1c8] sm:$0xff]  ;;  %v15447_v12 = vunpack.c.l.bf16 %v14052_v9 }
 0x3a4   : > { %v7126_v60 = vpack.c.bf16 %v7097_v40, %v7096_v63  ;;  %v4717_v63 = vld [vmem:[#allocation3 + $0x80] sm:$0xf] }
 0x3a5   : > { %v5317_v43 = vpop.f32.mrf.mxu2  ;;  %v6097_v59 = vsel %vm1184_vm4, %v13924_v57, %v14020_v39  ;;  %v9468_v57 = vld [vmem:[%s15222_s4 + $0x150] sm:$0xff]  ;;  %v16006_v40 = vld [vmem:[#allocation113_spill] sm:$0xff] }
 0x3a6   : > { %v7184_v27 = vshrl.u32 %v7126_v60, 16  ;;  %v7187_v31 = vshll.u32 %v7126_v60, 16  ;;  %v14031_v23 = vadd.f32 %v5317_v43, %v13806_v25  ;;  %v5712_v13 = vpop.f32.mrf.mxu3  ;;  %v14036_v58 = vpop.f32.mrf.mxu1  ;;  %6249 = vmatmul.bf16.gmra.mxu0 %v6097_v59  ;;  %v9496_v25 = vld [vmem:[%s15222_s4 + $0x1b0] sm:$0xff]  ;;  %v5463_v52 = vmul.f32 %v13715_v41, %v16006_v40  ;;  %v16007_v41 = vld [vmem:[#allocation46_spill] sm:$0xff] }
 0x3a7   : > { %v14034_v22 = vadd.f32 %v5712_v13, %v13682_v24  ;;  %v16005_v24 = vld [vmem:[#allocation114_spill] sm:$0xff]  ;;  %v4750_v43 = vunpack.c.l.bf16 %v4717_v63  ;;  %6908 = vmatpush.bf16.msra.mxu2 %v9468_v57  ;;  %7661 = vmatpush.bf16.msra.mxu0 %v9499_v8  ;;  %v5588_v59 = vsel %vm2012_vm6, %v5583_v2, %v13962_v62  ;;  %v5597_v62 = vshrl.u32 %v13958_v55, 16  ;;  %v16008_v8 = vld [vmem:[#allocation53_spill] sm:$0xff] }
 0x3a8   : > { %v5854_v45 = vld [vmem:[#allocation3 + $0x88] sm:$0xf]  ;;  %v5462_v26 = vmul.f32 %v13655_v49, %v16005_v24  ;;  %v7186_v10 = vrot.slane %v7184_v27, 3  ;;  %v7189_v6 = vrot.slane %v7187_v31, 4  ;;  %7374 = vmatpush.bf16.msra.mxu3 %v9496_v25  ;;  %v9467_v31 = vld [vmem:[%s15222_s4 + $0x148] sm:$0xff]  ;;  %v7098_v25 = vmul.f32 %v15447_v12, %v16008_v8 }
 0x3a9   : > { %v5887_v60 = vunpack.c.l.bf16 %v5854_v45  ;;  %v9498_v63 = vld [vmem:[%s15222_s4 + $0x1c0] sm:$0xff]  ;;  %v14072_v45 = vpop.f32.mrf.mxu0  ;;  %v16011_v8 = vunpack.c.h.bf16 %v14052_v9 }
 0x3aa   : > { %v14056_v13 = vpack.c.bf16 %v5463_v52, %v5462_v26  ;;  %v7190_v57 = vor.u32 %v7189_v6, %v7186_v10  ;;  %16009 = vst [vmem:[#allocation130_spill] sm:$0xff] %v14072_v45  ;;  %v5599_v6 = vor.u32 %v5597_v62, %v13982_v38 }
 0x3ab   : > { %5754 = vmatmul.bf16.gmra.mxu3 %v5588_v59  ;;  %v5920_v27 = vmul.f32 %v5887_v60, %v16007_v41  ;;  %v4783_v60 = vmul.f32 %v4750_v43, %v16007_v41  ;;  %6909 = vmatpush.bf16.msra.mxu2 %v9467_v31  ;;  %v7099_v12 = vmul.f32 %v16011_v8, %v16010_v1 }
 0x3ac   : > { %v5601_v2 = vshll.u32 %v14056_v13, 16  ;;  %7662 = vmatpush.bf16.msra.mxu0 %v9498_v63  ;;  %v14076_v59 = vsel %vm1184_vm4, %v7181_v16, %v7190_v57  ;;  %v9434_v16 = vld [vmem:[#allocation3 + $0xc] sm:$0xff] }
 0x3ad   : > { %v5319_v26 = vpop.f32.mrf.mxu2  ;;  %v5937_v52 = vpack.c.bf16 %v5920_v27, %v5920_v27  ;;  %v7127_v38 = vpack.c.bf16 %v7099_v12, %v7098_v25  ;;  %v4800_v41 = vpack.c.bf16 %v4783_v60, %v4783_v60 }
 0x3ae   : > { %v14079_v10 = vadd.f32 %v5319_v26, %v13843_v7  ;;  %v5715_v55 = vpop.f32.mrf.mxu3  ;;  %v5603_v49 = vrot.slane %v5601_v2, 1  ;;  %v14088_v43 = vpop.f32.mrf.mxu1  ;;  %v9466_v7 = vld [vmem:[%s15222_s4 + $0x140] sm:$0xff] }
 0x3af   : > { %v14086_v27 = vadd.f32 %v5715_v55, %v13706_v5  ;;  %v6099_v31 = vshrl.u32 %v5937_v52, 16  ;;  %v6102_v63 = vshll.u32 %v5937_v52, 16  ;;  %6910 = vmatpush.bf16.msra.mxu2 %v9466_v7  ;;  %v9512_v5 = vld [vmem:[%s15222_s4 + $0x230] sm:$0xff]  ;;  %v7193_v1 = vshrl.u32 %v7127_v38, 16 }
 0x3b0   : > { %v14094_v26 = vsel %vm2012_vm6, %v5599_v6, %v5603_v49  ;;  %v7196_v52 = vshll.u32 %v7127_v38, 16  ;;  %8106 = vmatpush.bf16.msra.mxu1 %v9512_v5  ;;  %v5211_v25 = vshrl.u32 %v4800_v41, 16  ;;  %v5214_v60 = vshll.u32 %v4800_v41, 16  ;;  %v16014_v5 = vld [vmem:[#allocation120_spill] sm:$0xff]  ;;  %v10459_v41 = vld [vmem:[#allocation3 + $0x10] sm:$0xff]  }
 0x3b1   : > { %v6101_v62 = vrot.slane %v6099_v31, 3  ;;  %v6104_v2 = vrot.slane %v6102_v63, 4  ;;  %6461 = vmatmul.bf16.vlgmr.msrb.gmra.mxu1 %v9434_v16  ;;  %v7195_v8 = vrot.slane %v7193_v1, 3  ;;  %v14105_v7 = vpop.f32.mrf.mxu0 }
 0x3b2   : > { %5361 = vmatmul.bf16.gmra.mxu2 %v13967_v18  ;;  %v7198_v45 = vrot.slane %v7196_v52, 4  ;;  %16012 = vst [vmem:[#allocation102_spill] sm:$0xff] %v14105_v7  ;;  %v5213_v1 = vrot.slane %v5211_v25, 3 }
 0x3b3   : > { %v6105_v55 = vor.u32 %v6104_v2, %v6101_v62  ;;  %v16013_v62 = vld [vmem:[#allocation119_spill] sm:$0xff] }
 0x3b4   : > { %v7199_v63 = vor.u32 %v7198_v45, %v7195_v8  ;;  %v5464_v2 = vmul.f32 %v13717_v48, %v16013_v62  ;;  %v5216_v45 = vrot.slane %v5214_v60, 4  ;;  %v10131_v48 = vunpack.c.l.bf16 %v10459_v41  ;;  %v16016_v60 = vld [vmem:[#allocation62_spill] sm:$0xff] }
 0x3b5   : > { %v5322_v6 = vpop.f32.mrf.mxu2  ;;  %v6106_v12 = vsel %vm1184_vm4, %v14020_v39, %v6105_v55  ;;  %v5465_v39 = vmul.f32 %v13775_v34, %v16014_v5  ;;  %v14121_v55 = vld [vmem:[#allocation3 + $0x38] sm:$0xff]   ;;  %v5605_v34 = vshrl.u32 %v14056_v13, 16 }
 0x3b6   : > { %v14103_v31 = vadd.f32 %v5322_v6, %v13895_v56  ;;  %v5717_v18 = vpop.f32.mrf.mxu3  ;;  %v14110_v38 = vpop.f32.mrf.mxu1  ;;  %6254 = vmatmul.bf16.gmra.mxu0 %v6106_v12  ;;  %v14117_v56 = vsel %vm1184_vm4, %v7190_v57, %v7199_v63  ;;  %v15449_v8 = vunpack.c.l.bf16 %v14121_v55  ;;  %v15450_v6 = vunpack.c.h.bf16 %v14121_v55  ;;  %v16015_v57 = vld [vmem:[#allocation61_spill] sm:$0xff] }
 0x3b7   : > { %v14108_v16 = vadd.f32 %v5717_v18, %v13739_v35  ;;  %v14119_v52 = vpack.c.bf16 %v5465_v39, %v5464_v2  ;;  %v6574_v35 = vld [vmem:[#allocation3 + $0xc] sm:$0xf]  ;;  %v5217_v39 = vor.u32 %v5216_v45, %v5213_v1  ;;  %v5607_v61 = vor.u32 %v5605_v34, %v5603_v49  ;;  %v9435_v1 = vld [vmem:[#allocation3 + $0x14] sm:$0xff] }
 0x3b8   : > { %v7100_v25 = vmul.f32 %v15449_v8, %v16015_v57  ;;  %v7101_v18 = vmul.f32 %v15450_v6, %v16016_v60  ;;  %v6607_v7 = vunpack.c.l.bf16 %v6574_v35  ;;  %v10132_v57 = vunpack.c.h.bf16 %v10459_v41  ;;  %v16018_v34 = vld [vmem:[#allocation18_spill] sm:$0xff] }
 0x3b9   : > { %v5609_v12 = vshll.u32 %v14119_v52, 16  ;;  %v6641_v8 = vmul.f32 %v10131_v48, %v15906_v53  ;;  %v14146_v35 = vpop.f32.mrf.mxu0  ;;  %v9474_v53 = vld [vmem:[#allocation3 + $0x14] sm:$0xff] }
 0x3ba   : > { %v7128_v13 = vpack.c.bf16 %v7101_v18, %v7100_v25  ;;  %16017 = vst [vmem:[#allocation43_spill] sm:$0xff] %v14146_v35 }
 0x3bb   : > { %5759 = vmatmul.bf16.gmra.mxu3 %v14004_v42  ;;  %v5611_v24 = vrot.slane %v5609_v12, 1  ;;  %v6640_v12 = vmul.f32 %v6607_v7, %v16018_v34 }
 0x3bc   : > { %v7202_v45 = vshrl.u32 %v7128_v13, 16  ;;  %v7205_v49 = vshll.u32 %v7128_v13, 16 }
 0x3bd   : > { %v5324_v2 = vpop.f32.mrf.mxu2  ;;  %v14144_v60 = vsel %vm2012_vm6, %v5607_v61, %v5611_v24  ;;  %v16021_v61 = vld [vmem:[#allocation31_spill] sm:$0xff] }
 0x3be   : > { %v14135_v42 = vadd.f32 %v5324_v2, %v13939_v15  ;;  %v5720_v40 = vpop.f32.mrf.mxu3  ;;  %v14140_v62 = vpop.f32.mrf.mxu1  ;;  %v5218_v15 = vsel %vm1184_vm4, %v13953_v37, %v5217_v39  ;;  %v7204_v41 = vrot.slane %v7202_v45, 3  ;;  %v7207_v48 = vrot.slane %v7205_v49, 4  ;;  %v16022_v45 = vld [vmem:[#allocation126_spill] sm:$0xff] }
 0x3bf   : > { %v14138_v19 = vadd.f32 %v5720_v40, %v13766_v36  ;;  %v16019_v36 = vld [vmem:[#allocation33_spill] sm:$0xff]  ;;  %v16020_v40 = vunpack.c.l.bf16 %v13832_v20  ;;  %v6642_v18 = vmul.f32 %v10132_v57, %v16021_v61  ;;  %v6673_v2 = vpack.c.bf16 %v6641_v8, %v6640_v12  ;;  %v9495_v8 = vld [vmem:[%s15222_s4 + $0x1a8] sm:$0xff] }
 0x3c0   : > { %v7208_v6 = vor.u32 %v7207_v48, %v7204_v41  ;;  %v5466_v49 = vmul.f32 %v13777_v4, %v16022_v45  ;;  %7375 = vmatpush.bf16.msra.mxu3 %v9495_v8  ;;  %v5613_v4 = vshrl.u32 %v14119_v52, 16 }
 0x3c1   : > { %v6643_v25 = vmul.f32 %v16020_v40, %v16019_v36  ;;  %6466 = vmatmul.bf16.gmra.mxu1 %v9435_v1  ;;  %v6710_v57 = vshll.u32 %v6673_v2, 16  ;;  %v14182_v41 = vpop.f32.mrf.mxu0 }
 0x3c2   : > { %5366 = vmatmul.bf16.gmra.mxu2 %v5218_v15  ;;  %v14161_v39 = vsel %vm1184_vm4, %v7199_v63, %v7208_v6  ;;  %16024 = vst [vmem:[#allocation55_spill] sm:$0xff] %v14182_v41  ;;  %v5615_v36 = vor.u32 %v5613_v4, %v5611_v24 }
 0x3c3   : > { %v14155_v35 = vpack.c.bf16 %v6643_v25, %v6642_v18  ;;  %v6712_v48 = vrot.slane %v6710_v57, 1  ;;  %v16025_v18 = vld [vmem:[#allocation68_spill] sm:$0xff] }
 0x3c5   : > { %v5327_v13 = vpop.f32.mrf.mxu2  ;;  %v6715_v63 = vshll.u32 %v14155_v35, 16 }
 0x3c6   : > { %v14158_v37 = vadd.f32 %v5327_v13, %v13994_v11  ;;  %v5722_v7 = vpop.f32.mrf.mxu3  ;;  %v14166_v1 = vpop.f32.mrf.mxu1  ;;  %7663 = vmatmul.bf16.vlgmr.msra.gmra.mxu0 %v9474_v53  ;;  %v16023_v11 = vld [vmem:[#allocation127_spill] sm:$0xff] }
 0x3c7   : > { %v14164_v15 = vadd.f32 %v5722_v7, %v13802_v3  ;;  %v5467_v12 = vmul.f32 %v13856_v46, %v16023_v11  ;;  %v14178_v3 = vld [vmem:[#allocation3 + $0x40] sm:$0xff]   ;;  %v6717_v61 = vrot.slane %v6715_v63, 1 }
 0x3c8   : > { %v15453_v53 = vunpack.c.l.bf16 %v14178_v3  ;;  %v15452_v25 = vunpack.c.h.bf16 %v14178_v3  ;;  %v16026_v7 = vld [vmem:[#allocation69_spill] sm:$0xff] }
 0x3c9   : > { %v14176_v40 = vpack.c.bf16 %v5467_v12, %v5466_v49  ;;  %v6708_v12 = vshrl.u32 %v6673_v2, 16  ;;  %v9436_v2 = vld [vmem:[#allocation3 + $0x1c] sm:$0xff] }
 0x3ca   : > { %v7102_v13 = vmul.f32 %v15453_v53, %v16025_v18  ;;  %v7103_v8 = vmul.f32 %v15452_v25, %v16026_v7  ;;  %v9475_v25 = vld [vmem:[#allocation3 + $0x1c] sm:$0xff] }
 0x3cb   : > { %5764 = vmatmul.bf16.gmra.mxu3 %v14094_v26  ;;  %v5617_v46 = vshll.u32 %v14176_v40, 16  ;;  %v6713_v18 = vor.u32 %v6712_v48, %v6708_v12 }
 0x3cc   : > { %v7129_v57 = vpack.c.bf16 %v7103_v8, %v7102_v13  ;;  %v16030_v8 = vld [vmem:[#allocation39_spill] sm:$0xff] }
 0x3cd   : > { %v5329_v49 = vpop.f32.mrf.mxu2  ;;  %v14193_v41 = vrot.slane %v5617_v46, 1  ;;  %v6718_v4 = vsel %vm2012_vm6, %v6713_v18, %v6717_v61  ;;  %v16028_v46 = vld [vmem:[#allocation40_spill] sm:$0xff] }
 0x3ce   : > { %v14196_v26 = vadd.f32 %v5329_v49, %v14036_v58  ;;  %v5725_v52 = vpop.f32.mrf.mxu3  ;;  %v14201_v11 = vpop.f32.mrf.mxu1  ;;  %v7211_v63 = vshrl.u32 %v7129_v57, 16  ;;  %v7214_v24 = vshll.u32 %v7129_v57, 16  ;;  %v16029_v58 = vunpack.c.l.bf16 %v13880_v50 }
 0x3cf   : > { %v14199_v34 = vadd.f32 %v5725_v52, %v13835_v21  ;;  %v14205_v7 = vsel %vm2012_vm6, %v5615_v36, %v14193_v41  ;;  %v9511_v21 = vld [vmem:[%s15222_s4 + $0x228] sm:$0xff]  ;;  %v16031_v36 = vunpack.c.h.bf16 %v13832_v20  ;;  %v14217_v57 = vpop.f32.mrf.mxu0 }
 0x3d0   : > { %v6645_v49 = vmul.f32 %v16029_v58, %v16028_v46  ;;  %v7213_v48 = vrot.slane %v7211_v63, 3  ;;  %v7216_v13 = vrot.slane %v7214_v24, 4  ;;  %8107 = vmatpush.bf16.msra.mxu1 %v9511_v21  ;;  %16032 = vst [vmem:[#allocation23_spill] sm:$0xff] %v14217_v57  ;;  %v14233_v21 = vld [vmem:[#allocation3 + $0x48] sm:$0xff]  }
 0x3d1   : > { %16027 = vst [vmem:[#allocation63_spill] sm:$0xff] %v14199_v34  ;;  %6471 = vmatmul.bf16.gmra.mxu1 %v9436_v2  ;;  %v6644_v12 = vmul.f32 %v16031_v36, %v16030_v8  ;;  %v9437_v57 = vld [vmem:[#allocation3 + $0x24] sm:$0xff] }
 0x3d2   : > { %6911 = vmatmul.bf16.vlgmr.msra.gmra.mxu2 %v6718_v4  ;;  %v7217_v52 = vor.u32 %v7216_v13, %v7213_v48  ;;  %v15455_v48 = vunpack.c.h.bf16 %v14233_v21 }
 0x3d3   : > { %v14219_v53 = vpack.c.bf16 %v6645_v49, %v6644_v12  ;;  %v15454_v49 = vunpack.c.l.bf16 %v14233_v21  ;;  %v16036_v12 = vld [vmem:[#allocation76_spill] sm:$0xff] }
 0x3d4   : > { %v14225_v58 = vsel %vm1184_vm4, %v7208_v6, %v7217_v52 }
 0x3d5   : > { %v5332_v18 = vpop.f32.mrf.mxu2  ;;  %16033 = vst [vmem:[#allocation28_spill] sm:$0xff] %v14225_v58  ;;  %v6723_v24 = vshll.u32 %v14219_v53, 16  ;;  %v16040_v58 = vunpack.c.l.bf16 %v13960_v47 }
 0x3d6   : > { %v14222_v2 = vadd.f32 %v5332_v18, %v14088_v43  ;;  %v5727_v4 = vpop.f32.mrf.mxu3  ;;  %v14230_v20 = vpop.f32.mrf.mxu1  ;;  %7668 = vmatmul.bf16.gmra.mxu0 %v9475_v25  ;;  %v16035_v43 = vld [vmem:[#allocation77_spill] sm:$0xff]  ;;  %v7105_v25 = vmul.f32 %v15455_v48, %v16036_v12 }
 0x3d7   : > { %v14228_v63 = vadd.f32 %v5727_v4, %v13886_v33  ;;  %v7104_v6 = vmul.f32 %v15454_v49, %v16035_v43  ;;  %v6719_v33 = vshrl.u32 %v14155_v35, 16  ;;  %v6725_v36 = vrot.slane %v6723_v24, 1  ;;  %v14248_v8 = vpop.f32.mrf.mxu0  ;;  %v16039_v24 = vld [vmem:[#allocation52_spill] sm:$0xff] }
 0x3d8   : > { %16037 = vst [vmem:[#allocation129_spill] sm:$0xff] %v14248_v8  ;;  %v6647_v12 = vmul.f32 %v16040_v58, %v16039_v24  ;;  %v16042_v8 = vunpack.c.h.bf16 %v13880_v50  ;;  %v9494_v50 = vld [vmem:[%s15222_s4 + $0x1a0] sm:$0xff] }
 0x3d9   : > { %16034 = vst [vmem:[#allocation30_spill] sm:$0xff] %v14228_v63  ;;  %v6721_v43 = vor.u32 %v6719_v33, %v6717_v61  ;;  %v7130_v49 = vpack.c.bf16 %v7105_v25, %v7104_v6  ;;  %v9476_v6 = vld [vmem:[#allocation3 + $0x24] sm:$0xff]  ;;  %7376 = vmatpush.bf16.msra.mxu3 %v9494_v50 }
 0x3db   : > { %5769 = vmatmul.bf16.gmra.mxu3 %v14144_v60  ;;  %v6726_v35 = vsel %vm2012_vm6, %v6721_v43, %v6725_v36  ;;  %v7220_v48 = vshrl.u32 %v7130_v49, 16 }
 0x3dd   : > { %v5334_v13 = vpop.f32.mrf.mxu2 }
 0x3de   : > { %v14246_v18 = vadd.f32 %v5334_v13, %v14110_v38  ;;  %v5730_v4 = vpop.f32.mrf.mxu3  ;;  %v14253_v46 = vpop.f32.mrf.mxu1  ;;  %v7223_v38 = vshll.u32 %v7130_v49, 16  ;;  %v16041_v13 = vld [vmem:[#allocation47_spill] sm:$0xff] }
 0x3df   : > { %v14251_v60 = vadd.f32 %v5730_v4, %v13937_v30  ;;  %v6646_v30 = vmul.f32 %v16042_v8, %v16041_v13  ;;  %v5403_v4 = vld [vmem:[#allocation3 + $0x80] sm:$0xf] }
 0x3e0   : > { %v7225_v63 = vrot.slane %v7223_v38, 4  ;;  %v5436_v49 = vunpack.c.l.bf16 %v5403_v4  ;;  %v16049_v38 = vld [vmem:[#allocation7_spill] sm:$0xff] }
 0x3e1   : > { %16038 = vst [vmem:[#allocation78_spill] sm:$0xff] %v14251_v60  ;;  %6476 = vmatmul.bf16.gmra.mxu1 %v9437_v57  ;;  %v7222_v60 = vrot.slane %v7220_v48, 3  ;;  %v14262_v33 = vpack.c.bf16 %v6647_v12, %v6646_v30  ;;  %v14284_v48 = vld [vmem:[#allocation3 + $0x50] sm:$0xff]   ;;  %v16047_v30 = vld [vmem:[#allocation132_spill] sm:$0xff] }
 0x3e2   : > { %6916 = vmatmul.bf16.gmra.mxu2 %v6726_v35  ;;  %v15456_v12 = vunpack.c.l.bf16 %v14284_v48  ;;  %v5468_v4 = vmul.f32 %v13858_v29, %v16047_v30  ;;  %v9478_v30 = vld [vmem:[#allocation3 + $0x34] sm:$0xff] }
 0x3e3   : > { %v14264_v25 = vor.u32 %v7225_v63, %v7222_v60  ;;  %v14281_v63 = vpop.f32.mrf.mxu0 }
 0x3e4   : > { %16045 = vst [vmem:[#allocation83_spill] sm:$0xff] %v14281_v63 }
 0x3e5   : > { %v5337_v61 = vpop.f32.mrf.mxu2  ;;  %v14279_v8 = vsel %vm1184_vm4, %v7217_v52, %v14264_v25  ;;  %v9493_v52 = vld [vmem:[%s15222_s4 + $0x198] sm:$0xff] }
 0x3e6   : > { %v14267_v43 = vadd.f32 %v5337_v61, %v14140_v62  ;;  %v5732_v58 = vpop.f32.mrf.mxu3  ;;  %v14272_v35 = vpop.f32.mrf.mxu1  ;;  %7673 = vmatmul.bf16.gmra.mxu0 %v9476_v6  ;;  %16044 = vst [vmem:[#allocation82_spill] sm:$0xff] %v14279_v8  ;;  %v6731_v62 = vshll.u32 %v14262_v33, 16  ;;  %v16048_v61 = vld [vmem:[#allocation6_spill] sm:$0xff]  ;;  %7377 = vmatpush.bf16.msra.mxu3 %v9493_v52 }
 0x3e7   : > { %v14270_v57 = vadd.f32 %v5732_v58, %v13985_v54  ;;  %v16046_v54 = vld [vmem:[#allocation51_spill] sm:$0xff]  ;;  %v7106_v6 = vmul.f32 %v15456_v12, %v16048_v61 }
 0x3e8   : > { %v5469_v60 = vmul.f32 %v5436_v49, %v16046_v54  ;;  %v6727_v49 = vshrl.u32 %v14219_v53, 16  ;;  %v14299_v50 = vrot.slane %v6731_v62, 1  ;;  %v9492_v53 = vld [vmem:[%s15222_s4 + $0x190] sm:$0xff]  ;;  %v9438_v52 = vld [vmem:[#allocation3 + $0x2c] sm:$0xff] }
 0x3e9   : > { %16043 = vst [vmem:[#allocation75_spill] sm:$0xff] %v14270_v57 }
 0x3ea   : > { %v14307_v8 = vpack.c.bf16 %v5469_v60, %v5468_v4  ;;  %v6729_v12 = vor.u32 %v6727_v49, %v6725_v36  ;;  %7378 = vmatpush.bf16.msra.mxu3 %v9492_v53  ;;  %v16056_v49 = vunpack.c.h.bf16 %v13960_v47 }
 0x3eb   : > { %5774 = vmatmul.bf16.gmra.mxu3 %v14205_v7  ;;  %v16050_v7 = vunpack.c.h.bf16 %v14284_v48 }
 0x3ec   : > { %v5625_v36 = vshll.u32 %v14307_v8, 16 }
 0x3ed   : > { %v5339_v58 = vpop.f32.mrf.mxu2  ;;  %v7107_v13 = vmul.f32 %v16050_v7, %v16049_v38  ;;  %v6734_v38 = vsel %vm2012_vm6, %v6729_v12, %v14299_v50  ;;  %v14329_v12 = vpop.f32.mrf.mxu0 }
 0x3ee   : > { %v14305_v24 = vadd.f32 %v5339_v58, %v14166_v1  ;;  %v5735_v63 = vpop.f32.mrf.mxu3  ;;  %v14312_v61 = vpop.f32.mrf.mxu1  ;;  %v16052_v1 = vld [vmem:[#allocation56_spill] sm:$0xff]  ;;  %v16053_v58 = vunpack.c.l.bf16 %v14052_v9  ;;  %16054 = vst [vmem:[#allocation91_spill] sm:$0xff] %v14329_v12  ;;  %v5621_v12 = vshrl.u32 %v14176_v40, 16  ;;  %v5627_v54 = vrot.slane %v5625_v36, 1 }
 0x3ef   : > { %v14310_v29 = vadd.f32 %v5735_v63, %v14031_v23  ;;  %v7131_v62 = vpack.c.bf16 %v7107_v13, %v7106_v6  ;;  %v9510_v63 = vld [vmem:[%s15222_s4 + $0x220] sm:$0xff]  ;;  %v9491_v13 = vld [vmem:[%s15222_s4 + $0x188] sm:$0xff]  ;;  %v14354_v36 = vld [vmem:[#allocation3 + $0x58] sm:$0xff]  }
 0x3f0   : > { %v6649_v60 = vmul.f32 %v16053_v58, %v16052_v1  ;;  %v16055_v6 = vld [vmem:[#allocation58_spill] sm:$0xff]  ;;  %8108 = vmatpush.bf16.msra.mxu1 %v9510_v63  ;;  %v5404_v1 = vld [vmem:[#allocation3 + $0x84] sm:$0x1]  ;;  %7379 = vmatpush.bf16.msra.mxu3 %v9491_v13  ;;  %v15458_v13 = vunpack.c.h.bf16 %v14354_v36 }
 0x3f1   : > { %16051 = vst [vmem:[#allocation111_spill] sm:$0xff] %v14310_v29  ;;  %v7229_v4 = vshrl.u32 %v7131_v62, 16  ;;  %v7232_v23 = vshll.u32 %v7131_v62, 16  ;;  %6481 = vmatmul.bf16.gmra.mxu1 %v9438_v52  ;;  %v6648_v7 = vmul.f32 %v16056_v49, %v16055_v6  ;;  %v5437_v63 = vunpack.c.l.bf16 %v5404_v1  ;;  %v16059_v49 = vld [vmem:[#allocation131_spill] sm:$0xff] }
 0x3f2   : > { %6921 = vmatmul.bf16.gmra.mxu2 %v6734_v38  ;;  %v9477_v38 = vld [vmem:[#allocation3 + $0x2c] sm:$0xff] }
 0x3f3   : > { %v7231_v53 = vrot.slane %v7229_v4, 3  ;;  %v7234_v62 = vrot.slane %v7232_v23, 4  ;;  %v14334_v58 = vpack.c.bf16 %v6649_v60, %v6648_v7  ;;  %v9490_v60 = vld [vmem:[%s15222_s4 + $0x180] sm:$0xff]  ;;  %v5470_v7 = vmul.f32 %v5437_v63, %v16059_v49 }
 0x3f4   : > { %7380 = vmatpush.bf16.msra.mxu3 %v9490_v60 }
 0x3f5   : > { %v5342_v52 = vpop.f32.mrf.mxu2  ;;  %v7235_v29 = vor.u32 %v7234_v62, %v7231_v53  ;;  %v6739_v40 = vshll.u32 %v14334_v58, 16  ;;  %v16060_v53 = vld [vmem:[#allocation4_spill] sm:$0xff] }
 0x3f6   : > { %v14337_v57 = vadd.f32 %v5342_v52, %v14201_v11  ;;  %v5737_v34 = vpop.f32.mrf.mxu3  ;;  %v14343_v4 = vpop.f32.mrf.mxu1  ;;  %7678 = vmatmul.bf16.gmra.mxu0 %v9477_v38  ;;  %v5623_v11 = vor.u32 %v5621_v12, %v14193_v41  ;;  %v16061_v41 = vld [vmem:[#allocation5_spill] sm:$0xff]  ;;  %v6735_v52 = vshrl.u32 %v14262_v33, 16 }
 0x3f7   : > { %v14341_v47 = vadd.f32 %v5737_v34, %v14079_v10  ;;  %v14350_v23 = vsel %vm1184_vm4, %v14264_v25, %v7235_v29  ;;  %v15457_v34 = vunpack.c.l.bf16 %v14354_v36  ;;  %v7109_v1 = vmul.f32 %v15458_v13, %v16061_v41  ;;  %v14366_v12 = vpop.f32.mrf.mxu0  ;;  %v7024_v13 = vld [vmem:[#allocation3 + $0x10] sm:$0x8] }
 0x3f8   : > { %16058 = vst [vmem:[#allocation41_spill] sm:$0xff] %v14350_v23  ;;  %v5628_v10 = vsel %vm2012_vm6, %v5623_v11, %v5627_v54  ;;  %v6741_v38 = vrot.slane %v6739_v40, 1  ;;  %v5487_v41 = vpack.c.bf16 %v5470_v7, %v5470_v7  ;;  %v16064_v40 = vld [vmem:[#allocation66_spill] sm:$0xff]  ;;  %v7025_v23 = vld [vmem:[#allocation3 + $0x14] sm:$0xf]  ;;  %v5629_v7 = vshrl.u32 %v14307_v8, 16 }
 0x3f9   : > { %16057 = vst [vmem:[#allocation90_spill] sm:$0xff] %v14341_v47  ;;  %v7108_v25 = vmul.f32 %v15457_v34, %v16060_v53  ;;  %v6737_v53 = vor.u32 %v6735_v52, %v14299_v50  ;;  %v9439_v34 = vld [vmem:[#allocation3 + $0x34] sm:$0xff]  ;;  %v7057_v52 = vunpack.c.l.bf16 %v7024_v13 }
 0x3fa   : > { %16062 = vst [vmem:[#allocation115_spill] sm:$0xff] %v14366_v12 }
 0x3fb   : > { %5779 = vmatmul.bf16.gmra.mxu3 %v5628_v10  ;;  %v7132_v10 = vpack.c.bf16 %v7109_v1, %v7108_v25  ;;  %v6742_v33 = vsel %vm2012_vm6, %v6737_v53, %v6741_v38  ;;  %v16066_v1 = vld [vmem:[#allocation65_spill] sm:$0xff] }
 0x3fd   : > { %v5344_v62 = vpop.f32.mrf.mxu2  ;;  %v7238_v12 = vshrl.u32 %v7132_v10, 16  ;;  %v7241_v49 = vshll.u32 %v7132_v10, 16  ;;  %v7058_v10 = vunpack.c.l.bf16 %v7025_v23 }
 0x3fe   : > { %v14370_v60 = vadd.f32 %v5344_v62, %v14230_v20  ;;  %v5740_v11 = vpop.f32.mrf.mxu3  ;;  %v14375_v6 = vpop.f32.mrf.mxu1  ;;  %v16065_v20 = vunpack.c.l.bf16 %v14121_v55 }
 0x3ff   : > { %v14373_v63 = vadd.f32 %v5740_v11, %v14103_v31  ;;  %v7240_v31 = vrot.slane %v7238_v12, 3  ;;  %v7243_v25 = vrot.slane %v7241_v49, 4  ;;  %v16067_v11 = vunpack.c.h.bf16 %v14052_v9  ;;  %v14394_v9 = vpop.f32.mrf.mxu0 }
 0x400   : > { %v6651_v62 = vmul.f32 %v16065_v20, %v16064_v40  ;;  %v5631_v12 = vor.u32 %v5629_v7, %v5627_v54  ;;  %16068 = vst [vmem:[#allocation92_spill] sm:$0xff] %v14394_v9 }
 0x401   : > { %16063 = vst [vmem:[#allocation94_spill] sm:$0xff] %v14373_v63  ;;  %6486 = vmatmul.bf16.gmra.mxu1 %v9439_v34  ;;  %v6650_v50 = vmul.f32 %v16067_v11, %v16066_v1  ;;  %v5633_v63 = vshll.u32 %v5487_v41, 16  ;;  %v7244_v47 = vor.u32 %v7243_v25, %v7240_v31  ;;  %v16069_v41 = vld [vmem:[#allocation19_spill] sm:$0xff]  ;;  %v14404_v25 = vld [vmem:[#allocation3 + $0x60] sm:$0xff]  }
 0x402   : > { %6926 = vmatmul.bf16.gmra.mxu2 %v6742_v33  ;;  %v7090_v33 = vmul.f32 %v7057_v52, %v16069_v41  ;;  %v15460_v11 = vunpack.c.h.bf16 %v14404_v25 }
 0x403   : > { %v14386_v45 = vpack.c.bf16 %v6651_v62, %v6650_v50  ;;  %v14392_v49 = vsel %vm1184_vm4, %v7235_v29, %v7244_v47  ;;  %v5635_v23 = vrot.slane %v5633_v63, 1  ;;  %v16070_v62 = vld [vmem:[#allocation21_spill] sm:$0xff]  ;;  %v15459_v29 = vunpack.c.l.bf16 %v14404_v25  ;;  %v16071_v50 = vld [vmem:[#allocation8_spill] sm:$0xff] }
 0x404   : > { %v7091_v31 = vmul.f32 %v7058_v10, %v16070_v62  ;;  %v16072_v63 = vld [vmem:[#allocation9_spill] sm:$0xff]  ;;  %v6743_v10 = vshrl.u32 %v14334_v58, 16 }
 0x405   : > { %v5347_v53 = vpop.f32.mrf.mxu2  ;;  %v5636_v54 = vsel %vm2012_vm6, %v5631_v12, %v5635_v23  ;;  %v7111_v52 = vmul.f32 %v15460_v11, %v16072_v63 }
 0x406   : > { %v14389_v20 = vadd.f32 %v5347_v53, %v14253_v46  ;;  %v5742_v34 = vpop.f32.mrf.mxu3  ;;  %v14399_v8 = vpop.f32.mrf.mxu1  ;;  %7683 = vmatmul.bf16.gmra.mxu0 %v9478_v30  ;;  %v6747_v46 = vshll.u32 %v14386_v45, 16  ;;  %v7110_v30 = vmul.f32 %v15459_v29, %v16071_v50  ;;  %v6745_v62 = vor.u32 %v6743_v10, %v6741_v38 }
 0x407   : > { %v14397_v13 = vadd.f32 %v5742_v34, %v14135_v42  ;;  %v7123_v42 = vpack.c.bf16 %v7091_v31, %v7090_v33  ;;  %v9440_v31 = vld [vmem:[#allocation3 + $0x3c] sm:$0xff]  ;;  %v14424_v11 = vpop.f32.mrf.mxu0 }
 0x408   : > { %v6749_v53 = vrot.slane %v6747_v46, 1  ;;  %v7133_v23 = vpack.c.bf16 %v7111_v52, %v7110_v30  ;;  %16073 = vst [vmem:[#allocation32_spill] sm:$0xff] %v14424_v11 }
 0x409   : > { %v7161_v50 = vshll.u32 %v7123_v42, 16 }
 0x40a   : > { %v7247_v29 = vshrl.u32 %v7133_v23, 16  ;;  %v7250_v63 = vshll.u32 %v7133_v23, 16  ;;  %v6750_v58 = vsel %vm2012_vm6, %v6745_v62, %v6749_v53  ;;  %v9479_v62 = vld [vmem:[#allocation3 + $0x3c] sm:$0xff] }
 0x40b   : > { %5784 = vmatmul.bf16.gmra.mxu3 %v5636_v54  ;;  %v7158_v54 = vshrl.u32 %v7123_v42, 16  ;;  %v16075_v42 = vunpack.c.h.bf16 %v14121_v55  ;;  %v7163_v10 = vrot.slane %v7161_v50, 4 }
 0x40c   : > { %v7249_v38 = vrot.slane %v7247_v29, 3  ;;  %v7252_v30 = vrot.slane %v7250_v63, 4 }
 0x40d   : > { %v5349_v7 = vpop.f32.mrf.mxu2  ;;  %v6652_v52 = vmul.f32 %v16075_v42, %v15953_v14 }
 0x40e   : > { %v14417_v34 = vadd.f32 %v5349_v7, %v14272_v35  ;;  %v5745_v12 = vpop.f32.mrf.mxu3  ;;  %v14422_v33 = vpop.f32.mrf.mxu1  ;;  %v16074_v35 = vunpack.c.l.bf16 %v14178_v3  ;;  %v7160_v7 = vrot.slane %v7158_v54, 3 }
 0x40f   : > { %v14420_v41 = vadd.f32 %v5745_v12, %v14158_v37  ;;  %v9509_v37 = vld [vmem:[%s15222_s4 + $0x218] sm:$0xff]  ;;  %v7253_v12 = vor.u32 %v7252_v30, %v7249_v38 }
 0x410   : > { %v6653_v46 = vmul.f32 %v16074_v35, %v15949_v0  ;;  %8109 = vmatpush.bf16.msra.mxu1 %v9509_v37  ;;  %v7164_v55 = vor.u32 %v7163_v10, %v7160_v7  ;;  %v14449_v37 = vpop.f32.mrf.mxu0 }
 0x411   : > { %6491 = vmatmul.bf16.gmra.mxu1 %v9440_v31  ;;  %v14440_v35 = vsel %vm1184_vm4, %v7244_v47, %v7253_v12  ;;  %16076 = vst [vmem:[#allocation121_spill] sm:$0xff] %v14449_v37  ;;  %v6751_v47 = vshrl.u32 %v14386_v45, 16  ;;  %v16078_v45 = vunpack.c.l.bf16 %v14233_v21 }
 0x412   : > { %6931 = vmatmul.bf16.gmra.mxu2 %v6750_v58  ;;  %v6679_v1 = vpack.c.bf16 %v6653_v46, %v6652_v52  ;;  %v7173_v50 = vsel %vm1184_vm4, %v7164_v55, %v14016_v51 }
 0x413   : > { %v6753_v7 = vor.u32 %v6751_v47, %v6749_v53 }
 0x414   : > { %v6755_v54 = vshll.u32 %v6679_v1, 16 }
 0x415   : > { %v5352_v23 = vpop.f32.mrf.mxu2 }
 0x416   : > { %v14437_v58 = vadd.f32 %v5352_v23, %v14312_v61  ;;  %v5747_v31 = vpop.f32.mrf.mxu3  ;;  %v14445_v63 = vpop.f32.mrf.mxu1  ;;  %7688 = vmatmul.bf16.gmra.mxu0 %v9479_v62  ;;  %v14451_v61 = vld [vmem:[#allocation3 + $0x68] sm:$0xff]   ;;  %v6757_v38 = vrot.slane %v6755_v54, 1  ;;  %v16080_v54 = vld [vmem:[#allocation13_spill] sm:$0xff] }
 0x417   : > { %v14443_v29 = vadd.f32 %v5747_v31, %v14196_v26  ;;  %v15462_v51 = vunpack.c.l.bf16 %v14451_v61  ;;  %v15463_v10 = vunpack.c.h.bf16 %v14451_v61  ;;  %v9441_v23 = vld [vmem:[#allocation3 + $0x44] sm:$0xff] }
 0x418   : > { %v6758_v62 = vsel %vm2012_vm6, %v6753_v7, %v6757_v38  ;;  %v16077_v31 = vld [vmem:[#allocation81_spill] sm:$0xff]  ;;  %v14477_v47 = vpop.f32.mrf.mxu0 }
 0x419   : > { %v6655_v55 = vmul.f32 %v16078_v45, %v16077_v31  ;;  %v7112_v53 = vmul.f32 %v15462_v51, %v16080_v54  ;;  %16082 = vst [vmem:[#allocation98_spill] sm:$0xff] %v14477_v47  ;;  %v9480_v7 = vld [vmem:[#allocation3 + $0x44] sm:$0xff] }
 0x41b   : > { %7381 = vmatmul.bf16.vlgmr.msra.gmra.mxu3 %v7173_v50  ;;  %v16081_v50 = vld [vmem:[#allocation12_spill] sm:$0xff] }
 0x41d   : > { %v5354_v46 = vpop.f32.mrf.mxu2 }
 0x41e   : > { %v14455_v26 = vadd.f32 %v5354_v46, %v14343_v4  ;;  %v5750_v30 = vpop.f32.mrf.mxu3  ;;  %v14460_v52 = vpop.f32.mrf.mxu1  ;;  %v7113_v46 = vmul.f32 %v15463_v10, %v16081_v50 }
 0x41f   : > { %v14458_v42 = vadd.f32 %v5750_v30, %v14222_v2  ;;  %v16079_v2 = vunpack.c.h.bf16 %v14178_v3 }
 0x421   : > { %6496 = vmatmul.bf16.gmra.mxu1 %v9441_v23  ;;  %v6654_v4 = vmul.f32 %v16079_v2, %v15963_v28 }
 0x422   : > { %6936 = vmatmul.bf16.gmra.mxu2 %v6758_v62  ;;  %v7134_v62 = vpack.c.bf16 %v7113_v46, %v7112_v53  ;;  %v6759_v53 = vshrl.u32 %v6679_v1, 16 }
 0x423   : > { %v14479_v14 = vpack.c.bf16 %v6655_v55, %v6654_v4  ;;  %v14491_v4 = vld [vmem:[#allocation3 + $0x70] sm:$0xff]  }
 0x424   : > { %v7256_v54 = vshrl.u32 %v7134_v62, 16  ;;  %v7259_v51 = vshll.u32 %v7134_v62, 16  ;;  %v16083_v62 = vld [vmem:[#allocation84_spill] sm:$0xff]  ;;  %v15466_v1 = vunpack.c.l.bf16 %v14491_v4 }
 0x425   : > { %v5357_v30 = vpop.f32.mrf.mxu2  ;;  %v6763_v50 = vshll.u32 %v14479_v14, 16 }
 0x426   : > { %v14482_v23 = vadd.f32 %v5357_v30, %v14375_v6  ;;  %v5752_v3 = vpop.f32.mrf.mxu3  ;;  %v14487_v2 = vpop.f32.mrf.mxu1  ;;  %7693 = vmatmul.bf16.gmra.mxu0 %v9480_v7  ;;  %v7258_v10 = vrot.slane %v7256_v54, 3  ;;  %v7261_v28 = vrot.slane %v7259_v51, 4  ;;  %v6761_v51 = vor.u32 %v6759_v53, %v6757_v38  ;;  %v16086_v38 = vld [vmem:[#allocation87_spill] sm:$0xff] }
 0x427   : > { %v14485_v45 = vadd.f32 %v5752_v3, %v14246_v18  ;;  %v6765_v46 = vrot.slane %v6763_v50, 1  ;;  %v6260_v3 = vadd.f32 %v16083_v62, %v13992_v44  ;;  %v14501_v54 = vpop.f32.mrf.mxu0  ;;  %v9442_v50 = vld [vmem:[#allocation3 + $0x4c] sm:$0xff]  ;;  %v16087_v53 = vunpack.c.h.bf16 %v14233_v21  ;;  %v16090_v21 = vld [vmem:[#allocation116_spill] sm:$0xff] }
 0x428   : > { %v7262_v55 = vor.u32 %v7261_v28, %v7258_v10  ;;  %16084 = vst [vmem:[#allocation36_spill] sm:$0xff] %v14501_v54  ;;  %v15467_v10 = vunpack.c.h.bf16 %v14491_v4  ;;  %v16088_v62 = vld [vmem:[#allocation15_spill] sm:$0xff] }
 0x42a   : > { %v14494_v18 = vsel %vm1184_vm4, %v7253_v12, %v7262_v55 }
 0x42b   : > { %7386 = vmatmul.bf16.gmra.mxu3 %v14024_v17 }
 0x42d   : > { %v5359_v6 = vpop.f32.mrf.mxu2 }
 0x42e   : > { %v14497_v30 = vadd.f32 %v5359_v6, %v14399_v8  ;;  %v5755_v7 = vpop.f32.mrf.mxu3  ;;  %v6462_v28 = vpop.f32.mrf.mxu1  ;;  %v6766_v8 = vsel %vm2012_vm6, %v6761_v51, %v6765_v46  ;;  %v16085_v6 = vunpack.c.l.bf16 %v14284_v48 }
 0x42f   : > { %v14504_v17 = vadd.f32 %v5755_v7, %v14267_v43  ;;  %v14508_v12 = vadd.f32 %v6462_v28, %v6260_v3  ;;  %v9508_v43 = vld [vmem:[%s15222_s4 + $0x210] sm:$0xff]  ;;  %v6656_v7 = vmul.f32 %v16087_v53, %v16086_v38  ;;  %v7114_v3 = vmul.f32 %v15466_v1, %v16088_v62  ;;  %v16089_v28 = vld [vmem:[#allocation17_spill] sm:$0xff] }
 0x430   : > { %v6657_v44 = vmul.f32 %v16085_v6, %v15970_v32  ;;  %v7115_v51 = vmul.f32 %v15467_v10, %v16089_v28  ;;  %8110 = vmatpush.bf16.msra.mxu1 %v9508_v43  ;;  %v6261_v53 = vadd.f32 %v16090_v21, %v14034_v22  ;;  %v14538_v10 = vpop.f32.mrf.mxu0  ;;  %v16092_v21 = vld [vmem:[#allocation35_spill] sm:$0xff] }
 0x431   : > { %6501 = vmatmul.bf16.gmra.mxu1 %v9442_v50  ;;  %16091 = vst [vmem:[#allocation128_spill] sm:$0xff] %v14538_v10  ;;  %v9482_v10 = vld [vmem:[#allocation3 + $0x54] sm:$0xff] }
 0x432   : > { %6941 = vmatmul.bf16.gmra.mxu2 %v6766_v8  ;;  %v9481_v8 = vld [vmem:[#allocation3 + $0x4c] sm:$0xff]  ;;  %v14526_v50 = vpack.c.bf16 %v6657_v44, %v6656_v7  ;;  %v7135_v32 = vpack.c.bf16 %v7115_v51, %v7114_v3  ;;  %v14542_v51 = vld [vmem:[#allocation3 + $0x78] sm:$0xff]  }
 0x434   : > { %v7265_v1 = vshrl.u32 %v7135_v32, 16  ;;  %v7268_v28 = vshll.u32 %v7135_v32, 16  ;;  %v6771_v44 = vshll.u32 %v14526_v50, 16 }
 0x435   : > { %v5362_v6 = vpop.f32.mrf.mxu2 }
 0x436   : > { %v14529_v31 = vadd.f32 %v5362_v6, %v14422_v33  ;;  %v5757_v54 = vpop.f32.mrf.mxu3  ;;  %v6464_v62 = vpop.f32.mrf.mxu1  ;;  %7698 = vmatmul.bf16.gmra.mxu0 %v9481_v8  ;;  %v7267_v7 = vrot.slane %v7265_v1, 3  ;;  %v7270_v33 = vrot.slane %v7268_v28, 4  ;;  %v6262_v1 = vadd.f32 %v16092_v21, %v14086_v27 }
 0x437   : > { %v14534_v38 = vadd.f32 %v5757_v54, %v14305_v24  ;;  %v14536_v43 = vadd.f32 %v6464_v62, %v6261_v53  ;;  %v6767_v24 = vshrl.u32 %v14479_v14, 16  ;;  %v6773_v54 = vrot.slane %v6771_v44, 1 }
 0x438   : > { %v7271_v3 = vor.u32 %v7270_v33, %v7267_v7  ;;  %v15469_v28 = vunpack.c.l.bf16 %v14542_v51  ;;  %v15470_v14 = vunpack.c.h.bf16 %v14542_v51  ;;  %v16094_v33 = vunpack.c.l.bf16 %v14354_v36  ;;  %v14564_v27 = vpop.f32.mrf.mxu0 }
 0x439   : > { %v6769_v62 = vor.u32 %v6767_v24, %v6765_v46  ;;  %16095 = vst [vmem:[#allocation97_spill] sm:$0xff] %v14564_v27  ;;  %v16097_v46 = vunpack.c.h.bf16 %v14284_v48  ;;  %v16100_v48 = vld [vmem:[#allocation67_spill] sm:$0xff] }
 0x43a   : > { %v14546_v6 = vsel %vm1184_vm4, %v7262_v55, %v7271_v3  ;;  %v9443_v55 = vld [vmem:[#allocation3 + $0x54] sm:$0xff] }
 0x43b   : > { %7391 = vmatmul.bf16.gmra.mxu3 %v14076_v59  ;;  %v6774_v7 = vsel %vm2012_vm6, %v6769_v62, %v6773_v54 }
 0x43d   : > { %v5364_v22 = vpop.f32.mrf.mxu2 }
 0x43e   : > { %v14549_v32 = vadd.f32 %v5364_v22, %v14445_v63  ;;  %v5760_v8 = vpop.f32.mrf.mxu3  ;;  %v6467_v59 = vpop.f32.mrf.mxu1  ;;  %v16093_v63 = vld [vmem:[#allocation96_spill] sm:$0xff] }
 0x43f   : > { %v14554_v53 = vadd.f32 %v5760_v8, %v14337_v57  ;;  %v14558_v44 = vadd.f32 %v6467_v59, %v6262_v1  ;;  %v6659_v22 = vmul.f32 %v16094_v33, %v16093_v63  ;;  %v16096_v57 = vld [vmem:[#allocation95_spill] sm:$0xff]  ;;  %v16098_v8 = vld [vmem:[#allocation20_spill] sm:$0xff]  ;;  %v16099_v1 = vld [vmem:[#allocation25_spill] sm:$0xff] }
 0x440   : > { %v6658_v24 = vmul.f32 %v16097_v46, %v16096_v57  ;;  %v7116_v21 = vmul.f32 %v15469_v28, %v16098_v8  ;;  %v7117_v59 = vmul.f32 %v15470_v14, %v16099_v1  ;;  %v6263_v46 = vadd.f32 %v16100_v48, %v14108_v16  ;;  %v16106_v14 = vld [vmem:[#allocation104_spill] sm:$0xff] }
 0x441   : > { %6506 = vmatmul.bf16.gmra.mxu1 %v9443_v55 }
 0x442   : > { %6946 = vmatmul.bf16.gmra.mxu2 %v6774_v7  ;;  %v14575_v0 = vpack.c.bf16 %v6659_v22, %v6658_v24  ;;  %v7136_v7 = vpack.c.bf16 %v7117_v59, %v7116_v21  ;;  %v10473_v59 = vld [vmem:[#allocation3 + $0x80] sm:$0xff]  }
 0x444   : > { %v7274_v28 = vshrl.u32 %v7136_v7, 16  ;;  %v7277_v63 = vshll.u32 %v7136_v7, 16  ;;  %v6779_v22 = vshll.u32 %v14575_v0, 16  ;;  %v14600_v7 = vld [vmem:[#allocation3 + $0x78] sm:$0xff]  }
 0x445   : > { %v5367_v62 = vpop.f32.mrf.mxu2  ;;  %16103 = vst [vmem:[#allocation48_spill] sm:$0xff] %v14600_v7 }
 0x446   : > { %v14578_v55 = vadd.f32 %v5367_v62, %v14460_v52  ;;  %v5762_v33 = vpop.f32.mrf.mxu3  ;;  %v6469_v8 = vpop.f32.mrf.mxu1  ;;  %7703 = vmatmul.bf16.gmra.mxu0 %v9482_v10  ;;  %v7276_v24 = vrot.slane %v7274_v28, 3  ;;  %v7279_v21 = vrot.slane %v7277_v63, 4  ;;  %v16104_v63 = vld [vmem:[#allocation89_spill] sm:$0xff] }
 0x447   : > { %v14583_v57 = vadd.f32 %v5762_v33, %v14370_v60  ;;  %v14585_v1 = vadd.f32 %v6469_v8, %v6263_v46  ;;  %v14591_v62 = vpop.f32.mrf.mxu0  ;;  %v6775_v60 = vshrl.u32 %v14526_v50, 16  ;;  %v14594_v33 = vrot.slane %v6779_v22, 1 }
 0x448   : > { %v14589_v52 = vor.u32 %v7279_v21, %v7276_v24  ;;  %16101 = vst [vmem:[#allocation42_spill] sm:$0xff] %v14591_v62  ;;  %v6264_v48 = vadd.f32 %v16104_v63, %v14138_v19  ;;  %v14610_v22 = vunpack.c.l.bf16 %v10473_v59  ;;  %v14612_v24 = vunpack.c.h.bf16 %v10473_v59  ;;  %v9444_v21 = vld [vmem:[#allocation3 + $0x5c] sm:$0xff]  ;;  %v9507_v59 = vld [vmem:[%s15222_s4 + $0x208] sm:$0xff] }
 0x449   : > { %v6777_v50 = vor.u32 %v6775_v60, %v6773_v54  ;;  %v10300_v62 = vunpack.c.h.bf16 %v14600_v7  ;;  %v16109_v54 = vunpack.c.h.bf16 %v14354_v36  ;;  %8111 = vmatpush.bf16.msra.mxu1 %v9507_v59 }
 0x44a   : > { %v14598_v10 = vsel %vm1184_vm4, %v7271_v3, %v14589_v52 }
 0x44b   : > { %7396 = vmatmul.bf16.gmra.mxu3 %v14117_v56  ;;  %16102 = vst [vmem:[#allocation133_spill] sm:$0xff] %v14598_v10  ;;  %v6782_v19 = vsel %vm2012_vm6, %v6777_v50, %v14594_v33  ;;  %v16123_v10 = vld [vmem:[#allocation124_spill] sm:$0xff] }
 0x44d   : > { %v5369_v16 = vpop.f32.mrf.mxu2 }
 0x44e   : > { %v14603_v28 = vadd.f32 %v5369_v16, %v14487_v2  ;;  %v5765_v56 = vpop.f32.mrf.mxu3  ;;  %v6472_v8 = vpop.f32.mrf.mxu1  ;;  %v16107_v2 = vunpack.c.l.bf16 %v14404_v25 }
 0x44f   : > { %v14608_v46 = vadd.f32 %v5765_v56, %v14389_v20  ;;  %v14614_v3 = vadd.f32 %v6472_v8, %v6264_v48  ;;  %v16108_v20 = vld [vmem:[#allocation103_spill] sm:$0xff]  ;;  %v16110_v56 = vld [vmem:[#allocation38_spill] sm:$0xff]  ;;  %v16111_v48 = vld [vmem:[#allocation37_spill] sm:$0xff]  ;;  %v14642_v37 = vpop.f32.mrf.mxu0 }
 0x450   : > { %v6661_v16 = vmul.f32 %v16107_v2, %v16106_v14  ;;  %v6660_v60 = vmul.f32 %v16109_v54, %v16108_v20  ;;  %v7118_v63 = vmul.f32 %v14610_v22, %v16110_v56  ;;  %v7119_v8 = vmul.f32 %v14612_v24, %v16111_v48  ;;  %v9483_v54 = vld [vmem:[#allocation3 + $0x5c] sm:$0xff]  ;;  %v7807_v20 = vld [vmem:[#allocation3 + $0x90] sm:$0xf]  ;;  %v16113_v56 = vld [vmem:[#allocation118_spill] sm:$0xff]  ;;  %16114 = vst [vmem:[#allocation100_spill] sm:$0xff] %v14642_v37 }
 0x451   : > { %16105 = vst [vmem:[#allocation59_spill] sm:$0xff] %v14608_v46  ;;  %6511 = vmatmul.bf16.gmra.mxu1 %v9444_v21  ;;  %v7869_v2 = vmul.f32 %v14610_v22, %v16014_v5  ;;  %v16112_v21 = vld [vmem:[#allocation119_spill] sm:$0xff]  ;;  %v6265_v47 = vadd.f32 %v16113_v56, %v14164_v15  ;;  %v16120_v56 = vld [vmem:[#allocation132_spill] sm:$0xff]  ;;  %v6783_v37 = vshrl.u32 %v14575_v0, 16 }
 0x452   : > { %6951 = vmatmul.bf16.gmra.mxu2 %v6782_v19  ;;  %v14634_v50 = vpack.c.bf16 %v6661_v16, %v6660_v60  ;;  %v7868_v19 = vmul.f32 %v10300_v62, %v16112_v21  ;;  %v7137_v7 = vpack.c.bf16 %v7119_v8, %v7118_v63  ;;  %v7840_v8 = vunpack.c.l.bf16 %v7807_v20  ;;  %v16122_v46 = vld [vmem:[#allocation63_spill] sm:$0xff] }
 0x453   : > { %v6785_v9 = vor.u32 %v6783_v37, %v14594_v33 }
 0x454   : > { %v7888_v48 = vpack.c.bf16 %v7869_v2, %v7868_v19  ;;  %v7283_v62 = vshrl.u32 %v7137_v7, 16  ;;  %v7286_v59 = vshll.u32 %v7137_v7, 16  ;;  %v6787_v63 = vshll.u32 %v14634_v50, 16  ;;  %v16119_v7 = vld [vmem:[#allocation127_spill] sm:$0xff] }
 0x455   : > { %v6912_v36 = vpop.f32.mrf.mxu2 }
 0x456   : > { %v14638_v14 = vadd.f32 %v6912_v36, %v14508_v12  ;;  %v5767_v27 = vpop.f32.mrf.mxu3  ;;  %v6474_v60 = vpop.f32.mrf.mxu1  ;;  %7708 = vmatmul.bf16.gmra.mxu0 %v9483_v54  ;;  %v14650_v12 = vld [vmem:[#allocation3 + $0x88] sm:$0xff]   ;;  %v7285_v36 = vrot.slane %v7283_v62, 3  ;;  %v7288_v11 = vrot.slane %v7286_v59, 4  ;;  %v8013_v19 = vshll.u32 %v7888_v48, 16 }
 0x457   : > { %v14645_v16 = vadd.f32 %v5767_v27, %v14417_v34  ;;  %v14647_v40 = vadd.f32 %v6474_v60, %v6265_v47  ;;  %16116 = vst [vmem:[#allocation101_spill] sm:$0xff] %v14650_v12  ;;  %v15472_v15 = vunpack.c.l.bf16 %v14650_v12  ;;  %v15475_v2 = vunpack.c.h.bf16 %v14650_v12  ;;  %v16118_v27 = vld [vmem:[#allocation126_spill] sm:$0xff]  ;;  %v16121_v60 = vld [vmem:[#allocation51_spill] sm:$0xff] }
 0x458   : > { %v14655_v34 = vor.u32 %v7288_v11, %v7285_v36  ;;  %v7870_v47 = vmul.f32 %v14612_v24, %v16118_v27  ;;  %v7873_v62 = vmul.f32 %v7840_v8, %v16121_v60  ;;  %v6266_v12 = vadd.f32 %v16123_v10, %v16122_v46  ;;  %v16127_v10 = vld [vmem:[#allocation110_spill] sm:$0xff] }
 0x459   : > { %16115 = vst [vmem:[#allocation60_spill] sm:$0xff] %v14645_v16  ;;  %v7871_v54 = vmul.f32 %v15472_v15, %v16119_v7  ;;  %v7872_v20 = vmul.f32 %v15475_v2, %v16120_v56  ;;  %v6789_v16 = vrot.slane %v6787_v63, 1  ;;  %v14677_v2 = vrot.slane %v8013_v19, 1 }
 0x45a   : > { %16117 = vst [vmem:[#allocation105_spill] sm:$0xff] %v14655_v34  ;;  %v16128_v46 = vunpack.c.l.bf16 %v14451_v61 }
 0x45b   : > { %7401 = vmatmul.bf16.gmra.mxu3 %v14161_v39  ;;  %v14670_v39 = vsel %vm1184_vm4, %v14589_v52, %v14655_v34  ;;  %v7889_v11 = vpack.c.bf16 %v7871_v54, %v7870_v47  ;;  %16124 = vst [vmem:[#allocation106_spill] sm:$0xff] %v14677_v2  ;;  %v14679_v8 = vpack.c.bf16 %v7873_v62, %v7872_v20  ;;  %v9445_v47 = vld [vmem:[#allocation3 + $0x64] sm:$0xff]  ;;  %v8017_v54 = vshrl.u32 %v7888_v48, 16 }
 0x45c   : > { %v6790_v34 = vsel %vm2012_vm6, %v6785_v9, %v6789_v16  ;;  %v6663_v19 = vmul.f32 %v16128_v46, %v16127_v10  ;;  %v16130_v48 = vunpack.c.h.bf16 %v14404_v25  ;;  %v9484_v46 = vld [vmem:[#allocation3 + $0x64] sm:$0xff] }
 0x45d   : > { %v6914_v59 = vpop.f32.mrf.mxu2  ;;  %16125 = vst [vmem:[#allocation64_spill] sm:$0xff] %v14679_v8  ;;  %v8029_v20 = vshll.u32 %v14679_v8, 16  ;;  %v8025_v33 = vshrl.u32 %v7889_v11, 16  ;;  %v9446_v8 = vld [vmem:[#allocation3 + $0x6c] sm:$0xff] }
 0x45e   : > { %v14673_v36 = vadd.f32 %v6914_v59, %v14536_v43  ;;  %v5770_v15 = vpop.f32.mrf.mxu3  ;;  %v6477_v63 = vpop.f32.mrf.mxu1  ;;  %v8021_v43 = vshll.u32 %v7889_v11, 16 }
 0x45f   : > { %v14682_v0 = vadd.f32 %v5770_v15, %v14437_v58  ;;  %v14685_v52 = vadd.f32 %v6477_v63, %v6266_v12  ;;  %v14687_v59 = vpop.f32.mrf.mxu0  ;;  %v8019_v58 = vor.u32 %v8017_v54, %v14677_v2  ;;  %v16129_v12 = vld [vmem:[#allocation109_spill] sm:$0xff]  ;;  %v14701_v63 = vrot.slane %v8029_v20, 1  ;;  %v16133_v54 = vld [vmem:[#allocation30_spill] sm:$0xff] }
 0x460   : > { %16126 = vst [vmem:[#allocation54_spill] sm:$0xff] %v14687_v59  ;;  %v8023_v37 = vrot.slane %v8021_v43, 1  ;;  %v6662_v15 = vmul.f32 %v16130_v48, %v16129_v12  ;;  %v16134_v43 = vld [vmem:[#allocation93_spill] sm:$0xff]  ;;  %v6791_v48 = vshrl.u32 %v14634_v50, 16  ;;  %v16141_v50 = vunpack.c.l.bf16 %v14491_v4 }
 0x461   : > { %6516 = vmatmul.bf16.gmra.mxu1 %v9445_v47  ;;  %16132 = vst [vmem:[#allocation10_spill] sm:$0xff] %v14701_v63  ;;  %v6267_v11 = vadd.f32 %v16134_v43, %v16133_v54  ;;  %v16137_v43 = vld [vmem:[#allocation78_spill] sm:$0xff] }
 0x462   : > { %6956 = vmatmul.bf16.gmra.mxu2 %v6790_v34  ;;  %v14699_v62 = vsel %vm2012_vm6, %v8019_v58, %v8023_v37  ;;  %v8027_v9 = vor.u32 %v8025_v33, %v8023_v37  ;;  %v6684_v10 = vpack.c.bf16 %v6663_v19, %v6662_v15 }
 0x463   : > { %16131 = vst [vmem:[#allocation73_spill] sm:$0xff] %v14699_v62 }
 0x464   : > { %v14710_v25 = vsel %vm2012_vm6, %v8027_v9, %v14701_v63  ;;  %v6795_v33 = vshll.u32 %v6684_v10, 16 }
 0x465   : > { %v6917_v59 = vpop.f32.mrf.mxu2  ;;  %16135 = vst [vmem:[#allocation11_spill] sm:$0xff] %v14710_v25  ;;  %v16140_v25 = vld [vmem:[#allocation113_spill] sm:$0xff] }
 0x466   : > { %v14704_v34 = vadd.f32 %v6917_v59, %v14558_v44  ;;  %v5772_v47 = vpop.f32.mrf.mxu3  ;;  %v6479_v37 = vpop.f32.mrf.mxu1  ;;  %7713 = vmatmul.bf16.gmra.mxu0 %v9484_v46  ;;  %v16136_v44 = vld [vmem:[#allocation28_spill] sm:$0xff]  ;;  %v6797_v15 = vrot.slane %v6795_v33, 1  ;;  %v6665_v33 = vmul.f32 %v16141_v50, %v16140_v25  ;;  %v16167_v25 = vld [vmem:[#allocation33_spill] sm:$0xff] }
 0x467   : > { %v14713_v58 = vadd.f32 %v5772_v47, %v14455_v26  ;;  %v14715_v20 = vadd.f32 %v6479_v37, %v6267_v11  ;;  %v14717_v19 = vpop.f32.mrf.mxu0  ;;  %v16138_v26 = vld [vmem:[#allocation123_spill] sm:$0xff]  ;;  %v6793_v37 = vor.u32 %v6791_v48, %v6789_v16 }
 0x468   : > { %v6268_v47 = vadd.f32 %v16138_v26, %v16137_v43  ;;  %v9485_v43 = vld [vmem:[#allocation3 + $0x6c] sm:$0xff] }
 0x46b   : > { %7406 = vmatmul.bf16.gmra.mxu3 %v16136_v44  ;;  %v6798_v44 = vsel %vm2012_vm6, %v6793_v37, %v6797_v15  ;;  %v16144_v37 = vld [vmem:[#allocation75_spill] sm:$0xff] }
 0x46d   : > { %v6919_v59 = vpop.f32.mrf.mxu2 }
 0x46e   : > { %v14722_v54 = vadd.f32 %v6919_v59, %v14585_v1  ;;  %v5775_v9 = vpop.f32.mrf.mxu3  ;;  %v6482_v11 = vpop.f32.mrf.mxu1  ;;  %v9506_v1 = vld [vmem:[%s15222_s4 + $0x200] sm:$0xff] }
 0x46f   : > { %v14727_v46 = vadd.f32 %v5775_v9, %v14482_v23  ;;  %v14729_v63 = vadd.f32 %v6482_v11, %v6268_v47  ;;  %v16142_v59 = vld [vmem:[#allocation114_spill] sm:$0xff]  ;;  %v16143_v23 = vunpack.c.h.bf16 %v14451_v61  ;;  %8112 = vmatpush.bf16.msra.mxu1 %v9506_v1  ;;  %v14741_v16 = vpop.f32.mrf.mxu0 }
 0x471   : > { %16139 = vst [vmem:[#allocation107_spill] sm:$0xff] %v14729_v63  ;;  %6521 = vmatmul.bf16.gmra.mxu1 %v9446_v8  ;;  %v6664_v9 = vmul.f32 %v16143_v23, %v16142_v59  ;;  %v16145_v8 = vld [vmem:[#allocation135_spill] sm:$0xff]  ;;  %v16147_v23 = vld [vmem:[#allocation82_spill] sm:$0xff]  ;;  %v6799_v63 = vshrl.u32 %v6684_v10, 16 }
 0x472   : > { %6961 = vmatmul.bf16.gmra.mxu2 %v6798_v44  ;;  %v6269_v44 = vadd.f32 %v16145_v8, %v16144_v37  ;;  %v16149_v59 = vld [vmem:[#allocation99_spill] sm:$0xff] }
 0x473   : > { %v6685_v26 = vpack.c.bf16 %v6665_v33, %v6664_v9 }
 0x475   : > { %v6922_v48 = vpop.f32.mrf.mxu2  ;;  %v6803_v1 = vshll.u32 %v6685_v26, 16 }
 0x476   : > { %v14744_v47 = vadd.f32 %v6922_v48, %v14614_v3  ;;  %v5777_v11 = vpop.f32.mrf.mxu3  ;;  %v6484_v62 = vpop.f32.mrf.mxu1  ;;  %7718 = vmatmul.bf16.gmra.mxu0 %v9485_v43  ;;  %v16148_v48 = vld [vmem:[#allocation111_spill] sm:$0xff]  ;;  %v6801_v43 = vor.u32 %v6799_v63, %v6797_v15 }
 0x477   : > { %v14749_v50 = vadd.f32 %v5777_v11, %v14497_v30  ;;  %v14751_v61 = vadd.f32 %v6484_v62, %v6269_v44  ;;  %v6805_v33 = vrot.slane %v6803_v1, 1  ;;  %v6270_v37 = vadd.f32 %v16149_v59, %v16148_v48  ;;  %v14759_v8 = vpop.f32.mrf.mxu0  ;;  %v9447_v44 = vld [vmem:[#allocation3 + $0x74] sm:$0xff]  ;;  %v16153_v48 = vld [vmem:[#allocation90_spill] sm:$0xff] }
 0x478   : > { %v16152_v59 = vunpack.c.h.bf16 %v14491_v4 }
 0x479   : > { %16146 = vst [vmem:[#allocation122_spill] sm:$0xff] %v14751_v61  ;;  %v6806_v10 = vsel %vm2012_vm6, %v6801_v43, %v6805_v33 }
 0x47a   : > { %v6666_v1 = vmul.f32 %v16152_v59, %v16112_v21  ;;  %v16156_v21 = vld [vmem:[#allocation41_spill] sm:$0xff] }
 0x47b   : > { %7411 = vmatmul.bf16.gmra.mxu3 %v16147_v23 }
 0x47d   : > { %v6924_v2 = vpop.f32.mrf.mxu2 }
 0x47e   : > { %v14755_v3 = vadd.f32 %v6924_v2, %v14647_v40  ;;  %v5780_v9 = vpop.f32.mrf.mxu3  ;;  %v6487_v62 = vpop.f32.mrf.mxu1  ;;  %v16151_v40 = vunpack.c.l.bf16 %v14542_v51 }
 0x47f   : > { %v14762_v30 = vadd.f32 %v5780_v9, %v14529_v31  ;;  %v14764_v11 = vadd.f32 %v6487_v62, %v6270_v37  ;;  %v9486_v31 = vld [vmem:[#allocation3 + $0x74] sm:$0xff]  ;;  %v16154_v37 = vld [vmem:[#allocation125_spill] sm:$0xff] }
 0x480   : > { %v6667_v2 = vmul.f32 %v16151_v40, %v16014_v5  ;;  %v6271_v62 = vadd.f32 %v16154_v37, %v16153_v48  ;;  %v16158_v48 = vld [vmem:[#allocation130_spill] sm:$0xff] }
 0x481   : > { %16150 = vst [vmem:[#allocation112_spill] sm:$0xff] %v14764_v11  ;;  %6526 = vmatmul.bf16.gmra.mxu1 %v9447_v44  ;;  %v9449_v11 = vld [vmem:[#allocation3 + $0x84] sm:$0xff] }
 0x482   : > { %6966 = vmatmul.bf16.gmra.mxu2 %v6806_v10  ;;  %v6686_v9 = vpack.c.bf16 %v6667_v2, %v6666_v1  ;;  %v14783_v10 = vpop.f32.mrf.mxu0  ;;  %v6807_v2 = vshrl.u32 %v6685_v26, 16  ;;  %v6669_v26 = vmul.f32 %v14610_v22, %v16119_v7  ;;  %v10489_v7 = vld [vmem:[#allocation3 + $0x18] sm:$0xff]  }
 0x484   : > { %v6811_v4 = vshll.u32 %v6686_v9, 16  ;;  %v6809_v37 = vor.u32 %v6807_v2, %v6805_v33  ;;  %v16161_v2 = vld [vmem:[#allocation102_spill] sm:$0xff] }
 0x485   : > { %v6927_v23 = vpop.f32.mrf.mxu2 }
 0x486   : > { %v14774_v63 = vadd.f32 %v6927_v23, %v14685_v52  ;;  %v5782_v15 = vpop.f32.mrf.mxu3  ;;  %v6489_v5 = vpop.f32.mrf.mxu1  ;;  %7723 = vmatmul.bf16.gmra.mxu0 %v9486_v31  ;;  %v6813_v52 = vrot.slane %v6811_v4, 1  ;;  %v16157_v23 = vld [vmem:[#allocation94_spill] sm:$0xff]  ;;  %v16160_v4 = vunpack.c.h.bf16 %v14542_v51 }
 0x487   : > { %v14779_v43 = vadd.f32 %v5782_v15, %v14549_v32  ;;  %v14781_v44 = vadd.f32 %v6489_v5, %v6271_v62  ;;  %v6272_v32 = vadd.f32 %v16158_v48, %v16157_v23  ;;  %v9448_v5 = vld [vmem:[#allocation3 + $0x7c] sm:$0xff]  ;;  %v6273_v23 = vadd.f32 %v16161_v2, %v14397_v13  ;;  %v6605_v51 = vld [vmem:[#allocation3 + $0x88] sm:$0xf] }
 0x488   : > { %v6815_v13 = vshrl.u32 %v6686_v9, 16 }
 0x489   : > { %16155 = vst [vmem:[#allocation14_spill] sm:$0xff] %v14781_v44 }
 0x48b   : > { %7416 = vmatmul.bf16.gmra.mxu3 %v16156_v21  ;;  %v6814_v21 = vsel %vm2012_vm6, %v6809_v37, %v6813_v52  ;;  %v7776_v37 = vld [vmem:[#allocation3 + $0x14] sm:$0xf] }
 0x48d   : > { %v6929_v40 = vpop.f32.mrf.mxu2 }
 0x48e   : > { %v14787_v59 = vadd.f32 %v6929_v40, %v14715_v20  ;;  %v5785_v1 = vpop.f32.mrf.mxu3  ;;  %v6492_v31 = vpop.f32.mrf.mxu1  ;;  %v6668_v40 = vmul.f32 %v16160_v4, %v16118_v27  ;;  %v14814_v27 = vld [vmem:[#allocation3 + $0x20] sm:$0xff]   ;;  %v6638_v4 = vunpack.c.l.bf16 %v6605_v51  ;;  %v16166_v51 = vld [vmem:[#allocation18_spill] sm:$0xff] }
 0x48f   : > { %v14792_v15 = vadd.f32 %v5785_v1, %v14578_v55  ;;  %v14794_v62 = vadd.f32 %v6492_v31, %v6272_v32  ;;  %v14799_v20 = vpop.f32.mrf.mxu0  ;;  %v9487_v55 = vld [vmem:[#allocation3 + $0x7c] sm:$0xff] }
 0x490   : > { %v14804_v1 = vpack.c.bf16 %v6669_v26, %v6668_v40  ;;  %v10255_v40 = vunpack.c.l.bf16 %v14814_v27 }
 0x491   : > { %16159 = vst [vmem:[#allocation108_spill] sm:$0xff] %v14794_v62  ;;  %6531 = vmatmul.bf16.gmra.mxu1 %v9448_v5  ;;  %v10251_v5 = vunpack.c.l.bf16 %v10489_v7  ;;  %v10252_v62 = vunpack.c.h.bf16 %v10489_v7 }
 0x492   : > { %6971 = vmatmul.bf16.gmra.mxu2 %v6814_v21  ;;  %v6819_v31 = vshll.u32 %v14804_v1, 16  ;;  %v7809_v21 = vunpack.c.l.bf16 %v7776_v37 }
 0x494   : > { %v7842_v61 = vmul.f32 %v7809_v21, %v16166_v51 }
 0x496   : > { %v5787_v33 = vpop.f32.mrf.mxu3  ;;  %v6494_v32 = vpop.f32.mrf.mxu1  ;;  %7728 = vmatmul.bf16.gmra.mxu0 %v9487_v55 }
 0x497   : > { %v14809_v48 = vadd.f32 %v5787_v33, %v14603_v28  ;;  %v14811_v22 = vadd.f32 %v6494_v32, %v6273_v23  ;;  %v14817_v26 = vpop.f32.mrf.mxu0  ;;  %v6821_v28 = vrot.slane %v6819_v31, 1  ;;  %v16164_v33 = vld [vmem:[#allocation43_spill] sm:$0xff]  ;;  %v6671_v31 = vmul.f32 %v6638_v4, %v16121_v60 }
 0x498   : > { %16163 = vst [vmem:[#allocation134_spill] sm:$0xff] %v14817_v26  ;;  %v6274_v2 = vadd.f32 %v16164_v33, %v14420_v41  ;;  %v7845_v26 = vmul.f32 %v10255_v40, %v16167_v25  ;;  %v6670_v41 = vmul.f32 %v14612_v24, %v16120_v56 }
 0x499   : > { %16162 = vst [vmem:[#allocation24_spill] sm:$0xff] %v14811_v22  ;;  %v6817_v22 = vor.u32 %v6815_v13, %v6813_v52 }
 0x49a   : > { %v6688_v13 = vpack.c.bf16 %v6671_v31, %v6670_v41 }
 0x49b   : > { %7421 = vmatmul.bf16.gmra.mxu3 %v14392_v49  ;;  %v16165_v49 = vld [vmem:[#allocation22_spill] sm:$0xff]  ;;  %v6822_v9 = vsel %vm2012_vm6, %v6817_v22, %v6821_v28  ;;  %v16169_v22 = vld [vmem:[#allocation55_spill] sm:$0xff] }
 0x49c   : > { %v7843_v44 = vmul.f32 %v10251_v5, %v16165_v49  ;;  %v9488_v5 = vld [vmem:[#allocation3 + $0x84] sm:$0xff]  ;;  %v6827_v24 = vshll.u32 %v6688_v13, 16 }
 0x49e   : > { %v7382_v55 = vpop.f32.mrf.mxu3  ;;  %v6497_v32 = vpop.f32.mrf.mxu1  ;;  %v7875_v7 = vpack.c.bf16 %v7843_v44, %v7842_v61  ;;  %v10491_v61 = vld [vmem:[#allocation3 + $0x28] sm:$0xff]   ;;  %v6829_v40 = vrot.slane %v6827_v24, 1 }
 0x49f   : > { %v14823_v23 = vadd.f32 %v7382_v55, %v14638_v14  ;;  %v14826_v37 = vadd.f32 %v6497_v32, %v6274_v2  ;;  %v16168_v14 = vld [vmem:[#allocation31_spill] sm:$0xff]  ;;  %v6275_v2 = vadd.f32 %v16169_v22, %v14443_v29  ;;  %v14837_v60 = vpop.f32.mrf.mxu0  ;;  %v6823_v29 = vshrl.u32 %v14804_v1, 16  ;;  %v16171_v22 = vld [vmem:[#allocation40_spill] sm:$0xff] }
 0x4a0   : > { %v7844_v52 = vmul.f32 %v10252_v62, %v16168_v14  ;;  %v6606_v62 = vld [vmem:[#allocation3 + $0x8c] sm:$0x1]  ;;  %v10259_v49 = vunpack.c.l.bf16 %v10491_v61 }
 0x4a1   : > { %6536 = vmatmul.bf16.gmra.mxu1 %v9449_v11  ;;  %v7912_v11 = vshll.u32 %v7875_v7, 16  ;;  %v6639_v51 = vunpack.c.l.bf16 %v6606_v62 }
 0x4a2   : > { %6976 = vmatmul.bf16.gmra.mxu2 %v6822_v9  ;;  %v7876_v55 = vpack.c.bf16 %v7845_v26, %v7844_v52  ;;  %v7910_v26 = vshrl.u32 %v7875_v7, 16  ;;  %v16170_v9 = vld [vmem:[#allocation23_spill] sm:$0xff]  ;;  %v6825_v52 = vor.u32 %v6823_v29, %v6821_v28  ;;  %v16174_v28 = vld [vmem:[#allocation129_spill] sm:$0xff] }
 0x4a3   : > { %v7914_v44 = vrot.slane %v7912_v11, 1  ;;  %v6276_v31 = vadd.f32 %v16170_v9, %v14458_v42  ;;  %v16172_v42 = vld [vmem:[#allocation131_spill] sm:$0xff]  ;;  %v6831_v9 = vshrl.u32 %v6688_v13, 16 }
 0x4a4   : > { %v7917_v56 = vshll.u32 %v7876_v55, 16  ;;  %v6830_v1 = vsel %vm2012_vm6, %v6825_v52, %v6829_v40  ;;  %v16173_v11 = vld [vmem:[#allocation39_spill] sm:$0xff] }
 0x4a6   : > { %v7384_v33 = vpop.f32.mrf.mxu3  ;;  %v6499_v25 = vpop.f32.mrf.mxu1  ;;  %7733 = vmatmul.bf16.gmra.mxu0 %v9488_v5  ;;  %v7919_v32 = vrot.slane %v7917_v56, 1  ;;  %v7915_v5 = vor.u32 %v7914_v44, %v7910_v26  ;;  %v6277_v44 = vadd.f32 %v16174_v28, %v14485_v45  ;;  %v16175_v45 = vld [vmem:[#allocation83_spill] sm:$0xff] }
 0x4a7   : > { %v14840_v21 = vadd.f32 %v7384_v33, %v14673_v36  ;;  %v14842_v4 = vadd.f32 %v6499_v25, %v6275_v2  ;;  %v7847_v2 = vmul.f32 %v10259_v49, %v16171_v22  ;;  %v6672_v25 = vmul.f32 %v6639_v51, %v16172_v42  ;;  %v10492_v49 = vld [vmem:[#allocation3 + $0x30] sm:$0xff]  }
 0x4a8   : > { %v7920_v7 = vsel %vm2012_vm6, %v7915_v5, %v7919_v32  ;;  %v6833_v51 = vor.u32 %v6831_v9, %v6829_v40  ;;  %v10263_v5 = vunpack.c.l.bf16 %v10492_v49 }
 0x4a9   : > { %v6689_v26 = vpack.c.bf16 %v6672_v25, %v6672_v25  ;;  %v10260_v25 = vunpack.c.h.bf16 %v10491_v61 }
 0x4ab   : > { %7426 = vmatmul.bf16.gmra.mxu3 %v14440_v35  ;;  %v10256_v35 = vunpack.c.h.bf16 %v14814_v27 }
 0x4ae   : > { %v7387_v36 = vpop.f32.mrf.mxu3  ;;  %v6502_v14 = vpop.f32.mrf.mxu1 }
 0x4af   : > { %v14849_v41 = vadd.f32 %v7387_v36, %v14704_v34  ;;  %v14852_v33 = vadd.f32 %v6502_v14, %v6276_v31  ;;  %v7846_v34 = vmul.f32 %v10256_v35, %v16173_v11  ;;  %v6835_v31 = vshll.u32 %v6689_v26, 16 }
 0x4b0   : > { %v7921_v14 = vshrl.u32 %v7876_v55, 16  ;;  %v16176_v55 = vld [vmem:[#allocation52_spill] sm:$0xff] }
 0x4b1   : > { %8113 = vmatmul.bf16.vlgmr.msra.gmra.mxu1 %v7920_v7  ;;  %v7877_v24 = vpack.c.bf16 %v7847_v2, %v7846_v34  ;;  %v6837_v22 = vrot.slane %v6835_v31, 1  ;;  %v7849_v40 = vmul.f32 %v10263_v5, %v16176_v55  ;;  %v16177_v34 = vld [vmem:[#allocation47_spill] sm:$0xff]  ;;  %v16182_v55 = vld [vmem:[#allocation92_spill] sm:$0xff] }
 0x4b2   : > { %6981 = vmatmul.bf16.gmra.mxu2 %v6830_v1  ;;  %v6278_v1 = vadd.f32 %v16175_v45, %v14504_v17  ;;  %v7923_v2 = vor.u32 %v7921_v14, %v7919_v32  ;;  %v16179_v5 = vld [vmem:[#allocation115_spill] sm:$0xff] }
 0x4b3   : > { %v7925_v36 = vshll.u32 %v7877_v24, 16  ;;  %v7929_v9 = vshrl.u32 %v7877_v24, 16 }
 0x4b5   : > { %v7927_v52 = vrot.slane %v7925_v36, 1  ;;  %v10493_v36 = vld [vmem:[#allocation3 + $0x38] sm:$0xff]  }
 0x4b6   : > { %v7389_v56 = vpop.f32.mrf.mxu3  ;;  %v6504_v62 = vpop.f32.mrf.mxu1 }
 0x4b7   : > { %v14862_v27 = vadd.f32 %v7389_v56, %v14722_v54  ;;  %v14864_v29 = vadd.f32 %v6504_v62, %v6277_v44  ;;  %v7928_v13 = vsel %vm2012_vm6, %v7923_v2, %v7927_v52  ;;  %v7848_v56 = vmul.f32 %v10260_v25, %v16177_v34  ;;  %v16180_v2 = vld [vmem:[#allocation56_spill] sm:$0xff]  ;;  %v10494_v34 = vld [vmem:[#allocation3 + $0x40] sm:$0xff]  }
 0x4b9   : > { %v7878_v17 = vpack.c.bf16 %v7849_v40, %v7848_v56  ;;  %v16183_v56 = vld [vmem:[#allocation133_spill] sm:$0xff] }
 0x4bb   : > { %7431 = vmatmul.bf16.gmra.mxu3 %v14494_v18  ;;  %v6838_v18 = vsel %vm2012_vm6, %v6833_v51, %v6837_v22  ;;  %v7933_v26 = vshll.u32 %v7878_v17, 16  ;;  %v10267_v51 = vunpack.c.l.bf16 %v10493_v36 }
 0x4bd   : > { %v7935_v31 = vrot.slane %v7933_v26, 1  ;;  %v7851_v25 = vmul.f32 %v10267_v51, %v16180_v2  ;;  %v16185_v26 = vld [vmem:[#allocation32_spill] sm:$0xff] }
 0x4be   : > { %v7392_v35 = vpop.f32.mrf.mxu3  ;;  %v6507_v7 = vpop.f32.mrf.mxu1  ;;  %v16188_v2 = vld [vmem:[#allocation60_spill] sm:$0xff] }
 0x4bf   : > { %v14870_v54 = vadd.f32 %v7392_v35, %v14744_v47  ;;  %v14872_v11 = vadd.f32 %v6507_v7, %v6278_v1  ;;  %v16178_v47 = vld [vmem:[#allocation91_spill] sm:$0xff]  ;;  %v6280_v35 = vadd.f32 %v16179_v5, %v14554_v53  ;;  %v10264_v1 = vunpack.c.h.bf16 %v10492_v49 }
 0x4c0   : > { %v6279_v44 = vadd.f32 %v16178_v47, %v14534_v38  ;;  %v6281_v53 = vadd.f32 %v16182_v55, %v14583_v57  ;;  %v10268_v5 = vunpack.c.h.bf16 %v10493_v36 }
 0x4c1   : > { %8118 = vmatmul.bf16.gmra.mxu1 %v7928_v13 }
 0x4c2   : > { %6986 = vmatmul.bf16.gmra.mxu2 %v6838_v18 }
 0x4c6   : > { %v7394_v28 = vpop.f32.mrf.mxu3  ;;  %v6509_v61 = vpop.f32.mrf.mxu1 }
 0x4c7   : > { %v14881_v32 = vadd.f32 %v7394_v28, %v14755_v3  ;;  %v14883_v62 = vadd.f32 %v6509_v61, %v6279_v44  ;;  %v7931_v3 = vor.u32 %v7929_v9, %v7927_v52  ;;  %v7937_v28 = vshrl.u32 %v7878_v17, 16  ;;  %v16184_v61 = vld [vmem:[#allocation59_spill] sm:$0xff]  ;;  %v16189_v17 = vld [vmem:[#allocation121_spill] sm:$0xff] }
 0x4c8   : > { %v10271_v44 = vunpack.c.l.bf16 %v10494_v34  ;;  %v6282_v9 = vadd.f32 %v16185_v26, %v16184_v61  ;;  %v10495_v61 = vld [vmem:[#allocation3 + $0x48] sm:$0xff]  }
 0x4c9   : > { %v7936_v22 = vsel %vm2012_vm6, %v7931_v3, %v7935_v31  ;;  %v16187_v3 = vld [vmem:[#allocation65_spill] sm:$0xff] }
 0x4cb   : > { %7436 = vmatmul.bf16.gmra.mxu3 %v14546_v6  ;;  %v16181_v6 = vld [vmem:[#allocation58_spill] sm:$0xff] }
 0x4cc   : > { %v7850_v24 = vmul.f32 %v10264_v1, %v16181_v6  ;;  %v7852_v1 = vmul.f32 %v10268_v5, %v16187_v3  ;;  %v16190_v6 = vld [vmem:[#allocation49_spill] sm:$0xff] }
 0x4ce   : > { %v7397_v14 = vpop.f32.mrf.mxu3  ;;  %v6512_v38 = vpop.f32.mrf.mxu1  ;;  %v7879_v18 = vpack.c.bf16 %v7851_v25, %v7850_v24  ;;  %v6283_v25 = vadd.f32 %v16189_v17, %v16188_v2  ;;  %v16191_v24 = vld [vmem:[#allocation101_spill] sm:$0xff]  ;;  %v9489_v17 = vld [vmem:[#allocation3 + $0x8c] sm:$0xff] }
 0x4cf   : > { %v14889_v45 = vadd.f32 %v7397_v14, %v14774_v63  ;;  %v14891_v7 = vadd.f32 %v6512_v38, %v6280_v35  ;;  %v7939_v14 = vor.u32 %v7937_v28, %v7935_v31  ;;  %v16186_v35 = vld [vmem:[#allocation66_spill] sm:$0xff]  ;;  %v16194_v36 = vunpack.c.h.bf16 %v16191_v24 }
 0x4d0   : > { %v7941_v49 = vshll.u32 %v7879_v18, 16  ;;  %v7853_v38 = vmul.f32 %v10271_v44, %v16186_v35  ;;  %v7945_v26 = vshrl.u32 %v7879_v18, 16 }
 0x4d1   : > { %8123 = vmatmul.bf16.gmra.mxu1 %v7936_v22 }
 0x4d2   : > { %v7943_v47 = vrot.slane %v7941_v49, 1  ;;  %v7880_v22 = vpack.c.bf16 %v7853_v38, %v7852_v1  ;;  %v14919_v49 = vpop.f32.mrf.mxu0  ;;  %v10272_v1 = vunpack.c.h.bf16 %v10494_v34  ;;  %v16198_v34 = vld [vmem:[#allocation36_spill] sm:$0xff] }
 0x4d4   : > { %v7949_v28 = vshll.u32 %v7880_v22, 16  ;;  %v7947_v3 = vor.u32 %v7945_v26, %v7943_v47  ;;  %v16199_v26 = vld [vmem:[#allocation46_spill] sm:$0xff] }
 0x4d6   : > { %v7399_v13 = vpop.f32.mrf.mxu3  ;;  %v6514_v40 = vpop.f32.mrf.mxu1 }
 0x4d7   : > { %v14899_v63 = vadd.f32 %v7399_v13, %v14787_v59  ;;  %v14901_v52 = vadd.f32 %v6514_v40, %v6281_v53  ;;  %v7944_v59 = vsel %vm2012_vm6, %v7939_v14, %v7943_v47  ;;  %v16192_v13 = vunpack.c.l.bf16 %v16191_v24  ;;  %v16193_v53 = vld [vmem:[#allocation50_spill] sm:$0xff] }
 0x4d8   : > { %v7121_v31 = vmul.f32 %v16194_v36, %v16193_v53  ;;  %v16195_v14 = vld [vmem:[#allocation98_spill] sm:$0xff]  ;;  %v6285_v47 = vadd.f32 %v16198_v34, %v14713_v58 }
 0x4d9   : > { %v7120_v55 = vmul.f32 %v16192_v13, %v16190_v6  ;;  %v6284_v5 = vadd.f32 %v16195_v14, %v14682_v0  ;;  %v16196_v6 = vld [vmem:[#allocation72_spill] sm:$0xff]  ;;  %v7056_v13 = vld [vmem:[#allocation3 + $0x90] sm:$0xf] }
 0x4da   : > { %v16197_v0 = vld [vmem:[#allocation71_spill] sm:$0xff]  ;;  %v7089_v36 = vunpack.c.l.bf16 %v7056_v13  ;;  %v10276_v13 = vunpack.c.h.bf16 %v10495_v61 }
 0x4db   : > { %7441 = vmatmul.bf16.gmra.mxu3 %v16183_v56  ;;  %v7138_v44 = vpack.c.bf16 %v7121_v31, %v7120_v55  ;;  %v7854_v53 = vmul.f32 %v10272_v1, %v16197_v0 }
 0x4dd   : > { %v7295_v35 = vshll.u32 %v7138_v44, 16 }
 0x4de   : > { %v6517_v51 = vpop.f32.mrf.mxu1 }
 0x4df   : > { %v14906_v57 = vadd.f32 %v6517_v51, %v6282_v9  ;;  %v7951_v9 = vrot.slane %v7949_v28, 1  ;;  %v10275_v51 = vunpack.c.l.bf16 %v10495_v61  ;;  %v7297_v55 = vrot.slane %v7295_v35, 4 }
 0x4e1   : > { %8128 = vmatmul.bf16.gmra.mxu1 %v7944_v59  ;;  %v7292_v59 = vshrl.u32 %v7138_v44, 16  ;;  %v7855_v24 = vmul.f32 %v10275_v51, %v16196_v6  ;;  %v7122_v51 = vmul.f32 %v7089_v36, %v16199_v26  ;;  %v16202_v36 = vld [vmem:[#allocation81_spill] sm:$0xff] }
 0x4e3   : > { %v7294_v18 = vrot.slane %v7292_v59, 3  ;;  %v7881_v31 = vpack.c.bf16 %v7855_v24, %v7854_v53  ;;  %v10496_v59 = vld [vmem:[#allocation3 + $0x50] sm:$0xff]   ;;  %v7139_v35 = vpack.c.bf16 %v7122_v51, %v7122_v51 }
 0x4e5   : > { %v7957_v14 = vshll.u32 %v7881_v31, 16  ;;  %v7304_v0 = vshll.u32 %v7139_v35, 16 }
 0x4e6   : > { %v6519_v40 = vpop.f32.mrf.mxu1 }
 0x4e7   : > { %v14921_v56 = vadd.f32 %v6519_v40, %v6283_v25  ;;  %v7952_v25 = vsel %vm2012_vm6, %v7947_v3, %v7951_v9  ;;  %v7298_v40 = vor.u32 %v7297_v55, %v7294_v18  ;;  %v7953_v3 = vshrl.u32 %v7880_v22, 16 }
 0x4e8   : > { %v7959_v1 = vrot.slane %v7957_v14, 1  ;;  %v7301_v55 = vshrl.u32 %v7139_v35, 16  ;;  %v7306_v26 = vrot.slane %v7304_v0, 4  ;;  %v16204_v14 = vld [vmem:[#allocation97_spill] sm:$0xff]  ;;  %v10280_v0 = vunpack.c.h.bf16 %v10496_v59 }
 0x4e9   : > { %v7955_v24 = vor.u32 %v7953_v3, %v7951_v9  ;;  %v10497_v3 = vld [vmem:[#allocation3 + $0x58] sm:$0xff]  }
 0x4ea   : > { %v7303_v22 = vrot.slane %v7301_v55, 3 }
 0x4eb   : > { %7446 = vmatmul.bf16.gmra.mxu3 %v14670_v39  ;;  %v14930_v39 = vpop.f32.mrf.mxu0  ;;  %7738 = vmatmul.bf16.gmra.mxu0 %v9489_v17  ;;  %v10279_v17 = vunpack.c.l.bf16 %v10496_v59  ;;  %v7960_v53 = vsel %vm2012_vm6, %v7955_v24, %v7959_v1 }
 0x4ec   : > { %v7307_v61 = vor.u32 %v7306_v26, %v7303_v22 }
 0x4ed   : > { %v7857_v34 = vmul.f32 %v10279_v17, %v16202_v36  ;;  %v16206_v36 = vld [vmem:[#allocation88_spill] sm:$0xff] }
 0x4ee   : > { %v6522_v38 = vpop.f32.mrf.mxu1  ;;  %v7308_v35 = vsel %vm1184_vm4, %v7298_v40, %v7307_v61  ;;  %v16209_v61 = vld [vmem:[#allocation54_spill] sm:$0xff] }
 0x4ef   : > { %v14926_v2 = vadd.f32 %v6522_v38, %v6284_v5  ;;  %v16200_v5 = vld [vmem:[#allocation105_spill] sm:$0xff] }
 0x4f0   : > { %v7299_v38 = vsel %vm1184_vm4, %v16200_v5, %v7298_v40 }
 0x4f1   : > { %8133 = vmatmul.bf16.gmra.mxu1 %v7952_v25  ;;  %v16201_v25 = vld [vmem:[#allocation128_spill] sm:$0xff] }
 0x4f2   : > { %v6286_v6 = vadd.f32 %v16201_v25, %v14727_v46  ;;  %v6287_v46 = vadd.f32 %v16204_v14, %v14749_v50  ;;  %v7961_v25 = vshrl.u32 %v7881_v31, 16  ;;  %v16208_v31 = vld [vmem:[#allocation100_spill] sm:$0xff] }
 0x4f3   : > { %v6289_v22 = vadd.f32 %v16208_v31, %v14779_v43  ;;  %v7744_v31 = vadd.f32 %v14741_v16, %v14823_v23  ;;  %v16213_v16 = vld [vmem:[#allocation103_spill] sm:$0xff] }
 0x4f4   : > { %v7963_v55 = vor.u32 %v7961_v25, %v7959_v1 }
 0x4f6   : > { %v6524_v28 = vpop.f32.mrf.mxu1 }
 0x4f7   : > { %v14935_v44 = vadd.f32 %v6524_v28, %v6285_v47  ;;  %v16203_v47 = vld [vmem:[#allocation80_spill] sm:$0xff] }
 0x4f8   : > { %v7856_v28 = vmul.f32 %v10276_v13, %v16203_v47  ;;  %v16207_v47 = vld [vmem:[#allocation87_spill] sm:$0xff] }
 0x4f9   : > { %v7858_v40 = vmul.f32 %v10280_v0, %v16207_v47 }
 0x4fa   : > { %v7882_v51 = vpack.c.bf16 %v7857_v34, %v7856_v28 }
 0x4fb   : > { %7451 = vmatmul.bf16.gmra.mxu3 %v7299_v38 }
 0x4fc   : > { %v7965_v38 = vshll.u32 %v7882_v51, 16  ;;  %v7969_v1 = vshrl.u32 %v7882_v51, 16  ;;  %v6291_v51 = vadd.f32 %v14717_v19, %v14809_v48 }
 0x4fe   : > { %v6527_v58 = vpop.f32.mrf.mxu1  ;;  %v7967_v17 = vrot.slane %v7965_v38, 1  ;;  %v6290_v38 = vadd.f32 %v16209_v61, %v14792_v15 }
 0x4ff   : > { %v14942_v18 = vadd.f32 %v6527_v58, %v6286_v6  ;;  %v10283_v6 = vunpack.c.l.bf16 %v10497_v3  ;;  %v16205_v58 = vld [vmem:[#allocation42_spill] sm:$0xff] }
 0x500   : > { %v6288_v24 = vadd.f32 %v16205_v58, %v14762_v30  ;;  %v7968_v50 = vsel %vm2012_vm6, %v7963_v55, %v7967_v17  ;;  %v7971_v25 = vor.u32 %v7969_v1, %v7967_v17  ;;  %v16211_v55 = vld [vmem:[#allocation95_spill] sm:$0xff]  ;;  %v10499_v17 = vld [vmem:[#allocation3 + $0x68] sm:$0xff]  }
 0x501   : > { %8138 = vmatmul.bf16.gmra.mxu1 %v7960_v53  ;;  %v7859_v34 = vmul.f32 %v10283_v6, %v16206_v36  ;;  %v10284_v6 = vunpack.c.h.bf16 %v10497_v3 }
 0x503   : > { %v7883_v28 = vpack.c.bf16 %v7859_v34, %v7858_v40  ;;  %v7860_v0 = vmul.f32 %v10284_v6, %v16211_v55  ;;  %v10291_v40 = vunpack.c.l.bf16 %v10499_v17 }
 0x505   : > { %v7973_v30 = vshll.u32 %v7883_v28, 16  ;;  %v7977_v3 = vshrl.u32 %v7883_v28, 16 }
 0x506   : > { %v6529_v5 = vpop.f32.mrf.mxu1 }
 0x507   : > { %v14949_v9 = vadd.f32 %v6529_v5, %v6287_v46  ;;  %v10498_v46 = vld [vmem:[#allocation3 + $0x60] sm:$0xff]   ;;  %v7975_v59 = vrot.slane %v7973_v30, 1 }
 0x508   : > { %v10287_v5 = vunpack.c.l.bf16 %v10498_v46  ;;  %v10288_v48 = vunpack.c.h.bf16 %v10498_v46 }
 0x509   : > { %v7979_v19 = vor.u32 %v7977_v3, %v7975_v59 }
 0x50a   : > { %v7862_v23 = vmul.f32 %v10288_v48, %v16213_v16 }
 0x50b   : > { %7456 = vmatmul.bf16.gmra.mxu3 %v7308_v35 }
 0x50e   : > { %v6532_v13 = vpop.f32.mrf.mxu1 }
 0x50f   : > { %v14954_v53 = vadd.f32 %v6532_v13, %v6288_v24  ;;  %v7976_v24 = vsel %vm2012_vm6, %v7971_v25, %v7975_v59  ;;  %v16210_v13 = vld [vmem:[#allocation96_spill] sm:$0xff]  ;;  %v10543_v59 = vld [vmem:[%s10696_s16] sm:$0xff]  ;;  %v14997_v25 = vpop.f32.mrf.mxu2 }
 0x510   : > { %v7861_v43 = vmul.f32 %v10287_v5, %v16210_v13  ;;  %v16212_v5 = vld [vmem:[#allocation104_spill] sm:$0xff]  ;;  %v14999_v13 = vpop.f32.mrf.mxu3 }
 0x511   : > { %8143 = vmatmul.bf16.gmra.mxu1 %v7968_v50  ;;  %v7863_v61 = vmul.f32 %v10291_v40, %v16212_v5 }
 0x512   : > { %v7884_v50 = vpack.c.bf16 %v7861_v43, %v7860_v0  ;;  %v10500_v0 = vld [vmem:[#allocation3 + $0x70] sm:$0xff]  }
 0x513   : > { %v10295_v40 = vunpack.c.l.bf16 %v10500_v0 }
 0x514   : > { %v7981_v15 = vshll.u32 %v7884_v50, 16 }
 0x516   : > { %v6534_v26 = vpop.f32.mrf.mxu1  ;;  %v7983_v47 = vrot.slane %v7981_v15, 1  ;;  %v7985_v15 = vshrl.u32 %v7884_v50, 16  ;;  %v16214_v50 = vld [vmem:[#allocation110_spill] sm:$0xff] }
 0x517   : > { %v14961_v14 = vadd.f32 %v6534_v26, %v6289_v22  ;;  %v14979_v22 = vld [vmem:[%s15223_s5] ss:$0 sm:$0xff]  ;;  %v7865_v5 = vmul.f32 %v10295_v40, %v16214_v50 }
 0x518   : > { %v7984_v1 = vsel %vm2012_vm6, %v7979_v19, %v7983_v47  ;;  %v10292_v19 = vunpack.c.h.bf16 %v10499_v17  ;;  %v7747_v17 = vadd.f32 %v14799_v20, %v14862_v27  ;;  %v16216_v20 = vld [vmem:[#allocation134_spill] sm:$0xff] }
 0x519   : > { %v7748_v27 = vadd.f32 %v16216_v20, %v14870_v54 }
 0x51e   : > { %v6537_v35 = vpop.f32.mrf.mxu1 }
 0x51f   : > { %v14965_v58 = vadd.f32 %v6537_v35, %v6290_v38  ;;  %v7885_v38 = vpack.c.bf16 %v7863_v61, %v7862_v23  ;;  %v7745_v35 = vadd.f32 %v14759_v8, %v14840_v21  ;;  %v7746_v8 = vadd.f32 %v14783_v10, %v14849_v41  ;;  %v15007_v21 = vpop.f32.mrf.mxu0  ;;  %v10545_v41 = vld [vmem:[%s10696_s16 + $0x10] sm:$0xff] }
 0x520   : > { %v7864_v10 = vmul.f32 %v10292_v19, %v16129_v12 }
 0x521   : > { %8148 = vmatmul.bf16.gmra.mxu1 %v7976_v24  ;;  %v7989_v43 = vshll.u32 %v7885_v38, 16 }
 0x523   : > { %v7991_v3 = vrot.slane %v7989_v43, 1  ;;  %v10546_v43 = vld [vmem:[%s10696_s16 + $0x18] sm:$0xff] }
 0x526   : > { %v6539_v36 = vpop.f32.mrf.mxu1 }
 0x527   : > { %v14972_v34 = vadd.f32 %v6539_v36, %v6291_v51  ;;  %v10544_v51 = vld [vmem:[%s10696_s16 + $0x8] sm:$0xff] }
 0x52e   : > { %v8114_v26 = vpop.f32.mrf.mxu1 }
 0x52f   : > { %v8194_v30 = vadd.f32 %v8114_v26, %v7744_v31  ;;  %v7987_v26 = vor.u32 %v7985_v15, %v7983_v47  ;;  %v7886_v47 = vpack.c.bf16 %v7865_v5, %v7864_v10  ;;  %v16215_v15 = vld [vmem:[#allocation48_spill] sm:$0xff] }
 0x530   : > { %v10299_v40 = vunpack.c.l.bf16 %v16215_v15 }
 0x531   : > { %v8230_v28 = vadd.f32 %v14979_v22, %v8194_v30  ;;  %8153 = vmatmul.bf16.gmra.mxu1 %v7984_v1  ;;  %v15009_v30 = vpop.f32.mrf.mxu2  ;;  %v7992_v1 = vsel %vm2012_vm6, %v7987_v26, %v7991_v3  ;;  %v10296_v26 = vunpack.c.h.bf16 %v10500_v0  ;;  %v7749_v0 = vadd.f32 %v14837_v60, %v14881_v32 }
 0x532   : > { %v8001_v15 = vshrl.u32 %v7886_v47, 16  ;;  %v7750_v60 = vadd.f32 %v14919_v49, %v14889_v45  ;;  %v7751_v45 = vadd.f32 %v14930_v39, %v14899_v63 }
 0x533   : > { %v8262_v46 = vadd.f32 %v10543_v59, %v8230_v28  ;;  %v15014_v28 = vpop.f32.mrf.mxu3 }
 0x535   : > { %8294 = vst.msk [vmem:[%s14989_s17] sm:$0xff] %vm1042_vm2, %v8262_v46  ;;  %v15022_v46 = vpop.f32.mrf.mxu0 }
 0x536   : > { %v8116_v6 = vpop.f32.mrf.mxu1 }
 0x537   : > { %v8195_v24 = vadd.f32 %v8116_v6, %v7745_v35  ;;  %v7997_v35 = vshll.u32 %v7886_v47, 16  ;;  %v10549_v47 = vld [vmem:[%s10696_s16 + $0x30] sm:$0xff] }
 0x539   : > { %v8231_v55 = vadd.f32 %v14979_v22, %v8195_v24  ;;  %v15025_v24 = vpop.f32.mrf.mxu2 }
 0x53b   : > { %v8263_v36 = vadd.f32 %v10544_v51, %v8231_v55  ;;  %v15028_v55 = vpop.f32.mrf.mxu3  ;;  %v7993_v51 = vshrl.u32 %v7885_v38, 16 }
 0x53d   : > { %8295 = vst.msk [vmem:[%s14989_s17 + $0x8] sm:$0xff] %vm1042_vm2, %v8263_v36  ;;  %v7999_v36 = vrot.slane %v7997_v35, 1  ;;  %v15038_v5 = vpop.f32.mrf.mxu0 }
 0x53e   : > { %v8119_v31 = vpop.f32.mrf.mxu1 }
 0x53f   : > { %v8196_v48 = vadd.f32 %v8119_v31, %v7746_v8  ;;  %v7995_v31 = vor.u32 %v7993_v51, %v7991_v3 }
 0x541   : > { %v8232_v61 = vadd.f32 %v14979_v22, %v8196_v48  ;;  %8158 = vmatmul.bf16.gmra.mxu1 %v7992_v1  ;;  %v8000_v48 = vsel %vm2012_vm6, %v7995_v31, %v7999_v36  ;;  %v16217_v1 = vld [vmem:[#allocation113_spill] sm:$0xff]  ;;  %v15042_v54 = vpop.f32.mrf.mxu2 }
 0x542   : > { %v7867_v50 = vmul.f32 %v10299_v40, %v16217_v1 }
 0x543   : > { %v8264_v16 = vadd.f32 %v10545_v41, %v8232_v61  ;;  %v16218_v61 = vld [vmem:[#allocation114_spill] sm:$0xff] }
 0x544   : > { %v7866_v10 = vmul.f32 %v10296_v26, %v16218_v61  ;;  %v10547_v41 = vld [vmem:[%s10696_s16 + $0x20] sm:$0xff] }
 0x545   : > { %8296 = vst.msk [vmem:[%s14989_s17 + $0x10] sm:$0xff] %vm1042_vm2, %v8264_v16  ;;  %v15052_v51 = vpop.f32.mrf.mxu0 }
 0x546   : > { %v8121_v23 = vpop.f32.mrf.mxu1  ;;  %v7887_v3 = vpack.c.bf16 %v7867_v50, %v7866_v10 }
 0x547   : > { %v8197_v59 = vadd.f32 %v8121_v23, %v7747_v17  ;;  %v15048_v17 = vpop.f32.mrf.mxu3 }
 0x548   : > { %v8005_v35 = vshll.u32 %v7887_v3, 16 }
 0x549   : > { %v8233_v6 = vadd.f32 %v14979_v22, %v8197_v59  ;;  %v15058_v32 = vpop.f32.mrf.mxu2 }
 0x54a   : > { %v8007_v40 = vrot.slane %v8005_v35, 1 }
 0x54b   : > { %v8265_v12 = vadd.f32 %v10546_v43, %v8233_v6  ;;  %v10548_v43 = vld [vmem:[%s10696_s16 + $0x28] sm:$0xff] }
 0x54d   : > { %8297 = vst.msk [vmem:[%s14989_s17 + $0x18] sm:$0xff] %vm1042_vm2, %v8265_v12  ;;  %v7694_v49 = vpop.f32.mrf.mxu0 }
 0x54e   : > { %v8124_v8 = vpop.f32.mrf.mxu1 }
 0x54f   : > { %v8198_v19 = vadd.f32 %v8124_v8, %v7748_v27  ;;  %v8003_v27 = vor.u32 %v8001_v15, %v7999_v36  ;;  %v15060_v31 = vpop.f32.mrf.mxu3  ;;  %v16219_v36 = vld [vmem:[#allocation107_spill] sm:$0xff] }
 0x550   : > { %v7000_v50 = vadd.f32 %v14997_v25, %v16219_v36 }
 0x551   : > { %v8234_v38 = vadd.f32 %v14979_v22, %v8198_v19  ;;  %8163 = vmatmul.bf16.gmra.mxu1 %v8000_v48  ;;  %v8008_v26 = vsel %vm2012_vm6, %v8003_v27, %v8007_v40  ;;  %v6944_v61 = vpop.f32.mrf.mxu2  ;;  %v10551_v27 = vld [vmem:[%s10696_s16 + $0x40] sm:$0xff] }
 0x552   : > { %v7470_v10 = vadd.f32 %v14999_v13, %v7000_v50  ;;  %v16221_v13 = vld [vmem:[#allocation106_spill] sm:$0xff] }
 0x553   : > { %v8266_v16 = vadd.f32 %v10547_v41, %v8234_v38 }
 0x554   : > { %v7752_v63 = vadd.f32 %v15007_v21, %v7470_v10 }
 0x555   : > { %8298 = vst.msk [vmem:[%s14989_s17 + $0x20] sm:$0xff] %vm1042_vm2, %v8266_v16 }
 0x556   : > { %v8126_v23 = vpop.f32.mrf.mxu1 }
 0x557   : > { %v8199_v59 = vadd.f32 %v8126_v23, %v7749_v0  ;;  %v7414_v16 = vpop.f32.mrf.mxu3  ;;  %v10550_v0 = vld [vmem:[%s10696_s16 + $0x38] sm:$0xff] }
 0x559   : > { %v8235_v6 = vadd.f32 %v14979_v22, %v8199_v59  ;;  %v8009_v59 = vshrl.u32 %v7887_v3, 16 }
 0x55b   : > { %v8267_v12 = vadd.f32 %v10548_v43, %v8235_v6  ;;  %v8011_v35 = vor.u32 %v8009_v59, %v8007_v40  ;;  %v16220_v6 = vld [vmem:[#allocation122_spill] sm:$0xff]  ;;  %v16224_v59 = vld [vmem:[#allocation73_spill] sm:$0xff] }
 0x55c   : > { %v7001_v25 = vadd.f32 %v15009_v30, %v16220_v6 }
 0x55d   : > { %8299 = vst.msk [vmem:[%s14989_s17 + $0x28] sm:$0xff] %vm1042_vm2, %v8267_v12  ;;  %v7696_v12 = vpop.f32.mrf.mxu0  ;;  %v8016_v15 = vsel %vm2012_vm6, %v8011_v35, %v16221_v13 }
 0x55e   : > { %v8129_v20 = vpop.f32.mrf.mxu1 }
 0x55f   : > { %v8200_v8 = vadd.f32 %v8129_v20, %v7750_v60  ;;  %v7471_v60 = vadd.f32 %v15014_v28, %v7001_v25  ;;  %v6947_v20 = vpop.f32.mrf.mxu2 }
 0x561   : > { %v8236_v19 = vadd.f32 %v14979_v22, %v8200_v8  ;;  %8168 = vmatmul.bf16.gmra.mxu1 %v8008_v26  ;;  %v7417_v8 = vpop.f32.mrf.mxu3  ;;  %v7753_v30 = vadd.f32 %v15022_v46, %v7471_v60  ;;  %v16222_v26 = vld [vmem:[#allocation112_spill] sm:$0xff] }
 0x563   : > { %v8268_v48 = vadd.f32 %v10549_v47, %v8236_v19  ;;  %v7002_v19 = vadd.f32 %v15025_v24, %v16222_v26 }
 0x565   : > { %8300 = vst.msk [vmem:[%s14989_s17 + $0x30] sm:$0xff] %vm1042_vm2, %v8268_v48  ;;  %v7472_v28 = vadd.f32 %v15028_v55, %v7002_v19  ;;  %v16226_v19 = vld [vmem:[#allocation24_spill] sm:$0xff] }
 0x566   : > { %v8131_v1 = vpop.f32.mrf.mxu1 }
 0x567   : > { %v8201_v38 = vadd.f32 %v8131_v1, %v7751_v45  ;;  %v7699_v45 = vpop.f32.mrf.mxu0  ;;  %v10552_v1 = vld [vmem:[%s10696_s16 + $0x48] sm:$0xff]  ;;  %v6949_v50 = vpop.f32.mrf.mxu2 }
 0x569   : > { %v8237_v41 = vadd.f32 %v14979_v22, %v8201_v38  ;;  %v7754_v38 = vadd.f32 %v15038_v5, %v7472_v28  ;;  %v7419_v46 = vpop.f32.mrf.mxu3 }
 0x56b   : > { %v8269_v23 = vadd.f32 %v10550_v0, %v8237_v41  ;;  %v16223_v41 = vld [vmem:[#allocation14_spill] sm:$0xff] }
 0x56c   : > { %v7003_v24 = vadd.f32 %v15042_v54, %v16223_v41 }
 0x56d   : > { %8301 = vst.msk [vmem:[%s14989_s17 + $0x38] sm:$0xff] %vm1042_vm2, %v8269_v23 }
 0x56e   : > { %v8134_v39 = vpop.f32.mrf.mxu1  ;;  %v7473_v55 = vadd.f32 %v15048_v17, %v7003_v24 }
 0x56f   : > { %v8202_v43 = vadd.f32 %v8134_v39, %v7752_v63  ;;  %v10553_v63 = vld [vmem:[%s10696_s16 + $0x50] sm:$0xff]  ;;  %v7701_v35 = vpop.f32.mrf.mxu0  ;;  %v6952_v6 = vpop.f32.mrf.mxu2 }
 0x570   : > { %v7755_v5 = vadd.f32 %v15052_v51, %v7473_v55 }
 0x571   : > { %v8238_v3 = vadd.f32 %v14979_v22, %v8202_v43  ;;  %8173 = vmatmul.bf16.gmra.mxu1 %v8016_v15  ;;  %v16225_v43 = vld [vmem:[#allocation108_spill] sm:$0xff]  ;;  %v7422_v15 = vpop.f32.mrf.mxu3 }
 0x572   : > { %v7004_v54 = vadd.f32 %v15058_v32, %v16225_v43 }
 0x573   : > { %v8270_v21 = vadd.f32 %v10551_v27, %v8238_v3  ;;  %v10554_v3 = vld [vmem:[%s10696_s16 + $0x58] sm:$0xff] }
 0x574   : > { %v7474_v17 = vadd.f32 %v15060_v31, %v7004_v54 }
 0x575   : > { %8302 = vst.msk [vmem:[%s14989_s17 + $0x40] sm:$0xff] %vm1042_vm2, %v8270_v21  ;;  %v7808_v21 = vld [vmem:[#allocation3 + $0x94] sm:$0x1] }
 0x576   : > { %v8136_v40 = vpop.f32.mrf.mxu1  ;;  %v7841_v26 = vunpack.c.l.bf16 %v7808_v21 }
 0x577   : > { %v8203_v47 = vadd.f32 %v8136_v40, %v7753_v30  ;;  %v7756_v30 = vadd.f32 %v7694_v49, %v7474_v17  ;;  %v7704_v51 = vpop.f32.mrf.mxu0  ;;  %v6954_v28 = vpop.f32.mrf.mxu2 }
 0x579   : > { %v8239_v48 = vadd.f32 %v14979_v22, %v8203_v47  ;;  %v7005_v47 = vadd.f32 %v6944_v61, %v16226_v19  ;;  %v7006_v61 = vadd.f32 %v6947_v20, %v14826_v37 }
 0x57b   : > { %v8271_v36 = vadd.f32 %v10552_v1, %v8239_v48  ;;  %v7475_v48 = vadd.f32 %v7414_v16, %v7005_v47  ;;  %v16227_v1 = vld [vmem:[#allocation11_spill] sm:$0xff] }
 0x57d   : > { %8303 = vst.msk [vmem:[%s14989_s17 + $0x48] sm:$0xff] %vm1042_vm2, %v8271_v36  ;;  %v7424_v36 = vpop.f32.mrf.mxu3  ;;  %v7757_v49 = vadd.f32 %v7696_v12, %v7475_v48 }
 0x57e   : > { %v8139_v10 = vpop.f32.mrf.mxu1 }
 0x57f   : > { %v8204_v0 = vadd.f32 %v8139_v10, %v7754_v38  ;;  %v7874_v38 = vmul.f32 %v7841_v26, %v16172_v42  ;;  %v10555_v10 = vld [vmem:[%s10696_s16 + $0x60] sm:$0xff]  ;;  %v7706_v16 = vpop.f32.mrf.mxu0  ;;  %v10556_v42 = vld [vmem:[%s10696_s16 + $0x68] sm:$0xff] }
 0x581   : > { %v8240_v23 = vadd.f32 %v14979_v22, %v8204_v0  ;;  %8178 = vmatmul.bf16.gmra.mxu1 %v16224_v59  ;;  %v7891_v0 = vpack.c.bf16 %v7874_v38, %v7874_v38 }
 0x583   : > { %v8272_v39 = vadd.f32 %v10553_v63, %v8240_v23  ;;  %v7476_v23 = vadd.f32 %v7417_v8, %v7006_v61  ;;  %v6957_v63 = vpop.f32.mrf.mxu2  ;;  %v7007_v8 = vadd.f32 %v6949_v50, %v14842_v4  ;;  %v7008_v4 = vadd.f32 %v6952_v6, %v14852_v33 }
 0x585   : > { %8304 = vst.msk [vmem:[%s14989_s17 + $0x50] sm:$0xff] %vm1042_vm2, %v8272_v39  ;;  %v16228_v39 = vld [vmem:[#allocation64_spill] sm:$0xff]  ;;  %v7427_v54 = vpop.f32.mrf.mxu3  ;;  %v7758_v17 = vadd.f32 %v7699_v45, %v7476_v23  ;;  %v7478_v48 = vadd.f32 %v7422_v15, %v7008_v4  ;;  %v10559_v15 = vld [vmem:[%s10696_s16 + $0x80] sm:$0xff] }
 0x586   : > { %v8141_v25 = vpop.f32.mrf.mxu1 }
 0x587   : > { %v8205_v13 = vadd.f32 %v8141_v25, %v7755_v5  ;;  %v8033_v5 = vshrl.u32 %v16228_v39, 16  ;;  %v8037_v25 = vshll.u32 %v7891_v0, 16 }
 0x589   : > { %v8241_v60 = vadd.f32 %v14979_v22, %v8205_v13  ;;  %v16229_v13 = vld [vmem:[#allocation10_spill] sm:$0xff]  ;;  %v8039_v20 = vrot.slane %v8037_v25, 1  ;;  %v10560_v25 = vld [vmem:[%s10696_s16 + $0x88] sm:$0xff] }
 0x58a   : > { %v8035_v12 = vor.u32 %v8033_v5, %v16229_v13 }
 0x58b   : > { %v8273_v27 = vadd.f32 %v10554_v3, %v8241_v60  ;;  %v6959_v19 = vpop.f32.mrf.mxu2 }
 0x58c   : > { %v8040_v3 = vsel %vm2012_vm6, %v8035_v12, %v8039_v20 }
 0x58d   : > { %8305 = vst.msk [vmem:[%s14989_s17 + $0x58] sm:$0xff] %vm1042_vm2, %v8273_v27  ;;  %v7477_v27 = vadd.f32 %v7419_v46, %v7007_v8  ;;  %v7429_v47 = vpop.f32.mrf.mxu3 }
 0x58e   : > { %v8144_v40 = vpop.f32.mrf.mxu1 }
 0x58f   : > { %v8206_v32 = vadd.f32 %v8144_v40, %v7756_v30  ;;  %v7709_v30 = vpop.f32.mrf.mxu0  ;;  %v10557_v40 = vld [vmem:[%s10696_s16 + $0x70] sm:$0xff]  ;;  %v7759_v45 = vadd.f32 %v7701_v35, %v7477_v27  ;;  %v7009_v35 = vadd.f32 %v6954_v28, %v14864_v29 }
 0x591   : > { %v8242_v31 = vadd.f32 %v14979_v22, %v8206_v32  ;;  %8183 = vmatmul.bf16.gmra.mxu1 %v16227_v1  ;;  %v7479_v33 = vadd.f32 %v7424_v36, %v7009_v35 }
 0x593   : > { %v8274_v41 = vadd.f32 %v10555_v10, %v8242_v31  ;;  %v10558_v31 = vld [vmem:[%s10696_s16 + $0x78] sm:$0xff]  ;;  %v7760_v10 = vadd.f32 %v7704_v51, %v7478_v48  ;;  %v7010_v51 = vadd.f32 %v6957_v63, %v14872_v11 }
 0x595   : > { %8306 = vst.msk [vmem:[%s14989_s17 + $0x60] sm:$0xff] %vm1042_vm2, %v8274_v41  ;;  %v6962_v41 = vpop.f32.mrf.mxu2  ;;  %v7432_v0 = vpop.f32.mrf.mxu3  ;;  %v7480_v29 = vadd.f32 %v7427_v54, %v7010_v51 }
 0x596   : > { %v8146_v24 = vpop.f32.mrf.mxu1  ;;  %v7012_v27 = vadd.f32 %v6962_v41, %v14891_v7 }
 0x597   : > { %v8207_v55 = vadd.f32 %v8146_v24, %v7757_v49  ;;  %v7711_v38 = vpop.f32.mrf.mxu0 }
 0x599   : > { %v8243_v59 = vadd.f32 %v14979_v22, %v8207_v55  ;;  %v7761_v55 = vadd.f32 %v7706_v16, %v7479_v33  ;;  %v7011_v16 = vadd.f32 %v6959_v19, %v14883_v62  ;;  %v7482_v62 = vadd.f32 %v7432_v0, %v7012_v27 }
 0x59b   : > { %v8275_v43 = vadd.f32 %v10556_v42, %v8243_v59  ;;  %v7481_v11 = vadd.f32 %v7429_v47, %v7011_v16 }
 0x59d   : > { %8307 = vst.msk [vmem:[%s14989_s17 + $0x68] sm:$0xff] %vm1042_vm2, %v8275_v43  ;;  %v6964_v5 = vpop.f32.mrf.mxu2  ;;  %v7434_v36 = vpop.f32.mrf.mxu3  ;;  %v7762_v43 = vadd.f32 %v7709_v30, %v7480_v29 }
 0x59e   : > { %v8149_v37 = vpop.f32.mrf.mxu1 }
 0x59f   : > { %v8208_v60 = vadd.f32 %v8149_v37, %v7758_v17  ;;  %v7714_v23 = vpop.f32.mrf.mxu0  ;;  %v10561_v37 = vld [vmem:[%s10696_s16 + $0x90] sm:$0xff] }
 0x5a0   : > { %v7764_v47 = vadd.f32 %v7714_v23, %v7482_v62 }
 0x5a1   : > { %v8244_v21 = vadd.f32 %v14979_v22, %v8208_v60  ;;  %8188 = vmatmul.bf16.gmra.mxu1 %v8040_v3  ;;  %v7763_v60 = vadd.f32 %v7711_v38, %v7481_v11  ;;  %v10566_v11 = vld [vmem:[%s10696_s16 + $0xb8] sm:$0xff] }
 0x5a3   : > { %v8276_v26 = vadd.f32 %v10557_v40, %v8244_v21 }
 0x5a5   : > { %8308 = vst.msk [vmem:[%s14989_s17 + $0x70] sm:$0xff] %vm1042_vm2, %v8276_v26  ;;  %v6967_v54 = vpop.f32.mrf.mxu2  ;;  %v7437_v8 = vpop.f32.mrf.mxu3  ;;  %v10562_v26 = vld [vmem:[%s10696_s16 + $0x98] sm:$0xff] }
 0x5a6   : > { %v8151_v32 = vpop.f32.mrf.mxu1  ;;  %v7014_v35 = vadd.f32 %v6967_v54, %v14906_v57 }
 0x5a7   : > { %v8209_v50 = vadd.f32 %v8151_v32, %v7759_v45  ;;  %v7716_v17 = vpop.f32.mrf.mxu0 }
 0x5a9   : > { %v8245_v46 = vadd.f32 %v14979_v22, %v8209_v50  ;;  %v7013_v50 = vadd.f32 %v6964_v5, %v14901_v52  ;;  %v7484_v52 = vadd.f32 %v7437_v8, %v7014_v35 }
 0x5ab   : > { %v8277_v1 = vadd.f32 %v10558_v31, %v8245_v46  ;;  %v7483_v7 = vadd.f32 %v7434_v36, %v7013_v50  ;;  %v10563_v31 = vld [vmem:[%s10696_s16 + $0xa0] sm:$0xff] }
 0x5ad   : > { %8309 = vst.msk [vmem:[%s14989_s17 + $0x78] sm:$0xff] %vm1042_vm2, %v8277_v1  ;;  %v6969_v45 = vpop.f32.mrf.mxu2  ;;  %v7439_v32 = vpop.f32.mrf.mxu3 }
 0x5ae   : > { %v8154_v49 = vpop.f32.mrf.mxu1 }
 0x5af   : > { %v8210_v24 = vadd.f32 %v8154_v49, %v7760_v10  ;;  %v7719_v40 = vpop.f32.mrf.mxu0  ;;  %v7765_v10 = vadd.f32 %v7716_v17, %v7483_v7 }
 0x5b1   : > { %v8246_v6 = vadd.f32 %v14979_v22, %v8210_v24 }
 0x5b3   : > { %v8278_v61 = vadd.f32 %v10559_v15, %v8246_v6  ;;  %v10564_v6 = vld [vmem:[%s10696_s16 + $0xa8] sm:$0xff] }
 0x5b5   : > { %8310 = vst.msk [vmem:[%s14989_s17 + $0x80] sm:$0xff] %vm1042_vm2, %v8278_v61  ;;  %v6972_v41 = vpop.f32.mrf.mxu2  ;;  %v7442_v0 = vpop.f32.mrf.mxu3  ;;  %v7766_v61 = vadd.f32 %v7719_v40, %v7484_v52 }
 0x5b6   : > { %v8156_v59 = vpop.f32.mrf.mxu1 }
 0x5b7   : > { %v8211_v39 = vadd.f32 %v8156_v59, %v7761_v55  ;;  %v7721_v38 = vpop.f32.mrf.mxu0  ;;  %v7015_v59 = vadd.f32 %v6969_v45, %v14921_v56 }
 0x5b9   : > { %v8247_v28 = vadd.f32 %v14979_v22, %v8211_v39  ;;  %v7485_v57 = vadd.f32 %v7439_v32, %v7015_v59 }
 0x5bb   : > { %v8279_v42 = vadd.f32 %v10560_v25, %v8247_v28  ;;  %v10565_v28 = vld [vmem:[%s10696_s16 + $0xb0] sm:$0xff]  ;;  %v7767_v25 = vadd.f32 %v7721_v38, %v7485_v57 }
 0x5bd   : > { %8311 = vst.msk [vmem:[%s14989_s17 + $0x88] sm:$0xff] %vm1042_vm2, %v8279_v42  ;;  %v6974_v39 = vpop.f32.mrf.mxu2  ;;  %v7444_v29 = vpop.f32.mrf.mxu3 }
 0x5be   : > { %v8159_v13 = vpop.f32.mrf.mxu1  ;;  %v7017_v8 = vadd.f32 %v6974_v39, %v14935_v44 }
 0x5bf   : > { %v8212_v12 = vadd.f32 %v8159_v13, %v7762_v43  ;;  %v7724_v55 = vpop.f32.mrf.mxu0  ;;  %v7016_v43 = vadd.f32 %v6972_v41, %v14926_v2 }
 0x5c0   : > { %v7487_v2 = vadd.f32 %v7444_v29, %v7017_v8 }
 0x5c1   : > { %v8248_v63 = vadd.f32 %v14979_v22, %v8212_v12  ;;  %v7486_v56 = vadd.f32 %v7442_v0, %v7016_v43 }
 0x5c3   : > { %v8280_v20 = vadd.f32 %v10561_v37, %v8248_v63  ;;  %v7768_v37 = vadd.f32 %v7724_v55, %v7486_v56 }
 0x5c5   : > { %8312 = vst.msk [vmem:[%s14989_s17 + $0x90] sm:$0xff] %vm1042_vm2, %v8280_v20  ;;  %v6977_v17 = vpop.f32.mrf.mxu2  ;;  %v7447_v54 = vpop.f32.mrf.mxu3 }
 0x5c6   : > { %v8161_v3 = vpop.f32.mrf.mxu1  ;;  %v7018_v45 = vadd.f32 %v6977_v17, %v14942_v18 }
 0x5c7   : > { %v8213_v21 = vadd.f32 %v8161_v3, %v7763_v60  ;;  %v7726_v16 = vpop.f32.mrf.mxu0 }
 0x5c8   : > { %v7769_v40 = vadd.f32 %v7726_v16, %v7487_v2  ;;  %v7488_v44 = vadd.f32 %v7447_v54, %v7018_v45 }
 0x5c9   : > { %v8249_v30 = vadd.f32 %v14979_v22, %v8213_v21  ;;  %v10567_v21 = vld [vmem:[%s10696_s16 + $0xc0] sm:$0xff] }
 0x5cb   : > { %v8281_v19 = vadd.f32 %v10562_v26, %v8249_v30 }
 0x5cd   : > { %8313 = vst.msk [vmem:[%s14989_s17 + $0x98] sm:$0xff] %vm1042_vm2, %v8281_v19  ;;  %v6979_v30 = vpop.f32.mrf.mxu2  ;;  %v7449_v26 = vpop.f32.mrf.mxu3 }
 0x5ce   : > { %v8164_v4 = vpop.f32.mrf.mxu1 }
 0x5cf   : > { %v8214_v48 = vadd.f32 %v8164_v4, %v7764_v47  ;;  %v7729_v27 = vpop.f32.mrf.mxu0  ;;  %v10568_v4 = vld [vmem:[%s10696_s16 + $0xc8] sm:$0xff] }
 0x5d0   : > { %v7770_v7 = vadd.f32 %v7729_v27, %v7488_v44 }
 0x5d1   : > { %v8250_v46 = vadd.f32 %v14979_v22, %v8214_v48 }
 0x5d3   : > { %v8282_v1 = vadd.f32 %v10563_v31, %v8250_v46 }
 0x5d5   : > { %8314 = vst.msk [vmem:[%s14989_s17 + $0xa0] sm:$0xff] %vm1042_vm2, %v8282_v1  ;;  %v6982_v46 = vpop.f32.mrf.mxu2  ;;  %v7019_v1 = vadd.f32 %v6979_v30, %v14949_v9 }
 0x5d6   : > { %v8166_v49 = vpop.f32.mrf.mxu1 }
 0x5d7   : > { %v8215_v24 = vadd.f32 %v8166_v49, %v7765_v10  ;;  %v7731_v48 = vpop.f32.mrf.mxu0  ;;  %v7452_v10 = vpop.f32.mrf.mxu3  ;;  %v7489_v18 = vadd.f32 %v7449_v26, %v7019_v1  ;;  %v10569_v49 = vld [vmem:[%s10696_s16 + $0xd0] sm:$0xff] }
 0x5d9   : > { %v8251_v33 = vadd.f32 %v14979_v22, %v8215_v24  ;;  %v7771_v24 = vadd.f32 %v7731_v48, %v7489_v18 }
 0x5db   : > { %v8283_v15 = vadd.f32 %v10564_v6, %v8251_v33  ;;  %v7020_v33 = vadd.f32 %v6982_v46, %v14954_v53 }
 0x5dd   : > { %8315 = vst.msk [vmem:[%s14989_s17 + $0xa8] sm:$0xff] %vm1042_vm2, %v8283_v15  ;;  %v6984_v15 = vpop.f32.mrf.mxu2  ;;  %v7490_v9 = vadd.f32 %v7452_v10, %v7020_v33 }
 0x5de   : > { %v8169_v23 = vpop.f32.mrf.mxu1  ;;  %v7021_v57 = vadd.f32 %v6984_v15, %v14961_v14 }
 0x5df   : > { %v8216_v51 = vadd.f32 %v8169_v23, %v7766_v61  ;;  %v7734_v0 = vpop.f32.mrf.mxu0  ;;  %v7454_v55 = vpop.f32.mrf.mxu3  ;;  %v10570_v23 = vld [vmem:[%s10696_s16 + $0xd8] sm:$0xff] }
 0x5e0   : > { %v7491_v53 = vadd.f32 %v7454_v55, %v7021_v57 }
 0x5e1   : > { %v8252_v5 = vadd.f32 %v14979_v22, %v8216_v51  ;;  %v7772_v51 = vadd.f32 %v7734_v0, %v7490_v9 }
 0x5e3   : > { %v8284_v36 = vadd.f32 %v10565_v28, %v8252_v5 }
 0x5e5   : > { %8316 = vst.msk [vmem:[%s14989_s17 + $0xb0] sm:$0xff] %vm1042_vm2, %v8284_v36  ;;  %v6987_v36 = vpop.f32.mrf.mxu2 }
 0x5e6   : > { %v8171_v42 = vpop.f32.mrf.mxu1  ;;  %v7022_v56 = vadd.f32 %v6987_v36, %v14965_v58 }
 0x5e7   : > { %v8217_v13 = vadd.f32 %v8171_v42, %v7767_v25  ;;  %v7736_v29 = vpop.f32.mrf.mxu0  ;;  %v10571_v25 = vld [vmem:[%s10696_s16 + $0xe0] sm:$0xff]  ;;  %v7457_v43 = vpop.f32.mrf.mxu3 }
 0x5e8   : > { %v7492_v17 = vadd.f32 %v7457_v43, %v7022_v56 }
 0x5e9   : > { %v8253_v12 = vadd.f32 %v14979_v22, %v8217_v13  ;;  %v7773_v13 = vadd.f32 %v7736_v29, %v7491_v53 }
 0x5eb   : > { %v8285_v63 = vadd.f32 %v10566_v11, %v8253_v12 }
 0x5ed   : > { %8317 = vst.msk [vmem:[%s14989_s17 + $0xb8] sm:$0xff] %vm1042_vm2, %v8285_v63  ;;  %v10572_v63 = vld [vmem:[%s10696_s16 + $0xe8] sm:$0xff] }
 0x5ee   : > { %v8174_v20 = vpop.f32.mrf.mxu1 }
 0x5ef   : > { %v8218_v60 = vadd.f32 %v8174_v20, %v7768_v37  ;;  %v7739_v14 = vpop.f32.mrf.mxu0  ;;  %v6989_v37 = vpop.f32.mrf.mxu2 }
 0x5f0   : > { %v7774_v20 = vadd.f32 %v7739_v14, %v7492_v17  ;;  %v7459_v8 = vpop.f32.mrf.mxu3  ;;  %v7023_v2 = vadd.f32 %v6989_v37, %v14972_v34 }
 0x5f1   : > { %v8254_v3 = vadd.f32 %v14979_v22, %v8218_v60 }
 0x5f3   : > { %v8286_v62 = vadd.f32 %v10567_v21, %v8254_v3  ;;  %v7493_v3 = vadd.f32 %v7459_v8, %v7023_v2 }
 0x5f5   : > { %8318 = vst.msk [vmem:[%s14989_s17 + $0xc0] sm:$0xff] %vm1042_vm2, %v8286_v62  ;;  %v10573_v62 = vld [vmem:[%s10696_s16 + $0xf0] sm:$0xff] }
 0x5f6   : > { %v8176_v19 = vpop.f32.mrf.mxu1 }
 0x5f7   : > { %v8219_v47 = vadd.f32 %v8176_v19, %v7769_v40  ;;  %v7741_v21 = vpop.f32.mrf.mxu0 }
 0x5f8   : > { %v7775_v40 = vadd.f32 %v7741_v21, %v7493_v3 }
 0x5f9   : > { %v8255_v32 = vadd.f32 %v14979_v22, %v8219_v47  ;;  %v10574_v47 = vld [vmem:[%s10696_s16 + $0xf8] sm:$0xff] }
 0x5fb   : > { %v8287_v50 = vadd.f32 %v10568_v4, %v8255_v32 }
 0x5fd   : > { %8319 = vst.msk [vmem:[%s14989_s17 + $0xc8] sm:$0xff] %vm1042_vm2, %v8287_v50 }
 0x5fe   : > { %v8179_v31 = vpop.f32.mrf.mxu1 }
 0x5ff   : > { %v8220_v38 = vadd.f32 %v8179_v31, %v7770_v7 }
 0x601   : > { %v8256_v41 = vadd.f32 %v14979_v22, %v8220_v38 }
 0x603   : > { %v8288_v35 = vadd.f32 %v10569_v49, %v8256_v41 }
 0x605   : > { %8320 = vst.msk [vmem:[%s14989_s17 + $0xd0] sm:$0xff] %vm1042_vm2, %v8288_v35 }
 0x606   : > { %v8181_v52 = vpop.f32.mrf.mxu1 }
 0x607   : > { %v8221_v6 = vadd.f32 %v8181_v52, %v7771_v24 }
 0x609   : > { %v8257_v61 = vadd.f32 %v14979_v22, %v8221_v6 }
 0x60b   : > { %v8289_v59 = vadd.f32 %v10570_v23, %v8257_v61 }
 0x60d   : > { %8321 = vst.msk [vmem:[%s14989_s17 + $0xd8] sm:$0xff] %vm1042_vm2, %v8289_v59 }
 0x60e   : > { %v8184_v39 = vpop.f32.mrf.mxu1 }
 0x60f   : > { %v8222_v5 = vadd.f32 %v8184_v39, %v7772_v51 }
 0x611   : > { %v8258_v28 = vadd.f32 %v14979_v22, %v8222_v5 }
 0x613   : > { %v8290_v42 = vadd.f32 %v10571_v25, %v8258_v28 }
 0x615   : > { %8322 = vst.msk [vmem:[%s14989_s17 + $0xe0] sm:$0xff] %vm1042_vm2, %v8290_v42 }
 0x616   : > { %v8186_v16 = vpop.f32.mrf.mxu1 }
 0x617   : > { %v8223_v12 = vadd.f32 %v8186_v16, %v7773_v13 }
 0x619   : > { %v8259_v11 = vadd.f32 %v14979_v22, %v8223_v12 }
 0x61b   : > { %v8291_v54 = vadd.f32 %v10572_v63, %v8259_v11 }
 0x61d   : > { %8323 = vst.msk [vmem:[%s14989_s17 + $0xe8] sm:$0xff] %vm1042_vm2, %v8291_v54 }
 0x61e   : > { %v8189_v60 = vpop.f32.mrf.mxu1 }
 0x61f   : > { %v8224_v58 = vadd.f32 %v8189_v60, %v7774_v20 }
 0x621   : > { %v8260_v27 = vadd.f32 %v14979_v22, %v8224_v58 }
 0x623   : > { %v8292_v30 = vadd.f32 %v10573_v62, %v8260_v27 }
 0x625   : > { %8324 = vst.msk [vmem:[%s14989_s17 + $0xf0] sm:$0xff] %vm1042_vm2, %v8292_v30 }
 0x626   : > { %v8191_v26 = vpop.f32.mrf.mxu1 }
 0x627   : > { %v8225_v19 = vadd.f32 %v8191_v26, %v7775_v40 }
 0x629   : > { %v8261_v45 = vadd.f32 %v14979_v22, %v8225_v19 }
 0x62b   : > { %v8293_v44 = vadd.f32 %v10574_v47, %v8261_v45 }
 0x62d   : > { %8325 = vst.msk [vmem:[%s14989_s17 + $0xf8] sm:$0xff] %vm1042_vm2, %v8293_v44 }
 0x62e PF: > { %s16_s21 = sadd.s32 1, %s10581_s21  }
 0x62f   : > { %p13_p4 = scmp.ge.s32.totalorder %s16_s21, 4  }
 0x631   :  { %15 = sbr.rel (!%p13_p4) target bundleno = 1 (0x1), region = 90 }

</bundles_post_ra>
